<compile_context>
chip_gen: v7x
topology: tpu7x:2x2x1
jax: 0.10.0
libtpu: 0.0.40
codegen_flags: <defaults>
</compile_context>

<pallas_src>
import functools

import jax
import jax.numpy as jnp
from jax import lax
from jax.experimental import pallas as pl
from jax.experimental.pallas import tpu as pltpu

NEG_SLOPE = 0.01  # nn.LeakyReLU() default

# (Cin, Cout) per conv layer; kernel is always 3x3 / pad 1, pool 2x2 / stride 2.
LAYER_CHANNELS = ((3, 32), (32, 64), (64, 32))


def _write_padded(pad_ref, x):
    """Write x into the interior of pad_ref; zero only the 1-wide halo ring."""
    nb, hp, wp, c = pad_ref.shape
    h, w = hp - 2, wp - 2
    zrow = jnp.zeros((nb, 1, wp, c), jnp.float32)
    zcol = jnp.zeros((nb, h, 1, c), jnp.float32)
    pad_ref[:, 0:1, :, :] = zrow
    pad_ref[:, h + 1:h + 2, :, :] = zrow
    pad_ref[:, 1:h + 1, 0:1, :] = zcol
    pad_ref[:, 1:h + 1, w + 1:w + 2, :] = zcol
    pad_ref[:, 1:h + 1, 1:w + 1, :] = x


def _conv3x3_lrelu_pool(pad_ref, w_ref, b_ref):
    """conv3x3(pad=1) -> LeakyReLU -> maxpool2x2 on a halo-padded VMEM scratch.

    The conv is 9 accumulated (M, Cin) @ (Cin, Cout) MXU matmuls (one per tap):
    no im2col lane concatenation, at most one shifted slab live at a time.
    """
    nb, hp, wp, cin = pad_ref.shape
    h, w = hp - 2, wp - 2
    cout = w_ref.shape[2]
    m = nb * h * w

    acc = None
    for t, (dy, dx) in enumerate((dy, dx) for dy in range(3) for dx in range(3)):
        slab = pad_ref[:, dy:dy + h, dx:dx + w, :].reshape(m, cin)
        part = jnp.dot(slab, w_ref[t], preferred_element_type=jnp.float32)
        acc = part if acc is None else acc + part

    acc = acc + b_ref[...]                                  # (m, cout) + (1, cout)
    acc = jnp.where(acc >= 0.0, acc, NEG_SLOPE * acc)       # LeakyReLU

    # 2x2 / stride-2 max pool.
    y = acc.reshape(nb * (h // 2), 2, w // 2, 2, cout)
    y = jnp.maximum(y[:, 0], y[:, 1])                       # pool H pairs
    y = jnp.maximum(y[:, :, 0], y[:, :, 1])                 # pool W pairs
    return y.reshape(nb, h // 2, w // 2, cout)


def _fused_kernel(x_ref, w1_ref, b1_ref, w2_ref, b2_ref, w3_ref, b3_ref,
                  o_ref, pad1, pad2, pad3):
    """Whole ClientTrashNet feature extractor for one batch block."""
    _write_padded(pad1, x_ref[...])
    y1 = _conv3x3_lrelu_pool(pad1, w1_ref, b1_ref)          # (nb, H/2, W/2, 32)

    _write_padded(pad2, y1)
    y2 = _conv3x3_lrelu_pool(pad2, w2_ref, b2_ref)          # (nb, H/4, W/4, 64)

    _write_padded(pad3, y2)
    y3 = _conv3x3_lrelu_pool(pad3, w3_ref, b3_ref)          # (nb, H/8, W/8, 32)

    # Flatten in torch NCHW order (c, h, w) in-kernel so the output is the final
    # feature vector: a lane-dense (nb, 128) slab -> full-lane stores.
    nb, ho, wo, cout = y3.shape
    flat = jnp.swapaxes(y3.reshape(nb, ho * wo, cout), 1, 2).reshape(nb, cout * ho * wo)
    o_ref[...] = flat.astype(o_ref.dtype)


def _pick_num_blocks(n):
    # Fold the whole batch into one grid step when it is small (batch just adds
    # M rows to the matmuls; extra grid steps are pure overhead on 1-TC v5e/v6e).
    # Keep a 2-wide "parallel" axis for larger even batches so a dual-TensorCore
    # chip (v7x) splits the images across cores.
    # TODO(synk): query the chip's TensorCore count so v7x also splits n == 2.
    return 2 if (n >= 4 and n % 2 == 0) else 1


@functools.partial(jax.jit, static_argnames=("num_blocks",))
def _forward_impl(x_nchw, params, num_blocks):
    n, c, h, w = x_nchw.shape
    nb = n // num_blocks
    x = jnp.transpose(x_nchw, (0, 2, 3, 1))                 # NCHW -> NHWC (C on lanes)

    flat_args = []
    in_specs = [pl.BlockSpec((nb, h, w, c), lambda g: (g, 0, 0, 0))]
    for (w_hwio, b), (cin, cout) in zip(params, LAYER_CHANNELS):
        flat_args.append(w_hwio.reshape(9, cin, cout))       # tap-major (dy, dx)
        flat_args.append(b.reshape(1, cout))
        in_specs.append(pl.BlockSpec((9, cin, cout), lambda g: (0, 0, 0)))
        in_specs.append(pl.BlockSpec((1, cout), lambda g: (0, 0)))

    ho, wo = h // 8, w // 8
    cout_last = LAYER_CHANNELS[-1][1]
    feat = cout_last * ho * wo                               # 128 for a 16x16 input

    return pl.pallas_call(
        _fused_kernel,
        out_shape=jax.ShapeDtypeStruct((n, feat), jnp.float32),
        grid_spec=pltpu.PrefetchScalarGridSpec(
            num_scalar_prefetch=0,
            grid=(num_blocks,),
            in_specs=in_specs,
            out_specs=pl.BlockSpec((nb, feat), lambda g: (g, 0)),
            scratch_shapes=[
                pltpu.VMEM((nb, h + 2, w + 2, LAYER_CHANNELS[0][0]), jnp.float32),
                pltpu.VMEM((nb, h // 2 + 2, w // 2 + 2, LAYER_CHANNELS[1][0]), jnp.float32),
                pltpu.VMEM((nb, h // 4 + 2, w // 4 + 2, LAYER_CHANNELS[2][0]), jnp.float32),
            ],
        ),
        compiler_params=pltpu.CompilerParams(
            dimension_semantics=("parallel",)),
    )(x, *flat_args)


def client_trashnet_forward(x_nchw, params):
    """Matches ClientTrashNet.forward: 3x (conv3x3 -> LeakyReLU -> maxpool2x2) + flatten."""
    return _forward_impl(x_nchw, params, num_blocks=_pick_num_blocks(x_nchw.shape[0]))


def init_params(key):
    """Deterministic synthetic params (PyTorch Conv2d-style init), stored in HWIO."""
    params = []
    for i, (cin, cout) in enumerate(LAYER_CHANNELS):
        kw, kb = jax.random.split(jax.random.fold_in(key, i))
        fan_in = cin * 3 * 3
        bound = 1.0 / jnp.sqrt(fan_in)
        w = jax.random.uniform(kw, (3, 3, cin, cout), jnp.float32, -bound, bound)
        b = jax.random.uniform(kb, (cout,), jnp.float32, -bound, bound)
        params.append((w, b))
    return params


def reference_forward(x_nchw, params):
    """Plain-JAX reference (correctness check only)."""
    x = x_nchw
    for w_hwio, b in params:
        y = lax.conv_general_dilated(
            x, w_hwio, window_strides=(1, 1), padding="SAME",
            dimension_numbers=("NCHW", "HWIO", "NCHW"),
            precision=lax.Precision.HIGHEST,
        )
        y = y + b[None, :, None, None]
        y = jnp.where(y >= 0.0, y, NEG_SLOPE * y)
        n, c, h, w_ = y.shape
        y = y.reshape(n, c, h // 2, 2, w_ // 2, 2).max(axis=(3, 5))
        x = y
    return x.reshape(x.shape[0], -1)


if __name__ == "__main__":
    key = jax.random.PRNGKey(0)
    k_x, k_p = jax.random.split(key)

    # Small input consistent with the module: batch=2, 3 channels, 16x16.
    x = jax.random.normal(k_x, (2, 3, 16, 16), dtype=jnp.float32)
    params = init_params(k_p)

    out = jax.block_until_ready(client_trashnet_forward(x, params))
    ref = reference_forward(x, params)

    assert out.shape == (2, 32 * 2 * 2), out.shape  # 3 pools: 16 -> 8 -> 4 -> 2
    max_err = float(jnp.max(jnp.abs(out - ref)))
    assert jnp.allclose(out, ref, atol=1e-4, rtol=1e-4), max_err
    print("KERNEL_OK")
</pallas_src>

<mosaic_0001>
module attributes {stable_mosaic.version = 11 : i64} {
  func.func @_fused_kernel(%arg0: i32, %arg1: memref<2x16x16x3xf32, #tpu.memory_space<vmem>>, %arg2: memref<9x3x32xf32, #tpu.memory_space<vmem>>, %arg3: memref<1x32xf32, #tpu.memory_space<vmem>>, %arg4: memref<9x32x64xf32, #tpu.memory_space<vmem>>, %arg5: memref<1x64xf32, #tpu.memory_space<vmem>>, %arg6: memref<9x64x32xf32, #tpu.memory_space<vmem>>, %arg7: memref<1x32xf32, #tpu.memory_space<vmem>>, %arg8: memref<2x128xf32, #tpu.memory_space<vmem>>, %arg9: memref<2x18x18x3xf32, #tpu.memory_space<vmem>>, %arg10: memref<2x10x10x32xf32, #tpu.memory_space<vmem>>, %arg11: memref<2x6x6x64xf32, #tpu.memory_space<vmem>>) attributes {dimension_semantics = [#tpu.dimension_semantics<parallel>], iteration_bounds = array<i64: 1>, scalar_prefetch = 0 : i64, scratch_operands = 3 : i64, tpu.core_type = #tpu.core_type<tc>, window_params = [{transform_indices = @transform_0, window_bounds = array<i64: 2, 16, 16, 3>}, {pipeline_mode = #tpu.pipeline_mode<synchronous>, transform_indices = @transform_1, window_bounds = array<i64: 9, 3, 32>}, {pipeline_mode = #tpu.pipeline_mode<synchronous>, transform_indices = @transform_2, window_bounds = array<i64: 1, 32>}, {pipeline_mode = #tpu.pipeline_mode<synchronous>, transform_indices = @transform_3, window_bounds = array<i64: 9, 32, 64>}, {pipeline_mode = #tpu.pipeline_mode<synchronous>, transform_indices = @transform_4, window_bounds = array<i64: 1, 64>}, {pipeline_mode = #tpu.pipeline_mode<synchronous>, transform_indices = @transform_5, window_bounds = array<i64: 9, 64, 32>}, {pipeline_mode = #tpu.pipeline_mode<synchronous>, transform_indices = @transform_6, window_bounds = array<i64: 1, 32>}, {transform_indices = @transform_7, window_bounds = array<i64: 2, 128>}]} {
    %c0 = arith.constant 0 : index
    %c0_0 = arith.constant 0 : index
    %c0_1 = arith.constant 0 : index
    %c0_2 = arith.constant 0 : index
    %0 = vector.load %arg1[%c0, %c0_0, %c0_1, %c0_2] : memref<2x16x16x3xf32, #tpu.memory_space<vmem>>, vector<2x16x16x3xf32>
    %cst = arith.constant 0.000000e+00 : f32
    %1 = vector.broadcast %cst : f32 to vector<2x1x18x3xf32>
    %cst_3 = arith.constant 0.000000e+00 : f32
    %2 = vector.broadcast %cst_3 : f32 to vector<2x16x1x3xf32>
    %c0_4 = arith.constant 0 : index
    %c0_5 = arith.constant 0 : index
    %c0_6 = arith.constant 0 : index
    %c0_7 = arith.constant 0 : index
    %3 = vector.load %arg9[%c0_4, %c0_5, %c0_6, %c0_7] : memref<2x18x18x3xf32, #tpu.memory_space<vmem>>, vector<2x1x18x3xf32>
    tpu.vector_store %arg9[%c0_4, %c0_5, %c0_6, %c0_7], %1 {strides = array<i32>} : memref<2x18x18x3xf32, #tpu.memory_space<vmem>>, vector<2x1x18x3xf32>,
    %c0_8 = arith.constant 0 : index
    %c17 = arith.constant 17 : index
    %c0_9 = arith.constant 0 : index
    %c0_10 = arith.constant 0 : index
    %4 = vector.load %arg9[%c0_8, %c17, %c0_9, %c0_10] : memref<2x18x18x3xf32, #tpu.memory_space<vmem>>, vector<2x1x18x3xf32>
    tpu.vector_store %arg9[%c0_8, %c17, %c0_9, %c0_10], %1 {strides = array<i32>} : memref<2x18x18x3xf32, #tpu.memory_space<vmem>>, vector<2x1x18x3xf32>,
    %c0_11 = arith.constant 0 : index
    %c1 = arith.constant 1 : index
    %c0_12 = arith.constant 0 : index
    %c0_13 = arith.constant 0 : index
    %5 = vector.load %arg9[%c0_11, %c1, %c0_12, %c0_13] : memref<2x18x18x3xf32, #tpu.memory_space<vmem>>, vector<2x16x1x3xf32>
    tpu.vector_store %arg9[%c0_11, %c1, %c0_12, %c0_13], %2 {strides = array<i32>} : memref<2x18x18x3xf32, #tpu.memory_space<vmem>>, vector<2x16x1x3xf32>,
    %c0_14 = arith.constant 0 : index
    %c1_15 = arith.constant 1 : index
    %c17_16 = arith.constant 17 : index
    %c0_17 = arith.constant 0 : index
    %6 = vector.load %arg9[%c0_14, %c1_15, %c17_16, %c0_17] : memref<2x18x18x3xf32, #tpu.memory_space<vmem>>, vector<2x16x1x3xf32>
    tpu.vector_store %arg9[%c0_14, %c1_15, %c17_16, %c0_17], %2 {strides = array<i32>} : memref<2x18x18x3xf32, #tpu.memory_space<vmem>>, vector<2x16x1x3xf32>,
    %c0_18 = arith.constant 0 : index
    %c1_19 = arith.constant 1 : index
    %c1_20 = arith.constant 1 : index
    %c0_21 = arith.constant 0 : index
    %7 = vector.load %arg9[%c0_18, %c1_19, %c1_20, %c0_21] : memref<2x18x18x3xf32, #tpu.memory_space<vmem>>, vector<2x16x16x3xf32>
    tpu.vector_store %arg9[%c0_18, %c1_19, %c1_20, %c0_21], %0 {strides = array<i32>} : memref<2x18x18x3xf32, #tpu.memory_space<vmem>>, vector<2x16x16x3xf32>,
    %c0_22 = arith.constant 0 : index
    %c0_23 = arith.constant 0 : index
    %c0_24 = arith.constant 0 : index
    %c0_25 = arith.constant 0 : index
    %8 = vector.load %arg9[%c0_22, %c0_23, %c0_24, %c0_25] : memref<2x18x18x3xf32, #tpu.memory_space<vmem>>, vector<2x16x16x3xf32>
    %9 = vector.shape_cast %8 : vector<2x16x16x3xf32> to vector<512x3xf32>
    %c0_26 = arith.constant 0 : index
    %c0_27 = arith.constant 0 : index
    %c0_28 = arith.constant 0 : index
    %10 = vector.load %arg2[%c0_26, %c0_27, %c0_28] : memref<9x3x32xf32, #tpu.memory_space<vmem>>, vector<1x3x32xf32>
    %11 = vector.shape_cast %10 : vector<1x3x32xf32> to vector<3x32xf32>
    %cst_29 = arith.constant dense<0.000000e+00> : vector<512x32xf32>
    %12 = tpu.matmul %9, %11, %cst_29 {dimension_numbers = #tpu.dot_dimension_numbers<[1], [0], [0], [1], [0, 0, 1, 1], [], []>} : vector<512x3xf32>, vector<3x32xf32>, vector<512x32xf32> -> vector<512x32xf32>
    %c0_30 = arith.constant 0 : index
    %c0_31 = arith.constant 0 : index
    %c1_32 = arith.constant 1 : index
    %c0_33 = arith.constant 0 : index
    %13 = vector.load %arg9[%c0_30, %c0_31, %c1_32, %c0_33] : memref<2x18x18x3xf32, #tpu.memory_space<vmem>>, vector<2x16x16x3xf32>
    %14 = vector.shape_cast %13 : vector<2x16x16x3xf32> to vector<512x3xf32>
    %c1_34 = arith.constant 1 : index
    %c0_35 = arith.constant 0 : index
    %c0_36 = arith.constant 0 : index
    %15 = vector.load %arg2[%c1_34, %c0_35, %c0_36] : memref<9x3x32xf32, #tpu.memory_space<vmem>>, vector<1x3x32xf32>
    %16 = vector.shape_cast %15 : vector<1x3x32xf32> to vector<3x32xf32>
    %cst_37 = arith.constant dense<0.000000e+00> : vector<512x32xf32>
    %17 = tpu.matmul %14, %16, %cst_37 {dimension_numbers = #tpu.dot_dimension_numbers<[1], [0], [0], [1], [0, 0, 1, 1], [], []>} : vector<512x3xf32>, vector<3x32xf32>, vector<512x32xf32> -> vector<512x32xf32>
    %18 = arith.addf %12, %17 : vector<512x32xf32>
    %c0_38 = arith.constant 0 : index
    %c0_39 = arith.constant 0 : index
    %c2 = arith.constant 2 : index
    %c0_40 = arith.constant 0 : index
    %19 = vector.load %arg9[%c0_38, %c0_39, %c2, %c0_40] : memref<2x18x18x3xf32, #tpu.memory_space<vmem>>, vector<2x16x16x3xf32>
    %20 = vector.shape_cast %19 : vector<2x16x16x3xf32> to vector<512x3xf32>
    %c2_41 = arith.constant 2 : index
    %c0_42 = arith.constant 0 : index
    %c0_43 = arith.constant 0 : index
    %21 = vector.load %arg2[%c2_41, %c0_42, %c0_43] : memref<9x3x32xf32, #tpu.memory_space<vmem>>, vector<1x3x32xf32>
    %22 = vector.shape_cast %21 : vector<1x3x32xf32> to vector<3x32xf32>
    %cst_44 = arith.constant dense<0.000000e+00> : vector<512x32xf32>
    %23 = tpu.matmul %20, %22, %cst_44 {dimension_numbers = #tpu.dot_dimension_numbers<[1], [0], [0], [1], [0, 0, 1, 1], [], []>} : vector<512x3xf32>, vector<3x32xf32>, vector<512x32xf32> -> vector<512x32xf32>
    %24 = arith.addf %18, %23 : vector<512x32xf32>
    %c0_45 = arith.constant 0 : index
    %c1_46 = arith.constant 1 : index
    %c0_47 = arith.constant 0 : index
    %c0_48 = arith.constant 0 : index
    %25 = vector.load %arg9[%c0_45, %c1_46, %c0_47, %c0_48] : memref<2x18x18x3xf32, #tpu.memory_space<vmem>>, vector<2x16x16x3xf32>
    %26 = vector.shape_cast %25 : vector<2x16x16x3xf32> to vector<512x3xf32>
    %c3 = arith.constant 3 : index
    %c0_49 = arith.constant 0 : index
    %c0_50 = arith.constant 0 : index
    %27 = vector.load %arg2[%c3, %c0_49, %c0_50] : memref<9x3x32xf32, #tpu.memory_space<vmem>>, vector<1x3x32xf32>
    %28 = vector.shape_cast %27 : vector<1x3x32xf32> to vector<3x32xf32>
    %cst_51 = arith.constant dense<0.000000e+00> : vector<512x32xf32>
    %29 = tpu.matmul %26, %28, %cst_51 {dimension_numbers = #tpu.dot_dimension_numbers<[1], [0], [0], [1], [0, 0, 1, 1], [], []>} : vector<512x3xf32>, vector<3x32xf32>, vector<512x32xf32> -> vector<512x32xf32>
    %30 = arith.addf %24, %29 : vector<512x32xf32>
    %c0_52 = arith.constant 0 : index
    %c1_53 = arith.constant 1 : index
    %c1_54 = arith.constant 1 : index
    %c0_55 = arith.constant 0 : index
    %31 = vector.load %arg9[%c0_52, %c1_53, %c1_54, %c0_55] : memref<2x18x18x3xf32, #tpu.memory_space<vmem>>, vector<2x16x16x3xf32>
    %32 = vector.shape_cast %31 : vector<2x16x16x3xf32> to vector<512x3xf32>
    %c4 = arith.constant 4 : index
    %c0_56 = arith.constant 0 : index
    %c0_57 = arith.constant 0 : index
    %33 = vector.load %arg2[%c4, %c0_56, %c0_57] : memref<9x3x32xf32, #tpu.memory_space<vmem>>, vector<1x3x32xf32>
    %34 = vector.shape_cast %33 : vector<1x3x32xf32> to vector<3x32xf32>
    %cst_58 = arith.constant dense<0.000000e+00> : vector<512x32xf32>
    %35 = tpu.matmul %32, %34, %cst_58 {dimension_numbers = #tpu.dot_dimension_numbers<[1], [0], [0], [1], [0, 0, 1, 1], [], []>} : vector<512x3xf32>, vector<3x32xf32>, vector<512x32xf32> -> vector<512x32xf32>
    %36 = arith.addf %30, %35 : vector<512x32xf32>
    %c0_59 = arith.constant 0 : index
    %c1_60 = arith.constant 1 : index
    %c2_61 = arith.constant 2 : index
    %c0_62 = arith.constant 0 : index
    %37 = vector.load %arg9[%c0_59, %c1_60, %c2_61, %c0_62] : memref<2x18x18x3xf32, #tpu.memory_space<vmem>>, vector<2x16x16x3xf32>
    %38 = vector.shape_cast %37 : vector<2x16x16x3xf32> to vector<512x3xf32>
    %c5 = arith.constant 5 : index
    %c0_63 = arith.constant 0 : index
    %c0_64 = arith.constant 0 : index
    %39 = vector.load %arg2[%c5, %c0_63, %c0_64] : memref<9x3x32xf32, #tpu.memory_space<vmem>>, vector<1x3x32xf32>
    %40 = vector.shape_cast %39 : vector<1x3x32xf32> to vector<3x32xf32>
    %cst_65 = arith.constant dense<0.000000e+00> : vector<512x32xf32>
    %41 = tpu.matmul %38, %40, %cst_65 {dimension_numbers = #tpu.dot_dimension_numbers<[1], [0], [0], [1], [0, 0, 1, 1], [], []>} : vector<512x3xf32>, vector<3x32xf32>, vector<512x32xf32> -> vector<512x32xf32>
    %42 = arith.addf %36, %41 : vector<512x32xf32>
    %c0_66 = arith.constant 0 : index
    %c2_67 = arith.constant 2 : index
    %c0_68 = arith.constant 0 : index
    %c0_69 = arith.constant 0 : index
    %43 = vector.load %arg9[%c0_66, %c2_67, %c0_68, %c0_69] : memref<2x18x18x3xf32, #tpu.memory_space<vmem>>, vector<2x16x16x3xf32>
    %44 = vector.shape_cast %43 : vector<2x16x16x3xf32> to vector<512x3xf32>
    %c6 = arith.constant 6 : index
    %c0_70 = arith.constant 0 : index
    %c0_71 = arith.constant 0 : index
    %45 = vector.load %arg2[%c6, %c0_70, %c0_71] : memref<9x3x32xf32, #tpu.memory_space<vmem>>, vector<1x3x32xf32>
    %46 = vector.shape_cast %45 : vector<1x3x32xf32> to vector<3x32xf32>
    %cst_72 = arith.constant dense<0.000000e+00> : vector<512x32xf32>
    %47 = tpu.matmul %44, %46, %cst_72 {dimension_numbers = #tpu.dot_dimension_numbers<[1], [0], [0], [1], [0, 0, 1, 1], [], []>} : vector<512x3xf32>, vector<3x32xf32>, vector<512x32xf32> -> vector<512x32xf32>
    %48 = arith.addf %42, %47 : vector<512x32xf32>
    %c0_73 = arith.constant 0 : index
    %c2_74 = arith.constant 2 : index
    %c1_75 = arith.constant 1 : index
    %c0_76 = arith.constant 0 : index
    %49 = vector.load %arg9[%c0_73, %c2_74, %c1_75, %c0_76] : memref<2x18x18x3xf32, #tpu.memory_space<vmem>>, vector<2x16x16x3xf32>
    %50 = vector.shape_cast %49 : vector<2x16x16x3xf32> to vector<512x3xf32>
    %c7 = arith.constant 7 : index
    %c0_77 = arith.constant 0 : index
    %c0_78 = arith.constant 0 : index
    %51 = vector.load %arg2[%c7, %c0_77, %c0_78] : memref<9x3x32xf32, #tpu.memory_space<vmem>>, vector<1x3x32xf32>
    %52 = vector.shape_cast %51 : vector<1x3x32xf32> to vector<3x32xf32>
    %cst_79 = arith.constant dense<0.000000e+00> : vector<512x32xf32>
    %53 = tpu.matmul %50, %52, %cst_79 {dimension_numbers = #tpu.dot_dimension_numbers<[1], [0], [0], [1], [0, 0, 1, 1], [], []>} : vector<512x3xf32>, vector<3x32xf32>, vector<512x32xf32> -> vector<512x32xf32>
    %54 = arith.addf %48, %53 : vector<512x32xf32>
    %c0_80 = arith.constant 0 : index
    %c2_81 = arith.constant 2 : index
    %c2_82 = arith.constant 2 : index
    %c0_83 = arith.constant 0 : index
    %55 = vector.load %arg9[%c0_80, %c2_81, %c2_82, %c0_83] : memref<2x18x18x3xf32, #tpu.memory_space<vmem>>, vector<2x16x16x3xf32>
    %56 = vector.shape_cast %55 : vector<2x16x16x3xf32> to vector<512x3xf32>
    %c8 = arith.constant 8 : index
    %c0_84 = arith.constant 0 : index
    %c0_85 = arith.constant 0 : index
    %57 = vector.load %arg2[%c8, %c0_84, %c0_85] : memref<9x3x32xf32, #tpu.memory_space<vmem>>, vector<1x3x32xf32>
    %58 = vector.shape_cast %57 : vector<1x3x32xf32> to vector<3x32xf32>
    %cst_86 = arith.constant dense<0.000000e+00> : vector<512x32xf32>
    %59 = tpu.matmul %56, %58, %cst_86 {dimension_numbers = #tpu.dot_dimension_numbers<[1], [0], [0], [1], [0, 0, 1, 1], [], []>} : vector<512x3xf32>, vector<3x32xf32>, vector<512x32xf32> -> vector<512x32xf32>
    %60 = arith.addf %54, %59 : vector<512x32xf32>
    %c0_87 = arith.constant 0 : index
    %c0_88 = arith.constant 0 : index
    %61 = vector.load %arg3[%c0_87, %c0_88] : memref<1x32xf32, #tpu.memory_space<vmem>>, vector<1x32xf32>
    %62 = vector.broadcast %61 : vector<1x32xf32> to vector<512x32xf32>
    %63 = arith.addf %60, %62 : vector<512x32xf32>
    %cst_89 = arith.constant 0.000000e+00 : f32
    %64 = vector.broadcast %cst_89 : f32 to vector<512x32xf32>
    %65 = arith.cmpf oge, %63, %64 : vector<512x32xf32>
    %cst_90 = arith.constant 0.00999999977 : f32
    %66 = vector.broadcast %cst_90 : f32 to vector<512x32xf32>
    %67 = arith.mulf %66, %63 : vector<512x32xf32>
    %68 = arith.select %65, %63, %67 : vector<512x32xi1>, vector<512x32xf32>
    %69 = vector.shape_cast %68 : vector<512x32xf32> to vector<16x2x8x2x32xf32>
    %70 = vector.extract_strided_slice %69 {offsets = [0, 0, 0, 0, 0], sizes = [16, 1, 8, 2, 32], strides = [1, 1, 1, 1, 1]} : vector<16x2x8x2x32xf32> to vector<16x1x8x2x32xf32>
    %71 = vector.shape_cast %70 : vector<16x1x8x2x32xf32> to vector<16x8x2x32xf32>
    %72 = vector.extract_strided_slice %69 {offsets = [0, 1, 0, 0, 0], sizes = [16, 1, 8, 2, 32], strides = [1, 1, 1, 1, 1]} : vector<16x2x8x2x32xf32> to vector<16x1x8x2x32xf32>
    %73 = vector.shape_cast %72 : vector<16x1x8x2x32xf32> to vector<16x8x2x32xf32>
    %74 = arith.maximumf %71, %73 : vector<16x8x2x32xf32>
    %75 = vector.extract_strided_slice %74 {offsets = [0, 0, 0, 0], sizes = [16, 8, 1, 32], strides = [1, 1, 1, 1]} : vector<16x8x2x32xf32> to vector<16x8x1x32xf32>
    %76 = vector.shape_cast %75 : vector<16x8x1x32xf32> to vector<16x8x32xf32>
    %77 = vector.extract_strided_slice %74 {offsets = [0, 0, 1, 0], sizes = [16, 8, 1, 32], strides = [1, 1, 1, 1]} : vector<16x8x2x32xf32> to vector<16x8x1x32xf32>
    %78 = vector.shape_cast %77 : vector<16x8x1x32xf32> to vector<16x8x32xf32>
    %79 = arith.maximumf %76, %78 : vector<16x8x32xf32>
    %80 = vector.shape_cast %79 : vector<16x8x32xf32> to vector<2x8x8x32xf32>
    %cst_91 = arith.constant 0.000000e+00 : f32
    %81 = vector.broadcast %cst_91 : f32 to vector<2x1x10x32xf32>
    %cst_92 = arith.constant 0.000000e+00 : f32
    %82 = vector.broadcast %cst_92 : f32 to vector<2x8x1x32xf32>
    %c0_93 = arith.constant 0 : index
    %c0_94 = arith.constant 0 : index
    %c0_95 = arith.constant 0 : index
    %c0_96 = arith.constant 0 : index
    %83 = vector.load %arg10[%c0_93, %c0_94, %c0_95, %c0_96] : memref<2x10x10x32xf32, #tpu.memory_space<vmem>>, vector<2x1x10x32xf32>
    tpu.vector_store %arg10[%c0_93, %c0_94, %c0_95, %c0_96], %81 {strides = array<i32>} : memref<2x10x10x32xf32, #tpu.memory_space<vmem>>, vector<2x1x10x32xf32>,
    %c0_97 = arith.constant 0 : index
    %c9 = arith.constant 9 : index
    %c0_98 = arith.constant 0 : index
    %c0_99 = arith.constant 0 : index
    %84 = vector.load %arg10[%c0_97, %c9, %c0_98, %c0_99] : memref<2x10x10x32xf32, #tpu.memory_space<vmem>>, vector<2x1x10x32xf32>
    tpu.vector_store %arg10[%c0_97, %c9, %c0_98, %c0_99], %81 {strides = array<i32>} : memref<2x10x10x32xf32, #tpu.memory_space<vmem>>, vector<2x1x10x32xf32>,
    %c0_100 = arith.constant 0 : index
    %c1_101 = arith.constant 1 : index
    %c0_102 = arith.constant 0 : index
    %c0_103 = arith.constant 0 : index
    %85 = vector.load %arg10[%c0_100, %c1_101, %c0_102, %c0_103] : memref<2x10x10x32xf32, #tpu.memory_space<vmem>>, vector<2x8x1x32xf32>
    tpu.vector_store %arg10[%c0_100, %c1_101, %c0_102, %c0_103], %82 {strides = array<i32>} : memref<2x10x10x32xf32, #tpu.memory_space<vmem>>, vector<2x8x1x32xf32>,
    %c0_104 = arith.constant 0 : index
    %c1_105 = arith.constant 1 : index
    %c9_106 = arith.constant 9 : index
    %c0_107 = arith.constant 0 : index
    %86 = vector.load %arg10[%c0_104, %c1_105, %c9_106, %c0_107] : memref<2x10x10x32xf32, #tpu.memory_space<vmem>>, vector<2x8x1x32xf32>
    tpu.vector_store %arg10[%c0_104, %c1_105, %c9_106, %c0_107], %82 {strides = array<i32>} : memref<2x10x10x32xf32, #tpu.memory_space<vmem>>, vector<2x8x1x32xf32>,
    %c0_108 = arith.constant 0 : index
    %c1_109 = arith.constant 1 : index
    %c1_110 = arith.constant 1 : index
    %c0_111 = arith.constant 0 : index
    %87 = vector.load %arg10[%c0_108, %c1_109, %c1_110, %c0_111] : memref<2x10x10x32xf32, #tpu.memory_space<vmem>>, vector<2x8x8x32xf32>
    tpu.vector_store %arg10[%c0_108, %c1_109, %c1_110, %c0_111], %80 {strides = array<i32>} : memref<2x10x10x32xf32, #tpu.memory_space<vmem>>, vector<2x8x8x32xf32>,
    %c0_112 = arith.constant 0 : index
    %c0_113 = arith.constant 0 : index
    %c0_114 = arith.constant 0 : index
    %c0_115 = arith.constant 0 : index
    %88 = vector.load %arg10[%c0_112, %c0_113, %c0_114, %c0_115] : memref<2x10x10x32xf32, #tpu.memory_space<vmem>>, vector<2x8x8x32xf32>
    %89 = vector.shape_cast %88 : vector<2x8x8x32xf32> to vector<128x32xf32>
    %c0_116 = arith.constant 0 : index
    %c0_117 = arith.constant 0 : index
    %c0_118 = arith.constant 0 : index
    %90 = vector.load %arg4[%c0_116, %c0_117, %c0_118] : memref<9x32x64xf32, #tpu.memory_space<vmem>>, vector<1x32x64xf32>
    %91 = vector.shape_cast %90 : vector<1x32x64xf32> to vector<32x64xf32>
    %cst_119 = arith.constant dense<0.000000e+00> : vector<128x64xf32>
    %92 = tpu.matmul %89, %91, %cst_119 {dimension_numbers = #tpu.dot_dimension_numbers<[1], [0], [0], [1], [0, 0, 1, 1], [], []>} : vector<128x32xf32>, vector<32x64xf32>, vector<128x64xf32> -> vector<128x64xf32>
    %c0_120 = arith.constant 0 : index
    %c0_121 = arith.constant 0 : index
    %c1_122 = arith.constant 1 : index
    %c0_123 = arith.constant 0 : index
    %93 = vector.load %arg10[%c0_120, %c0_121, %c1_122, %c0_123] : memref<2x10x10x32xf32, #tpu.memory_space<vmem>>, vector<2x8x8x32xf32>
    %94 = vector.shape_cast %93 : vector<2x8x8x32xf32> to vector<128x32xf32>
    %c1_124 = arith.constant 1 : index
    %c0_125 = arith.constant 0 : index
    %c0_126 = arith.constant 0 : index
    %95 = vector.load %arg4[%c1_124, %c0_125, %c0_126] : memref<9x32x64xf32, #tpu.memory_space<vmem>>, vector<1x32x64xf32>
    %96 = vector.shape_cast %95 : vector<1x32x64xf32> to vector<32x64xf32>
    %cst_127 = arith.constant dense<0.000000e+00> : vector<128x64xf32>
    %97 = tpu.matmul %94, %96, %cst_127 {dimension_numbers = #tpu.dot_dimension_numbers<[1], [0], [0], [1], [0, 0, 1, 1], [], []>} : vector<128x32xf32>, vector<32x64xf32>, vector<128x64xf32> -> vector<128x64xf32>
    %98 = arith.addf %92, %97 : vector<128x64xf32>
    %c0_128 = arith.constant 0 : index
    %c0_129 = arith.constant 0 : index
    %c2_130 = arith.constant 2 : index
    %c0_131 = arith.constant 0 : index
    %99 = vector.load %arg10[%c0_128, %c0_129, %c2_130, %c0_131] : memref<2x10x10x32xf32, #tpu.memory_space<vmem>>, vector<2x8x8x32xf32>
    %100 = vector.shape_cast %99 : vector<2x8x8x32xf32> to vector<128x32xf32>
    %c2_132 = arith.constant 2 : index
    %c0_133 = arith.constant 0 : index
    %c0_134 = arith.constant 0 : index
    %101 = vector.load %arg4[%c2_132, %c0_133, %c0_134] : memref<9x32x64xf32, #tpu.memory_space<vmem>>, vector<1x32x64xf32>
    %102 = vector.shape_cast %101 : vector<1x32x64xf32> to vector<32x64xf32>
    %cst_135 = arith.constant dense<0.000000e+00> : vector<128x64xf32>
    %103 = tpu.matmul %100, %102, %cst_135 {dimension_numbers = #tpu.dot_dimension_numbers<[1], [0], [0], [1], [0, 0, 1, 1], [], []>} : vector<128x32xf32>, vector<32x64xf32>, vector<128x64xf32> -> vector<128x64xf32>
    %104 = arith.addf %98, %103 : vector<128x64xf32>
    %c0_136 = arith.constant 0 : index
    %c1_137 = arith.constant 1 : index
    %c0_138 = arith.constant 0 : index
    %c0_139 = arith.constant 0 : index
    %105 = vector.load %arg10[%c0_136, %c1_137, %c0_138, %c0_139] : memref<2x10x10x32xf32, #tpu.memory_space<vmem>>, vector<2x8x8x32xf32>
    %106 = vector.shape_cast %105 : vector<2x8x8x32xf32> to vector<128x32xf32>
    %c3_140 = arith.constant 3 : index
    %c0_141 = arith.constant 0 : index
    %c0_142 = arith.constant 0 : index
    %107 = vector.load %arg4[%c3_140, %c0_141, %c0_142] : memref<9x32x64xf32, #tpu.memory_space<vmem>>, vector<1x32x64xf32>
    %108 = vector.shape_cast %107 : vector<1x32x64xf32> to vector<32x64xf32>
    %cst_143 = arith.constant dense<0.000000e+00> : vector<128x64xf32>
    %109 = tpu.matmul %106, %108, %cst_143 {dimension_numbers = #tpu.dot_dimension_numbers<[1], [0], [0], [1], [0, 0, 1, 1], [], []>} : vector<128x32xf32>, vector<32x64xf32>, vector<128x64xf32> -> vector<128x64xf32>
    %110 = arith.addf %104, %109 : vector<128x64xf32>
    %c0_144 = arith.constant 0 : index
    %c1_145 = arith.constant 1 : index
    %c1_146 = arith.constant 1 : index
    %c0_147 = arith.constant 0 : index
    %111 = vector.load %arg10[%c0_144, %c1_145, %c1_146, %c0_147] : memref<2x10x10x32xf32, #tpu.memory_space<vmem>>, vector<2x8x8x32xf32>
    %112 = vector.shape_cast %111 : vector<2x8x8x32xf32> to vector<128x32xf32>
    %c4_148 = arith.constant 4 : index
    %c0_149 = arith.constant 0 : index
    %c0_150 = arith.constant 0 : index
    %113 = vector.load %arg4[%c4_148, %c0_149, %c0_150] : memref<9x32x64xf32, #tpu.memory_space<vmem>>, vector<1x32x64xf32>
    %114 = vector.shape_cast %113 : vector<1x32x64xf32> to vector<32x64xf32>
    %cst_151 = arith.constant dense<0.000000e+00> : vector<128x64xf32>
    %115 = tpu.matmul %112, %114, %cst_151 {dimension_numbers = #tpu.dot_dimension_numbers<[1], [0], [0], [1], [0, 0, 1, 1], [], []>} : vector<128x32xf32>, vector<32x64xf32>, vector<128x64xf32> -> vector<128x64xf32>
    %116 = arith.addf %110, %115 : vector<128x64xf32>
    %c0_152 = arith.constant 0 : index
    %c1_153 = arith.constant 1 : index
    %c2_154 = arith.constant 2 : index
    %c0_155 = arith.constant 0 : index
    %117 = vector.load %arg10[%c0_152, %c1_153, %c2_154, %c0_155] : memref<2x10x10x32xf32, #tpu.memory_space<vmem>>, vector<2x8x8x32xf32>
    %118 = vector.shape_cast %117 : vector<2x8x8x32xf32> to vector<128x32xf32>
    %c5_156 = arith.constant 5 : index
    %c0_157 = arith.constant 0 : index
    %c0_158 = arith.constant 0 : index
    %119 = vector.load %arg4[%c5_156, %c0_157, %c0_158] : memref<9x32x64xf32, #tpu.memory_space<vmem>>, vector<1x32x64xf32>
    %120 = vector.shape_cast %119 : vector<1x32x64xf32> to vector<32x64xf32>
    %cst_159 = arith.constant dense<0.000000e+00> : vector<128x64xf32>
    %121 = tpu.matmul %118, %120, %cst_159 {dimension_numbers = #tpu.dot_dimension_numbers<[1], [0], [0], [1], [0, 0, 1, 1], [], []>} : vector<128x32xf32>, vector<32x64xf32>, vector<128x64xf32> -> vector<128x64xf32>
    %122 = arith.addf %116, %121 : vector<128x64xf32>
    %c0_160 = arith.constant 0 : index
    %c2_161 = arith.constant 2 : index
    %c0_162 = arith.constant 0 : index
    %c0_163 = arith.constant 0 : index
    %123 = vector.load %arg10[%c0_160, %c2_161, %c0_162, %c0_163] : memref<2x10x10x32xf32, #tpu.memory_space<vmem>>, vector<2x8x8x32xf32>
    %124 = vector.shape_cast %123 : vector<2x8x8x32xf32> to vector<128x32xf32>
    %c6_164 = arith.constant 6 : index
    %c0_165 = arith.constant 0 : index
    %c0_166 = arith.constant 0 : index
    %125 = vector.load %arg4[%c6_164, %c0_165, %c0_166] : memref<9x32x64xf32, #tpu.memory_space<vmem>>, vector<1x32x64xf32>
    %126 = vector.shape_cast %125 : vector<1x32x64xf32> to vector<32x64xf32>
    %cst_167 = arith.constant dense<0.000000e+00> : vector<128x64xf32>
    %127 = tpu.matmul %124, %126, %cst_167 {dimension_numbers = #tpu.dot_dimension_numbers<[1], [0], [0], [1], [0, 0, 1, 1], [], []>} : vector<128x32xf32>, vector<32x64xf32>, vector<128x64xf32> -> vector<128x64xf32>
    %128 = arith.addf %122, %127 : vector<128x64xf32>
    %c0_168 = arith.constant 0 : index
    %c2_169 = arith.constant 2 : index
    %c1_170 = arith.constant 1 : index
    %c0_171 = arith.constant 0 : index
    %129 = vector.load %arg10[%c0_168, %c2_169, %c1_170, %c0_171] : memref<2x10x10x32xf32, #tpu.memory_space<vmem>>, vector<2x8x8x32xf32>
    %130 = vector.shape_cast %129 : vector<2x8x8x32xf32> to vector<128x32xf32>
    %c7_172 = arith.constant 7 : index
    %c0_173 = arith.constant 0 : index
    %c0_174 = arith.constant 0 : index
    %131 = vector.load %arg4[%c7_172, %c0_173, %c0_174] : memref<9x32x64xf32, #tpu.memory_space<vmem>>, vector<1x32x64xf32>
    %132 = vector.shape_cast %131 : vector<1x32x64xf32> to vector<32x64xf32>
    %cst_175 = arith.constant dense<0.000000e+00> : vector<128x64xf32>
    %133 = tpu.matmul %130, %132, %cst_175 {dimension_numbers = #tpu.dot_dimension_numbers<[1], [0], [0], [1], [0, 0, 1, 1], [], []>} : vector<128x32xf32>, vector<32x64xf32>, vector<128x64xf32> -> vector<128x64xf32>
    %134 = arith.addf %128, %133 : vector<128x64xf32>
    %c0_176 = arith.constant 0 : index
    %c2_177 = arith.constant 2 : index
    %c2_178 = arith.constant 2 : index
    %c0_179 = arith.constant 0 : index
    %135 = vector.load %arg10[%c0_176, %c2_177, %c2_178, %c0_179] : memref<2x10x10x32xf32, #tpu.memory_space<vmem>>, vector<2x8x8x32xf32>
    %136 = vector.shape_cast %135 : vector<2x8x8x32xf32> to vector<128x32xf32>
    %c8_180 = arith.constant 8 : index
    %c0_181 = arith.constant 0 : index
    %c0_182 = arith.constant 0 : index
    %137 = vector.load %arg4[%c8_180, %c0_181, %c0_182] : memref<9x32x64xf32, #tpu.memory_space<vmem>>, vector<1x32x64xf32>
    %138 = vector.shape_cast %137 : vector<1x32x64xf32> to vector<32x64xf32>
    %cst_183 = arith.constant dense<0.000000e+00> : vector<128x64xf32>
    %139 = tpu.matmul %136, %138, %cst_183 {dimension_numbers = #tpu.dot_dimension_numbers<[1], [0], [0], [1], [0, 0, 1, 1], [], []>} : vector<128x32xf32>, vector<32x64xf32>, vector<128x64xf32> -> vector<128x64xf32>
    %140 = arith.addf %134, %139 : vector<128x64xf32>
    %c0_184 = arith.constant 0 : index
    %c0_185 = arith.constant 0 : index
    %141 = vector.load %arg5[%c0_184, %c0_185] : memref<1x64xf32, #tpu.memory_space<vmem>>, vector<1x64xf32>
    %142 = vector.broadcast %141 : vector<1x64xf32> to vector<128x64xf32>
    %143 = arith.addf %140, %142 : vector<128x64xf32>
    %cst_186 = arith.constant 0.000000e+00 : f32
    %144 = vector.broadcast %cst_186 : f32 to vector<128x64xf32>
    %145 = arith.cmpf oge, %143, %144 : vector<128x64xf32>
    %cst_187 = arith.constant 0.00999999977 : f32
    %146 = vector.broadcast %cst_187 : f32 to vector<128x64xf32>
    %147 = arith.mulf %146, %143 : vector<128x64xf32>
    %148 = arith.select %145, %143, %147 : vector<128x64xi1>, vector<128x64xf32>
    %149 = vector.shape_cast %148 : vector<128x64xf32> to vector<8x2x4x2x64xf32>
    %150 = vector.extract_strided_slice %149 {offsets = [0, 0, 0, 0, 0], sizes = [8, 1, 4, 2, 64], strides = [1, 1, 1, 1, 1]} : vector<8x2x4x2x64xf32> to vector<8x1x4x2x64xf32>
    %151 = vector.shape_cast %150 : vector<8x1x4x2x64xf32> to vector<8x4x2x64xf32>
    %152 = vector.extract_strided_slice %149 {offsets = [0, 1, 0, 0, 0], sizes = [8, 1, 4, 2, 64], strides = [1, 1, 1, 1, 1]} : vector<8x2x4x2x64xf32> to vector<8x1x4x2x64xf32>
    %153 = vector.shape_cast %152 : vector<8x1x4x2x64xf32> to vector<8x4x2x64xf32>
    %154 = arith.maximumf %151, %153 : vector<8x4x2x64xf32>
    %155 = vector.extract_strided_slice %154 {offsets = [0, 0, 0, 0], sizes = [8, 4, 1, 64], strides = [1, 1, 1, 1]} : vector<8x4x2x64xf32> to vector<8x4x1x64xf32>
    %156 = vector.shape_cast %155 : vector<8x4x1x64xf32> to vector<8x4x64xf32>
    %157 = vector.extract_strided_slice %154 {offsets = [0, 0, 1, 0], sizes = [8, 4, 1, 64], strides = [1, 1, 1, 1]} : vector<8x4x2x64xf32> to vector<8x4x1x64xf32>
    %158 = vector.shape_cast %157 : vector<8x4x1x64xf32> to vector<8x4x64xf32>
    %159 = arith.maximumf %156, %158 : vector<8x4x64xf32>
    %160 = vector.shape_cast %159 : vector<8x4x64xf32> to vector<2x4x4x64xf32>
    %cst_188 = arith.constant 0.000000e+00 : f32
    %161 = vector.broadcast %cst_188 : f32 to vector<2x1x6x64xf32>
    %cst_189 = arith.constant 0.000000e+00 : f32
    %162 = vector.broadcast %cst_189 : f32 to vector<2x4x1x64xf32>
    %c0_190 = arith.constant 0 : index
    %c0_191 = arith.constant 0 : index
    %c0_192 = arith.constant 0 : index
    %c0_193 = arith.constant 0 : index
    %163 = vector.load %arg11[%c0_190, %c0_191, %c0_192, %c0_193] : memref<2x6x6x64xf32, #tpu.memory_space<vmem>>, vector<2x1x6x64xf32>
    tpu.vector_store %arg11[%c0_190, %c0_191, %c0_192, %c0_193], %161 {strides = array<i32>} : memref<2x6x6x64xf32, #tpu.memory_space<vmem>>, vector<2x1x6x64xf32>,
    %c0_194 = arith.constant 0 : index
    %c5_195 = arith.constant 5 : index
    %c0_196 = arith.constant 0 : index
    %c0_197 = arith.constant 0 : index
    %164 = vector.load %arg11[%c0_194, %c5_195, %c0_196, %c0_197] : memref<2x6x6x64xf32, #tpu.memory_space<vmem>>, vector<2x1x6x64xf32>
    tpu.vector_store %arg11[%c0_194, %c5_195, %c0_196, %c0_197], %161 {strides = array<i32>} : memref<2x6x6x64xf32, #tpu.memory_space<vmem>>, vector<2x1x6x64xf32>,
    %c0_198 = arith.constant 0 : index
    %c1_199 = arith.constant 1 : index
    %c0_200 = arith.constant 0 : index
    %c0_201 = arith.constant 0 : index
    %165 = vector.load %arg11[%c0_198, %c1_199, %c0_200, %c0_201] : memref<2x6x6x64xf32, #tpu.memory_space<vmem>>, vector<2x4x1x64xf32>
    tpu.vector_store %arg11[%c0_198, %c1_199, %c0_200, %c0_201], %162 {strides = array<i32>} : memref<2x6x6x64xf32, #tpu.memory_space<vmem>>, vector<2x4x1x64xf32>,
    %c0_202 = arith.constant 0 : index
    %c1_203 = arith.constant 1 : index
    %c5_204 = arith.constant 5 : index
    %c0_205 = arith.constant 0 : index
    %166 = vector.load %arg11[%c0_202, %c1_203, %c5_204, %c0_205] : memref<2x6x6x64xf32, #tpu.memory_space<vmem>>, vector<2x4x1x64xf32>
    tpu.vector_store %arg11[%c0_202, %c1_203, %c5_204, %c0_205], %162 {strides = array<i32>} : memref<2x6x6x64xf32, #tpu.memory_space<vmem>>, vector<2x4x1x64xf32>,
    %c0_206 = arith.constant 0 : index
    %c1_207 = arith.constant 1 : index
    %c1_208 = arith.constant 1 : index
    %c0_209 = arith.constant 0 : index
    %167 = vector.load %arg11[%c0_206, %c1_207, %c1_208, %c0_209] : memref<2x6x6x64xf32, #tpu.memory_space<vmem>>, vector<2x4x4x64xf32>
    tpu.vector_store %arg11[%c0_206, %c1_207, %c1_208, %c0_209], %160 {strides = array<i32>} : memref<2x6x6x64xf32, #tpu.memory_space<vmem>>, vector<2x4x4x64xf32>,
    %c0_210 = arith.constant 0 : index
    %c0_211 = arith.constant 0 : index
    %c0_212 = arith.constant 0 : index
    %c0_213 = arith.constant 0 : index
    %168 = vector.load %arg11[%c0_210, %c0_211, %c0_212, %c0_213] : memref<2x6x6x64xf32, #tpu.memory_space<vmem>>, vector<2x4x4x64xf32>
    %169 = vector.shape_cast %168 : vector<2x4x4x64xf32> to vector<32x64xf32>
    %c0_214 = arith.constant 0 : index
    %c0_215 = arith.constant 0 : index
    %c0_216 = arith.constant 0 : index
    %170 = vector.load %arg6[%c0_214, %c0_215, %c0_216] : memref<9x64x32xf32, #tpu.memory_space<vmem>>, vector<1x64x32xf32>
    %171 = vector.shape_cast %170 : vector<1x64x32xf32> to vector<64x32xf32>
    %cst_217 = arith.constant dense<0.000000e+00> : vector<32x32xf32>
    %172 = tpu.matmul %169, %171, %cst_217 {dimension_numbers = #tpu.dot_dimension_numbers<[1], [0], [0], [1], [0, 0, 1, 1], [], []>} : vector<32x64xf32>, vector<64x32xf32>, vector<32x32xf32> -> vector<32x32xf32>
    %c0_218 = arith.constant 0 : index
    %c0_219 = arith.constant 0 : index
    %c1_220 = arith.constant 1 : index
    %c0_221 = arith.constant 0 : index
    %173 = vector.load %arg11[%c0_218, %c0_219, %c1_220, %c0_221] : memref<2x6x6x64xf32, #tpu.memory_space<vmem>>, vector<2x4x4x64xf32>
    %174 = vector.shape_cast %173 : vector<2x4x4x64xf32> to vector<32x64xf32>
    %c1_222 = arith.constant 1 : index
    %c0_223 = arith.constant 0 : index
    %c0_224 = arith.constant 0 : index
    %175 = vector.load %arg6[%c1_222, %c0_223, %c0_224] : memref<9x64x32xf32, #tpu.memory_space<vmem>>, vector<1x64x32xf32>
    %176 = vector.shape_cast %175 : vector<1x64x32xf32> to vector<64x32xf32>
    %cst_225 = arith.constant dense<0.000000e+00> : vector<32x32xf32>
    %177 = tpu.matmul %174, %176, %cst_225 {dimension_numbers = #tpu.dot_dimension_numbers<[1], [0], [0], [1], [0, 0, 1, 1], [], []>} : vector<32x64xf32>, vector<64x32xf32>, vector<32x32xf32> -> vector<32x32xf32>
    %178 = arith.addf %172, %177 : vector<32x32xf32>
    %c0_226 = arith.constant 0 : index
    %c0_227 = arith.constant 0 : index
    %c2_228 = arith.constant 2 : index
    %c0_229 = arith.constant 0 : index
    %179 = vector.load %arg11[%c0_226, %c0_227, %c2_228, %c0_229] : memref<2x6x6x64xf32, #tpu.memory_space<vmem>>, vector<2x4x4x64xf32>
    %180 = vector.shape_cast %179 : vector<2x4x4x64xf32> to vector<32x64xf32>
    %c2_230 = arith.constant 2 : index
    %c0_231 = arith.constant 0 : index
    %c0_232 = arith.constant 0 : index
    %181 = vector.load %arg6[%c2_230, %c0_231, %c0_232] : memref<9x64x32xf32, #tpu.memory_space<vmem>>, vector<1x64x32xf32>
    %182 = vector.shape_cast %181 : vector<1x64x32xf32> to vector<64x32xf32>
    %cst_233 = arith.constant dense<0.000000e+00> : vector<32x32xf32>
    %183 = tpu.matmul %180, %182, %cst_233 {dimension_numbers = #tpu.dot_dimension_numbers<[1], [0], [0], [1], [0, 0, 1, 1], [], []>} : vector<32x64xf32>, vector<64x32xf32>, vector<32x32xf32> -> vector<32x32xf32>
    %184 = arith.addf %178, %183 : vector<32x32xf32>
    %c0_234 = arith.constant 0 : index
    %c1_235 = arith.constant 1 : index
    %c0_236 = arith.constant 0 : index
    %c0_237 = arith.constant 0 : index
    %185 = vector.load %arg11[%c0_234, %c1_235, %c0_236, %c0_237] : memref<2x6x6x64xf32, #tpu.memory_space<vmem>>, vector<2x4x4x64xf32>
    %186 = vector.shape_cast %185 : vector<2x4x4x64xf32> to vector<32x64xf32>
    %c3_238 = arith.constant 3 : index
    %c0_239 = arith.constant 0 : index
    %c0_240 = arith.constant 0 : index
    %187 = vector.load %arg6[%c3_238, %c0_239, %c0_240] : memref<9x64x32xf32, #tpu.memory_space<vmem>>, vector<1x64x32xf32>
    %188 = vector.shape_cast %187 : vector<1x64x32xf32> to vector<64x32xf32>
    %cst_241 = arith.constant dense<0.000000e+00> : vector<32x32xf32>
    %189 = tpu.matmul %186, %188, %cst_241 {dimension_numbers = #tpu.dot_dimension_numbers<[1], [0], [0], [1], [0, 0, 1, 1], [], []>} : vector<32x64xf32>, vector<64x32xf32>, vector<32x32xf32> -> vector<32x32xf32>
    %190 = arith.addf %184, %189 : vector<32x32xf32>
    %c0_242 = arith.constant 0 : index
    %c1_243 = arith.constant 1 : index
    %c1_244 = arith.constant 1 : index
    %c0_245 = arith.constant 0 : index
    %191 = vector.load %arg11[%c0_242, %c1_243, %c1_244, %c0_245] : memref<2x6x6x64xf32, #tpu.memory_space<vmem>>, vector<2x4x4x64xf32>
    %192 = vector.shape_cast %191 : vector<2x4x4x64xf32> to vector<32x64xf32>
    %c4_246 = arith.constant 4 : index
    %c0_247 = arith.constant 0 : index
    %c0_248 = arith.constant 0 : index
    %193 = vector.load %arg6[%c4_246, %c0_247, %c0_248] : memref<9x64x32xf32, #tpu.memory_space<vmem>>, vector<1x64x32xf32>
    %194 = vector.shape_cast %193 : vector<1x64x32xf32> to vector<64x32xf32>
    %cst_249 = arith.constant dense<0.000000e+00> : vector<32x32xf32>
    %195 = tpu.matmul %192, %194, %cst_249 {dimension_numbers = #tpu.dot_dimension_numbers<[1], [0], [0], [1], [0, 0, 1, 1], [], []>} : vector<32x64xf32>, vector<64x32xf32>, vector<32x32xf32> -> vector<32x32xf32>
    %196 = arith.addf %190, %195 : vector<32x32xf32>
    %c0_250 = arith.constant 0 : index
    %c1_251 = arith.constant 1 : index
    %c2_252 = arith.constant 2 : index
    %c0_253 = arith.constant 0 : index
    %197 = vector.load %arg11[%c0_250, %c1_251, %c2_252, %c0_253] : memref<2x6x6x64xf32, #tpu.memory_space<vmem>>, vector<2x4x4x64xf32>
    %198 = vector.shape_cast %197 : vector<2x4x4x64xf32> to vector<32x64xf32>
    %c5_254 = arith.constant 5 : index
    %c0_255 = arith.constant 0 : index
    %c0_256 = arith.constant 0 : index
    %199 = vector.load %arg6[%c5_254, %c0_255, %c0_256] : memref<9x64x32xf32, #tpu.memory_space<vmem>>, vector<1x64x32xf32>
    %200 = vector.shape_cast %199 : vector<1x64x32xf32> to vector<64x32xf32>
    %cst_257 = arith.constant dense<0.000000e+00> : vector<32x32xf32>
    %201 = tpu.matmul %198, %200, %cst_257 {dimension_numbers = #tpu.dot_dimension_numbers<[1], [0], [0], [1], [0, 0, 1, 1], [], []>} : vector<32x64xf32>, vector<64x32xf32>, vector<32x32xf32> -> vector<32x32xf32>
    %202 = arith.addf %196, %201 : vector<32x32xf32>
    %c0_258 = arith.constant 0 : index
    %c2_259 = arith.constant 2 : index
    %c0_260 = arith.constant 0 : index
    %c0_261 = arith.constant 0 : index
    %203 = vector.load %arg11[%c0_258, %c2_259, %c0_260, %c0_261] : memref<2x6x6x64xf32, #tpu.memory_space<vmem>>, vector<2x4x4x64xf32>
    %204 = vector.shape_cast %203 : vector<2x4x4x64xf32> to vector<32x64xf32>
    %c6_262 = arith.constant 6 : index
    %c0_263 = arith.constant 0 : index
    %c0_264 = arith.constant 0 : index
    %205 = vector.load %arg6[%c6_262, %c0_263, %c0_264] : memref<9x64x32xf32, #tpu.memory_space<vmem>>, vector<1x64x32xf32>
    %206 = vector.shape_cast %205 : vector<1x64x32xf32> to vector<64x32xf32>
    %cst_265 = arith.constant dense<0.000000e+00> : vector<32x32xf32>
    %207 = tpu.matmul %204, %206, %cst_265 {dimension_numbers = #tpu.dot_dimension_numbers<[1], [0], [0], [1], [0, 0, 1, 1], [], []>} : vector<32x64xf32>, vector<64x32xf32>, vector<32x32xf32> -> vector<32x32xf32>
    %208 = arith.addf %202, %207 : vector<32x32xf32>
    %c0_266 = arith.constant 0 : index
    %c2_267 = arith.constant 2 : index
    %c1_268 = arith.constant 1 : index
    %c0_269 = arith.constant 0 : index
    %209 = vector.load %arg11[%c0_266, %c2_267, %c1_268, %c0_269] : memref<2x6x6x64xf32, #tpu.memory_space<vmem>>, vector<2x4x4x64xf32>
    %210 = vector.shape_cast %209 : vector<2x4x4x64xf32> to vector<32x64xf32>
    %c7_270 = arith.constant 7 : index
    %c0_271 = arith.constant 0 : index
    %c0_272 = arith.constant 0 : index
    %211 = vector.load %arg6[%c7_270, %c0_271, %c0_272] : memref<9x64x32xf32, #tpu.memory_space<vmem>>, vector<1x64x32xf32>
    %212 = vector.shape_cast %211 : vector<1x64x32xf32> to vector<64x32xf32>
    %cst_273 = arith.constant dense<0.000000e+00> : vector<32x32xf32>
    %213 = tpu.matmul %210, %212, %cst_273 {dimension_numbers = #tpu.dot_dimension_numbers<[1], [0], [0], [1], [0, 0, 1, 1], [], []>} : vector<32x64xf32>, vector<64x32xf32>, vector<32x32xf32> -> vector<32x32xf32>
    %214 = arith.addf %208, %213 : vector<32x32xf32>
    %c0_274 = arith.constant 0 : index
    %c2_275 = arith.constant 2 : index
    %c2_276 = arith.constant 2 : index
    %c0_277 = arith.constant 0 : index
    %215 = vector.load %arg11[%c0_274, %c2_275, %c2_276, %c0_277] : memref<2x6x6x64xf32, #tpu.memory_space<vmem>>, vector<2x4x4x64xf32>
    %216 = vector.shape_cast %215 : vector<2x4x4x64xf32> to vector<32x64xf32>
    %c8_278 = arith.constant 8 : index
    %c0_279 = arith.constant 0 : index
    %c0_280 = arith.constant 0 : index
    %217 = vector.load %arg6[%c8_278, %c0_279, %c0_280] : memref<9x64x32xf32, #tpu.memory_space<vmem>>, vector<1x64x32xf32>
    %218 = vector.shape_cast %217 : vector<1x64x32xf32> to vector<64x32xf32>
    %cst_281 = arith.constant dense<0.000000e+00> : vector<32x32xf32>
    %219 = tpu.matmul %216, %218, %cst_281 {dimension_numbers = #tpu.dot_dimension_numbers<[1], [0], [0], [1], [0, 0, 1, 1], [], []>} : vector<32x64xf32>, vector<64x32xf32>, vector<32x32xf32> -> vector<32x32xf32>
    %220 = arith.addf %214, %219 : vector<32x32xf32>
    %c0_282 = arith.constant 0 : index
    %c0_283 = arith.constant 0 : index
    %221 = vector.load %arg7[%c0_282, %c0_283] : memref<1x32xf32, #tpu.memory_space<vmem>>, vector<1x32xf32>
    %222 = vector.broadcast %221 : vector<1x32xf32> to vector<32x32xf32>
    %223 = arith.addf %220, %222 : vector<32x32xf32>
    %cst_284 = arith.constant 0.000000e+00 : f32
    %224 = vector.broadcast %cst_284 : f32 to vector<32x32xf32>
    %225 = arith.cmpf oge, %223, %224 : vector<32x32xf32>
    %cst_285 = arith.constant 0.00999999977 : f32
    %226 = vector.broadcast %cst_285 : f32 to vector<32x32xf32>
    %227 = arith.mulf %226, %223 : vector<32x32xf32>
    %228 = arith.select %225, %223, %227 : vector<32x32xi1>, vector<32x32xf32>
    %229 = vector.shape_cast %228 : vector<32x32xf32> to vector<4x2x2x2x32xf32>
    %230 = vector.extract_strided_slice %229 {offsets = [0, 0, 0, 0, 0], sizes = [4, 1, 2, 2, 32], strides = [1, 1, 1, 1, 1]} : vector<4x2x2x2x32xf32> to vector<4x1x2x2x32xf32>
    %231 = vector.shape_cast %230 : vector<4x1x2x2x32xf32> to vector<4x2x2x32xf32>
    %232 = vector.extract_strided_slice %229 {offsets = [0, 1, 0, 0, 0], sizes = [4, 1, 2, 2, 32], strides = [1, 1, 1, 1, 1]} : vector<4x2x2x2x32xf32> to vector<4x1x2x2x32xf32>
    %233 = vector.shape_cast %232 : vector<4x1x2x2x32xf32> to vector<4x2x2x32xf32>
    %234 = arith.maximumf %231, %233 : vector<4x2x2x32xf32>
    %235 = vector.extract_strided_slice %234 {offsets = [0, 0, 0, 0], sizes = [4, 2, 1, 32], strides = [1, 1, 1, 1]} : vector<4x2x2x32xf32> to vector<4x2x1x32xf32>
    %236 = vector.shape_cast %235 : vector<4x2x1x32xf32> to vector<4x2x32xf32>
    %237 = vector.extract_strided_slice %234 {offsets = [0, 0, 1, 0], sizes = [4, 2, 1, 32], strides = [1, 1, 1, 1]} : vector<4x2x2x32xf32> to vector<4x2x1x32xf32>
    %238 = vector.shape_cast %237 : vector<4x2x1x32xf32> to vector<4x2x32xf32>
    %239 = arith.maximumf %236, %238 : vector<4x2x32xf32>
    %240 = vector.shape_cast %239 : vector<4x2x32xf32> to vector<2x2x2x32xf32>
    %241 = vector.shape_cast %240 : vector<2x2x2x32xf32> to vector<2x4x32xf32>
    %242 = tpu.transpose %241, [0, 2, 1] : vector<2x4x32xf32> -> vector<2x32x4xf32>
    %243 = vector.shape_cast %242 : vector<2x32x4xf32> to vector<2x128xf32>
    %c0_286 = arith.constant 0 : index
    %c0_287 = arith.constant 0 : index
    %244 = vector.load %arg8[%c0_286, %c0_287] : memref<2x128xf32, #tpu.memory_space<vmem>>, vector<2x128xf32>
    tpu.vector_store %arg8[%c0_286, %c0_287], %243 {strides = array<i32>} : memref<2x128xf32, #tpu.memory_space<vmem>>, vector<2x128xf32>,
    return
  }
  func.func @transform_0(%arg0: i32) -> (i32, i32, i32, i32) {
    %c0_i32 = arith.constant 0 : i32
    %c0_i32_0 = arith.constant 0 : i32
    %c0_i32_1 = arith.constant 0 : i32
    %c0_i32_2 = arith.constant 0 : i32
    return %arg0, %c0_i32, %c0_i32_0, %c0_i32_1 : i32, i32, i32, i32
  }
  func.func @transform_1(%arg0: i32) -> (i32, i32, i32) {
    %c0_i32 = arith.constant 0 : i32
    %c0_i32_0 = arith.constant 0 : i32
    %c0_i32_1 = arith.constant 0 : i32
    %c0_i32_2 = arith.constant 0 : i32
    return %c0_i32, %c0_i32_0, %c0_i32_1 : i32, i32, i32
  }
  func.func @transform_2(%arg0: i32) -> (i32, i32) {
    %c0_i32 = arith.constant 0 : i32
    %c0_i32_0 = arith.constant 0 : i32
    %c0_i32_1 = arith.constant 0 : i32
    return %c0_i32, %c0_i32_0 : i32, i32
  }
  func.func @transform_3(%arg0: i32) -> (i32, i32, i32) {
    %c0_i32 = arith.constant 0 : i32
    %c0_i32_0 = arith.constant 0 : i32
    %c0_i32_1 = arith.constant 0 : i32
    %c0_i32_2 = arith.constant 0 : i32
    return %c0_i32, %c0_i32_0, %c0_i32_1 : i32, i32, i32
  }
  func.func @transform_4(%arg0: i32) -> (i32, i32) {
    %c0_i32 = arith.constant 0 : i32
    %c0_i32_0 = arith.constant 0 : i32
    %c0_i32_1 = arith.constant 0 : i32
    return %c0_i32, %c0_i32_0 : i32, i32
  }
  func.func @transform_5(%arg0: i32) -> (i32, i32, i32) {
    %c0_i32 = arith.constant 0 : i32
    %c0_i32_0 = arith.constant 0 : i32
    %c0_i32_1 = arith.constant 0 : i32
    %c0_i32_2 = arith.constant 0 : i32
    return %c0_i32, %c0_i32_0, %c0_i32_1 : i32, i32, i32
  }
  func.func @transform_6(%arg0: i32) -> (i32, i32) {
    %c0_i32 = arith.constant 0 : i32
    %c0_i32_0 = arith.constant 0 : i32
    %c0_i32_1 = arith.constant 0 : i32
    return %c0_i32, %c0_i32_0 : i32, i32
  }
  func.func @transform_7(%arg0: i32) -> (i32, i32) {
    %c0_i32 = arith.constant 0 : i32
    %c0_i32_0 = arith.constant 0 : i32
    return %arg0, %c0_i32 : i32, i32
  }
}

</mosaic_0001>

<bundles_post_ra>
// kernel: _forward_impl.1
= control target key start
LH: loop header
LB: loop body
LE: loop exit
PB: predicated region body
PF: predicated region fallthrough
CT: control target
= control target key end

     0   :  { %vm559_vm0 = vcmask 1042432   ;;  %vm91_vm1 = vcmask 23552   ;;  %vm94_vm2 = vcmask 17408   ;;  %v22468_v1 = vmov 0.0   ;;  %s22460_s0 = inlined_call_operand.vmem [shape: f32[2,16,16,3], index: 0, kind: input, shape index: {}]   ;;  %s22461_s1 = inlined_call_operand.vmem [shape: f32[9,3,32], index: 1, kind: input, shape index: {}]   ;;  %s22462_s2 = inlined_call_operand.vmem [shape: f32[1,32], index: 2, kind: input, shape index: {}]   ;;  %s22463_s3 = inlined_call_operand.vmem [shape: f32[9,32,64], index: 3, kind: input, shape index: {}]   ;;  %s22464_s4 = inlined_call_operand.vmem [shape: f32[1,64], index: 4, kind: input, shape index: {}]   ;;  %s22465_s5 = inlined_call_operand.vmem [shape: f32[9,64,32], index: 5, kind: input, shape index: {}]   ;;  %s22466_s6 = inlined_call_operand.vmem [shape: f32[1,32], index: 6, kind: input, shape index: {}]   ;;  %s22467_s7 = inlined_call_operand.hbm [shape: f32[2,128], index: 7, kind: output, shape index: {}]  }
   0x1   :  { %v14644_v0 = vld [vmem:[%s22461_s1 + $0x8] sm:$0x7]  ;;  %92 = vst.msk [vmem:[#allocation2] sm:$0xff] %vm91_vm1, %v22468_v1  ;;  %93 = vst.msk [vmem:[#allocation2 + $0x8] sm:$0xff] %vm91_vm1, %v22468_v1  ;;  %v18890_v2 = vld [vmem:[%s22461_s1 + $0xc] sm:$0x7] }
   0x2   :  { %16622 = vmatprep.subr.msk.mxu0 %vm559_vm0, %v14644_v0  ;;  %96 = vst.msk [vmem:[#allocation2 + $0x1b0] sm:$0xff] %vm91_vm1, %v22468_v1  ;;  %97 = vst.msk [vmem:[#allocation2 + $0x1b8] sm:$0xff] %vm91_vm1, %v22468_v1  ;;  %v27_v3 = vld [vmem:[%s22460_s0] sm:$0xff]  ;;  %v28_v4 = vld [vmem:[%s22460_s0 + $0x8] sm:$0xff]  ;;  %vm107_vm3 = vcmask 16384  }
   0x3   :  { %100 = vst.msk [vmem:[#allocation2 + $0x198] sm:$0xff] %vm91_vm1, %v22468_v1  ;;  %101 = vst.msk [vmem:[#allocation2 + $0x1a0] sm:$0xff] %vm91_vm1, %v22468_v1  ;;  %16623 = vmatpush3.msk.msra.mxu0 %vm559_vm0, %v14644_v0  ;;  %v29_v5 = vld [vmem:[%s22460_s0 + $0x10] sm:$0xff]  ;;  %v30_v6 = vld [vmem:[%s22460_s0 + $0x18] sm:$0xff] }
   0x4   :  { %103 = vst.msk [vmem:[#allocation2 + $0x348] sm:$0xff] %vm91_vm1, %v22468_v1  ;;  %104 = vst.msk [vmem:[#allocation2 + $0x350] sm:$0xff] %vm91_vm1, %v22468_v1  ;;  %v31_v7 = vld [vmem:[%s22460_s0 + $0x20] sm:$0xff]  ;;  %16720 = vmatprep.subr.msk.mxu0 %vm559_vm0, %v18890_v2  ;;  %v32_v8 = vld [vmem:[%s22460_s0 + $0x28] sm:$0xff] }
   0x5   :  { %95 = vst.msk [vmem:[#allocation2 + $0x10] sm:$0x3] %vm94_vm2, %v22468_v1  ;;  %98 = vst.msk [vmem:[#allocation2 + $0x1c0] sm:$0x3] %vm94_vm2, %v22468_v1  ;;  %v33_v9 = vld [vmem:[%s22460_s0 + $0x30] sm:$0xff]  ;;  %v34_v10 = vld [vmem:[%s22460_s0 + $0x38] sm:$0xff] }
   0x6   :  { %102 = vst.msk [vmem:[#allocation2 + $0x1a8] sm:$0x3] %vm94_vm2, %v22468_v1  ;;  %105 = vst.msk [vmem:[#allocation2 + $0x358] sm:$0x3] %vm94_vm2, %v22468_v1  ;;  %v35_v11 = vld [vmem:[%s22460_s0 + $0x40] sm:$0xff]  ;;  %v36_v12 = vld [vmem:[%s22460_s0 + $0x48] sm:$0xff] }
   0x7   :  { %172 = vst.msk [vmem:[#allocation2 + $0x19] sm:$0xff] %vm91_vm1, %v27_v3  ;;  %173 = vst.msk [vmem:[#allocation2 + $0x21] sm:$0xff] %vm91_vm1, %v28_v4  ;;  %v37_v13 = vld [vmem:[%s22460_s0 + $0x50] sm:$0xff]  ;;  %v38_v14 = vld [vmem:[%s22460_s0 + $0x58] sm:$0xff] }
   0x8   :  { %140 = vst.msk [vmem:[#allocation2 + $0x29] sm:$0x1] %vm107_vm3, %v22468_v1  ;;  %108 = vst.msk [vmem:[#allocation2 + $0x18] sm:$0x1] %vm107_vm3, %v22468_v1  ;;  %v39_v15 = vld [vmem:[%s22460_s0 + $0x60] sm:$0xff]  ;;  %v40_v16 = vld [vmem:[%s22460_s0 + $0x68] sm:$0xff] }
   0x9   :  { %109 = vst.msk [vmem:[#allocation2 + $0x30] sm:$0x1] %vm107_vm3, %v22468_v1  ;;  %110 = vst.msk [vmem:[#allocation2 + $0x48] sm:$0x1] %vm107_vm3, %v22468_v1  ;;  %v41_v17 = vld [vmem:[%s22460_s0 + $0x70] sm:$0xff]  ;;  %v42_v18 = vld [vmem:[%s22460_s0 + $0x78] sm:$0xff] }
   0xa   :  { %111 = vst.msk [vmem:[#allocation2 + $0x60] sm:$0x1] %vm107_vm3, %v22468_v1  ;;  %112 = vst.msk [vmem:[#allocation2 + $0x78] sm:$0x1] %vm107_vm3, %v22468_v1  ;;  %v43_v19 = vld [vmem:[%s22460_s0 + $0x80] sm:$0xff]  ;;  %v44_v20 = vld [vmem:[%s22460_s0 + $0x88] sm:$0xff] }
   0xb   :  { %113 = vst.msk [vmem:[#allocation2 + $0x90] sm:$0x1] %vm107_vm3, %v22468_v1  ;;  %114 = vst.msk [vmem:[#allocation2 + $0xa8] sm:$0x1] %vm107_vm3, %v22468_v1  ;;  %v45_v21 = vld [vmem:[%s22460_s0 + $0x90] sm:$0xff]  ;;  %v1528_v22 = vld [vmem:[#allocation2 + $0x2] sm:$0xff] }
   0xc   :  { %115 = vst.msk [vmem:[#allocation2 + $0xc0] sm:$0x1] %vm107_vm3, %v22468_v1  ;;  %116 = vst.msk [vmem:[#allocation2 + $0xd8] sm:$0x1] %vm107_vm3, %v22468_v1  ;;  %v1529_v23 = vld [vmem:[#allocation2 + $0xa] sm:$0xff]  ;;  %v46_v24 = vld [vmem:[%s22460_s0 + $0x98] sm:$0xff]  ;;  %16624 = vmatprep.mubr.msk.f32.mxu0 %vm91_vm1, %v1528_v22 }
   0xd   :  { %117 = vst.msk [vmem:[#allocation2 + $0xf0] sm:$0x1] %vm107_vm3, %v22468_v1  ;;  %118 = vst.msk [vmem:[#allocation2 + $0x108] sm:$0x1] %vm107_vm3, %v22468_v1  ;;  %v19110_v26 = vld [vmem:[%s22461_s1 + $0x10] sm:$0x7]  ;;  %16625 = vmatmul.mubr.msk.f32.vlgmr.msra.gmra.mrb[0].mxu0 %vm91_vm1, %v1529_v23 }
   0xe   :  { %119 = vst.msk [vmem:[#allocation2 + $0x120] sm:$0x1] %vm107_vm3, %v22468_v1  ;;  %120 = vst.msk [vmem:[#allocation2 + $0x138] sm:$0x1] %vm107_vm3, %v22468_v1  ;;  %v1530_v25 = vld [vmem:[#allocation2 + $0x1a] sm:$0xff]  ;;  %16721 = vmatpush3.msk.msra.mxu0 %vm559_vm0, %v18890_v2  ;;  %v48_v34 = vld [vmem:[%s22460_s0 + $0xa8] sm:$0xff] }
   0xf   :  { %121 = vst.msk [vmem:[#allocation2 + $0x150] sm:$0x1] %vm107_vm3, %v22468_v1  ;;  %122 = vst.msk [vmem:[#allocation2 + $0x168] sm:$0x1] %vm107_vm3, %v22468_v1  ;;  %16627 = vmatprep.mubr.msk.f32.mxu0 %vm91_vm1, %v1530_v25  ;;  %v1531_v27 = vld [vmem:[#allocation2 + $0x22] sm:$0xff]  ;;  %16818 = vmatprep.subr.msk.mxu0 %vm559_vm0, %v19110_v26  ;;  %v49_v35 = vld [vmem:[%s22460_s0 + $0xb0] sm:$0xff] }
  0x10   :  { %123 = vst.msk [vmem:[#allocation2 + $0x180] sm:$0x1] %vm107_vm3, %v22468_v1  ;;  %124 = vst.msk [vmem:[#allocation2 + $0x1c8] sm:$0x1] %vm107_vm3, %v22468_v1  ;;  %v47_v33 = vld [vmem:[%s22460_s0 + $0xa0] sm:$0xff]  ;;  %v50_v36 = vld [vmem:[%s22460_s0 + $0xb8] sm:$0xff] }
  0x11   :  { %125 = vst.msk [vmem:[#allocation2 + $0x1e0] sm:$0x1] %vm107_vm3, %v22468_v1  ;;  %126 = vst.msk [vmem:[#allocation2 + $0x1f8] sm:$0x1] %vm107_vm3, %v22468_v1  ;;  %16628 = vmatmul.mubr.msk.f32.gmra.mrb[2].mxu0 %vm91_vm1, %v1531_v27  ;;  %v51_v37 = vld [vmem:[%s22460_s0 + $0xc0] sm:$0xff]  ;;  %v52_v38 = vld [vmem:[%s22460_s0 + $0xc8] sm:$0xff] }
  0x12   :  { %127 = vst.msk [vmem:[#allocation2 + $0x210] sm:$0x1] %vm107_vm3, %v22468_v1  ;;  %128 = vst.msk [vmem:[#allocation2 + $0x228] sm:$0x1] %vm107_vm3, %v22468_v1  ;;  %v53_v39 = vld [vmem:[%s22460_s0 + $0xd0] sm:$0xff]  ;;  %v54_v40 = vld [vmem:[%s22460_s0 + $0xd8] sm:$0xff] }
  0x13   :  { %129 = vst.msk [vmem:[#allocation2 + $0x240] sm:$0x1] %vm107_vm3, %v22468_v1  ;;  %130 = vst.msk [vmem:[#allocation2 + $0x258] sm:$0x1] %vm107_vm3, %v22468_v1  ;;  %v55_v42 = vld [vmem:[%s22460_s0 + $0xe0] sm:$0xff]  ;;  %v56_v43 = vld [vmem:[%s22460_s0 + $0xe8] sm:$0xff] }
  0x14   :  { %131 = vst.msk [vmem:[#allocation2 + $0x270] sm:$0x1] %vm107_vm3, %v22468_v1  ;;  %132 = vst.msk [vmem:[#allocation2 + $0x288] sm:$0x1] %vm107_vm3, %v22468_v1  ;;  %v57_v44 = vld [vmem:[%s22460_s0 + $0xf0] sm:$0xff]  ;;  %v2238_v45 = vld [vmem:[#allocation2 + $0x18] sm:$0xff] }
  0x15   :  { %133 = vst.msk [vmem:[#allocation2 + $0x2a0] sm:$0x1] %vm107_vm3, %v22468_v1  ;;  %134 = vst.msk [vmem:[#allocation2 + $0x2b8] sm:$0x1] %vm107_vm3, %v22468_v1  ;;  %v58_v46 = vld [vmem:[%s22460_s0 + $0xf8] sm:$0xff]  ;;  %v59_v47 = vld [vmem:[%s22460_s0 + $0x100] sm:$0xff] }
  0x16   :  { %135 = vst.msk [vmem:[#allocation2 + $0x2d0] sm:$0x1] %vm107_vm3, %v22468_v1  ;;  %136 = vst.msk [vmem:[#allocation2 + $0x2e8] sm:$0x1] %vm107_vm3, %v22468_v1  ;;  %v60_v48 = vld [vmem:[%s22460_s0 + $0x108] sm:$0xff]  ;;  %v61_v49 = vld [vmem:[%s22460_s0 + $0x110] sm:$0xff] }
  0x17   :  { %137 = vst.msk [vmem:[#allocation2 + $0x300] sm:$0x1] %vm107_vm3, %v22468_v1  ;;  %138 = vst.msk [vmem:[#allocation2 + $0x318] sm:$0x1] %vm107_vm3, %v22468_v1  ;;  %v62_v50 = vld [vmem:[%s22460_s0 + $0x118] sm:$0xff]  ;;  %v63_v51 = vld [vmem:[%s22460_s0 + $0x120] sm:$0xff] }
  0x18   :  { %139 = vst.msk [vmem:[#allocation2 + $0x330] sm:$0x1] %vm107_vm3, %v22468_v1  ;;  %141 = vst.msk [vmem:[#allocation2 + $0x41] sm:$0x1] %vm107_vm3, %v22468_v1  ;;  %v64_v52 = vld [vmem:[%s22460_s0 + $0x128] sm:$0xff]  ;;  %v65_v53 = vld [vmem:[%s22460_s0 + $0x130] sm:$0xff] }
  0x19   :  { %142 = vst.msk [vmem:[#allocation2 + $0x59] sm:$0x1] %vm107_vm3, %v22468_v1  ;;  %143 = vst.msk [vmem:[#allocation2 + $0x71] sm:$0x1] %vm107_vm3, %v22468_v1  ;;  %v66_v54 = vld [vmem:[%s22460_s0 + $0x138] sm:$0xff]  ;;  %v67_v55 = vld [vmem:[%s22460_s0 + $0x140] sm:$0xff] }
  0x1a   :  { %144 = vst.msk [vmem:[#allocation2 + $0x89] sm:$0x1] %vm107_vm3, %v22468_v1  ;;  %145 = vst.msk [vmem:[#allocation2 + $0xa1] sm:$0x1] %vm107_vm3, %v22468_v1  ;;  %v68_v56 = vld [vmem:[%s22460_s0 + $0x148] sm:$0xff]  ;;  %v69_v57 = vld [vmem:[%s22460_s0 + $0x150] sm:$0xff] }
  0x1b   :  { %146 = vst.msk [vmem:[#allocation2 + $0xb9] sm:$0x1] %vm107_vm3, %v22468_v1  ;;  %147 = vst.msk [vmem:[#allocation2 + $0xd1] sm:$0x1] %vm107_vm3, %v22468_v1  ;;  %v70_v58 = vld [vmem:[%s22460_s0 + $0x158] sm:$0xff]  ;;  %v2239_v59 = vld [vmem:[#allocation2 + $0x20] sm:$0xff] }
  0x1c   :  { %148 = vst.msk [vmem:[#allocation2 + $0xe9] sm:$0x1] %vm107_vm3, %v22468_v1  ;;  %149 = vst.msk [vmem:[#allocation2 + $0x101] sm:$0x1] %vm107_vm3, %v22468_v1  ;;  %v71_v2 = vld [vmem:[%s22460_s0 + $0x160] sm:$0xff]  ;;  %v72_v3 = vld [vmem:[%s22460_s0 + $0x168] sm:$0xff] }
  0x1d   :  { %150 = vst.msk [vmem:[#allocation2 + $0x119] sm:$0x1] %vm107_vm3, %v22468_v1  ;;  %151 = vst.msk [vmem:[#allocation2 + $0x131] sm:$0x1] %vm107_vm3, %v22468_v1  ;;  %v73_v4 = vld [vmem:[%s22460_s0 + $0x170] sm:$0xff]  ;;  %v90_v23 = vld [vmem:[%s22460_s0 + $0x1f8] sm:$0xff] }
  0x1e   :  { %152 = vst.msk [vmem:[#allocation2 + $0x149] sm:$0x1] %vm107_vm3, %v22468_v1  ;;  %153 = vst.msk [vmem:[#allocation2 + $0x161] sm:$0x1] %vm107_vm3, %v22468_v1  ;;  %v89_v22 = vld [vmem:[%s22460_s0 + $0x1f0] sm:$0xff] }
  0x1f   :  { %154 = vst.msk [vmem:[#allocation2 + $0x179] sm:$0x1] %vm107_vm3, %v22468_v1  ;;  %155 = vst.msk [vmem:[#allocation2 + $0x191] sm:$0x1] %vm107_vm3, %v22468_v1 }
  0x20   :  { %156 = vst.msk [vmem:[#allocation2 + $0x1d9] sm:$0x1] %vm107_vm3, %v22468_v1  ;;  %157 = vst.msk [vmem:[#allocation2 + $0x1f1] sm:$0x1] %vm107_vm3, %v22468_v1 }
  0x21   :  { %158 = vst.msk [vmem:[#allocation2 + $0x209] sm:$0x1] %vm107_vm3, %v22468_v1  ;;  %159 = vst.msk [vmem:[#allocation2 + $0x221] sm:$0x1] %vm107_vm3, %v22468_v1 }
  0x22   :  { %160 = vst.msk [vmem:[#allocation2 + $0x239] sm:$0x1] %vm107_vm3, %v22468_v1  ;;  %161 = vst.msk [vmem:[#allocation2 + $0x251] sm:$0x1] %vm107_vm3, %v22468_v1 }
  0x23   :  { %162 = vst.msk [vmem:[#allocation2 + $0x269] sm:$0x1] %vm107_vm3, %v22468_v1  ;;  %163 = vst.msk [vmem:[#allocation2 + $0x281] sm:$0x1] %vm107_vm3, %v22468_v1 }
  0x24   :  { %164 = vst.msk [vmem:[#allocation2 + $0x299] sm:$0x1] %vm107_vm3, %v22468_v1  ;;  %165 = vst.msk [vmem:[#allocation2 + $0x2b1] sm:$0x1] %vm107_vm3, %v22468_v1 }
  0x25   :  { %166 = vst.msk [vmem:[#allocation2 + $0x2c9] sm:$0x1] %vm107_vm3, %v22468_v1  ;;  %167 = vst.msk [vmem:[#allocation2 + $0x2e1] sm:$0x1] %vm107_vm3, %v22468_v1 }
  0x26   :  { %168 = vst.msk [vmem:[#allocation2 + $0x2f9] sm:$0x1] %vm107_vm3, %v22468_v1  ;;  %169 = vst.msk [vmem:[#allocation2 + $0x311] sm:$0x1] %vm107_vm3, %v22468_v1 }
  0x27   :  { %170 = vst.msk [vmem:[#allocation2 + $0x329] sm:$0x1] %vm107_vm3, %v22468_v1  ;;  %171 = vst.msk [vmem:[#allocation2 + $0x341] sm:$0x1] %vm107_vm3, %v22468_v1 }
  0x28   :  { %174 = vst.msk [vmem:[#allocation2 + $0x31] sm:$0xff] %vm91_vm1, %v29_v5  ;;  %175 = vst.msk [vmem:[#allocation2 + $0x39] sm:$0xff] %vm91_vm1, %v30_v6  ;;  %v74_v5 = vld [vmem:[%s22460_s0 + $0x178] sm:$0xff]  ;;  %v75_v6 = vld [vmem:[%s22460_s0 + $0x180] sm:$0xff] }
  0x29   :  { %176 = vst.msk [vmem:[#allocation2 + $0x49] sm:$0xff] %vm91_vm1, %v31_v7  ;;  %177 = vst.msk [vmem:[#allocation2 + $0x51] sm:$0xff] %vm91_vm1, %v32_v8  ;;  %v76_v7 = vld [vmem:[%s22460_s0 + $0x188] sm:$0xff]  ;;  %v77_v8 = vld [vmem:[%s22460_s0 + $0x190] sm:$0xff] }
  0x2a   :  { %178 = vst.msk [vmem:[#allocation2 + $0x61] sm:$0xff] %vm91_vm1, %v33_v9  ;;  %179 = vst.msk [vmem:[#allocation2 + $0x69] sm:$0xff] %vm91_vm1, %v34_v10  ;;  %v78_v9 = vld [vmem:[%s22460_s0 + $0x198] sm:$0xff] }
  0x2b   :  { %180 = vst.msk [vmem:[#allocation2 + $0x79] sm:$0xff] %vm91_vm1, %v35_v11  ;;  %181 = vst.msk [vmem:[#allocation2 + $0x81] sm:$0xff] %vm91_vm1, %v36_v12  ;;  %v79_v11 = vld [vmem:[%s22460_s0 + $0x1a0] sm:$0xff]  ;;  %v80_v12 = vld [vmem:[%s22460_s0 + $0x1a8] sm:$0xff] }
  0x2c   :  { %182 = vst.msk [vmem:[#allocation2 + $0x91] sm:$0xff] %vm91_vm1, %v37_v13  ;;  %183 = vst.msk [vmem:[#allocation2 + $0x99] sm:$0xff] %vm91_vm1, %v38_v14  ;;  %v81_v13 = vld [vmem:[%s22460_s0 + $0x1b0] sm:$0xff] }
  0x2d   :  { %184 = vst.msk [vmem:[#allocation2 + $0xa9] sm:$0xff] %vm91_vm1, %v39_v15  ;;  %185 = vst.msk [vmem:[#allocation2 + $0xb1] sm:$0xff] %vm91_vm1, %v40_v16  ;;  %v82_v15 = vld [vmem:[%s22460_s0 + $0x1b8] sm:$0xff]  ;;  %v83_v16 = vld [vmem:[%s22460_s0 + $0x1c0] sm:$0xff] }
  0x2e   :  { %186 = vst.msk [vmem:[#allocation2 + $0xc1] sm:$0xff] %vm91_vm1, %v41_v17  ;;  %187 = vst.msk [vmem:[#allocation2 + $0xc9] sm:$0xff] %vm91_vm1, %v42_v18  ;;  %v84_v17 = vld [vmem:[%s22460_s0 + $0x1c8] sm:$0xff]  ;;  %v85_v18 = vld [vmem:[%s22460_s0 + $0x1d0] sm:$0xff] }
  0x2f   :  { %188 = vst.msk [vmem:[#allocation2 + $0xd9] sm:$0xff] %vm91_vm1, %v43_v19  ;;  %189 = vst.msk [vmem:[#allocation2 + $0xe1] sm:$0xff] %vm91_vm1, %v44_v20  ;;  %v1532_v28 = vld [vmem:[#allocation2 + $0x32] sm:$0xff]  ;;  %v1533_v29 = vld [vmem:[#allocation2 + $0x3a] sm:$0xff] }
  0x30   :  { %190 = vst.msk [vmem:[#allocation2 + $0xf1] sm:$0xff] %vm91_vm1, %v45_v21  ;;  %191 = vst.msk [vmem:[#allocation2 + $0xf9] sm:$0xff] %vm91_vm1, %v46_v24  ;;  %16630 = vmatprep.mubr.msk.f32.mxu0 %vm91_vm1, %v1532_v28  ;;  %v1534_v30 = vld [vmem:[#allocation2 + $0x4a] sm:$0xff]  ;;  %v1535_v31 = vld [vmem:[#allocation2 + $0x52] sm:$0xff] }
  0x31   :  { %16631 = vmatmul.mubr.msk.f32.gmra.mrb[4].mxu0 %vm91_vm1, %v1533_v29  ;;  %v1536_v32 = vld [vmem:[#allocation2 + $0x62] sm:$0xff]  ;;  %192 = vst.msk [vmem:[#allocation2 + $0x109] sm:$0xff] %vm91_vm1, %v47_v33  ;;  %193 = vst.msk [vmem:[#allocation2 + $0x111] sm:$0xff] %vm91_vm1, %v48_v34  ;;  %v1537_v41 = vld [vmem:[#allocation2 + $0x6a] sm:$0xff] }
  0x32   :  { %16633 = vmatprep.mubr.msk.f32.mxu0 %vm91_vm1, %v1534_v30  ;;  %194 = vst.msk [vmem:[#allocation2 + $0x121] sm:$0xff] %vm91_vm1, %v49_v35  ;;  %195 = vst.msk [vmem:[#allocation2 + $0x129] sm:$0xff] %vm91_vm1, %v50_v36  ;;  %v2240_v60 = vld [vmem:[#allocation2 + $0x30] sm:$0xff]  ;;  %v2241_v61 = vld [vmem:[#allocation2 + $0x38] sm:$0xff] }
  0x33   :  { %196 = vst.msk [vmem:[#allocation2 + $0x139] sm:$0xff] %vm91_vm1, %v51_v37  ;;  %197 = vst.msk [vmem:[#allocation2 + $0x141] sm:$0xff] %vm91_vm1, %v52_v38  ;;  %v2242_v62 = vld [vmem:[#allocation2 + $0x48] sm:$0xff]  ;;  %v2243_v63 = vld [vmem:[#allocation2 + $0x50] sm:$0xff] }
  0x34   :  { %198 = vst.msk [vmem:[#allocation2 + $0x151] sm:$0xff] %vm91_vm1, %v53_v39  ;;  %199 = vst.msk [vmem:[#allocation2 + $0x159] sm:$0xff] %vm91_vm1, %v54_v40  ;;  %v2244_v0 = vld [vmem:[#allocation2 + $0x60] sm:$0xff]  ;;  %v2245_v10 = vld [vmem:[#allocation2 + $0x68] sm:$0xff] }
  0x35   :  { %16634 = vmatmul.mubr.msk.f32.gmra.mrb[6].mxu0 %vm91_vm1, %v1535_v31  ;;  %200 = vst.msk [vmem:[#allocation2 + $0x169] sm:$0xff] %vm91_vm1, %v55_v42  ;;  %201 = vst.msk [vmem:[#allocation2 + $0x171] sm:$0xff] %vm91_vm1, %v56_v43  ;;  %v2246_v14 = vld [vmem:[#allocation2 + $0x78] sm:$0xff]  ;;  %v87_v20 = vld [vmem:[%s22460_s0 + $0x1e0] sm:$0xff] }
  0x36   :  { %202 = vst.msk [vmem:[#allocation2 + $0x181] sm:$0xff] %vm91_vm1, %v57_v44  ;;  %16636 = vmatprep.mubr.msk.f32.mxu0 %vm91_vm1, %v1536_v32  ;;  %203 = vst.msk [vmem:[#allocation2 + $0x189] sm:$0xff] %vm91_vm1, %v58_v46  ;;  %v86_v19 = vld [vmem:[%s22460_s0 + $0x1d8] sm:$0xff]  ;;  %v88_v21 = vld [vmem:[%s22460_s0 + $0x1e8] sm:$0xff] }
  0x37   :  { %204 = vst.msk [vmem:[#allocation2 + $0x1c9] sm:$0xff] %vm91_vm1, %v59_v47  ;;  %205 = vst.msk [vmem:[#allocation2 + $0x1d1] sm:$0xff] %vm91_vm1, %v60_v48  ;;  %v19314_v24 = vld [vmem:[%s22461_s1 + $0x14] sm:$0x7]  ;;  %v2247_v25 = vld [vmem:[#allocation2 + $0x80] sm:$0xff] }
  0x38   :  { %206 = vst.msk [vmem:[#allocation2 + $0x1e1] sm:$0xff] %vm91_vm1, %v61_v49  ;;  %207 = vst.msk [vmem:[#allocation2 + $0x1e9] sm:$0xff] %vm91_vm1, %v62_v50  ;;  %v2249_v27 = vld [vmem:[#allocation2 + $0x98] sm:$0xff]  ;;  %v2250_v28 = vld [vmem:[#allocation2 + $0xa8] sm:$0xff] }
  0x39   :  { %208 = vst.msk [vmem:[#allocation2 + $0x1f9] sm:$0xff] %vm91_vm1, %v63_v51  ;;  %209 = vst.msk [vmem:[#allocation2 + $0x201] sm:$0xff] %vm91_vm1, %v64_v52  ;;  %16637 = vmatmul.mubr.msk.f32.gmra.mrb[8].mxu0 %vm91_vm1, %v1537_v41  ;;  %v2251_v29 = vld [vmem:[#allocation2 + $0xb0] sm:$0xff]  ;;  %v2252_v30 = vld [vmem:[#allocation2 + $0xc0] sm:$0xff] }
  0x3a   :  { %210 = vst.msk [vmem:[#allocation2 + $0x211] sm:$0xff] %vm91_vm1, %v65_v53  ;;  %211 = vst.msk [vmem:[#allocation2 + $0x219] sm:$0xff] %vm91_vm1, %v66_v54  ;;  %16722 = vmatprep.mubr.msk.f32.mxu0 %vm91_vm1, %v2238_v45 }
  0x3b   :  { %212 = vst.msk [vmem:[#allocation2 + $0x229] sm:$0xff] %vm91_vm1, %v67_v55  ;;  %213 = vst.msk [vmem:[#allocation2 + $0x231] sm:$0xff] %vm91_vm1, %v68_v56 }
  0x3c   :  { %214 = vst.msk [vmem:[#allocation2 + $0x241] sm:$0xff] %vm91_vm1, %v69_v57  ;;  %215 = vst.msk [vmem:[#allocation2 + $0x249] sm:$0xff] %vm91_vm1, %v70_v58 }
  0x3d   :  { %16723 = vmatmul.mubr.msk.f32.vlgmr.msra.gmra.mrb[0].mxu0 %vm91_vm1, %v2239_v59  ;;  %216 = vst.msk [vmem:[#allocation2 + $0x259] sm:$0xff] %vm91_vm1, %v71_v2  ;;  %217 = vst.msk [vmem:[#allocation2 + $0x261] sm:$0xff] %vm91_vm1, %v72_v3 }
  0x3e   :  { %16819 = vmatpush3.msk.msra.mxu0 %vm559_vm0, %v19110_v26  ;;  %16725 = vmatprep.mubr.msk.f32.mxu0 %vm91_vm1, %v2240_v60  ;;  %218 = vst.msk [vmem:[#allocation2 + $0x271] sm:$0xff] %vm91_vm1, %v73_v4  ;;  %219 = vst.msk [vmem:[#allocation2 + $0x279] sm:$0xff] %vm91_vm1, %v74_v5  ;;  %v2248_v26 = vld [vmem:[#allocation2 + $0x90] sm:$0xff] }
  0x3f   :  { %220 = vst.msk [vmem:[#allocation2 + $0x289] sm:$0xff] %vm91_vm1, %v75_v6  ;;  %221 = vst.msk [vmem:[#allocation2 + $0x291] sm:$0xff] %vm91_vm1, %v76_v7  ;;  %16916 = vmatprep.subr.msk.mxu0 %vm559_vm0, %v19314_v24 }
  0x40   :  { %222 = vst.msk [vmem:[#allocation2 + $0x2a1] sm:$0xff] %vm91_vm1, %v77_v8  ;;  %223 = vst.msk [vmem:[#allocation2 + $0x2a9] sm:$0xff] %vm91_vm1, %v78_v9 }
  0x41   :  { %16726 = vmatmul.mubr.msk.f32.gmra.mrb[2].mxu0 %vm91_vm1, %v2241_v61  ;;  %224 = vst.msk [vmem:[#allocation2 + $0x2b9] sm:$0xff] %vm91_vm1, %v79_v11  ;;  %225 = vst.msk [vmem:[#allocation2 + $0x2c1] sm:$0xff] %vm91_vm1, %v80_v12 }
  0x42   :  { %16728 = vmatprep.mubr.msk.f32.mxu0 %vm91_vm1, %v2242_v62  ;;  %226 = vst.msk [vmem:[#allocation2 + $0x2d1] sm:$0xff] %vm91_vm1, %v81_v13  ;;  %227 = vst.msk [vmem:[#allocation2 + $0x2d9] sm:$0xff] %vm91_vm1, %v82_v15 }
  0x43   :  { %228 = vst.msk [vmem:[#allocation2 + $0x2e9] sm:$0xff] %vm91_vm1, %v83_v16  ;;  %229 = vst.msk [vmem:[#allocation2 + $0x2f1] sm:$0xff] %vm91_vm1, %v84_v17 }
  0x44   :  { %230 = vst.msk [vmem:[#allocation2 + $0x301] sm:$0xff] %vm91_vm1, %v85_v18  ;;  %231 = vst.msk [vmem:[#allocation2 + $0x309] sm:$0xff] %vm91_vm1, %v86_v19 }
  0x45   :  { %16729 = vmatmul.mubr.msk.f32.gmra.mrb[4].mxu0 %vm91_vm1, %v2243_v63  ;;  %232 = vst.msk [vmem:[#allocation2 + $0x319] sm:$0xff] %vm91_vm1, %v87_v20  ;;  %233 = vst.msk [vmem:[#allocation2 + $0x321] sm:$0xff] %vm91_vm1, %v88_v21 }
  0x46   :  { %16731 = vmatprep.mubr.msk.f32.mxu0 %vm91_vm1, %v2244_v0  ;;  %234 = vst.msk [vmem:[#allocation2 + $0x331] sm:$0xff] %vm91_vm1, %v89_v22  ;;  %235 = vst.msk [vmem:[#allocation2 + $0x339] sm:$0xff] %vm91_vm1, %v90_v23 }
  0x49   :  { %16732 = vmatmul.mubr.msk.f32.gmra.mrb[6].mxu0 %vm91_vm1, %v2245_v10 }
  0x4a   :  { %16734 = vmatprep.mubr.msk.f32.mxu0 %vm91_vm1, %v2246_v14 }
  0x4d   :  { %16735 = vmatmul.mubr.msk.f32.gmra.mrb[8].mxu0 %vm91_vm1, %v2247_v25 }
  0x4e   :  { %16737 = vmatprep.mubr.msk.f32.mxu0 %vm91_vm1, %v2248_v26 }
  0x51   :  { %16738 = vmatmul.mubr.msk.f32.gmra.mrb[10].mxu0 %vm91_vm1, %v2249_v27 }
  0x52   :  { %16740 = vmatprep.mubr.msk.f32.mxu0 %vm91_vm1, %v2250_v28 }
  0x53   :  { %12 = vsyncpa [#allocation6], 0  ;;  %v2253_v31 = vld [vmem:[#allocation2 + $0xc8] sm:$0xff]  ;;  %v2254_v32 = vld [vmem:[#allocation2 + $0xd8] sm:$0xff]  ;;  %vm8938_vm4 = vcmask 261120   ;;  %vm8940_vm5 = vcmask 254976  }
  0x54   :  { %v2255_v33 = vld [vmem:[#allocation2 + $0xe0] sm:$0xff]  ;;  %v2256_v34 = vld [vmem:[#allocation2 + $0xf0] sm:$0xff]  ;;  %v2257_v35 = vld [vmem:[#allocation2 + $0xf8] sm:$0xff]  ;;  %vm9623_vm10 = vcmask 1041409   ;;  %vm9625_vm11 = vcmask 1042434   ;;  %vm9627_vm12 = vcmask 1043459  }
  0x55   :  { %16741 = vmatmul.mubr.msk.f32.gmra.mrb[12].mxu0 %vm91_vm1, %v2251_v29  ;;  %v2258_v36 = vld [vmem:[#allocation2 + $0x108] sm:$0xff]  ;;  %v14513_v37 = vld [vmem:[%s22461_s1 + $0x4] sm:$0x7]  ;;  %v2259_v40 = vld [vmem:[#allocation2 + $0x110] sm:$0xff]  ;;  %vm9629_vm13 = vcmask 1044484   ;;  %vm9631_vm14 = vcmask 1045509  }
  0x56   :  { %16743 = vmatprep.mubr.msk.f32.mxu0 %vm91_vm1, %v2252_v30  ;;  %v301_v38 = vld [vmem:[#allocation2 + $0x1] sm:$0xff]  ;;  %v302_v39 = vld [vmem:[#allocation2 + $0x9] sm:$0xff]  ;;  %16426 = vmatprep.subr.msk.mxu1 %vm559_vm0, %v14513_v37  ;;  %v19338_v42 = vld [vmem:[#allocation2 + $0x19] sm:$0xff]  ;;  %vm9633_vm15 = vcmask 1046534   ;;  %s18796_s15 = smov 24   ;;  %s18797_s16 = smov 4  }
  0x57   :  { %v2260_v41 = vld [vmem:[#allocation2 + $0x120] sm:$0xff]  ;;  %16427 = vmatpush3.msk.msra.mxu1 %vm559_vm0, %v14513_v37  ;;  %16428 = vmatprep.mubr.msk.f32.mxu1 %vm91_vm1, %v301_v38  ;;  %v2261_v43 = vld [vmem:[#allocation2 + $0x128] sm:$0xff]  ;;  %v2262_v44 = vld [vmem:[#allocation2 + $0x138] sm:$0xff]  ;;  %s18798_s17 = smov 12   ;;  %s18799_s18 = smov 80  }
  0x58   :  { %16429 = vmatmul.mubr.msk.f32.vlgmr.msra.gmra.mrb[0].mxu1 %vm91_vm1, %v302_v39  ;;  %v19345_v45 = vld [vmem:[#allocation2 + $0x21] sm:$0xff]  ;;  %v19347_v46 = vld [vmem:[#allocation2 + $0x31] sm:$0xff]  ;;  %v19355_v49 = vld [vmem:[#allocation2 + $0x39] sm:$0xff]  ;;  %s18800_s19 = smov 16   ;;  %s18801_s20 = smov 88  }
  0x59   :  { %16744 = vmatmul.mubr.msk.f32.gmra.mrb[14].mxu0 %vm91_vm1, %v2253_v31  ;;  %16431 = vmatprep.mubr.msk.f32.mxu1 %vm91_vm1, %v19338_v42  ;;  %v2263_v47 = vld [vmem:[#allocation2 + $0x140] sm:$0xff]  ;;  %v2264_v48 = vld [vmem:[#allocation2 + $0x150] sm:$0xff]  ;;  %v2265_v51 = vld [vmem:[#allocation2 + $0x158] sm:$0xff]  ;;  %s18802_s21 = smov 20   ;;  %s18803_s0 = smov 96  }
  0x5a   :  { %16746 = vmatprep.mubr.msk.f32.mxu0 %vm91_vm1, %v2254_v32  ;;  %v19357_v50 = vld [vmem:[#allocation2 + $0x49] sm:$0xff]  ;;  %v19365_v53 = vld [vmem:[#allocation2 + $0x51] sm:$0xff]  ;;  %v19367_v54 = vld [vmem:[#allocation2 + $0x61] sm:$0xff]  ;;  %s18805_s22 = smov 104   ;;  %s18806_s23 = smov 32  }
  0x5b   :  { %v2266_v52 = vld [vmem:[#allocation2 + $0x168] sm:$0xff]  ;;  %v2267_v55 = vld [vmem:[#allocation2 + $0x170] sm:$0xff]  ;;  %v2268_v56 = vld [vmem:[#allocation2 + $0x180] sm:$0xff]  ;;  %s18807_s24 = smov 112   ;;  %s18808_s25 = smov 40  }
  0x5c   :  { %16432 = vmatmul.mubr.msk.f32.gmra.mrb[2].mxu1 %vm91_vm1, %v19345_v45  ;;  %v19375_v57 = vld [vmem:[#allocation2 + $0x69] sm:$0xff]  ;;  %v19377_v58 = vld [vmem:[#allocation2 + $0x79] sm:$0xff]  ;;  %v19385_v61 = vld [vmem:[#allocation2 + $0x81] sm:$0xff]  ;;  %s18809_s26 = smov 120   ;;  %s18810_s27 = smov 36  }
  0x5d   :  { %16747 = vmatmul.mubr.msk.f32.gmra.mrb[16].mxu0 %vm91_vm1, %v2255_v33  ;;  %16434 = vmatprep.mubr.msk.f32.mxu1 %vm91_vm1, %v19347_v46  ;;  %v2269_v59 = vld [vmem:[#allocation2 + $0x188] sm:$0xff]  ;;  %v19387_v62 = vld [vmem:[#allocation2 + $0x91] sm:$0xff]  ;;  %v2272_v0 = vld [vmem:[#allocation2 + $0x1e0] sm:$0xff]  ;;  %s18811_s28 = smov 44   ;;  %s18812_s29 = smov 48  }
  0x5e   :  { %16749 = vmatprep.mubr.msk.f32.mxu0 %vm91_vm1, %v2256_v34  ;;  %v2270_v60 = vld [vmem:[#allocation2 + $0x1c8] sm:$0xff]  ;;  %v2271_v63 = vld [vmem:[#allocation2 + $0x1d0] sm:$0xff]  ;;  %v19395_v2 = vld [vmem:[#allocation2 + $0x99] sm:$0xff]  ;;  %s18813_s30 = smov 56   ;;  %s18814_s8 = smov 52  }
  0x5f   :  { %v19397_v3 = vld [vmem:[#allocation2 + $0xa9] sm:$0xff]  ;;  %v2274_v5 = vld [vmem:[#allocation2 + $0x1f8] sm:$0xff]  ;;  %v19407_v7 = vld [vmem:[#allocation2 + $0xc1] sm:$0xff]  ;;  %s18815_s9 = smov 60   ;;  %s18819_s10 = smov 76  }
  0x60   :  { %16435 = vmatmul.mubr.msk.f32.gmra.mrb[4].mxu1 %vm91_vm1, %v19355_v49  ;;  %v2273_v4 = vld [vmem:[#allocation2 + $0x1e8] sm:$0xff]  ;;  %v19405_v6 = vld [vmem:[#allocation2 + $0xb1] sm:$0xff]  ;;  %v2275_v8 = vld [vmem:[#allocation2 + $0x200] sm:$0xff]  ;;  %s18820_s11 = smov 84   ;;  %s18821_s12 = smov 92  }
  0x61   :  { %16750 = vmatmul.mubr.msk.f32.gmra.mrb[18].mxu0 %vm91_vm1, %v2257_v35  ;;  %16437 = vmatprep.mubr.msk.f32.mxu1 %vm91_vm1, %v19357_v50  ;;  %v2276_v9 = vld [vmem:[#allocation2 + $0x210] sm:$0xff]  ;;  %v19417_v11 = vld [vmem:[#allocation2 + $0xd9] sm:$0xff]  ;;  %v2278_v13 = vld [vmem:[#allocation2 + $0x228] sm:$0xff]  ;;  %s18822_s13 = smov 100   ;;  %s18824_s14 = smov 116  }
  0x62   :  { %16752 = vmatprep.mubr.msk.f32.mxu0 %vm91_vm1, %v2258_v36  ;;  %v19415_v10 = vld [vmem:[#allocation2 + $0xc9] sm:$0xff]  ;;  %v2277_v12 = vld [vmem:[#allocation2 + $0x218] sm:$0xff]  ;;  %v19425_v14 = vld [vmem:[#allocation2 + $0xe1] sm:$0xff] }
  0x63   :  { %v19427_v15 = vld [vmem:[#allocation2 + $0xf1] sm:$0xff]  ;;  %v2280_v17 = vld [vmem:[#allocation2 + $0x240] sm:$0xff]  ;;  %v19437_v19 = vld [vmem:[#allocation2 + $0x109] sm:$0xff] }
  0x64   :  { %16438 = vmatmul.mubr.msk.f32.gmra.mrb[6].mxu1 %vm91_vm1, %v19365_v53  ;;  %v2279_v16 = vld [vmem:[#allocation2 + $0x230] sm:$0xff]  ;;  %v19435_v18 = vld [vmem:[#allocation2 + $0xf9] sm:$0xff]  ;;  %v2281_v20 = vld [vmem:[#allocation2 + $0x248] sm:$0xff] }
  0x65   :  { %16753 = vmatmul.mubr.msk.f32.gmra.mrb[20].mxu0 %vm91_vm1, %v2259_v40  ;;  %16440 = vmatprep.mubr.msk.f32.mxu1 %vm91_vm1, %v19367_v54  ;;  %v2282_v21 = vld [vmem:[#allocation2 + $0x258] sm:$0xff]  ;;  %v19447_v23 = vld [vmem:[#allocation2 + $0x121] sm:$0xff]  ;;  %v2284_v26 = vld [vmem:[#allocation2 + $0x270] sm:$0xff] }
  0x66   :  { %16755 = vmatprep.mubr.msk.f32.mxu0 %vm91_vm1, %v2260_v41  ;;  %v19445_v22 = vld [vmem:[#allocation2 + $0x111] sm:$0xff]  ;;  %v2283_v25 = vld [vmem:[#allocation2 + $0x260] sm:$0xff]  ;;  %v19455_v27 = vld [vmem:[#allocation2 + $0x129] sm:$0xff] }
  0x67   :  { %v19457_v28 = vld [vmem:[#allocation2 + $0x139] sm:$0xff]  ;;  %v2286_v30 = vld [vmem:[#allocation2 + $0x288] sm:$0xff]  ;;  %v19467_v32 = vld [vmem:[#allocation2 + $0x151] sm:$0xff] }
  0x68   :  { %16441 = vmatmul.mubr.msk.f32.gmra.mrb[8].mxu1 %vm91_vm1, %v19375_v57  ;;  %v2285_v29 = vld [vmem:[#allocation2 + $0x278] sm:$0xff]  ;;  %v19465_v31 = vld [vmem:[#allocation2 + $0x141] sm:$0xff]  ;;  %v2287_v33 = vld [vmem:[#allocation2 + $0x290] sm:$0xff] }
  0x69   :  { %16756 = vmatmul.mubr.msk.f32.gmra.mrb[22].mxu0 %vm91_vm1, %v2261_v43  ;;  %16443 = vmatprep.mubr.msk.f32.mxu1 %vm91_vm1, %v19377_v58  ;;  %v2288_v34 = vld [vmem:[#allocation2 + $0x2a0] sm:$0xff]  ;;  %v19477_v36 = vld [vmem:[#allocation2 + $0x169] sm:$0xff]  ;;  %v2290_v38 = vld [vmem:[#allocation2 + $0x2b8] sm:$0xff] }
  0x6a   :  { %16758 = vmatprep.mubr.msk.f32.mxu0 %vm91_vm1, %v2262_v44  ;;  %v19475_v35 = vld [vmem:[#allocation2 + $0x159] sm:$0xff]  ;;  %v2289_v37 = vld [vmem:[#allocation2 + $0x2a8] sm:$0xff]  ;;  %v19485_v39 = vld [vmem:[#allocation2 + $0x171] sm:$0xff] }
  0x6b   :  { %v333_v40 = vld [vmem:[#allocation2 + $0x1b1] sm:$0xff]  ;;  %v334_v41 = vld [vmem:[#allocation2 + $0x1b9] sm:$0xff]  ;;  %v20010_v1 = vld [vmem:[#allocation2 + $0x308] sm:$0xff] }
  0x6c   :  { %16444 = vmatmul.mubr.msk.f32.gmra.mrb[10].mxu1 %vm91_vm1, %v19385_v61  ;;  %v2291_v43 = vld [vmem:[#allocation2 + $0x2c0] sm:$0xff]  ;;  %v2292_v44 = vld [vmem:[#allocation2 + $0x2d0] sm:$0xff]  ;;  %22491 = vst [vmem:[#allocation16_spill] sm:$0xff] %v20010_v1 }
  0x6d   :  { %16759 = vmatmul.mubr.msk.f32.gmra.mrb[24].mxu0 %vm91_vm1, %v2263_v47  ;;  %16446 = vmatprep.mubr.msk.f32.mxu1 %vm91_vm1, %v19387_v62  ;;  %v19492_v47 = vld [vmem:[#allocation2 + $0x1c9] sm:$0xff] }
  0x6e   :  { %16761 = vmatprep.mubr.msk.f32.mxu0 %vm91_vm1, %v2264_v48  ;;  %v2293_v48 = vld [vmem:[#allocation2 + $0x2d8] sm:$0xff] }
  0x70   :  { %16447 = vmatmul.mubr.msk.f32.gmra.mrb[12].mxu1 %vm91_vm1, %v19395_v2 }
  0x71   :  { %16762 = vmatmul.mubr.msk.f32.gmra.mrb[26].mxu0 %vm91_vm1, %v2265_v51  ;;  %16449 = vmatprep.mubr.msk.f32.mxu1 %vm91_vm1, %v19397_v3  ;;  %v2294_v51 = vld [vmem:[#allocation2 + $0x2e8] sm:$0xff] }
  0x72   :  { %16764 = vmatprep.mubr.msk.f32.mxu0 %vm91_vm1, %v2266_v52  ;;  %v19499_v52 = vld [vmem:[#allocation2 + $0x1d1] sm:$0xff] }
  0x74   :  { %16450 = vmatmul.mubr.msk.f32.gmra.mrb[14].mxu1 %vm91_vm1, %v19405_v6 }
  0x75   :  { %16765 = vmatmul.mubr.msk.f32.gmra.mrb[28].mxu0 %vm91_vm1, %v2267_v55  ;;  %16452 = vmatprep.mubr.msk.f32.mxu1 %vm91_vm1, %v19407_v7  ;;  %v19501_v55 = vld [vmem:[#allocation2 + $0x1e1] sm:$0xff] }
  0x76   :  { %16767 = vmatprep.mubr.msk.f32.mxu0 %vm91_vm1, %v2268_v56  ;;  %v2295_v56 = vld [vmem:[#allocation2 + $0x2f0] sm:$0xff] }
  0x78   :  { %16453 = vmatmul.mubr.msk.f32.gmra.mrb[16].mxu1 %vm91_vm1, %v19415_v10 }
  0x79   :  { %16768 = vmatmul.mubr.msk.f32.gmra.mrb[30].mxu0 %vm91_vm1, %v2269_v59  ;;  %16455 = vmatprep.mubr.msk.f32.mxu1 %vm91_vm1, %v19417_v11  ;;  %v2296_v59 = vld [vmem:[#allocation2 + $0x300] sm:$0xff] }
  0x7a   :  { %16770 = vmatprep.mubr.msk.f32.mxu0 %vm91_vm1, %v2270_v60  ;;  %v19509_v60 = vld [vmem:[#allocation2 + $0x1e9] sm:$0xff] }
  0x7c   :  { %16456 = vmatmul.mubr.msk.f32.gmra.mrb[18].mxu1 %vm91_vm1, %v19425_v14 }
  0x7d   :  { %16771 = vmatmul.mubr.msk.f32.gmra.mrb[32].mxu0 %vm91_vm1, %v2271_v63  ;;  %16458 = vmatprep.mubr.msk.f32.mxu1 %vm91_vm1, %v19427_v15  ;;  %v19511_v63 = vld [vmem:[#allocation2 + $0x1f9] sm:$0xff] }
  0x7e   :  { %16773 = vmatprep.mubr.msk.f32.mxu0 %vm91_vm1, %v2272_v0  ;;  %v2297_v0 = vld [vmem:[#allocation2 + $0x308] sm:$0xff] }
  0x80   :  { %16459 = vmatmul.mubr.msk.f32.gmra.mrb[20].mxu1 %vm91_vm1, %v19435_v18 }
  0x81   :  { %16774 = vmatmul.mubr.msk.f32.gmra.mrb[34].mxu0 %vm91_vm1, %v2273_v4  ;;  %16461 = vmatprep.mubr.msk.f32.mxu1 %vm91_vm1, %v19437_v19  ;;  %v2298_v4 = vld [vmem:[#allocation2 + $0x318] sm:$0xff] }
  0x82   :  { %16776 = vmatprep.mubr.msk.f32.mxu0 %vm91_vm1, %v2274_v5  ;;  %v19519_v5 = vld [vmem:[#allocation2 + $0x201] sm:$0xff] }
  0x84   :  { %16462 = vmatmul.mubr.msk.f32.gmra.mrb[22].mxu1 %vm91_vm1, %v19445_v22 }
  0x85   :  { %16777 = vmatmul.mubr.msk.f32.gmra.mrb[36].mxu0 %vm91_vm1, %v2275_v8  ;;  %16464 = vmatprep.mubr.msk.f32.mxu1 %vm91_vm1, %v19447_v23  ;;  %v19521_v8 = vld [vmem:[#allocation2 + $0x211] sm:$0xff] }
  0x86   :  { %16779 = vmatprep.mubr.msk.f32.mxu0 %vm91_vm1, %v2276_v9  ;;  %v2299_v9 = vld [vmem:[#allocation2 + $0x320] sm:$0xff] }
  0x88   :  { %16465 = vmatmul.mubr.msk.f32.gmra.mrb[24].mxu1 %vm91_vm1, %v19455_v27 }
  0x89   :  { %16780 = vmatmul.mubr.msk.f32.gmra.mrb[38].mxu0 %vm91_vm1, %v2277_v12  ;;  %16467 = vmatprep.mubr.msk.f32.mxu1 %vm91_vm1, %v19457_v28  ;;  %v2300_v12 = vld [vmem:[#allocation2 + $0x330] sm:$0xff] }
  0x8a   :  { %16782 = vmatprep.mubr.msk.f32.mxu0 %vm91_vm1, %v2278_v13  ;;  %v19529_v13 = vld [vmem:[#allocation2 + $0x219] sm:$0xff] }
  0x8c   :  { %16468 = vmatmul.mubr.msk.f32.gmra.mrb[26].mxu1 %vm91_vm1, %v19465_v31 }
  0x8d   :  { %16783 = vmatmul.mubr.msk.f32.gmra.mrb[40].mxu0 %vm91_vm1, %v2279_v16  ;;  %16470 = vmatprep.mubr.msk.f32.mxu1 %vm91_vm1, %v19467_v32  ;;  %v19531_v16 = vld [vmem:[#allocation2 + $0x229] sm:$0xff] }
  0x8e   :  { %16785 = vmatprep.mubr.msk.f32.mxu0 %vm91_vm1, %v2280_v17  ;;  %v2301_v17 = vld [vmem:[#allocation2 + $0x338] sm:$0xff] }
  0x90   :  { %16471 = vmatmul.mubr.msk.f32.gmra.mrb[28].mxu1 %vm91_vm1, %v19475_v35 }
  0x91   :  { %16786 = vmatmul.mubr.msk.f32.gmra.mrb[42].mxu0 %vm91_vm1, %v2281_v20  ;;  %16473 = vmatprep.mubr.msk.f32.mxu1 %vm91_vm1, %v19477_v36  ;;  %v19539_v20 = vld [vmem:[#allocation2 + $0x231] sm:$0xff] }
  0x92   :  { %16788 = vmatprep.mubr.msk.f32.mxu0 %vm91_vm1, %v2282_v21  ;;  %v19541_v21 = vld [vmem:[#allocation2 + $0x241] sm:$0xff] }
  0x94   :  { %16474 = vmatmul.mubr.msk.f32.gmra.mrb[30].mxu1 %vm91_vm1, %v19485_v39 }
  0x95   :  { %16789 = vmatmul.mubr.msk.f32.gmra.mrb[44].mxu0 %vm91_vm1, %v2283_v25  ;;  %16476 = vmatprep.mubr.msk.f32.mxu1 %vm91_vm1, %v333_v40  ;;  %v19550_v25 = vld [vmem:[#allocation2 + $0x249] sm:$0xff] }
  0x96   :  { %16791 = vmatprep.mubr.msk.f32.mxu0 %vm91_vm1, %v2284_v26  ;;  %v19552_v26 = vld [vmem:[#allocation2 + $0x259] sm:$0xff]  ;;  %v19755_v40 = vld [vmem:[#allocation2 + $0xb0] sm:$0xff] }
  0x98   :  { %16477 = vmatmul.mubr.msk.f32.gmra.mrb[32].mxu1 %vm91_vm1, %v334_v41  ;;  %v19765_v41 = vld [vmem:[#allocation2 + $0xc0] sm:$0xff] }
  0x99   :  { %16792 = vmatmul.mubr.msk.f32.gmra.mrb[46].mxu0 %vm91_vm1, %v2285_v29  ;;  %16479 = vmatprep.mubr.msk.f32.mxu1 %vm91_vm1, %v19492_v47  ;;  %v19559_v29 = vld [vmem:[%s22461_s1 + $0x18] sm:$0x7] }
  0x9a   :  { %16794 = vmatprep.mubr.msk.f32.mxu0 %vm91_vm1, %v2286_v30  ;;  %v19573_v30 = vld [vmem:[#allocation2 + $0x271] sm:$0xff] }
  0x9c   :  { %16480 = vmatmul.mubr.msk.f32.gmra.mrb[34].mxu1 %vm91_vm1, %v19499_v52 }
  0x9d   :  { %16795 = vmatmul.mubr.msk.f32.gmra.mrb[48].mxu0 %vm91_vm1, %v2287_v33  ;;  %16482 = vmatprep.mubr.msk.f32.mxu1 %vm91_vm1, %v19501_v55  ;;  %v239_v33 = vld [vmem:[#allocation2 + $0x20] sm:$0xff] }
  0x9e   :  { %16797 = vmatprep.mubr.msk.f32.mxu0 %vm91_vm1, %v2288_v34  ;;  %v19697_v34 = vld [vmem:[#allocation2 + $0x38] sm:$0xff] }
  0xa0   :  { %16483 = vmatmul.mubr.msk.f32.gmra.mrb[36].mxu1 %vm91_vm1, %v19509_v60 }
  0xa1   :  { %16798 = vmatmul.mubr.msk.f32.gmra.mrb[50].mxu0 %vm91_vm1, %v2289_v37  ;;  %16485 = vmatprep.mubr.msk.f32.mxu1 %vm91_vm1, %v19511_v63  ;;  %v2979_v37 = vld [vmem:[#allocation2 + $0x189] sm:$0xff] }
  0xa2   :  { %16800 = vmatprep.mubr.msk.f32.mxu0 %vm91_vm1, %v2290_v38  ;;  %v19743_v38 = vld [vmem:[#allocation2 + $0x98] sm:$0xff] }
  0xa4   :  { %16486 = vmatmul.mubr.msk.f32.gmra.mrb[38].mxu1 %vm91_vm1, %v19519_v5 }
  0xa5   :  { %16801 = vmatmul.mubr.msk.f32.gmra.mrb[52].mxu0 %vm91_vm1, %v2291_v43  ;;  %16488 = vmatprep.mubr.msk.f32.mxu1 %vm91_vm1, %v19521_v8  ;;  %v19767_v43 = vld [vmem:[#allocation2 + $0xc8] sm:$0xff] }
  0xa6   :  { %16803 = vmatprep.mubr.msk.f32.mxu0 %vm91_vm1, %v2292_v44  ;;  %v19777_v44 = vld [vmem:[#allocation2 + $0xd8] sm:$0xff] }
  0xa8   :  { %16489 = vmatmul.mubr.msk.f32.gmra.mrb[40].mxu1 %vm91_vm1, %v19529_v13 }
  0xa9   :  { %16804 = vmatmul.mubr.msk.f32.gmra.mrb[54].mxu0 %vm91_vm1, %v2293_v48  ;;  %16491 = vmatprep.mubr.msk.f32.mxu1 %vm91_vm1, %v19531_v16  ;;  %v19789_v48 = vld [vmem:[#allocation2 + $0xf0] sm:$0xff] }
  0xaa   :  { %16806 = vmatprep.mubr.msk.f32.mxu0 %vm91_vm1, %v2294_v51  ;;  %v19791_v51 = vld [vmem:[#allocation2 + $0xf8] sm:$0xff] }
  0xac   :  { %16492 = vmatmul.mubr.msk.f32.gmra.mrb[42].mxu1 %vm91_vm1, %v19539_v20 }
  0xad   :  { %16807 = vmatmul.mubr.msk.f32.gmra.mrb[56].mxu0 %vm91_vm1, %v2295_v56  ;;  %16494 = vmatprep.mubr.msk.f32.mxu1 %vm91_vm1, %v19541_v21  ;;  %v19813_v56 = vld [vmem:[#allocation2 + $0x120] sm:$0xff] }
  0xae   :  { %16809 = vmatprep.mubr.msk.f32.mxu0 %vm91_vm1, %v2296_v59  ;;  %v19815_v59 = vld [vmem:[#allocation2 + $0x128] sm:$0xff] }
  0xb0   :  { %16495 = vmatmul.mubr.msk.f32.gmra.mrb[44].mxu1 %vm91_vm1, %v19550_v25 }
  0xb1   :  { %16810 = vmatmul.mubr.msk.f32.gmra.mrb[58].mxu0 %vm91_vm1, %v2297_v0  ;;  %16497 = vmatprep.mubr.msk.f32.mxu1 %vm91_vm1, %v19552_v26  ;;  %v19837_v0 = vld [vmem:[#allocation2 + $0x150] sm:$0xff] }
  0xb2   :  { %16812 = vmatprep.mubr.msk.f32.mxu0 %vm91_vm1, %v2298_v4  ;;  %v19839_v4 = vld [vmem:[#allocation2 + $0x158] sm:$0xff] }
  0xb5   :  { %16813 = vmatmul.mubr.msk.f32.gmra.mrb[60].mxu0 %vm91_vm1, %v2299_v9  ;;  %v268_v9 = vld [vmem:[#allocation2 + $0x1b0] sm:$0xff] }
  0xb6   :  { %16815 = vmatprep.mubr.msk.f32.mxu0 %vm91_vm1, %v2300_v12  ;;  %v269_v12 = vld [vmem:[#allocation2 + $0x1b8] sm:$0xff] }
  0xb9   :  { %16816 = vmatmul.mubr.msk.f32.gmra.mrb[62].mxu0 %vm91_vm1, %v2301_v17  ;;  %v19873_v17 = vld [vmem:[#allocation2 + $0x1e0] sm:$0xff] }
  0xba   :  { %16820 = vmatprep.mubr.msk.f32.mxu0 %vm91_vm1, %v19338_v42  ;;  %v19569_v42 = vld [vmem:[#allocation2 + $0x261] sm:$0xff] }
  0xbb   :  { %16498 = vmatmul.mubr.msk.f32.gmra.mrb[46].mxu1 %vm91_vm1, %v19569_v42 }
  0xbc   :  { %16500 = vmatprep.mubr.msk.f32.mxu1 %vm91_vm1, %v19573_v30 }
  0xbd   :  { %16821 = vmatmul.mubr.msk.f32.vlgmr.msra.gmra.mrb[0].mxu0 %vm91_vm1, %v19345_v45  ;;  %v19585_v45 = vld [vmem:[#allocation2 + $0x289] sm:$0xff] }
  0xbe   :  { %16917 = vmatpush3.msk.msra.mxu0 %vm559_vm0, %v19314_v24  ;;  %16823 = vmatprep.mubr.msk.f32.mxu0 %vm91_vm1, %v19347_v46  ;;  %v19583_v24 = vld [vmem:[#allocation2 + $0x279] sm:$0xff]  ;;  %v19595_v46 = vld [vmem:[#allocation2 + $0x291] sm:$0xff] }
  0xbf   :  { %17014 = vmatprep.subr.msk.mxu0 %vm559_vm0, %v19559_v29  ;;  %16501 = vmatmul.mubr.msk.f32.gmra.mrb[48].mxu1 %vm91_vm1, %v19583_v24 }
  0xc0   :  { %16503 = vmatprep.mubr.msk.f32.mxu1 %vm91_vm1, %v19585_v45 }
  0xc1   :  { %16824 = vmatmul.mubr.msk.f32.gmra.mrb[2].mxu0 %vm91_vm1, %v19355_v49  ;;  %v19597_v49 = vld [vmem:[#allocation2 + $0x2a1] sm:$0xff] }
  0xc2   :  { %16826 = vmatprep.mubr.msk.f32.mxu0 %vm91_vm1, %v19357_v50  ;;  %v19607_v50 = vld [vmem:[#allocation2 + $0x2a9] sm:$0xff] }
  0xc3   :  { %16504 = vmatmul.mubr.msk.f32.gmra.mrb[50].mxu1 %vm91_vm1, %v19595_v46 }
  0xc4   :  { %16506 = vmatprep.mubr.msk.f32.mxu1 %vm91_vm1, %v19597_v49 }
  0xc5   :  { %16827 = vmatmul.mubr.msk.f32.gmra.mrb[4].mxu0 %vm91_vm1, %v19365_v53  ;;  %v19609_v53 = vld [vmem:[#allocation2 + $0x2b9] sm:$0xff] }
  0xc6   :  { %16829 = vmatprep.mubr.msk.f32.mxu0 %vm91_vm1, %v19367_v54  ;;  %v19619_v54 = vld [vmem:[#allocation2 + $0x2c1] sm:$0xff] }
  0xc7   :  { %16507 = vmatmul.mubr.msk.f32.gmra.mrb[52].mxu1 %vm91_vm1, %v19607_v50 }
  0xc8   :  { %16509 = vmatprep.mubr.msk.f32.mxu1 %vm91_vm1, %v19609_v53 }
  0xc9   :  { %16830 = vmatmul.mubr.msk.f32.gmra.mrb[6].mxu0 %vm91_vm1, %v19375_v57  ;;  %v19621_v57 = vld [vmem:[#allocation2 + $0x2d1] sm:$0xff] }
  0xca   :  { %16832 = vmatprep.mubr.msk.f32.mxu0 %vm91_vm1, %v19377_v58  ;;  %v19631_v58 = vld [vmem:[#allocation2 + $0x2d9] sm:$0xff] }
  0xcb   :  { %16510 = vmatmul.mubr.msk.f32.gmra.mrb[54].mxu1 %vm91_vm1, %v19619_v54 }
  0xcc   :  { %16512 = vmatprep.mubr.msk.f32.mxu1 %vm91_vm1, %v19621_v57 }
  0xcd   :  { %16833 = vmatmul.mubr.msk.f32.gmra.mrb[8].mxu0 %vm91_vm1, %v19385_v61  ;;  %v19633_v61 = vld [vmem:[#allocation2 + $0x2e9] sm:$0xff] }
  0xce   :  { %16835 = vmatprep.mubr.msk.f32.mxu0 %vm91_vm1, %v19387_v62  ;;  %v19643_v62 = vld [vmem:[#allocation2 + $0x2f1] sm:$0xff] }
  0xcf   :  { %16513 = vmatmul.mubr.msk.f32.gmra.mrb[56].mxu1 %vm91_vm1, %v19631_v58 }
  0xd0   :  { %16515 = vmatprep.mubr.msk.f32.mxu1 %vm91_vm1, %v19633_v61 }
  0xd1   :  { %16836 = vmatmul.mubr.msk.f32.gmra.mrb[10].mxu0 %vm91_vm1, %v19395_v2  ;;  %v19645_v2 = vld [vmem:[#allocation2 + $0x301] sm:$0xff] }
  0xd2   :  { %16838 = vmatprep.mubr.msk.f32.mxu0 %vm91_vm1, %v19397_v3  ;;  %v19655_v3 = vld [vmem:[#allocation2 + $0x309] sm:$0xff] }
  0xd3   :  { %16516 = vmatmul.mubr.msk.f32.gmra.mrb[58].mxu1 %vm91_vm1, %v19643_v62 }
  0xd4   :  { %16518 = vmatprep.mubr.msk.f32.mxu1 %vm91_vm1, %v19645_v2 }
  0xd5   :  { %16839 = vmatmul.mubr.msk.f32.gmra.mrb[12].mxu0 %vm91_vm1, %v19405_v6  ;;  %v19657_v6 = vld [vmem:[#allocation2 + $0x319] sm:$0xff] }
  0xd6   :  { %16841 = vmatprep.mubr.msk.f32.mxu0 %vm91_vm1, %v19407_v7  ;;  %v19667_v7 = vld [vmem:[#allocation2 + $0x321] sm:$0xff] }
  0xd7   :  { %16519 = vmatmul.mubr.msk.f32.gmra.mrb[60].mxu1 %vm91_vm1, %v19655_v3 }
  0xd8   :  { %16521 = vmatprep.mubr.msk.f32.mxu1 %vm91_vm1, %v19657_v6 }
  0xd9   :  { %16842 = vmatmul.mubr.msk.f32.gmra.mrb[14].mxu0 %vm91_vm1, %v19415_v10  ;;  %v300_v10 = vld [vmem:[%s22461_s1] sm:$0x7] }
  0xda   :  { %16844 = vmatprep.mubr.msk.f32.mxu0 %vm91_vm1, %v19417_v11  ;;  %v236_v11 = vld [vmem:[#allocation2] sm:$0xff]  ;;  %16524 = vmatprep.subr.msk.mxu1 %vm559_vm0, %v300_v10 }
  0xdb   :  { %16522 = vmatmul.mubr.msk.f32.gmra.mrb[62].mxu1 %vm91_vm1, %v19667_v7 }
  0xdc   :  { %16525 = vmatpush3.msk.msra.mxu1 %vm559_vm0, %v300_v10  ;;  %16526 = vmatprep.mubr.msk.f32.mxu1 %vm91_vm1, %v236_v11  ;;  %v19958_v10 = vld [vmem:[#allocation2 + $0x288] sm:$0xff]  ;;  %v19960_v11 = vld [vmem:[#allocation2 + $0x290] sm:$0xff] }
  0xdd   :  { %16845 = vmatmul.mubr.msk.f32.gmra.mrb[16].mxu0 %vm91_vm1, %v19425_v14  ;;  %v237_v14 = vld [vmem:[#allocation2 + $0x8] sm:$0xff] }
  0xde   :  { %16847 = vmatprep.mubr.msk.f32.mxu0 %vm91_vm1, %v19427_v15  ;;  %v18755_v15 = vld [vmem:[%s22461_s1 + $0x8] sm:$0x7] }
  0xdf   :  { %16527 = vmatmul.mubr.msk.f32.vlgmr.msra.gmra.mrb[0].mxu1 %vm91_vm1, %v237_v14  ;;  %18010 = vmatprep.subr.msk.mxu1 %vm559_vm0, %v18755_v15  ;;  %v18760_v14 = vld [vmem:[#allocation2 + $0x62] sm:$0xff] }
  0xe0   :  { %18011 = vmatpush3.msk.msra.mxu1 %vm559_vm0, %v18755_v15  ;;  %v3666_v15 = vld [vmem:[#allocation2 + $0x7a] sm:$0xff] }
  0xe1   :  { %16848 = vmatmul.mubr.msk.f32.gmra.mrb[18].mxu0 %vm91_vm1, %v19435_v18  ;;  %v238_v18 = vld [vmem:[#allocation2 + $0x18] sm:$0xff] }
  0xe2   :  { %16850 = vmatprep.mubr.msk.f32.mxu0 %vm91_vm1, %v19437_v19  ;;  %16529 = vmatprep.mubr.msk.f32.mxu1 %vm91_vm1, %v238_v18  ;;  %v19695_v19 = vld [vmem:[#allocation2 + $0x30] sm:$0xff] }
  0xe3   :  { %16530 = vmatmul.mubr.msk.f32.gmra.mrb[2].mxu1 %vm91_vm1, %v239_v33  ;;  %v18761_v18 = vld [vmem:[#allocation2 + $0x6a] sm:$0xff]  ;;  %v19968_v33 = vld [vmem:[#allocation2 + $0x2a0] sm:$0xff] }
  0xe4   :  { %16532 = vmatprep.mubr.msk.f32.mxu1 %vm91_vm1, %v19695_v19 }
  0xe5   :  { %16851 = vmatmul.mubr.msk.f32.gmra.mrb[20].mxu0 %vm91_vm1, %v19445_v22  ;;  %v19707_v22 = vld [vmem:[#allocation2 + $0x48] sm:$0xff] }
  0xe6   :  { %16853 = vmatprep.mubr.msk.f32.mxu0 %vm91_vm1, %v19447_v23  ;;  %v19709_v23 = vld [vmem:[#allocation2 + $0x50] sm:$0xff] }
  0xe7   :  { %16533 = vmatmul.mubr.msk.f32.gmra.mrb[4].mxu1 %vm91_vm1, %v19697_v34 }
  0xe8   :  { %16535 = vmatprep.mubr.msk.f32.mxu1 %vm91_vm1, %v19707_v22 }
  0xe9   :  { %16854 = vmatmul.mubr.msk.f32.gmra.mrb[22].mxu0 %vm91_vm1, %v19455_v27  ;;  %v19719_v27 = vld [vmem:[#allocation2 + $0x60] sm:$0xff] }
  0xea   :  { %16856 = vmatprep.mubr.msk.f32.mxu0 %vm91_vm1, %v19457_v28  ;;  %v19721_v28 = vld [vmem:[#allocation2 + $0x68] sm:$0xff] }
  0xeb   :  { %16536 = vmatmul.mubr.msk.f32.gmra.mrb[6].mxu1 %vm91_vm1, %v19709_v23 }
  0xec   :  { %16538 = vmatprep.mubr.msk.f32.mxu1 %vm91_vm1, %v19719_v27 }
  0xed   :  { %16857 = vmatmul.mubr.msk.f32.gmra.mrb[24].mxu0 %vm91_vm1, %v19465_v31  ;;  %v2978_v31 = vld [vmem:[#allocation2 + $0x181] sm:$0xff] }
  0xee   :  { %16859 = vmatprep.mubr.msk.f32.mxu0 %vm91_vm1, %v19467_v32  ;;  %v19731_v32 = vld [vmem:[#allocation2 + $0x78] sm:$0xff] }
  0xef   :  { %16539 = vmatmul.mubr.msk.f32.gmra.mrb[8].mxu1 %vm91_vm1, %v19721_v28 }
  0xf0   :  { %16541 = vmatprep.mubr.msk.f32.mxu1 %vm91_vm1, %v19731_v32 }
  0xf1   :  { %16860 = vmatmul.mubr.msk.f32.gmra.mrb[26].mxu0 %vm91_vm1, %v19475_v35  ;;  %v19733_v35 = vld [vmem:[#allocation2 + $0x80] sm:$0xff] }
  0xf2   :  { %16862 = vmatprep.mubr.msk.f32.mxu0 %vm91_vm1, %v19477_v36  ;;  %v19741_v36 = vld [vmem:[#allocation2 + $0x90] sm:$0xff] }
  0xf3   :  { %16542 = vmatmul.mubr.msk.f32.gmra.mrb[10].mxu1 %vm91_vm1, %v19733_v35 }
  0xf4   :  { %16544 = vmatprep.mubr.msk.f32.mxu1 %vm91_vm1, %v19741_v36 }
  0xf5   :  { %16863 = vmatmul.mubr.msk.f32.gmra.mrb[28].mxu0 %vm91_vm1, %v19485_v39  ;;  %v19753_v39 = vld [vmem:[#allocation2 + $0xa8] sm:$0xff] }
  0xf6   :  { %16865 = vmatprep.mubr.msk.f32.mxu0 %vm91_vm1, %v2978_v31  ;;  %v19970_v31 = vld [vmem:[#allocation2 + $0x2a8] sm:$0xff] }
  0xf7   :  { %16545 = vmatmul.mubr.msk.f32.gmra.mrb[12].mxu1 %vm91_vm1, %v19743_v38  ;;  %22483 = vst [vmem:[#allocation8_spill] sm:$0xff] %v19970_v31 }
  0xf8   :  { %16547 = vmatprep.mubr.msk.f32.mxu1 %vm91_vm1, %v19753_v39 }
  0xf9   :  { %16866 = vmatmul.mubr.msk.f32.gmra.mrb[30].mxu0 %vm91_vm1, %v2979_v37  ;;  %v3667_v37 = vld [vmem:[#allocation2 + $0x82] sm:$0xff] }
  0xfa   :  { %16868 = vmatprep.mubr.msk.f32.mxu0 %vm91_vm1, %v19492_v47  ;;  %v19779_v47 = vld [vmem:[#allocation2 + $0xe0] sm:$0xff] }
  0xfb   :  { %16548 = vmatmul.mubr.msk.f32.gmra.mrb[14].mxu1 %vm91_vm1, %v19755_v40 }
  0xfc   :  { %16550 = vmatprep.mubr.msk.f32.mxu1 %vm91_vm1, %v19765_v41 }
  0xfd   :  { %16869 = vmatmul.mubr.msk.f32.gmra.mrb[32].mxu0 %vm91_vm1, %v19499_v52  ;;  %v19801_v52 = vld [vmem:[#allocation2 + $0x108] sm:$0xff] }
  0xfe   :  { %16871 = vmatprep.mubr.msk.f32.mxu0 %vm91_vm1, %v19501_v55  ;;  %v19803_v55 = vld [vmem:[#allocation2 + $0x110] sm:$0xff] }
  0xff   :  { %16551 = vmatmul.mubr.msk.f32.gmra.mrb[16].mxu1 %vm91_vm1, %v19767_v43 }
 0x100   :  { %16553 = vmatprep.mubr.msk.f32.mxu1 %vm91_vm1, %v19777_v44 }
 0x101   :  { %16872 = vmatmul.mubr.msk.f32.gmra.mrb[34].mxu0 %vm91_vm1, %v19509_v60  ;;  %v19825_v60 = vld [vmem:[#allocation2 + $0x138] sm:$0xff] }
 0x102   :  { %16874 = vmatprep.mubr.msk.f32.mxu0 %vm91_vm1, %v19511_v63  ;;  %v19827_v63 = vld [vmem:[#allocation2 + $0x140] sm:$0xff] }
 0x103   :  { %16554 = vmatmul.mubr.msk.f32.gmra.mrb[18].mxu1 %vm91_vm1, %v19779_v47 }
 0x104   :  { %16556 = vmatprep.mubr.msk.f32.mxu1 %vm91_vm1, %v19789_v48 }
 0x105   :  { %16875 = vmatmul.mubr.msk.f32.gmra.mrb[36].mxu0 %vm91_vm1, %v19519_v5  ;;  %v19849_v5 = vld [vmem:[#allocation2 + $0x168] sm:$0xff] }
 0x106   :  { %16877 = vmatprep.mubr.msk.f32.mxu0 %vm91_vm1, %v19521_v8  ;;  %v19851_v8 = vld [vmem:[#allocation2 + $0x170] sm:$0xff] }
 0x107   :  { %16557 = vmatmul.mubr.msk.f32.gmra.mrb[20].mxu1 %vm91_vm1, %v19791_v51 }
 0x108   :  { %16559 = vmatprep.mubr.msk.f32.mxu1 %vm91_vm1, %v19801_v52 }
 0x109   :  { %16878 = vmatmul.mubr.msk.f32.gmra.mrb[38].mxu0 %vm91_vm1, %v19529_v13  ;;  %v270_v13 = vld [vmem:[#allocation2 + $0x1c8] sm:$0xff] }
 0x10a   :  { %16880 = vmatprep.mubr.msk.f32.mxu0 %vm91_vm1, %v19531_v16  ;;  %v271_v16 = vld [vmem:[#allocation2 + $0x1d0] sm:$0xff] }
 0x10b   :  { %16560 = vmatmul.mubr.msk.f32.gmra.mrb[22].mxu1 %vm91_vm1, %v19803_v55 }
 0x10c   :  { %16562 = vmatprep.mubr.msk.f32.mxu1 %vm91_vm1, %v19813_v56 }
 0x10d   :  { %16881 = vmatmul.mubr.msk.f32.gmra.mrb[40].mxu0 %vm91_vm1, %v19539_v20  ;;  %v19875_v20 = vld [vmem:[#allocation2 + $0x1e8] sm:$0xff] }
 0x10e   :  { %16883 = vmatprep.mubr.msk.f32.mxu0 %vm91_vm1, %v19541_v21  ;;  %v19885_v21 = vld [vmem:[#allocation2 + $0x1f8] sm:$0xff] }
 0x10f   :  { %16563 = vmatmul.mubr.msk.f32.gmra.mrb[24].mxu1 %vm91_vm1, %v19815_v59 }
 0x110   :  { %16565 = vmatprep.mubr.msk.f32.mxu1 %vm91_vm1, %v19825_v60 }
 0x111   :  { %16884 = vmatmul.mubr.msk.f32.gmra.mrb[42].mxu0 %vm91_vm1, %v19550_v25  ;;  %v19887_v25 = vld [vmem:[#allocation2 + $0x200] sm:$0xff] }
 0x112   :  { %16886 = vmatprep.mubr.msk.f32.mxu0 %vm91_vm1, %v19552_v26  ;;  %v19897_v26 = vld [vmem:[#allocation2 + $0x210] sm:$0xff] }
 0x113   :  { %16566 = vmatmul.mubr.msk.f32.gmra.mrb[26].mxu1 %vm91_vm1, %v19827_v63 }
 0x114   :  { %16568 = vmatprep.mubr.msk.f32.mxu1 %vm91_vm1, %v19837_v0 }
 0x115   :  { %16887 = vmatmul.mubr.msk.f32.gmra.mrb[44].mxu0 %vm91_vm1, %v19569_v42  ;;  %v19899_v42 = vld [vmem:[#allocation2 + $0x218] sm:$0xff] }
 0x116   :  { %16889 = vmatprep.mubr.msk.f32.mxu0 %vm91_vm1, %v19573_v30  ;;  %v3010_v30 = vld [vmem:[#allocation2 + $0x331] sm:$0xff] }
 0x117   :  { %16569 = vmatmul.mubr.msk.f32.gmra.mrb[28].mxu1 %vm91_vm1, %v19839_v4 }
 0x118   :  { %16571 = vmatprep.mubr.msk.f32.mxu1 %vm91_vm1, %v19849_v5 }
 0x119   :  { %16890 = vmatmul.mubr.msk.f32.gmra.mrb[46].mxu0 %vm91_vm1, %v19583_v24  ;;  %v19909_v24 = vld [vmem:[#allocation2 + $0x228] sm:$0xff] }
 0x11a   :  { %16892 = vmatprep.mubr.msk.f32.mxu0 %vm91_vm1, %v19585_v45  ;;  %v19911_v45 = vld [vmem:[#allocation2 + $0x230] sm:$0xff] }
 0x11b   :  { %16572 = vmatmul.mubr.msk.f32.gmra.mrb[30].mxu1 %vm91_vm1, %v19851_v8 }
 0x11c   :  { %16574 = vmatprep.mubr.msk.f32.mxu1 %vm91_vm1, %v268_v9  ;;  %v3668_v9 = vld [vmem:[#allocation2 + $0x92] sm:$0xff] }
 0x11d   :  { %16893 = vmatmul.mubr.msk.f32.gmra.mrb[48].mxu0 %vm91_vm1, %v19595_v46  ;;  %v3011_v46 = vld [vmem:[#allocation2 + $0x339] sm:$0xff] }
 0x11e   :  { %16895 = vmatprep.mubr.msk.f32.mxu0 %vm91_vm1, %v19597_v49  ;;  %v3658_v49 = vld [vmem:[#allocation2 + $0x1a] sm:$0xff] }
 0x11f   :  { %16575 = vmatmul.mubr.msk.f32.gmra.mrb[32].mxu1 %vm91_vm1, %v269_v12  ;;  %v19978_v12 = vld [vmem:[#allocation2 + $0x2b8] sm:$0xff] }
 0x120   :  { %16577 = vmatprep.mubr.msk.f32.mxu1 %vm91_vm1, %v270_v13  ;;  %22484 = vst [vmem:[#allocation9_spill] sm:$0xff] %v19978_v12  ;;  %v19980_v13 = vld [vmem:[#allocation2 + $0x2c0] sm:$0xff] }
 0x121   :  { %16896 = vmatmul.mubr.msk.f32.gmra.mrb[50].mxu0 %vm91_vm1, %v19607_v50  ;;  %v19919_v50 = vld [vmem:[#allocation2 + $0x240] sm:$0xff]  ;;  %22485 = vst [vmem:[#allocation10_spill] sm:$0xff] %v19980_v13 }
 0x122   :  { %16898 = vmatprep.mubr.msk.f32.mxu0 %vm91_vm1, %v19609_v53  ;;  %v19921_v53 = vld [vmem:[#allocation2 + $0x248] sm:$0xff] }
 0x123   :  { %16578 = vmatmul.mubr.msk.f32.gmra.mrb[34].mxu1 %vm91_vm1, %v271_v16  ;;  %v3669_v16 = vld [vmem:[#allocation2 + $0x9a] sm:$0xff] }
 0x124   :  { %16580 = vmatprep.mubr.msk.f32.mxu1 %vm91_vm1, %v19873_v17 }
 0x125   :  { %16899 = vmatmul.mubr.msk.f32.gmra.mrb[52].mxu0 %vm91_vm1, %v19619_v54  ;;  %v3659_v54 = vld [vmem:[#allocation2 + $0x22] sm:$0xff] }
 0x126   :  { %16901 = vmatprep.mubr.msk.f32.mxu0 %vm91_vm1, %v19621_v57  ;;  %v19931_v57 = vld [vmem:[%s22461_s1 + $0x1c] sm:$0x7] }
 0x127   :  { %16581 = vmatmul.mubr.msk.f32.gmra.mrb[36].mxu1 %vm91_vm1, %v19875_v20 }
 0x128   :  { %16583 = vmatprep.mubr.msk.f32.mxu1 %vm91_vm1, %v19885_v21 }
 0x129   :  { %16902 = vmatmul.mubr.msk.f32.gmra.mrb[54].mxu0 %vm91_vm1, %v19631_v58  ;;  %v18756_v58 = vld [vmem:[#allocation2 + $0x32] sm:$0xff] }
 0x12a   :  { %16904 = vmatprep.mubr.msk.f32.mxu0 %vm91_vm1, %v19633_v61  ;;  %v19937_v61 = vld [vmem:[#allocation2 + $0x258] sm:$0xff] }
 0x12b   :  { %16584 = vmatmul.mubr.msk.f32.gmra.mrb[38].mxu1 %vm91_vm1, %v19887_v25 }
 0x12c   :  { %16586 = vmatprep.mubr.msk.f32.mxu1 %vm91_vm1, %v19897_v26 }
 0x12d   :  { %16905 = vmatmul.mubr.msk.f32.gmra.mrb[56].mxu0 %vm91_vm1, %v19643_v62  ;;  %v19939_v62 = vld [vmem:[#allocation2 + $0x260] sm:$0xff] }
 0x12e   :  { %16907 = vmatprep.mubr.msk.f32.mxu0 %vm91_vm1, %v19645_v2  ;;  %v18757_v2 = vld [vmem:[#allocation2 + $0x3a] sm:$0xff] }
 0x12f   :  { %16587 = vmatmul.mubr.msk.f32.gmra.mrb[40].mxu1 %vm91_vm1, %v19899_v42 }
 0x130   :  { %16589 = vmatprep.mubr.msk.f32.mxu1 %vm91_vm1, %v19909_v24 }
 0x131   :  { %16908 = vmatmul.mubr.msk.f32.gmra.mrb[58].mxu0 %vm91_vm1, %v19655_v3  ;;  %v19950_v3 = vld [vmem:[#allocation2 + $0x278] sm:$0xff] }
 0x132   :  { %16910 = vmatprep.mubr.msk.f32.mxu0 %vm91_vm1, %v19657_v6  ;;  %v18758_v6 = vld [vmem:[#allocation2 + $0x4a] sm:$0xff] }
 0x133   :  { %16590 = vmatmul.mubr.msk.f32.gmra.mrb[42].mxu1 %vm91_vm1, %v19911_v45 }
 0x134   :  { %16592 = vmatprep.mubr.msk.f32.mxu1 %vm91_vm1, %v19919_v50 }
 0x135   :  { %16911 = vmatmul.mubr.msk.f32.gmra.mrb[60].mxu0 %vm91_vm1, %v19667_v7  ;;  %v18759_v7 = vld [vmem:[#allocation2 + $0x52] sm:$0xff] }
 0x136   :  { %16913 = vmatprep.mubr.msk.f32.mxu0 %vm91_vm1, %v3010_v30  ;;  %v3670_v30 = vld [vmem:[#allocation2 + $0xaa] sm:$0xff] }
 0x137   :  { %16593 = vmatmul.mubr.msk.f32.gmra.mrb[44].mxu1 %vm91_vm1, %v19921_v53 }
 0x138   :  { %16595 = vmatprep.mubr.msk.f32.mxu1 %vm91_vm1, %v19937_v61 }
 0x139   :  { %16914 = vmatmul.mubr.msk.f32.gmra.mrb[62].mxu0 %vm91_vm1, %v3011_v46  ;;  %v19988_v46 = vld [vmem:[#allocation2 + $0x2d0] sm:$0xff] }
 0x13a   :  { %16918 = vmatprep.mubr.msk.f32.mxu0 %vm91_vm1, %v3658_v49  ;;  %22486 = vst [vmem:[#allocation11_spill] sm:$0xff] %v19988_v46  ;;  %v19990_v49 = vld [vmem:[#allocation2 + $0x2d8] sm:$0xff] }
 0x13b   :  { %16596 = vmatmul.mubr.msk.f32.gmra.mrb[46].mxu1 %vm91_vm1, %v19939_v62  ;;  %22487 = vst [vmem:[#allocation12_spill] sm:$0xff] %v19990_v49 }
 0x13d   :  { %16919 = vmatmul.mubr.msk.f32.vlgmr.msra.gmra.mrb[0].mxu0 %vm91_vm1, %v3659_v54  ;;  %v3671_v54 = vld [vmem:[#allocation2 + $0xb2] sm:$0xff] }
 0x13e   :  { %17015 = vmatpush3.msk.msra.mxu0 %vm559_vm0, %v19559_v29  ;;  %16921 = vmatprep.mubr.msk.f32.mxu0 %vm91_vm1, %v18756_v58  ;;  %v19948_v29 = vld [vmem:[#allocation2 + $0x270] sm:$0xff]  ;;  %v3672_v58 = vld [vmem:[#allocation2 + $0xc2] sm:$0xff] }
 0x13f   :  { %17112 = vmatprep.subr.msk.mxu0 %vm559_vm0, %v19931_v57  ;;  %16598 = vmatprep.mubr.msk.f32.mxu1 %vm91_vm1, %v19948_v29 }
 0x140   :  { %16599 = vmatmul.mubr.msk.f32.gmra.mrb[48].mxu1 %vm91_vm1, %v19950_v3 }
 0x141   :  { %16922 = vmatmul.mubr.msk.f32.gmra.mrb[2].mxu0 %vm91_vm1, %v18757_v2  ;;  %16601 = vmatprep.mubr.msk.f32.mxu1 %vm91_vm1, %v19958_v10  ;;  %v19998_v2 = vld [vmem:[#allocation2 + $0x2e8] sm:$0xff] }
 0x142   :  { %16924 = vmatprep.mubr.msk.f32.mxu0 %vm91_vm1, %v18758_v6  ;;  %22488 = vst [vmem:[#allocation13_spill] sm:$0xff] %v19998_v2  ;;  %v20000_v6 = vld [vmem:[#allocation2 + $0x2f0] sm:$0xff] }
 0x143   :  { %22489 = vst [vmem:[#allocation14_spill] sm:$0xff] %v20000_v6 }
 0x144   :  { %16602 = vmatmul.mubr.msk.f32.gmra.mrb[50].mxu1 %vm91_vm1, %v19960_v11 }
 0x145   :  { %16925 = vmatmul.mubr.msk.f32.gmra.mrb[4].mxu0 %vm91_vm1, %v18759_v7  ;;  %16604 = vmatprep.mubr.msk.f32.mxu1 %vm91_vm1, %v19968_v33  ;;  %v3673_v7 = vld [vmem:[#allocation2 + $0xca] sm:$0xff] }
 0x146   :  { %16927 = vmatprep.mubr.msk.f32.mxu0 %vm91_vm1, %v18760_v14  ;;  %v3674_v14 = vld [vmem:[#allocation2 + $0xda] sm:$0xff] }
 0x148   :  { %16605 = vmatmul.mubr.msk.f32.gmra.mrb[52].mxu1 %vm91_vm1, %v19970_v31  ;;  %v3682_v31 = vld [vmem:[#allocation2 + $0x13a] sm:$0xff] }
 0x149   :  { %16928 = vmatmul.mubr.msk.f32.gmra.mrb[6].mxu0 %vm91_vm1, %v18761_v18  ;;  %16607 = vmatprep.mubr.msk.f32.mxu1 %vm91_vm1, %v19978_v12  ;;  %v20008_v18 = vld [vmem:[#allocation2 + $0x300] sm:$0xff]  ;;  %v3678_v12 = vld [vmem:[#allocation2 + $0x10a] sm:$0xff] }
 0x14a   :  { %16930 = vmatprep.mubr.msk.f32.mxu0 %vm91_vm1, %v3666_v15  ;;  %22490 = vst [vmem:[#allocation15_spill] sm:$0xff] %v20008_v18 }
 0x14c   :  { %16608 = vmatmul.mubr.msk.f32.gmra.mrb[54].mxu1 %vm91_vm1, %v19980_v13  ;;  %v3677_v13 = vld [vmem:[#allocation2 + $0xfa] sm:$0xff] }
 0x14d   :  { %16931 = vmatmul.mubr.msk.f32.gmra.mrb[8].mxu0 %vm91_vm1, %v3667_v37  ;;  %16610 = vmatprep.mubr.msk.f32.mxu1 %vm91_vm1, %v19988_v46  ;;  %v3676_v46 = vld [vmem:[#allocation2 + $0xf2] sm:$0xff] }
 0x14e   :  { %16933 = vmatprep.mubr.msk.f32.mxu0 %vm91_vm1, %v3668_v9 }
 0x150   :  { %16611 = vmatmul.mubr.msk.f32.gmra.mrb[56].mxu1 %vm91_vm1, %v19990_v49  ;;  %v3675_v49 = vld [vmem:[#allocation2 + $0xe2] sm:$0xff] }
 0x151   :  { %16934 = vmatmul.mubr.msk.f32.gmra.mrb[10].mxu0 %vm91_vm1, %v3669_v16  ;;  %16613 = vmatprep.mubr.msk.f32.mxu1 %vm91_vm1, %v19998_v2  ;;  %v20018_v2 = vld [vmem:[#allocation2 + $0x318] sm:$0xff] }
 0x152   :  { %16936 = vmatprep.mubr.msk.f32.mxu0 %vm91_vm1, %v3670_v30  ;;  %22492 = vst [vmem:[#allocation17_spill] sm:$0xff] %v20018_v2 }
 0x154   :  { %16614 = vmatmul.mubr.msk.f32.gmra.mrb[58].mxu1 %vm91_vm1, %v20000_v6  ;;  %v20020_v6 = vld [vmem:[#allocation2 + $0x320] sm:$0xff] }
 0x155   :  { %16937 = vmatmul.mubr.msk.f32.gmra.mrb[12].mxu0 %vm91_vm1, %v3671_v54  ;;  %16616 = vmatprep.mubr.msk.f32.mxu1 %vm91_vm1, %v20008_v18  ;;  %22493 = vst [vmem:[#allocation18_spill] sm:$0xff] %v20020_v6  ;;  %v3680_v18 = vld [vmem:[#allocation2 + $0x122] sm:$0xff] }
 0x156   :  { %16939 = vmatprep.mubr.msk.f32.mxu0 %vm91_vm1, %v3672_v58 }
 0x158   :  { %16617 = vmatmul.mubr.msk.f32.gmra.mrb[60].mxu1 %vm91_vm1, %v20010_v1  ;;  %v3679_v1 = vld [vmem:[#allocation2 + $0x112] sm:$0xff] }
 0x159   :  { %16940 = vmatmul.mubr.msk.f32.gmra.mrb[14].mxu0 %vm91_vm1, %v3673_v7  ;;  %16619 = vmatprep.mubr.msk.f32.mxu1 %vm91_vm1, %v20018_v2  ;;  %v3681_v2 = vld [vmem:[#allocation2 + $0x12a] sm:$0xff] }
 0x15a   :  { %16942 = vmatprep.mubr.msk.f32.mxu0 %vm91_vm1, %v3674_v14 }
 0x15c   :  { %16620 = vmatmul.mubr.msk.f32.gmra.mrb[62].mxu1 %vm91_vm1, %v20020_v6  ;;  %v3684_v6 = vld [vmem:[#allocation2 + $0x152] sm:$0xff] }
 0x15d   :  { %16943 = vmatmul.mubr.msk.f32.gmra.mrb[16].mxu0 %vm91_vm1, %v3675_v49  ;;  %16639 = vmatprep.mubr.msk.f32.mxu1 %vm91_vm1, %v3666_v15  ;;  %v3683_v15 = vld [vmem:[#allocation2 + $0x142] sm:$0xff] }
 0x15e   :  { %16945 = vmatprep.mubr.msk.f32.mxu0 %vm91_vm1, %v3676_v46 }
 0x160   :  { %16640 = vmatmul.mubr.msk.f32.vlgmr.msra.gmra.mrb[10].mxu1 %vm91_vm1, %v3667_v37  ;;  %v3685_v37 = vld [vmem:[#allocation2 + $0x15a] sm:$0xff] }
 0x161   :  { %16946 = vmatmul.mubr.msk.f32.gmra.mrb[18].mxu0 %vm91_vm1, %v3677_v13  ;;  %16642 = vmatprep.mubr.msk.f32.mxu1 %vm91_vm1, %v3668_v9  ;;  %v3686_v9 = vld [vmem:[#allocation2 + $0x16a] sm:$0xff] }
 0x162   :  { %16948 = vmatprep.mubr.msk.f32.mxu0 %vm91_vm1, %v3678_v12 }
 0x164   :  { %16643 = vmatmul.mubr.msk.f32.gmra.mrb[12].mxu1 %vm91_vm1, %v3669_v16  ;;  %v3687_v16 = vld [vmem:[#allocation2 + $0x172] sm:$0xff] }
 0x165   :  { %16949 = vmatmul.mubr.msk.f32.gmra.mrb[20].mxu0 %vm91_vm1, %v3679_v1  ;;  %16645 = vmatprep.mubr.msk.f32.mxu1 %vm91_vm1, %v3670_v30  ;;  %v3688_v30 = vld [vmem:[#allocation2 + $0x182] sm:$0xff] }
 0x166   :  { %16951 = vmatprep.mubr.msk.f32.mxu0 %vm91_vm1, %v3680_v18 }
 0x168   :  { %16646 = vmatmul.mubr.msk.f32.gmra.mrb[14].mxu1 %vm91_vm1, %v3671_v54  ;;  %v3689_v54 = vld [vmem:[#allocation2 + $0x18a] sm:$0xff] }
 0x169   :  { %16952 = vmatmul.mubr.msk.f32.gmra.mrb[22].mxu0 %vm91_vm1, %v3681_v2  ;;  %16648 = vmatprep.mubr.msk.f32.mxu1 %vm91_vm1, %v3672_v58  ;;  %v3690_v58 = vld [vmem:[#allocation2 + $0x1ca] sm:$0xff] }
 0x16a   :  { %16954 = vmatprep.mubr.msk.f32.mxu0 %vm91_vm1, %v3682_v31 }
 0x16c   :  { %16649 = vmatmul.mubr.msk.f32.gmra.mrb[16].mxu1 %vm91_vm1, %v3673_v7  ;;  %v3691_v7 = vld [vmem:[#allocation2 + $0x1d2] sm:$0xff] }
 0x16d   :  { %16955 = vmatmul.mubr.msk.f32.gmra.mrb[24].mxu0 %vm91_vm1, %v3683_v15  ;;  %16651 = vmatprep.mubr.msk.f32.mxu1 %vm91_vm1, %v3674_v14  ;;  %v3692_v14 = vld [vmem:[#allocation2 + $0x1e2] sm:$0xff] }
 0x16e   :  { %16957 = vmatprep.mubr.msk.f32.mxu0 %vm91_vm1, %v3684_v6 }
 0x170   :  { %16652 = vmatmul.mubr.msk.f32.gmra.mrb[18].mxu1 %vm91_vm1, %v3675_v49  ;;  %v3694_v49 = vld [vmem:[#allocation2 + $0x1fa] sm:$0xff] }
 0x171   :  { %16958 = vmatmul.mubr.msk.f32.gmra.mrb[26].mxu0 %vm91_vm1, %v3685_v37  ;;  %16654 = vmatprep.mubr.msk.f32.mxu1 %vm91_vm1, %v3676_v46  ;;  %v3693_v46 = vld [vmem:[#allocation2 + $0x1ea] sm:$0xff] }
 0x172   :  { %16960 = vmatprep.mubr.msk.f32.mxu0 %vm91_vm1, %v3686_v9 }
 0x174   :  { %16655 = vmatmul.mubr.msk.f32.gmra.mrb[20].mxu1 %vm91_vm1, %v3677_v13  ;;  %v3696_v13 = vld [vmem:[#allocation2 + $0x212] sm:$0xff] }
 0x175   :  { %16961 = vmatmul.mubr.msk.f32.gmra.mrb[28].mxu0 %vm91_vm1, %v3687_v16  ;;  %16657 = vmatprep.mubr.msk.f32.mxu1 %vm91_vm1, %v3678_v12  ;;  %v3695_v12 = vld [vmem:[#allocation2 + $0x202] sm:$0xff] }
 0x176   :  { %16963 = vmatprep.mubr.msk.f32.mxu0 %vm91_vm1, %v3688_v30  ;;  %v3701_v30 = vld [vmem:[#allocation2 + $0x24a] sm:$0xff] }
 0x178   :  { %16658 = vmatmul.mubr.msk.f32.gmra.mrb[22].mxu1 %vm91_vm1, %v3679_v1  ;;  %v3697_v1 = vld [vmem:[#allocation2 + $0x21a] sm:$0xff] }
 0x179   :  { %16964 = vmatmul.mubr.msk.f32.gmra.mrb[30].mxu0 %vm91_vm1, %v3689_v54  ;;  %16660 = vmatprep.mubr.msk.f32.mxu1 %vm91_vm1, %v3680_v18  ;;  %v3698_v18 = vld [vmem:[#allocation2 + $0x22a] sm:$0xff]  ;;  %v3705_v54 = vld [vmem:[#allocation2 + $0x27a] sm:$0xff] }
 0x17a   :  { %16966 = vmatprep.mubr.msk.f32.mxu0 %vm91_vm1, %v3690_v58 }
 0x17c   :  { %16661 = vmatmul.mubr.msk.f32.gmra.mrb[24].mxu1 %vm91_vm1, %v3681_v2  ;;  %v3700_v2 = vld [vmem:[#allocation2 + $0x242] sm:$0xff] }
 0x17d   :  { %16967 = vmatmul.mubr.msk.f32.gmra.mrb[32].mxu0 %vm91_vm1, %v3691_v7  ;;  %16663 = vmatprep.mubr.msk.f32.mxu1 %vm91_vm1, %v3682_v31  ;;  %v3699_v31 = vld [vmem:[#allocation2 + $0x232] sm:$0xff] }
 0x17e   :  { %16969 = vmatprep.mubr.msk.f32.mxu0 %vm91_vm1, %v3692_v14 }
 0x180   :  { %16664 = vmatmul.mubr.msk.f32.gmra.mrb[26].mxu1 %vm91_vm1, %v3683_v15  ;;  %v1560_v15 = vld [vmem:[#allocation2 + $0x1b2] sm:$0xff] }
 0x181   :  { %16970 = vmatmul.mubr.msk.f32.gmra.mrb[34].mxu0 %vm91_vm1, %v3693_v46  ;;  %16666 = vmatprep.mubr.msk.f32.mxu1 %vm91_vm1, %v3684_v6  ;;  %v1561_v6 = vld [vmem:[#allocation2 + $0x1ba] sm:$0xff] }
 0x182   :  { %16972 = vmatprep.mubr.msk.f32.mxu0 %vm91_vm1, %v3694_v49 }
 0x184   :  { %16667 = vmatmul.mubr.msk.f32.gmra.mrb[28].mxu1 %vm91_vm1, %v3685_v37  ;;  %v3702_v37 = vld [vmem:[#allocation2 + $0x25a] sm:$0xff] }
 0x185   :  { %16973 = vmatmul.mubr.msk.f32.gmra.mrb[36].mxu0 %vm91_vm1, %v3695_v12  ;;  %16669 = vmatprep.mubr.msk.f32.mxu1 %vm91_vm1, %v3686_v9  ;;  %v3703_v9 = vld [vmem:[#allocation2 + $0x262] sm:$0xff] }
 0x186   :  { %16975 = vmatprep.mubr.msk.f32.mxu0 %vm91_vm1, %v3696_v13 }
 0x188   :  { %16670 = vmatmul.mubr.msk.f32.gmra.mrb[30].mxu1 %vm91_vm1, %v3687_v16  ;;  %v3704_v16 = vld [vmem:[#allocation2 + $0x272] sm:$0xff] }
 0x189   :  { %16976 = vmatmul.mubr.msk.f32.gmra.mrb[38].mxu0 %vm91_vm1, %v3697_v1  ;;  %16672 = vmatprep.mubr.msk.f32.mxu1 %vm91_vm1, %v1560_v15  ;;  %v3706_v15 = vld [vmem:[#allocation2 + $0x28a] sm:$0xff] }
 0x18a   :  { %16978 = vmatprep.mubr.msk.f32.mxu0 %vm91_vm1, %v3698_v18 }
 0x18c   :  { %16673 = vmatmul.mubr.msk.f32.gmra.mrb[32].mxu1 %vm91_vm1, %v1561_v6  ;;  %v3708_v6 = vld [vmem:[#allocation2 + $0x2a2] sm:$0xff] }
 0x18d   :  { %16979 = vmatmul.mubr.msk.f32.gmra.mrb[40].mxu0 %vm91_vm1, %v3699_v31  ;;  %16675 = vmatprep.mubr.msk.f32.mxu1 %vm91_vm1, %v3690_v58  ;;  %v3707_v58 = vld [vmem:[#allocation2 + $0x292] sm:$0xff] }
 0x18e   :  { %16981 = vmatprep.mubr.msk.f32.mxu0 %vm91_vm1, %v3700_v2 }
 0x190   :  { %16676 = vmatmul.mubr.msk.f32.gmra.mrb[34].mxu1 %vm91_vm1, %v3691_v7  ;;  %v3709_v7 = vld [vmem:[#allocation2 + $0x2aa] sm:$0xff] }
 0x191   :  { %16982 = vmatmul.mubr.msk.f32.gmra.mrb[42].mxu0 %vm91_vm1, %v3701_v30  ;;  %16678 = vmatprep.mubr.msk.f32.mxu1 %vm91_vm1, %v3692_v14  ;;  %v3710_v14 = vld [vmem:[#allocation2 + $0x2ba] sm:$0xff] }
 0x192   :  { %16984 = vmatprep.mubr.msk.f32.mxu0 %vm91_vm1, %v3702_v37 }
 0x194   :  { %16679 = vmatmul.mubr.msk.f32.gmra.mrb[36].mxu1 %vm91_vm1, %v3693_v46  ;;  %v3711_v46 = vld [vmem:[#allocation2 + $0x2c2] sm:$0xff] }
 0x195   :  { %16985 = vmatmul.mubr.msk.f32.gmra.mrb[44].mxu0 %vm91_vm1, %v3703_v9  ;;  %16681 = vmatprep.mubr.msk.f32.mxu1 %vm91_vm1, %v3694_v49  ;;  %v3712_v49 = vld [vmem:[#allocation2 + $0x2d2] sm:$0xff] }
 0x196   :  { %16987 = vmatprep.mubr.msk.f32.mxu0 %vm91_vm1, %v3704_v16 }
 0x198   :  { %16682 = vmatmul.mubr.msk.f32.gmra.mrb[38].mxu1 %vm91_vm1, %v3695_v12  ;;  %v3713_v12 = vld [vmem:[#allocation2 + $0x2da] sm:$0xff] }
 0x199   :  { %16988 = vmatmul.mubr.msk.f32.gmra.mrb[46].mxu0 %vm91_vm1, %v3705_v54  ;;  %16684 = vmatprep.mubr.msk.f32.mxu1 %vm91_vm1, %v3696_v13  ;;  %v3714_v13 = vld [vmem:[#allocation2 + $0x2ea] sm:$0xff] }
 0x19a   :  { %16990 = vmatprep.mubr.msk.f32.mxu0 %vm91_vm1, %v3706_v15 }
 0x19c   :  { %16685 = vmatmul.mubr.msk.f32.gmra.mrb[40].mxu1 %vm91_vm1, %v3697_v1  ;;  %v3715_v1 = vld [vmem:[#allocation2 + $0x2f2] sm:$0xff] }
 0x19d   :  { %16991 = vmatmul.mubr.msk.f32.gmra.mrb[48].mxu0 %vm91_vm1, %v3707_v58  ;;  %16687 = vmatprep.mubr.msk.f32.mxu1 %vm91_vm1, %v3698_v18  ;;  %v3716_v18 = vld [vmem:[#allocation2 + $0x302] sm:$0xff] }
 0x19e   :  { %16993 = vmatprep.mubr.msk.f32.mxu0 %vm91_vm1, %v3708_v6 }
 0x1a0   :  { %16688 = vmatmul.mubr.msk.f32.gmra.mrb[42].mxu1 %vm91_vm1, %v3699_v31  ;;  %v3717_v31 = vld [vmem:[#allocation2 + $0x30a] sm:$0xff] }
 0x1a1   :  { %16994 = vmatmul.mubr.msk.f32.gmra.mrb[50].mxu0 %vm91_vm1, %v3709_v7  ;;  %16690 = vmatprep.mubr.msk.f32.mxu1 %vm91_vm1, %v3700_v2  ;;  %v3718_v2 = vld [vmem:[#allocation2 + $0x31a] sm:$0xff] }
 0x1a2   :  { %16996 = vmatprep.mubr.msk.f32.mxu0 %vm91_vm1, %v3710_v14 }
 0x1a4   :  { %16691 = vmatmul.mubr.msk.f32.gmra.mrb[44].mxu1 %vm91_vm1, %v3701_v30  ;;  %v3719_v30 = vld [vmem:[#allocation2 + $0x322] sm:$0xff] }
 0x1a5   :  { %16997 = vmatmul.mubr.msk.f32.gmra.mrb[52].mxu0 %vm91_vm1, %v3711_v46  ;;  %16693 = vmatprep.mubr.msk.f32.mxu1 %vm91_vm1, %v3702_v37  ;;  %v3720_v37 = vld [vmem:[#allocation2 + $0x332] sm:$0xff] }
 0x1a6   :  { %16999 = vmatprep.mubr.msk.f32.mxu0 %vm91_vm1, %v3712_v49 }
 0x1a8   :  { %16694 = vmatmul.mubr.msk.f32.gmra.mrb[46].mxu1 %vm91_vm1, %v3703_v9  ;;  %v3721_v9 = vld [vmem:[#allocation2 + $0x33a] sm:$0xff] }
 0x1a9   :  { %17000 = vmatmul.mubr.msk.f32.gmra.mrb[54].mxu0 %vm91_vm1, %v3713_v12  ;;  %16696 = vmatprep.mubr.msk.f32.mxu1 %vm91_vm1, %v3704_v16  ;;  %v20123_v16 = vld [vmem:[%s22461_s1 + $0x20] sm:$0x7]  ;;  %s18818_s1 = smov 68  }
 0x1aa   :  { %17002 = vmatprep.mubr.msk.f32.mxu0 %vm91_vm1, %v3714_v13 }
 0x1ac   :  { %16697 = vmatmul.mubr.msk.f32.gmra.mrb[48].mxu1 %vm91_vm1, %v3705_v54 }
 0x1ad   :  { %17003 = vmatmul.mubr.msk.f32.gmra.mrb[56].mxu0 %vm91_vm1, %v3715_v1  ;;  %16699 = vmatprep.mubr.msk.f32.mxu1 %vm91_vm1, %v3706_v15 }
 0x1ae   :  { %17005 = vmatprep.mubr.msk.f32.mxu0 %vm91_vm1, %v3716_v18 }
 0x1b0   :  { %16700 = vmatmul.mubr.msk.f32.gmra.mrb[50].mxu1 %vm91_vm1, %v3707_v58  ;;  %v5088_v58 = vld [vmem:[#allocation2 + $0x99] sm:$0xff] }
 0x1b1   :  { %17006 = vmatmul.mubr.msk.f32.gmra.mrb[58].mxu0 %vm91_vm1, %v3717_v31  ;;  %16702 = vmatprep.mubr.msk.f32.mxu1 %vm91_vm1, %v3708_v6  ;;  %v5089_v6 = vld [vmem:[#allocation2 + $0xa9] sm:$0xff] }
 0x1b2   :  { %17008 = vmatprep.mubr.msk.f32.mxu0 %vm91_vm1, %v3718_v2 }
 0x1b4   :  { %16703 = vmatmul.mubr.msk.f32.gmra.mrb[52].mxu1 %vm91_vm1, %v3709_v7 }
 0x1b5   :  { %17009 = vmatmul.mubr.msk.f32.gmra.mrb[60].mxu0 %vm91_vm1, %v3719_v30  ;;  %16705 = vmatprep.mubr.msk.f32.mxu1 %vm91_vm1, %v3710_v14 }
 0x1b6   :  { %17011 = vmatprep.mubr.msk.f32.mxu0 %vm91_vm1, %v3720_v37  ;;  %v5095_v37 = vld [vmem:[#allocation2 + $0xf1] sm:$0xff] }
 0x1b8   :  { %16706 = vmatmul.mubr.msk.f32.gmra.mrb[54].mxu1 %vm91_vm1, %v3711_v46  ;;  %v5090_v46 = vld [vmem:[#allocation2 + $0xb1] sm:$0xff] }
 0x1b9   :  { %17012 = vmatmul.mubr.msk.f32.gmra.mrb[62].mxu0 %vm91_vm1, %v3721_v9  ;;  %16708 = vmatprep.mubr.msk.f32.mxu1 %vm91_vm1, %v3712_v49  ;;  %v5091_v49 = vld [vmem:[#allocation2 + $0xc1] sm:$0xff] }
 0x1ba   :  { %17016 = vmatprep.mubr.msk.f32.mxu0 %vm91_vm1, %v19695_v19  ;;  %v4397_v19 = vld [vmem:[#allocation2 + $0x180] sm:$0xff] }
 0x1bc   :  { %16709 = vmatmul.mubr.msk.f32.gmra.mrb[56].mxu1 %vm91_vm1, %v3713_v12 }
 0x1bd   :  { %17017 = vmatmul.mubr.msk.f32.vlgmr.msra.gmra.mrb[0].mxu0 %vm91_vm1, %v19697_v34  ;;  %16711 = vmatprep.mubr.msk.f32.mxu1 %vm91_vm1, %v3714_v13  ;;  %v4398_v34 = vld [vmem:[#allocation2 + $0x188] sm:$0xff] }
 0x1be   :  { %17113 = vmatpush3.msk.msra.mxu0 %vm559_vm0, %v19931_v57  ;;  %17019 = vmatprep.mubr.msk.f32.mxu0 %vm91_vm1, %v19707_v22  ;;  %v4399_v22 = vld [vmem:[#allocation2 + $0x198] sm:$0xff] }
 0x1bf   :  { %17210 = vmatprep.subr.msk.mxu0 %vm559_vm0, %v20123_v16 }
 0x1c0   :  { %16712 = vmatmul.mubr.msk.f32.gmra.mrb[58].mxu1 %vm91_vm1, %v3715_v1  ;;  %v5092_v1 = vld [vmem:[#allocation2 + $0xc9] sm:$0xff] }
 0x1c1   :  { %17020 = vmatmul.mubr.msk.f32.gmra.mrb[2].mxu0 %vm91_vm1, %v19709_v23  ;;  %16714 = vmatprep.mubr.msk.f32.mxu1 %vm91_vm1, %v3716_v18  ;;  %v4400_v23 = vld [vmem:[#allocation2 + $0x1a0] sm:$0xff] }
 0x1c2   :  { %17022 = vmatprep.mubr.msk.f32.mxu0 %vm91_vm1, %v19719_v27  ;;  %v22494_v27 = vld [vmem:[#allocation8_spill] sm:$0xff]  ;;  %v5093_v18 = vld [vmem:[#allocation2 + $0xd9] sm:$0xff] }
 0x1c4   :  { %16715 = vmatmul.mubr.msk.f32.gmra.mrb[60].mxu1 %vm91_vm1, %v3717_v31 }
 0x1c5   :  { %17023 = vmatmul.mubr.msk.f32.gmra.mrb[4].mxu0 %vm91_vm1, %v19721_v28  ;;  %16717 = vmatprep.mubr.msk.f32.mxu1 %vm91_vm1, %v3718_v2  ;;  %v22495_v28 = vld [vmem:[#allocation9_spill] sm:$0xff] }
 0x1c6   :  { %17025 = vmatprep.mubr.msk.f32.mxu0 %vm91_vm1, %v19731_v32  ;;  %v22496_v32 = vld [vmem:[#allocation10_spill] sm:$0xff] }
 0x1c8   :  { %16718 = vmatmul.mubr.msk.f32.gmra.mrb[62].mxu1 %vm91_vm1, %v3719_v30  ;;  %v5094_v30 = vld [vmem:[#allocation2 + $0xe1] sm:$0xff] }
 0x1c9   :  { %17026 = vmatmul.mubr.msk.f32.gmra.mrb[6].mxu0 %vm91_vm1, %v19733_v35  ;;  %v20235_v35 = vpop.f32.mrb[0].mxu1 }
 0x1ca   :  { %17028 = vmatprep.mubr.msk.f32.mxu0 %vm91_vm1, %v19741_v36  ;;  %v22497_v36 = vld [vmem:[#allocation11_spill] sm:$0xff] }
 0x1cd   :  { %17029 = vmatmul.mubr.msk.f32.gmra.mrb[8].mxu0 %vm91_vm1, %v19743_v38  ;;  %v20239_v38 = vpop.f32.mrb[1].mxu1 }
 0x1ce   :  { %17031 = vmatprep.mubr.msk.f32.mxu0 %vm91_vm1, %v19753_v39  ;;  %v22498_v39 = vld [vmem:[#allocation12_spill] sm:$0xff] }
 0x1d1   :  { %17032 = vmatmul.mubr.msk.f32.gmra.mrb[10].mxu0 %vm91_vm1, %v19755_v40  ;;  %v20243_v40 = vpop.f32.mrb[2].mxu1 }
 0x1d2   :  { %17034 = vmatprep.mubr.msk.f32.mxu0 %vm91_vm1, %v19765_v41  ;;  %v22499_v41 = vld [vmem:[#allocation13_spill] sm:$0xff] }
 0x1d5   :  { %17035 = vmatmul.mubr.msk.f32.gmra.mrb[12].mxu0 %vm91_vm1, %v19767_v43  ;;  %v20247_v43 = vpop.f32.mrb[3].mxu1 }
 0x1d6   :  { %17037 = vmatprep.mubr.msk.f32.mxu0 %vm91_vm1, %v19777_v44  ;;  %v22500_v44 = vld [vmem:[#allocation14_spill] sm:$0xff] }
 0x1d9   :  { %17038 = vmatmul.mubr.msk.f32.gmra.mrb[14].mxu0 %vm91_vm1, %v19779_v47  ;;  %v20251_v47 = vpop.f32.mrb[4].mxu1 }
 0x1da   :  { %17040 = vmatprep.mubr.msk.f32.mxu0 %vm91_vm1, %v19789_v48  ;;  %v22501_v48 = vld [vmem:[#allocation15_spill] sm:$0xff] }
 0x1dd   :  { %17041 = vmatmul.mubr.msk.f32.gmra.mrb[16].mxu0 %vm91_vm1, %v19791_v51  ;;  %v20255_v51 = vpop.f32.mrb[5].mxu1 }
 0x1de   :  { %17043 = vmatprep.mubr.msk.f32.mxu0 %vm91_vm1, %v19801_v52  ;;  %v22502_v52 = vld [vmem:[#allocation16_spill] sm:$0xff] }
 0x1e1   :  { %17044 = vmatmul.mubr.msk.f32.gmra.mrb[18].mxu0 %vm91_vm1, %v19803_v55  ;;  %v20259_v55 = vpop.f32.mrb[6].mxu1 }
 0x1e2   :  { %17046 = vmatprep.mubr.msk.f32.mxu0 %vm91_vm1, %v19813_v56  ;;  %v22503_v56 = vld [vmem:[#allocation17_spill] sm:$0xff] }
 0x1e5   :  { %17047 = vmatmul.mubr.msk.f32.gmra.mrb[20].mxu0 %vm91_vm1, %v19815_v59  ;;  %v20263_v59 = vpop.f32.mrb[7].mxu1 }
 0x1e6   :  { %17049 = vmatprep.mubr.msk.f32.mxu0 %vm91_vm1, %v19825_v60  ;;  %v4429_v60 = vld [vmem:[#allocation2 + $0x330] sm:$0xff] }
 0x1e9   :  { %17050 = vmatmul.mubr.msk.f32.gmra.mrb[22].mxu0 %vm91_vm1, %v19827_v63  ;;  %v22504_v63 = vld [vmem:[#allocation18_spill] sm:$0xff] }
 0x1ea   :  { %17052 = vmatprep.mubr.msk.f32.mxu0 %vm91_vm1, %v19837_v0  ;;  %v20267_v0 = vpop.f32.mrb[8].mxu1 }
 0x1ed   :  { %17053 = vmatmul.mubr.msk.f32.gmra.mrb[24].mxu0 %vm91_vm1, %v19839_v4  ;;  %v4430_v4 = vld [vmem:[#allocation2 + $0x338] sm:$0xff] }
 0x1ee   :  { %17055 = vmatprep.mubr.msk.f32.mxu0 %vm91_vm1, %v19849_v5  ;;  %v20270_v5 = vpop.f32.mrb[9].mxu1 }
 0x1f1   :  { %17056 = vmatmul.mubr.msk.f32.gmra.mrb[26].mxu0 %vm91_vm1, %v19851_v8  ;;  %v4431_v8 = vld [vmem:[#allocation2 + $0x348] sm:$0xff] }
 0x1f2   :  { %17058 = vmatprep.mubr.msk.f32.mxu0 %vm91_vm1, %v4397_v19  ;;  %v5096_v19 = vld [vmem:[#allocation2 + $0xf9] sm:$0xff] }
 0x1f5   :  { %17059 = vmatmul.mubr.msk.f32.gmra.mrb[28].mxu0 %vm91_vm1, %v4398_v34  ;;  %v5097_v34 = vld [vmem:[#allocation2 + $0x109] sm:$0xff] }
 0x1f6   :  { %17061 = vmatprep.mubr.msk.f32.mxu0 %vm91_vm1, %v4399_v22 }
 0x1f9   :  { %17062 = vmatmul.mubr.msk.f32.gmra.mrb[30].mxu0 %vm91_vm1, %v4400_v23 }
 0x1fa   :  { %17064 = vmatprep.mubr.msk.f32.mxu0 %vm91_vm1, %v19873_v17  ;;  %v4432_v17 = vld [vmem:[#allocation2 + $0x350] sm:$0xff] }
 0x1fd   :  { %17065 = vmatmul.mubr.msk.f32.gmra.mrb[32].mxu0 %vm91_vm1, %v19875_v20  ;;  %v5079_v20 = vld [vmem:[#allocation2 + $0x31] sm:$0xff] }
 0x1fe   :  { %17067 = vmatprep.mubr.msk.f32.mxu0 %vm91_vm1, %v19885_v21 }
 0x201   :  { %17068 = vmatmul.mubr.msk.f32.gmra.mrb[34].mxu0 %vm91_vm1, %v19887_v25 }
 0x202   :  { %17070 = vmatprep.mubr.msk.f32.mxu0 %vm91_vm1, %v19897_v26  ;;  %v5080_v26 = vld [vmem:[#allocation2 + $0x39] sm:$0xff] }
 0x205   :  { %17071 = vmatmul.mubr.msk.f32.gmra.mrb[36].mxu0 %vm91_vm1, %v19899_v42  ;;  %v5081_v42 = vld [vmem:[#allocation2 + $0x49] sm:$0xff] }
 0x206   :  { %17073 = vmatprep.mubr.msk.f32.mxu0 %vm91_vm1, %v19909_v24 }
 0x209   :  { %17074 = vmatmul.mubr.msk.f32.gmra.mrb[38].mxu0 %vm91_vm1, %v19911_v45 }
 0x20a   :  { %17076 = vmatprep.mubr.msk.f32.mxu0 %vm91_vm1, %v19919_v50  ;;  %v5082_v50 = vld [vmem:[#allocation2 + $0x51] sm:$0xff] }
 0x20d   :  { %17077 = vmatmul.mubr.msk.f32.gmra.mrb[40].mxu0 %vm91_vm1, %v19921_v53  ;;  %v5083_v53 = vld [vmem:[#allocation2 + $0x61] sm:$0xff] }
 0x20e   :  { %17079 = vmatprep.mubr.msk.f32.mxu0 %vm91_vm1, %v19937_v61 }
 0x211   :  { %17080 = vmatmul.mubr.msk.f32.gmra.mrb[42].mxu0 %vm91_vm1, %v19939_v62  ;;  %v5084_v62 = vld [vmem:[#allocation2 + $0x69] sm:$0xff] }
 0x212   :  { %17082 = vmatprep.mubr.msk.f32.mxu0 %vm91_vm1, %v19948_v29  ;;  %v5085_v29 = vld [vmem:[#allocation2 + $0x79] sm:$0xff] }
 0x215   :  { %17083 = vmatmul.mubr.msk.f32.gmra.mrb[44].mxu0 %vm91_vm1, %v19950_v3 }
 0x216   :  { %17085 = vmatprep.mubr.msk.f32.mxu0 %vm91_vm1, %v19958_v10 }
 0x219   :  { %17086 = vmatmul.mubr.msk.f32.gmra.mrb[46].mxu0 %vm91_vm1, %v19960_v11  ;;  %v5086_v11 = vld [vmem:[#allocation2 + $0x81] sm:$0xff] }
 0x21a   :  { %17088 = vmatprep.mubr.msk.f32.mxu0 %vm91_vm1, %v19968_v33  ;;  %v5087_v33 = vld [vmem:[#allocation2 + $0x91] sm:$0xff] }
 0x21d   :  { %17089 = vmatmul.mubr.msk.f32.gmra.mrb[48].mxu0 %vm91_vm1, %v22494_v27  ;;  %v5098_v27 = vld [vmem:[#allocation2 + $0x111] sm:$0xff] }
 0x21e   :  { %17091 = vmatprep.mubr.msk.f32.mxu0 %vm91_vm1, %v22495_v28  ;;  %v5099_v28 = vld [vmem:[#allocation2 + $0x121] sm:$0xff] }
 0x221   :  { %17092 = vmatmul.mubr.msk.f32.gmra.mrb[50].mxu0 %vm91_vm1, %v22496_v32 }
 0x222   :  { %17094 = vmatprep.mubr.msk.f32.mxu0 %vm91_vm1, %v22497_v36 }
 0x225   :  { %17095 = vmatmul.mubr.msk.f32.gmra.mrb[52].mxu0 %vm91_vm1, %v22498_v39  ;;  %v5100_v39 = vld [vmem:[#allocation2 + $0x129] sm:$0xff] }
 0x226   :  { %17097 = vmatprep.mubr.msk.f32.mxu0 %vm91_vm1, %v22499_v41  ;;  %v5101_v41 = vld [vmem:[#allocation2 + $0x139] sm:$0xff] }
 0x229   :  { %17098 = vmatmul.mubr.msk.f32.gmra.mrb[54].mxu0 %vm91_vm1, %v22500_v44 }
 0x22a   :  { %17100 = vmatprep.mubr.msk.f32.mxu0 %vm91_vm1, %v22501_v48 }
 0x22d   :  { %17101 = vmatmul.mubr.msk.f32.gmra.mrb[56].mxu0 %vm91_vm1, %v22502_v52  ;;  %v5102_v52 = vld [vmem:[#allocation2 + $0x141] sm:$0xff] }
 0x22e   :  { %17103 = vmatprep.mubr.msk.f32.mxu0 %vm91_vm1, %v22503_v56  ;;  %v5103_v56 = vld [vmem:[#allocation2 + $0x151] sm:$0xff] }
 0x231   :  { %17104 = vmatmul.mubr.msk.f32.gmra.mrb[58].mxu0 %vm91_vm1, %v22504_v63 }
 0x232   :  { %17106 = vmatprep.mubr.msk.f32.mxu0 %vm91_vm1, %v4429_v60 }
 0x233   :  { %v20274_v21 = vpop.f32.mrb[10].mxu1 }
 0x234   :  { %v20276_v25 = vpop.f32.mrb[11].mxu1 }
 0x235   :  { %17107 = vmatmul.mubr.msk.f32.gmra.mrb[60].mxu0 %vm91_vm1, %v4430_v4  ;;  %v5104_v4 = vld [vmem:[#allocation2 + $0x159] sm:$0xff] }
 0x236   :  { %17109 = vmatprep.mubr.msk.f32.mxu0 %vm91_vm1, %v4431_v8  ;;  %v5105_v8 = vld [vmem:[#allocation2 + $0x169] sm:$0xff] }
 0x237   :  { %v20280_v24 = vpop.f32.mrb[12].mxu1 }
 0x238   :  { %v20282_v45 = vpop.f32.mrb[13].mxu1 }
 0x239   :  { %17110 = vmatmul.mubr.msk.f32.gmra.mrb[62].mxu0 %vm91_vm1, %v4432_v17 }
 0x23a   :  { %17114 = vmatprep.mubr.msk.f32.mxu0 %vm91_vm1, %v5079_v20 }
 0x23b   :  { %v20288_v57 = vpop.f32.mrb[14].mxu1 }
 0x23c   :  { %v20290_v61 = vpop.f32.mrb[15].mxu1 }
 0x23d   :  { %17115 = vmatmul.mubr.msk.f32.vlgmr.msra.gmra.mrb[0].mxu0 %vm91_vm1, %v5080_v26  ;;  %v5106_v26 = vld [vmem:[#allocation2 + $0x171] sm:$0xff] }
 0x23e   :  { %17211 = vmatpush3.msk.msra.mxu0 %vm559_vm0, %v20123_v16  ;;  %17117 = vmatprep.mubr.msk.f32.mxu0 %vm91_vm1, %v5081_v42  ;;  %v5107_v42 = vld [vmem:[#allocation2 + $0x181] sm:$0xff]  ;;  %vm9635_vm0 = vcmask 1047559  }
 0x23f   :  { %v20294_v3 = vpop.f32.mrb[16].mxu1 }
 0x240   :  { %v20296_v10 = vpop.f32.mrb[17].mxu1 }
 0x241   :  { %17118 = vmatmul.mubr.msk.f32.gmra.mrb[2].mxu0 %vm91_vm1, %v5082_v50 }
 0x242   :  { %17120 = vmatprep.mubr.msk.f32.mxu0 %vm91_vm1, %v5083_v53 }
 0x243   :  { %v20300_v54 = vpop.f32.mrb[18].mxu1 }
 0x244   :  { %v20302_v15 = vpop.f32.mrb[19].mxu1 }
 0x245   :  { %17121 = vmatmul.mubr.msk.f32.gmra.mrb[4].mxu0 %vm91_vm1, %v5084_v62  ;;  %v5108_v62 = vld [vmem:[#allocation2 + $0x189] sm:$0xff] }
 0x246   :  { %17123 = vmatprep.mubr.msk.f32.mxu0 %vm91_vm1, %v5085_v29  ;;  %v5109_v29 = vld [vmem:[#allocation2 + $0x199] sm:$0xff] }
 0x247   :  { %v20306_v7 = vpop.f32.mrb[20].mxu1 }
 0x248   :  { %v20308_v14 = vpop.f32.mrb[21].mxu1 }
 0x249   :  { %17124 = vmatmul.mubr.msk.f32.gmra.mrb[6].mxu0 %vm91_vm1, %v5086_v11 }
 0x24a   :  { %17126 = vmatprep.mubr.msk.f32.mxu0 %vm91_vm1, %v5087_v33 }
 0x24b   :  { %v20312_v12 = vpop.f32.mrb[22].mxu1 }
 0x24c   :  { %v20314_v13 = vpop.f32.mrb[23].mxu1 }
 0x24d   :  { %17127 = vmatmul.mubr.msk.f32.gmra.mrb[8].mxu0 %vm91_vm1, %v5088_v58  ;;  %v5110_v58 = vld [vmem:[#allocation2 + $0x1a1] sm:$0xff] }
 0x24e   :  { %17129 = vmatprep.mubr.msk.f32.mxu0 %vm91_vm1, %v5089_v6  ;;  %v5111_v6 = vld [vmem:[#allocation2 + $0x1e1] sm:$0xff] }
 0x24f   :  { %v20318_v31 = vpop.f32.mrb[24].mxu1 }
 0x250   :  { %v20320_v2 = vpop.f32.mrb[25].mxu1 }
 0x251   :  { %17130 = vmatmul.mubr.msk.f32.gmra.mrb[10].mxu0 %vm91_vm1, %v5090_v46 }
 0x252   :  { %17132 = vmatprep.mubr.msk.f32.mxu0 %vm91_vm1, %v5091_v49 }
 0x253   :  { %v20324_v9 = vpop.f32.mrb[26].mxu1 }
 0x254   :  { %v20326_v16 = vpop.f32.mrb[27].mxu1 }
 0x255   :  { %17133 = vmatmul.mubr.msk.f32.gmra.mrb[12].mxu0 %vm91_vm1, %v5092_v1  ;;  %v5112_v1 = vld [vmem:[#allocation2 + $0x1e9] sm:$0xff] }
 0x256   :  { %17135 = vmatprep.mubr.msk.f32.mxu0 %vm91_vm1, %v5093_v18  ;;  %v5113_v18 = vld [vmem:[#allocation2 + $0x1f9] sm:$0xff] }
 0x257   :  { %v20330_v22 = vpop.f32.mrb[28].mxu1 }
 0x258   :  { %v20332_v23 = vpop.f32.mrb[29].mxu1 }
 0x259   :  { %17136 = vmatmul.mubr.msk.f32.gmra.mrb[14].mxu0 %vm91_vm1, %v5094_v30 }
 0x25a   :  { %17138 = vmatprep.mubr.msk.f32.mxu0 %vm91_vm1, %v5095_v37 }
 0x25b   :  { %v20336_v32 = vpop.f32.mrb[30].mxu1 }
 0x25c   :  { %22505 = vst [vmem:[#allocation8_spill] sm:$0xff] %v20336_v32  ;;  %v20338_v36 = vpop.f32.mrb[31].mxu1 }
 0x25d   :  { %17139 = vmatmul.mubr.msk.f32.gmra.mrb[16].mxu0 %vm91_vm1, %v5096_v19  ;;  %22506 = vst [vmem:[#allocation9_spill] sm:$0xff] %v20338_v36  ;;  %v5114_v19 = vld [vmem:[#allocation2 + $0x201] sm:$0xff] }
 0x25e   :  { %17141 = vmatprep.mubr.msk.f32.mxu0 %vm91_vm1, %v5097_v34  ;;  %v5115_v34 = vld [vmem:[#allocation2 + $0x211] sm:$0xff] }
 0x25f   :  { %v20342_v44 = vpop.f32.mrb[32].mxu1 }
 0x260   :  { %22507 = vst [vmem:[#allocation10_spill] sm:$0xff] %v20342_v44  ;;  %v20344_v48 = vpop.f32.mrb[33].mxu1 }
 0x261   :  { %17142 = vmatmul.mubr.msk.f32.gmra.mrb[18].mxu0 %vm91_vm1, %v5098_v27  ;;  %22508 = vst [vmem:[#allocation11_spill] sm:$0xff] %v20344_v48 }
 0x262   :  { %17144 = vmatprep.mubr.msk.f32.mxu0 %vm91_vm1, %v5099_v28 }
 0x263   :  { %v20348_v60 = vpop.f32.mrb[34].mxu1 }
 0x264   :  { %22509 = vst [vmem:[#allocation12_spill] sm:$0xff] %v20348_v60  ;;  %v20350_v63 = vpop.f32.mrb[35].mxu1 }
 0x265   :  { %17145 = vmatmul.mubr.msk.f32.gmra.mrb[20].mxu0 %vm91_vm1, %v5100_v39  ;;  %22510 = vst [vmem:[#allocation13_spill] sm:$0xff] %v20350_v63  ;;  %v5116_v39 = vld [vmem:[#allocation2 + $0x219] sm:$0xff] }
 0x266   :  { %17147 = vmatprep.mubr.msk.f32.mxu0 %vm91_vm1, %v5101_v41  ;;  %v5117_v41 = vld [vmem:[#allocation2 + $0x229] sm:$0xff] }
 0x267   :  { %v20354_v17 = vpop.f32.mrb[36].mxu1 }
 0x268   :  { %22511 = vst [vmem:[#allocation14_spill] sm:$0xff] %v20354_v17  ;;  %v20356_v20 = vpop.f32.mrb[37].mxu1 }
 0x269   :  { %17148 = vmatmul.mubr.msk.f32.gmra.mrb[22].mxu0 %vm91_vm1, %v5102_v52  ;;  %22512 = vst [vmem:[#allocation15_spill] sm:$0xff] %v20356_v20 }
 0x26a   :  { %17150 = vmatprep.mubr.msk.f32.mxu0 %vm91_vm1, %v5103_v56 }
 0x26b   :  { %v20360_v50 = vpop.f32.mrb[38].mxu1 }
 0x26c   :  { %22513 = vst [vmem:[#allocation16_spill] sm:$0xff] %v20360_v50  ;;  %v20362_v53 = vpop.f32.mrb[39].mxu1 }
 0x26d   :  { %17151 = vmatmul.mubr.msk.f32.gmra.mrb[24].mxu0 %vm91_vm1, %v5104_v4  ;;  %22514 = vst [vmem:[#allocation17_spill] sm:$0xff] %v20362_v53  ;;  %v5118_v4 = vld [vmem:[#allocation2 + $0x231] sm:$0xff] }
 0x26e   :  { %17153 = vmatprep.mubr.msk.f32.mxu0 %vm91_vm1, %v5105_v8  ;;  %v5119_v8 = vld [vmem:[#allocation2 + $0x241] sm:$0xff] }
 0x26f   :  { %v20366_v11 = vpop.f32.mrb[40].mxu1 }
 0x270   :  { %22515 = vst [vmem:[#allocation18_spill] sm:$0xff] %v20366_v11  ;;  %v20368_v33 = vpop.f32.mrb[41].mxu1 }
 0x271   :  { %17154 = vmatmul.mubr.msk.f32.gmra.mrb[26].mxu0 %vm91_vm1, %v5106_v26  ;;  %22516 = vst [vmem:[#allocation19_spill] sm:$0xff] %v20368_v33 }
 0x272   :  { %17156 = vmatprep.mubr.msk.f32.mxu0 %vm91_vm1, %v5107_v42 }
 0x273   :  { %v20372_v46 = vpop.f32.mrb[42].mxu1 }
 0x274   :  { %22517 = vst [vmem:[#allocation20_spill] sm:$0xff] %v20372_v46  ;;  %v20374_v49 = vpop.f32.mrb[43].mxu1 }
 0x275   :  { %17157 = vmatmul.mubr.msk.f32.gmra.mrb[28].mxu0 %vm91_vm1, %v5108_v62  ;;  %22518 = vst [vmem:[#allocation21_spill] sm:$0xff] %v20374_v49  ;;  %v5120_v62 = vld [vmem:[#allocation2 + $0x249] sm:$0xff] }
 0x276   :  { %17159 = vmatprep.mubr.msk.f32.mxu0 %vm91_vm1, %v5109_v29  ;;  %v5121_v29 = vld [vmem:[#allocation2 + $0x259] sm:$0xff] }
 0x277   :  { %v20378_v30 = vpop.f32.mrb[44].mxu1 }
 0x278   :  { %22519 = vst [vmem:[#allocation22_spill] sm:$0xff] %v20378_v30  ;;  %v20380_v37 = vpop.f32.mrb[45].mxu1 }
 0x279   :  { %17160 = vmatmul.mubr.msk.f32.gmra.mrb[30].mxu0 %vm91_vm1, %v5110_v58  ;;  %22520 = vst [vmem:[#allocation23_spill] sm:$0xff] %v20380_v37 }
 0x27a   :  { %17162 = vmatprep.mubr.msk.f32.mxu0 %vm91_vm1, %v5111_v6 }
 0x27b   :  { %v20384_v27 = vpop.f32.mrb[46].mxu1 }
 0x27c   :  { %22521 = vst [vmem:[#allocation24_spill] sm:$0xff] %v20384_v27  ;;  %v20386_v28 = vpop.f32.mrb[47].mxu1 }
 0x27d   :  { %17163 = vmatmul.mubr.msk.f32.gmra.mrb[32].mxu0 %vm91_vm1, %v5112_v1  ;;  %22522 = vst [vmem:[#allocation25_spill] sm:$0xff] %v20386_v28  ;;  %v5122_v1 = vld [vmem:[#allocation2 + $0x261] sm:$0xff] }
 0x27e   :  { %17165 = vmatprep.mubr.msk.f32.mxu0 %vm91_vm1, %v5113_v18  ;;  %v5123_v18 = vld [vmem:[#allocation2 + $0x271] sm:$0xff] }
 0x27f   :  { %v20390_v52 = vpop.f32.mrb[48].mxu1 }
 0x280   :  { %22523 = vst [vmem:[#allocation26_spill] sm:$0xff] %v20390_v52  ;;  %v20392_v56 = vpop.f32.mrb[49].mxu1 }
 0x281   :  { %17166 = vmatmul.mubr.msk.f32.gmra.mrb[34].mxu0 %vm91_vm1, %v5114_v19  ;;  %22524 = vst [vmem:[#allocation27_spill] sm:$0xff] %v20392_v56 }
 0x282   :  { %17168 = vmatprep.mubr.msk.f32.mxu0 %vm91_vm1, %v5115_v34 }
 0x283   :  { %v20396_v26 = vpop.f32.mrb[50].mxu1 }
 0x284   :  { %22525 = vst [vmem:[#allocation28_spill] sm:$0xff] %v20396_v26  ;;  %v20398_v42 = vpop.f32.mrb[51].mxu1 }
 0x285   :  { %17169 = vmatmul.mubr.msk.f32.gmra.mrb[36].mxu0 %vm91_vm1, %v5116_v39  ;;  %22526 = vst [vmem:[#allocation29_spill] sm:$0xff] %v20398_v42  ;;  %v5124_v39 = vld [vmem:[#allocation2 + $0x279] sm:$0xff] }
 0x286   :  { %17171 = vmatprep.mubr.msk.f32.mxu0 %vm91_vm1, %v5117_v41  ;;  %v5125_v41 = vld [vmem:[#allocation2 + $0x289] sm:$0xff] }
 0x287   :  { %v20402_v58 = vpop.f32.mrb[52].mxu1 }
 0x288   :  { %22527 = vst [vmem:[#allocation30_spill] sm:$0xff] %v20402_v58  ;;  %v20404_v6 = vpop.f32.mrb[53].mxu1 }
 0x289   :  { %17172 = vmatmul.mubr.msk.f32.gmra.mrb[38].mxu0 %vm91_vm1, %v5118_v4  ;;  %22528 = vst [vmem:[#allocation31_spill] sm:$0xff] %v20404_v6 }
 0x28a   :  { %17174 = vmatprep.mubr.msk.f32.mxu0 %vm91_vm1, %v5119_v8 }
 0x28b   :  { %v20408_v19 = vpop.f32.mrb[54].mxu1 }
 0x28c   :  { %22529 = vst [vmem:[#allocation32_spill] sm:$0xff] %v20408_v19  ;;  %v20410_v34 = vpop.f32.mrb[55].mxu1 }
 0x28d   :  { %17175 = vmatmul.mubr.msk.f32.gmra.mrb[40].mxu0 %vm91_vm1, %v5120_v62  ;;  %22530 = vst [vmem:[#allocation33_spill] sm:$0xff] %v20410_v34  ;;  %v5126_v62 = vld [vmem:[#allocation2 + $0x291] sm:$0xff] }
 0x28e   :  { %17177 = vmatprep.mubr.msk.f32.mxu0 %vm91_vm1, %v5121_v29  ;;  %v5127_v29 = vld [vmem:[#allocation2 + $0x2a1] sm:$0xff] }
 0x28f   :  { %v20414_v4 = vpop.f32.mrb[56].mxu1 }
 0x290   :  { %22531 = vst [vmem:[#allocation34_spill] sm:$0xff] %v20414_v4  ;;  %v20416_v8 = vpop.f32.mrb[57].mxu1 }
 0x291   :  { %17178 = vmatmul.mubr.msk.f32.gmra.mrb[42].mxu0 %vm91_vm1, %v5122_v1  ;;  %22532 = vst [vmem:[#allocation35_spill] sm:$0xff] %v20416_v8  ;;  %v5128_v1 = vld [vmem:[#allocation2 + $0x2a9] sm:$0xff] }
 0x292   :  { %17180 = vmatprep.mubr.msk.f32.mxu0 %vm91_vm1, %v5123_v18  ;;  %v5129_v18 = vld [vmem:[#allocation2 + $0x2b9] sm:$0xff] }
 0x293   :  { %v20420_v6 = vpop.f32.mrb[58].mxu1 }
 0x294   :  { %22533 = vst [vmem:[#allocation36_spill] sm:$0xff] %v20420_v6  ;;  %v20422_v19 = vpop.f32.mrb[59].mxu1 }
 0x295   :  { %17181 = vmatmul.mubr.msk.f32.gmra.mrb[44].mxu0 %vm91_vm1, %v5124_v39  ;;  %22534 = vst [vmem:[#allocation37_spill] sm:$0xff] %v20422_v19  ;;  %v5130_v39 = vld [vmem:[#allocation2 + $0x2c1] sm:$0xff] }
 0x296   :  { %17183 = vmatprep.mubr.msk.f32.mxu0 %vm91_vm1, %v5125_v41  ;;  %v5131_v41 = vld [vmem:[#allocation2 + $0x2d1] sm:$0xff] }
 0x297   :  { %v20426_v34 = vpop.f32.mrb[60].mxu1 }
 0x298   :  { %22535 = vst [vmem:[#allocation38_spill] sm:$0xff] %v20426_v34  ;;  %v20428_v4 = vpop.f32.mrb[61].mxu1  ;;  %v20541_v34 = vld [vmem:[%s22462_s2] ss:$0 sm:$0xff] }
 0x299   :  { %17184 = vmatmul.mubr.msk.f32.gmra.mrb[46].mxu0 %vm91_vm1, %v5126_v62  ;;  %22536 = vst [vmem:[#allocation39_spill] sm:$0xff] %v20428_v4  ;;  %v5132_v62 = vld [vmem:[#allocation2 + $0x2d9] sm:$0xff]  ;;  %v5134_v4 = vld [vmem:[#allocation2 + $0x2f1] sm:$0xff] }
 0x29a   :  { %17186 = vmatprep.mubr.msk.f32.mxu0 %vm91_vm1, %v5127_v29  ;;  %v5133_v29 = vld [vmem:[#allocation2 + $0x2e9] sm:$0xff] }
 0x29b   :  { %v20432_v8 = vpop.f32.mrb[62].mxu1 }
 0x29c   :  { %22537 = vst [vmem:[#allocation40_spill] sm:$0xff] %v20432_v8  ;;  %v20434_v6 = vpop.f32.mrb[63].mxu1  ;;  %v5137_v8 = vld [vmem:[#allocation2 + $0x319] sm:$0xff] }
 0x29d   :  { %17187 = vmatmul.mubr.msk.f32.gmra.mrb[48].mxu0 %vm91_vm1, %v5128_v1  ;;  %22538 = vst [vmem:[#allocation41_spill] sm:$0xff] %v20434_v6  ;;  %v5135_v1 = vld [vmem:[#allocation2 + $0x301] sm:$0xff]  ;;  %v5852_v6 = vld [vmem:[#allocation2 + $0x352] sm:$0xff] }
 0x29e   :  { %17189 = vmatprep.mubr.msk.f32.mxu0 %vm91_vm1, %v5129_v18  ;;  %v5136_v18 = vld [vmem:[#allocation2 + $0x309] sm:$0xff] }
 0x2a1   :  { %17190 = vmatmul.mubr.msk.f32.gmra.mrb[50].mxu0 %vm91_vm1, %v5130_v39  ;;  %v5138_v39 = vld [vmem:[#allocation2 + $0x321] sm:$0xff] }
 0x2a2   :  { %17192 = vmatprep.mubr.msk.f32.mxu0 %vm91_vm1, %v5131_v41  ;;  %v5139_v41 = vld [vmem:[#allocation2 + $0x331] sm:$0xff] }
 0x2a5   :  { %17193 = vmatmul.mubr.msk.f32.gmra.mrb[52].mxu0 %vm91_vm1, %v5132_v62  ;;  %v5140_v62 = vld [vmem:[#allocation2 + $0x339] sm:$0xff] }
 0x2a6   :  { %17195 = vmatprep.mubr.msk.f32.mxu0 %vm91_vm1, %v5133_v29  ;;  %v5141_v29 = vld [vmem:[#allocation2 + $0x349] sm:$0xff] }
 0x2a9   :  { %17196 = vmatmul.mubr.msk.f32.gmra.mrb[54].mxu0 %vm91_vm1, %v5134_v4  ;;  %v5142_v4 = vld [vmem:[#allocation2 + $0x351] sm:$0xff] }
 0x2aa   :  { %17198 = vmatprep.mubr.msk.f32.mxu0 %vm91_vm1, %v5135_v1  ;;  %v5789_v1 = vld [vmem:[#allocation2 + $0x32] sm:$0xff] }
 0x2ad   :  { %17199 = vmatmul.mubr.msk.f32.gmra.mrb[56].mxu0 %vm91_vm1, %v5136_v18  ;;  %v5790_v18 = vld [vmem:[#allocation2 + $0x3a] sm:$0xff] }
 0x2ae   :  { %17201 = vmatprep.mubr.msk.f32.mxu0 %vm91_vm1, %v5137_v8  ;;  %v5791_v8 = vld [vmem:[#allocation2 + $0x4a] sm:$0xff] }
 0x2b1   :  { %17202 = vmatmul.mubr.msk.f32.gmra.mrb[58].mxu0 %vm91_vm1, %v5138_v39  ;;  %v5792_v39 = vld [vmem:[#allocation2 + $0x52] sm:$0xff] }
 0x2b2   :  { %17204 = vmatprep.mubr.msk.f32.mxu0 %vm91_vm1, %v5139_v41  ;;  %v5793_v41 = vld [vmem:[#allocation2 + $0x62] sm:$0xff] }
 0x2b5   :  { %17205 = vmatmul.mubr.msk.f32.gmra.mrb[60].mxu0 %vm91_vm1, %v5140_v62  ;;  %v5794_v62 = vld [vmem:[#allocation2 + $0x6a] sm:$0xff] }
 0x2b6   :  { %17207 = vmatprep.mubr.msk.f32.mxu0 %vm91_vm1, %v5141_v29  ;;  %v5795_v29 = vld [vmem:[#allocation2 + $0x7a] sm:$0xff] }
 0x2b9   :  { %17208 = vmatmul.mubr.msk.f32.gmra.mrb[62].mxu0 %vm91_vm1, %v5142_v4  ;;  %v5796_v4 = vld [vmem:[#allocation2 + $0x82] sm:$0xff] }
 0x2ba   :  { %17212 = vmatprep.mubr.msk.f32.mxu0 %vm91_vm1, %v5789_v1  ;;  %v5797_v1 = vld [vmem:[#allocation2 + $0x92] sm:$0xff] }
 0x2bd   :  { %17213 = vmatmul.mubr.msk.f32.vlgmr.msra.gmra.mrb[0].mxu0 %vm91_vm1, %v5790_v18  ;;  %v5798_v18 = vld [vmem:[#allocation2 + $0x9a] sm:$0xff] }
 0x2be   :  { %17215 = vmatprep.mubr.msk.f32.mxu0 %vm91_vm1, %v5791_v8  ;;  %v5799_v8 = vld [vmem:[#allocation2 + $0xaa] sm:$0xff] }
 0x2c1   :  { %17216 = vmatmul.mubr.msk.f32.gmra.mrb[2].mxu0 %vm91_vm1, %v5792_v39  ;;  %v5800_v39 = vld [vmem:[#allocation2 + $0xb2] sm:$0xff] }
 0x2c2   :  { %17218 = vmatprep.mubr.msk.f32.mxu0 %vm91_vm1, %v5793_v41  ;;  %v5801_v41 = vld [vmem:[#allocation2 + $0xc2] sm:$0xff] }
 0x2c5   :  { %17219 = vmatmul.mubr.msk.f32.gmra.mrb[4].mxu0 %vm91_vm1, %v5794_v62  ;;  %v5802_v62 = vld [vmem:[#allocation2 + $0xca] sm:$0xff] }
 0x2c6   :  { %17221 = vmatprep.mubr.msk.f32.mxu0 %vm91_vm1, %v5795_v29  ;;  %v5803_v29 = vld [vmem:[#allocation2 + $0xda] sm:$0xff] }
 0x2c9   :  { %17222 = vmatmul.mubr.msk.f32.gmra.mrb[6].mxu0 %vm91_vm1, %v5796_v4  ;;  %v5804_v4 = vld [vmem:[#allocation2 + $0xe2] sm:$0xff] }
 0x2ca   :  { %17224 = vmatprep.mubr.msk.f32.mxu0 %vm91_vm1, %v5797_v1  ;;  %v5805_v1 = vld [vmem:[#allocation2 + $0xf2] sm:$0xff] }
 0x2cd   :  { %17225 = vmatmul.mubr.msk.f32.gmra.mrb[8].mxu0 %vm91_vm1, %v5798_v18  ;;  %v5806_v18 = vld [vmem:[#allocation2 + $0xfa] sm:$0xff] }
 0x2ce   :  { %17227 = vmatprep.mubr.msk.f32.mxu0 %vm91_vm1, %v5799_v8  ;;  %v5807_v8 = vld [vmem:[#allocation2 + $0x10a] sm:$0xff] }
 0x2d1   :  { %17228 = vmatmul.mubr.msk.f32.gmra.mrb[10].mxu0 %vm91_vm1, %v5800_v39  ;;  %v5808_v39 = vld [vmem:[#allocation2 + $0x112] sm:$0xff] }
 0x2d2   :  { %17230 = vmatprep.mubr.msk.f32.mxu0 %vm91_vm1, %v5801_v41  ;;  %v5809_v41 = vld [vmem:[#allocation2 + $0x122] sm:$0xff] }
 0x2d5   :  { %17231 = vmatmul.mubr.msk.f32.gmra.mrb[12].mxu0 %vm91_vm1, %v5802_v62  ;;  %v5810_v62 = vld [vmem:[#allocation2 + $0x12a] sm:$0xff] }
 0x2d6   :  { %17233 = vmatprep.mubr.msk.f32.mxu0 %vm91_vm1, %v5803_v29  ;;  %v5811_v29 = vld [vmem:[#allocation2 + $0x13a] sm:$0xff] }
 0x2d9   :  { %17234 = vmatmul.mubr.msk.f32.gmra.mrb[14].mxu0 %vm91_vm1, %v5804_v4  ;;  %v5812_v4 = vld [vmem:[#allocation2 + $0x142] sm:$0xff] }
 0x2da   :  { %17236 = vmatprep.mubr.msk.f32.mxu0 %vm91_vm1, %v5805_v1  ;;  %v5813_v1 = vld [vmem:[#allocation2 + $0x152] sm:$0xff] }
 0x2dd   :  { %17237 = vmatmul.mubr.msk.f32.gmra.mrb[16].mxu0 %vm91_vm1, %v5806_v18  ;;  %v5814_v18 = vld [vmem:[#allocation2 + $0x15a] sm:$0xff] }
 0x2de   :  { %17239 = vmatprep.mubr.msk.f32.mxu0 %vm91_vm1, %v5807_v8  ;;  %v5815_v8 = vld [vmem:[#allocation2 + $0x16a] sm:$0xff] }
 0x2e1   :  { %17240 = vmatmul.mubr.msk.f32.gmra.mrb[18].mxu0 %vm91_vm1, %v5808_v39  ;;  %v5816_v39 = vld [vmem:[#allocation2 + $0x172] sm:$0xff] }
 0x2e2   :  { %17242 = vmatprep.mubr.msk.f32.mxu0 %vm91_vm1, %v5809_v41  ;;  %v5817_v41 = vld [vmem:[#allocation2 + $0x182] sm:$0xff] }
 0x2e5   :  { %17243 = vmatmul.mubr.msk.f32.gmra.mrb[20].mxu0 %vm91_vm1, %v5810_v62  ;;  %v5818_v62 = vld [vmem:[#allocation2 + $0x18a] sm:$0xff] }
 0x2e6   :  { %17245 = vmatprep.mubr.msk.f32.mxu0 %vm91_vm1, %v5811_v29  ;;  %v5819_v29 = vld [vmem:[#allocation2 + $0x19a] sm:$0xff] }
 0x2e9   :  { %17246 = vmatmul.mubr.msk.f32.gmra.mrb[22].mxu0 %vm91_vm1, %v5812_v4  ;;  %v5820_v4 = vld [vmem:[#allocation2 + $0x1a2] sm:$0xff] }
 0x2ea   :  { %17248 = vmatprep.mubr.msk.f32.mxu0 %vm91_vm1, %v5813_v1  ;;  %v5821_v1 = vld [vmem:[#allocation2 + $0x1e2] sm:$0xff] }
 0x2ed   :  { %17249 = vmatmul.mubr.msk.f32.gmra.mrb[24].mxu0 %vm91_vm1, %v5814_v18  ;;  %v5822_v18 = vld [vmem:[#allocation2 + $0x1ea] sm:$0xff] }
 0x2ee   :  { %17251 = vmatprep.mubr.msk.f32.mxu0 %vm91_vm1, %v5815_v8  ;;  %v5823_v8 = vld [vmem:[#allocation2 + $0x1fa] sm:$0xff] }
 0x2f1   :  { %17252 = vmatmul.mubr.msk.f32.gmra.mrb[26].mxu0 %vm91_vm1, %v5816_v39  ;;  %v5824_v39 = vld [vmem:[#allocation2 + $0x202] sm:$0xff] }
 0x2f2   :  { %17254 = vmatprep.mubr.msk.f32.mxu0 %vm91_vm1, %v5817_v41  ;;  %v5825_v41 = vld [vmem:[#allocation2 + $0x212] sm:$0xff] }
 0x2f5   :  { %17255 = vmatmul.mubr.msk.f32.gmra.mrb[28].mxu0 %vm91_vm1, %v5818_v62  ;;  %v5826_v62 = vld [vmem:[#allocation2 + $0x21a] sm:$0xff] }
 0x2f6   :  { %17257 = vmatprep.mubr.msk.f32.mxu0 %vm91_vm1, %v5819_v29  ;;  %v5827_v29 = vld [vmem:[#allocation2 + $0x22a] sm:$0xff] }
 0x2f9   :  { %17258 = vmatmul.mubr.msk.f32.gmra.mrb[30].mxu0 %vm91_vm1, %v5820_v4  ;;  %v5828_v4 = vld [vmem:[#allocation2 + $0x232] sm:$0xff] }
 0x2fa   :  { %17260 = vmatprep.mubr.msk.f32.mxu0 %vm91_vm1, %v5821_v1  ;;  %v5829_v1 = vld [vmem:[#allocation2 + $0x242] sm:$0xff] }
 0x2fd   :  { %17261 = vmatmul.mubr.msk.f32.gmra.mrb[32].mxu0 %vm91_vm1, %v5822_v18  ;;  %v5830_v18 = vld [vmem:[#allocation2 + $0x24a] sm:$0xff] }
 0x2fe   :  { %17263 = vmatprep.mubr.msk.f32.mxu0 %vm91_vm1, %v5823_v8  ;;  %v5831_v8 = vld [vmem:[#allocation2 + $0x25a] sm:$0xff] }
 0x301   :  { %17264 = vmatmul.mubr.msk.f32.gmra.mrb[34].mxu0 %vm91_vm1, %v5824_v39  ;;  %v5832_v39 = vld [vmem:[#allocation2 + $0x262] sm:$0xff] }
 0x302   :  { %17266 = vmatprep.mubr.msk.f32.mxu0 %vm91_vm1, %v5825_v41  ;;  %v5833_v41 = vld [vmem:[#allocation2 + $0x272] sm:$0xff] }
 0x305   :  { %17267 = vmatmul.mubr.msk.f32.gmra.mrb[36].mxu0 %vm91_vm1, %v5826_v62  ;;  %v5834_v62 = vld [vmem:[#allocation2 + $0x27a] sm:$0xff] }
 0x306   :  { %17269 = vmatprep.mubr.msk.f32.mxu0 %vm91_vm1, %v5827_v29  ;;  %v5835_v29 = vld [vmem:[#allocation2 + $0x28a] sm:$0xff] }
 0x309   :  { %17270 = vmatmul.mubr.msk.f32.gmra.mrb[38].mxu0 %vm91_vm1, %v5828_v4  ;;  %v5836_v4 = vld [vmem:[#allocation2 + $0x292] sm:$0xff] }
 0x30a   :  { %17272 = vmatprep.mubr.msk.f32.mxu0 %vm91_vm1, %v5829_v1  ;;  %v5837_v1 = vld [vmem:[#allocation2 + $0x2a2] sm:$0xff] }
 0x30d   :  { %17273 = vmatmul.mubr.msk.f32.gmra.mrb[40].mxu0 %vm91_vm1, %v5830_v18  ;;  %v5838_v18 = vld [vmem:[#allocation2 + $0x2aa] sm:$0xff] }
 0x30e   :  { %17275 = vmatprep.mubr.msk.f32.mxu0 %vm91_vm1, %v5831_v8  ;;  %v5839_v8 = vld [vmem:[#allocation2 + $0x2ba] sm:$0xff] }
 0x311   :  { %17276 = vmatmul.mubr.msk.f32.gmra.mrb[42].mxu0 %vm91_vm1, %v5832_v39  ;;  %v5840_v39 = vld [vmem:[#allocation2 + $0x2c2] sm:$0xff] }
 0x312   :  { %17278 = vmatprep.mubr.msk.f32.mxu0 %vm91_vm1, %v5833_v41  ;;  %v5841_v41 = vld [vmem:[#allocation2 + $0x2d2] sm:$0xff] }
 0x315   :  { %17279 = vmatmul.mubr.msk.f32.gmra.mrb[44].mxu0 %vm91_vm1, %v5834_v62  ;;  %v5842_v62 = vld [vmem:[#allocation2 + $0x2da] sm:$0xff] }
 0x316   :  { %17281 = vmatprep.mubr.msk.f32.mxu0 %vm91_vm1, %v5835_v29  ;;  %v5843_v29 = vld [vmem:[#allocation2 + $0x2ea] sm:$0xff] }
 0x319   :  { %17282 = vmatmul.mubr.msk.f32.gmra.mrb[46].mxu0 %vm91_vm1, %v5836_v4  ;;  %v5844_v4 = vld [vmem:[#allocation2 + $0x2f2] sm:$0xff] }
 0x31a   :  { %17284 = vmatprep.mubr.msk.f32.mxu0 %vm91_vm1, %v5837_v1  ;;  %v5845_v1 = vld [vmem:[#allocation2 + $0x302] sm:$0xff] }
 0x31d   :  { %17285 = vmatmul.mubr.msk.f32.gmra.mrb[48].mxu0 %vm91_vm1, %v5838_v18  ;;  %v22539_v18 = vmov 0.0  }
 0x31e   :  { %17287 = vmatprep.mubr.msk.f32.mxu0 %vm91_vm1, %v5839_v8  ;;  %8939 = vst.msk [vmem:[#allocation3] sm:$0xff] %vm8938_vm4, %v22539_v18  ;;  %8942 = vst.msk [vmem:[#allocation3 + $0xa0] sm:$0xff] %vm8938_vm4, %v22539_v18  ;;  %v5846_v8 = vld [vmem:[#allocation2 + $0x30a] sm:$0xff] }
 0x31f   :  { %8945 = vst.msk [vmem:[#allocation3 + $0x90] sm:$0xff] %vm8938_vm4, %v22539_v18  ;;  %8947 = vst.msk [vmem:[#allocation3 + $0x130] sm:$0xff] %vm8938_vm4, %v22539_v18 }
 0x320   :  { %8941 = vst.msk [vmem:[#allocation3 + $0x8] sm:$0x3] %vm8940_vm5, %v22539_v18  ;;  %8943 = vst.msk [vmem:[#allocation3 + $0xa8] sm:$0x3] %vm8940_vm5, %v22539_v18 }
 0x321   :  { %17288 = vmatmul.mubr.msk.f32.gmra.mrb[50].mxu0 %vm91_vm1, %v5840_v39  ;;  %v5847_v39 = vld [vmem:[#allocation2 + $0x31a] sm:$0xff]  ;;  %8946 = vst.msk [vmem:[#allocation3 + $0x98] sm:$0x3] %vm8940_vm5, %v22539_v18  ;;  %8948 = vst.msk [vmem:[#allocation3 + $0x138] sm:$0x3] %vm8940_vm5, %v22539_v18 }
 0x322   :  { %17290 = vmatprep.mubr.msk.f32.mxu0 %vm91_vm1, %v5841_v41  ;;  %v5848_v41 = vld [vmem:[#allocation2 + $0x322] sm:$0xff] }
 0x325   :  { %17291 = vmatmul.mubr.msk.f32.gmra.mrb[52].mxu0 %vm91_vm1, %v5842_v62  ;;  %v5849_v62 = vld [vmem:[#allocation2 + $0x332] sm:$0xff] }
 0x326   :  { %17293 = vmatprep.mubr.msk.f32.mxu0 %vm91_vm1, %v5843_v29  ;;  %v5850_v29 = vld [vmem:[#allocation2 + $0x33a] sm:$0xff] }
 0x329   :  { %17294 = vmatmul.mubr.msk.f32.gmra.mrb[54].mxu0 %vm91_vm1, %v5844_v4  ;;  %v5851_v4 = vld [vmem:[#allocation2 + $0x34a] sm:$0xff] }
 0x32a   :  { %17296 = vmatprep.mubr.msk.f32.mxu0 %vm91_vm1, %v5845_v1  ;;  %v15235_v1 = vld [vmem:[%s22463_s3 + $0x20] sm:$0xff] }
 0x32d   :  { %17297 = vmatmul.mubr.msk.f32.gmra.mrb[56].mxu0 %vm91_vm1, %v5846_v8  ;;  %v15236_v8 = vld [vmem:[%s22463_s3 + $0x28] sm:$0xff] }
 0x32e   :  { %17299 = vmatprep.mubr.msk.f32.mxu0 %vm91_vm1, %v5847_v39  ;;  %v17794_v39 = vpack.c.bf16 %v15236_v8, %v15235_v1  ;;  %v6830_v8 = vlaneseq }
 0x330   :  { %17795 = vmatprep.subr.bf16.mxu1 %v17794_v39  ;;  %v20543_v58 = vshrl.u32 %v6830_v8, 7 }
 0x331   :  { %17300 = vmatmul.mubr.msk.f32.gmra.mrb[58].mxu0 %vm91_vm1, %v5848_v41  ;;  %17797 = vmatpush3.bf16.msra.mxu1 %v17794_v39  ;;  %v15237_v41 = vld [vmem:[%s22463_s3 + $0x30] sm:$0xff] }
 0x332   :  { %17302 = vmatprep.mubr.msk.f32.mxu0 %vm91_vm1, %v5849_v62  ;;  %22540 = vst [vmem:[#allocation42_spill] sm:$0xff] %v20543_v58 }
 0x335   :  { %17303 = vmatmul.mubr.msk.f32.gmra.mrb[60].mxu0 %vm91_vm1, %v5850_v29  ;;  %v9794_v29 = vld [vmem:[#allocation3 + $0x1] sm:$0xff] }
 0x336   :  { %17305 = vmatprep.mubr.msk.f32.mxu0 %vm91_vm1, %v5851_v4  ;;  %17316 = vmatprep.mubr.msk.f32.mxu1 %vm8938_vm4, %v9794_v29  ;;  %v18793_v4 = vmov 1983009808  }
 0x337   :  { %v6828_v1 = vunpack.c.l.s4 %v18793_v4 }
 0x339   :  { %17306 = vmatmul.mubr.msk.f32.gmra.mrb[62].mxu0 %vm91_vm1, %v5852_v6  ;;  %v15238_v6 = vld [vmem:[%s22463_s3 + $0x38] sm:$0xff]  ;;  %v6829_v19 = vunpack.c.0.s8 %v6828_v1 }
 0x33a   :  { %v17798_v62 = vpack.c.bf16 %v15238_v6, %v15237_v41 }
 0x33b   :  { %v20549_v29 = vsub.s32 %v6829_v19, %v20543_v58 }
 0x33c   :  { %17799 = vmatprep.subr.bf16.mxu1 %v17798_v62 }
 0x33d   :  { %17801 = vmatpush3.bf16.msra.mxu1 %v17798_v62 }
 0x390   :  { %v17214_v39 = vpop.f32.mrb[0].mxu0 }
 0x391   :  { %v18012_v18 = vadd.f32 %v17214_v39, %v20235_v35  ;;  %v6116_v41 = vpop.f32.mrb[1].mxu0 }
 0x392   :  { %v18013_v6 = vadd.f32 %v6116_v41, %v20239_v38 }
 0x393   :  { %v6507_v62 = vadd.f32 %v18012_v18, %v20541_v34 }
 0x394   :  { %v6506_v4 = vadd.f32 %v18013_v6, %v20541_v34  ;;  %v17217_v42 = vpop.f32.mrb[2].mxu0 }
 0x395   :  { %vm6571_vm6 = vcmp.ge.f32.partialorder %v6507_v62, 0.0  ;;  %v6635_v26 = vmul.f32 0.01, %v6507_v62  ;;  %v18014_v56 = vadd.f32 %v17217_v42, %v20243_v40  ;;  %v6126_v1 = vpop.f32.mrb[3].mxu0 }
 0x396   :  { %vm6570_vm7 = vcmp.ge.f32.partialorder %v6506_v4, 0.0  ;;  %v6634_v8 = vmul.f32 0.01, %v6506_v4  ;;  %v18015_v35 = vadd.f32 %v6126_v1, %v20247_v43  ;;  %v20560_v43 = vsub.s32 0, %v20543_v58 }
 0x397   :  { %v6699_v39 = vsel %vm6571_vm6, %v6507_v62, %v6635_v26  ;;  %v6509_v38 = vadd.f32 %v18014_v56, %v20541_v34 }
 0x398   :  { %v6843_v41 = vcombine.high %v6699_v39, %v6699_v39  ;;  %v6850_v18 = vrot.slane %v6699_v39, %v20549_v29  ;;  %v6698_v19 = vsel %vm6570_vm7, %v6506_v4, %v6634_v8  ;;  %v6508_v52 = vadd.f32 %v18015_v35, %v20541_v34  ;;  %v17220_v6 = vpop.f32.mrb[4].mxu0 }
 0x399   :  { %v6826_v28 = vcombine.high %v6698_v19, %v6698_v19  ;;  %v6833_v27 = vrot.slane %v6698_v19, %v20549_v29  ;;  %vm6573_vm8 = vcmp.ge.f32.partialorder %v6509_v38, 0.0  ;;  %v6637_v40 = vmul.f32 0.01, %v6509_v38  ;;  %v6136_v42 = vpop.f32.mrb[5].mxu0 }
 0x39a   :  { %v6857_v37 = vrot.slane %v6843_v41, %v20549_v29  ;;  %vm6572_vm9 = vcmp.ge.f32.partialorder %v6508_v52, 0.0  ;;  %v6636_v56 = vmul.f32 0.01, %v6508_v52  ;;  %v6858_v26 = vcombine.high %v6850_v18, %v6850_v18 }
 0x39b   :  { %v6840_v62 = vrot.slane %v6826_v28, %v20549_v29  ;;  %v6701_v4 = vsel %vm6573_vm8, %v6509_v38, %v6637_v40  ;;  %v18016_v1 = vadd.f32 %v17220_v6, %v20251_v47  ;;  %v6841_v8 = vcombine.high %v6833_v27, %v6833_v27 }
 0x39c   :  { %v6877_v35 = vcombine.high %v6701_v4, %v6701_v4  ;;  %v6884_v39 = vrot.slane %v6701_v4, %v20549_v29  ;;  %v6700_v19 = vsel %vm6572_vm9, %v6508_v52, %v6636_v56  ;;  %v17223_v30 = vpop.f32.mrb[6].mxu0  ;;  %v6859_v49 = vcombine.high %v6857_v37, %v6857_v37 }
 0x39d   :  { %v6842_v46 = vcombine.high %v6840_v62, %v6840_v62  ;;  %v6860_v41 = vcombine.high %v6700_v19, %v6700_v19  ;;  %v6867_v58 = vrot.slane %v6700_v19, %v20549_v29  ;;  %v6146_v33 = vpop.f32.mrb[7].mxu0  ;;  %v18017_v28 = vadd.f32 %v6136_v42, %v20255_v51 }
 0x39e   :  { %v6891_v11 = vrot.slane %v6877_v35, %v20549_v29  ;;  %v6892_v53 = vcombine.high %v6884_v39, %v6884_v39  ;;  %v8174_v50 = vmax.f32 %v6850_v18, %v6884_v39  ;;  %v6511_v52 = vadd.f32 %v18016_v1, %v20541_v34 }
 0x39f   :  { %v6874_v47 = vrot.slane %v6860_v41, %v20549_v29  ;;  %v6875_v38 = vcombine.high %v6867_v58, %v6867_v58  ;;  %v8170_v6 = vmax.f32 %v6833_v27, %v6867_v58 }
 0x3a0   :  { %v6893_v40 = vcombine.high %v6891_v11, %v6891_v11  ;;  %v8175_v56 = vmax.f32 %v6858_v26, %v6892_v53  ;;  %v8176_v4 = vmax.f32 %v6857_v37, %v6891_v11  ;;  %v15111_v20 = vrot.slane %v8174_v50, 9  ;;  %v20570_v19 = vpop.f32.mrb[8].mxu0 }
 0x3a1   :  { %v6876_v35 = vcombine.high %v6874_v47, %v6874_v47  ;;  %v8171_v17 = vmax.f32 %v6841_v8, %v6875_v38  ;;  %v8172_v18 = vmax.f32 %v6840_v62, %v6874_v47  ;;  %v15107_v39 = vrot.slane %v8170_v6, 9  ;;  %v20572_v51 = vpop.f32.mrb[9].mxu0 }
 0x3a2   :  { %v8177_v42 = vmax.f32 %v6859_v49, %v6893_v40  ;;  %v15112_v41 = vrot.slane %v8175_v56, 9  ;;  %v15113_v27 = vrot.slane %v8176_v4, 9  ;;  %v8814_v58 = vmax.f32 %v8174_v50, %v15111_v20 }
 0x3a3   :  { %v8173_v1 = vmax.f32 %v6842_v46, %v6876_v35  ;;  %v15108_v63 = vrot.slane %v8171_v17, 9  ;;  %v15109_v53 = vrot.slane %v8172_v18, 9  ;;  %v8810_v11 = vmax.f32 %v8170_v6, %v15107_v39 }
 0x3a4   :  { %v15114_v37 = vrot.slane %v8177_v42, 9  ;;  %v8815_v26 = vmax.f32 %v8175_v56, %v15112_v41  ;;  %v8816_v60 = vmax.f32 %v8176_v4, %v15113_v27  ;;  %vm6575_vm1 = vcmp.ge.f32.partialorder %v6511_v52, 0.0  ;;  %v20574_v62 = vpop.f32.mrb[10].mxu0 }
 0x3a5   :  { %v9130_v8 = vrot.slane %v8814_v58, %v20560_v43  ;;  %v15110_v47 = vrot.slane %v8173_v1, 9  ;;  %v8811_v49 = vmax.f32 %v8171_v17, %v15108_v63  ;;  %v8812_v38 = vmax.f32 %v8172_v18, %v15109_v53  ;;  %v20577_v40 = vpop.f32.mrb[11].mxu0 }
 0x3a6   :  { %v8817_v20 = vmax.f32 %v8177_v42, %v15114_v37  ;;  %v9134_v50 = vrot.slane %v8815_v26, %v20560_v43  ;;  %v9114_v46 = vrot.slane %v8810_v11, %v20560_v43  ;;  %v6639_v6 = vmul.f32 0.01, %v6511_v52 }
 0x3a7   :  { %v8813_v35 = vmax.f32 %v8173_v1, %v15110_v47  ;;  %v9118_v56 = vrot.slane %v8811_v49, %v20560_v43  ;;  %v9122_v4 = vrot.slane %v8812_v38, %v20560_v43  ;;  %v6510_v39 = vadd.f32 %v18017_v28, %v20541_v34 }
 0x3a8   :  { %v9138_v41 = vrot.slane %v8816_v60, %v20560_v43  ;;  %v6703_v63 = vsel %vm6575_vm1, %v6511_v52, %v6639_v6  ;;  %v18018_v17 = vadd.f32 %v17223_v30, %v20259_v55  ;;  %v18019_v18 = vadd.f32 %v6146_v33, %v20263_v59  ;;  %v20588_v42 = vpop.f32.mrb[12].mxu0 }
 0x3a9   :  { %v9126_v27 = vrot.slane %v8813_v35, %v20560_v43  ;;  %v9624_v58 = vsel %vm9623_vm10, %v9118_v56, %v9114_v46  ;;  %v6911_v1 = vcombine.high %v6703_v63, %v6703_v63  ;;  %v6918_v53 = vrot.slane %v6703_v63, %v20549_v29  ;;  %v20593_v11 = vpop.f32.mrb[13].mxu0 }
 0x3aa   :  { %v9626_v28 = vsel %vm9625_vm11, %v9122_v4, %v9624_v58  ;;  %vm6574_vm2 = vcmp.ge.f32.partialorder %v6510_v39, 0.0  ;;  %v6638_v60 = vmul.f32 0.01, %v6510_v39  ;;  %v6513_v52 = vadd.f32 %v18018_v17, %v20541_v34 }
 0x3ab   :  { %v9142_v55 = vrot.slane %v8817_v20, %v20560_v43  ;;  %v9628_v59 = vsel %vm9627_vm12, %v9126_v27, %v9626_v28  ;;  %v6925_v33 = vrot.slane %v6911_v1, %v20549_v29  ;;  %v6512_v30 = vadd.f32 %v18019_v18, %v20541_v34 }
 0x3ac   :  { %v9630_v37 = vsel %vm9629_vm13, %v9130_v8, %v9628_v59  ;;  %v6702_v26 = vsel %vm6574_vm2, %v6510_v39, %v6638_v60  ;;  %vm6577_vm3 = vcmp.ge.f32.partialorder %v6513_v52, 0.0  ;;  %v6641_v47 = vmul.f32 0.01, %v6513_v52  ;;  %v20602_v49 = vpop.f32.mrb[14].mxu0 }
 0x3ad   :  { %v9632_v38 = vsel %vm9631_vm14, %v9134_v50, %v9630_v37  ;;  %v6926_v46 = vcombine.high %v6918_v53, %v6918_v53  ;;  %v6894_v6 = vcombine.high %v6702_v26, %v6702_v26  ;;  %v6901_v35 = vrot.slane %v6702_v26, %v20549_v29  ;;  %v20606_v20 = vpop.f32.mrb[15].mxu0 }
 0x3ae   :  { %v9634_v56 = vsel %vm9633_vm15, %v9138_v41, %v9632_v38  ;;  %v6705_v4 = vsel %vm6577_vm3, %v6513_v52, %v6641_v47  ;;  %vm6576_vm5 = vcmp.ge.f32.partialorder %v6512_v30, 0.0  ;;  %v6640_v63 = vmul.f32 0.01, %v6512_v30 }
 0x3af   :  { %v9636_v8 = vsel %vm9635_vm0, %v9142_v55, %v9634_v56  ;;  %v6927_v39 = vcombine.high %v6925_v33, %v6925_v33  ;;  %v6908_v17 = vrot.slane %v6894_v6, %v20549_v29  ;;  %v6945_v18 = vcombine.high %v6705_v4, %v6705_v4 }
 0x3b0   :  { %9758 = vst.msk [vmem:[#allocation3 + $0x11] sm:$0xff] %vm8938_vm4, %v9636_v8  ;;  %v6952_v50 = vrot.slane %v6705_v4, %v20549_v29  ;;  %v6704_v27 = vsel %vm6576_vm5, %v6512_v30, %v6640_v63  ;;  %v18020_v58 = vadd.f32 %v20570_v19, %v20267_v0  ;;  %v18021_v41 = vadd.f32 %v20572_v51, %v20270_v5  ;;  %v20617_v1 = vpop.f32.mrb[16].mxu0 }
 0x3b1   :  { %v6909_v28 = vcombine.high %v6901_v35, %v6901_v35  ;;  %v6959_v60 = vrot.slane %v6945_v18, %v20549_v29  ;;  %v6928_v52 = vcombine.high %v6704_v27, %v6704_v27  ;;  %v6935_v55 = vrot.slane %v6704_v27, %v20549_v29  ;;  %v20621_v59 = vpop.f32.mrb[17].mxu0 }
 0x3b2   :  { %v6910_v37 = vcombine.high %v6908_v17, %v6908_v17  ;;  %v6960_v26 = vcombine.high %v6952_v50, %v6952_v50  ;;  %v8182_v47 = vmax.f32 %v6918_v53, %v6952_v50  ;;  %v6515_v30 = vadd.f32 %v18020_v58, %v20541_v34 }
 0x3b3   :  { %v6961_v38 = vcombine.high %v6959_v60, %v6959_v60  ;;  %v8184_v0 = vmax.f32 %v6925_v33, %v6959_v60  ;;  %v6942_v19 = vrot.slane %v6928_v52, %v20549_v29  ;;  %v6943_v5 = vcombine.high %v6935_v55, %v6935_v55 }
 0x3b4   :  { %v8183_v51 = vmax.f32 %v6926_v46, %v6960_v26  ;;  %v15119_v6 = vrot.slane %v8182_v47, 9  ;;  %v8178_v56 = vmax.f32 %v6901_v35, %v6935_v55  ;;  %v6514_v4 = vadd.f32 %v18021_v41, %v20541_v34  ;;  %v20626_v63 = vpop.f32.mrb[18].mxu0 }
 0x3b5   :  { %v8185_v8 = vmax.f32 %v6927_v39, %v6961_v38  ;;  %v15121_v18 = vrot.slane %v8184_v0, 9  ;;  %v6944_v27 = vcombine.high %v6942_v19, %v6942_v19  ;;  %v8179_v48 = vmax.f32 %v6909_v28, %v6943_v5  ;;  %v20628_v44 = vpop.f32.mrb[19].mxu0 }
 0x3b6   :  { %v15120_v53 = vrot.slane %v8183_v51, 9  ;;  %v8822_v50 = vmax.f32 %v8182_v47, %v15119_v6  ;;  %v8180_v58 = vmax.f32 %v6908_v17, %v6942_v19  ;;  %v15115_v33 = vrot.slane %v8178_v56, 9 }
 0x3b7   :  { %v15122_v60 = vrot.slane %v8185_v8, 9  ;;  %v8824_v52 = vmax.f32 %v8184_v0, %v15121_v18  ;;  %v8181_v36 = vmax.f32 %v6910_v37, %v6944_v27  ;;  %v15116_v46 = vrot.slane %v8179_v48, 9  ;;  %v9795_v26 = vld [vmem:[#allocation3 + $0x11] sm:$0xff] }
 0x3b8   :  { %v8823_v35 = vmax.f32 %v8183_v51, %v15120_v53  ;;  %v15117_v55 = vrot.slane %v8180_v58, 9  ;;  %v8818_v41 = vmax.f32 %v8178_v56, %v15115_v33  ;;  %vm6579_vm6 = vcmp.ge.f32.partialorder %v6515_v30, 0.0  ;;  %v20630_v32 = vpop.f32.mrb[20].mxu0  ;;  %17317 = vmatmul.mubr.msk.f32.vlgmr.msra.gmra.mrb[64].mxu1 %vm8938_vm4, %v9795_v26 }
 0x3b9   :  { %v8825_v39 = vmax.f32 %v8185_v8, %v15122_v60  ;;  %v9162_v28 = vrot.slane %v8822_v50, %v20560_v43  ;;  %v15118_v38 = vrot.slane %v8181_v36, 9  ;;  %v8819_v47 = vmax.f32 %v8179_v48, %v15116_v46  ;;  %v20634_v17 = vpop.f32.mrb[21].mxu0 }
 0x3ba   :  { %v9166_v0 = vrot.slane %v8823_v35, %v20560_v43  ;;  %v9170_v37 = vrot.slane %v8824_v52, %v20560_v43  ;;  %v8820_v19 = vmax.f32 %v8180_v58, %v15117_v55  ;;  %v6643_v5 = vmul.f32 0.01, %v6515_v30 }
 0x3bb   :  { %v8821_v51 = vmax.f32 %v8181_v36, %v15118_v38  ;;  %v9146_v6 = vrot.slane %v8818_v41, %v20560_v43  ;;  %v9150_v56 = vrot.slane %v8819_v47, %v20560_v43  ;;  %vm6578_vm7 = vcmp.ge.f32.partialorder %v6514_v4, 0.0 }
 0x3bc   :  { %v9154_v8 = vrot.slane %v8820_v19, %v20560_v43  ;;  %v6707_v18 = vsel %vm6579_vm6, %v6515_v30, %v6643_v5  ;;  %v6642_v27 = vmul.f32 0.01, %v6514_v4  ;;  %v18022_v48 = vadd.f32 %v20574_v62, %v20274_v21  ;;  %v20644_v53 = vpop.f32.mrb[22].mxu0 }
 0x3bd   :  { %v9158_v50 = vrot.slane %v8821_v51, %v20560_v43  ;;  %v9637_v58 = vsel %vm9623_vm10, %v9150_v56, %v9146_v6  ;;  %v6979_v36 = vcombine.high %v6707_v18, %v6707_v18  ;;  %v6986_v33 = vrot.slane %v6707_v18, %v20549_v29  ;;  %v20649_v60 = vpop.f32.mrb[23].mxu0 }
 0x3be   :  { %v9638_v52 = vsel %vm9625_vm11, %v9154_v8, %v9637_v58  ;;  %v6706_v46 = vsel %vm6578_vm7, %v6514_v4, %v6642_v27  ;;  %v6517_v30 = vadd.f32 %v18022_v48, %v20541_v34  ;;  %v18023_v26 = vadd.f32 %v20577_v40, %v20276_v25 }
 0x3bf   :  { %v9174_v21 = vrot.slane %v8825_v39, %v20560_v43  ;;  %v9639_v62 = vsel %vm9627_vm12, %v9158_v50, %v9638_v52  ;;  %v6993_v35 = vrot.slane %v6979_v36, %v20549_v29  ;;  %v6962_v55 = vcombine.high %v6706_v46, %v6706_v46 }
 0x3c0   :  { %v9640_v41 = vsel %vm9629_vm13, %v9162_v28, %v9639_v62  ;;  %v6969_v38 = vrot.slane %v6706_v46, %v20549_v29  ;;  %vm6581_vm8 = vcmp.ge.f32.partialorder %v6517_v30, 0.0  ;;  %v6645_v47 = vmul.f32 0.01, %v6517_v30  ;;  %v20660_v19 = vpop.f32.mrb[24].mxu0 }
 0x3c1   :  { %v9641_v4 = vsel %vm9631_vm14, %v9166_v0, %v9640_v41  ;;  %v6994_v5 = vcombine.high %v6986_v33, %v6986_v33  ;;  %v6995_v51 = vcombine.high %v6993_v35, %v6993_v35  ;;  %v6516_v25 = vadd.f32 %v18023_v26, %v20541_v34  ;;  %v20664_v40 = vpop.f32.mrb[25].mxu0 }
 0x3c2   :  { %v9642_v39 = vsel %vm9633_vm15, %v9170_v37, %v9641_v4  ;;  %v6976_v6 = vrot.slane %v6962_v55, %v20549_v29  ;;  %v6709_v56 = vsel %vm6581_vm8, %v6517_v30, %v6645_v47  ;;  %v18024_v28 = vadd.f32 %v20588_v42, %v20280_v24 }
 0x3c3   :  { %v9643_v8 = vsel %vm9635_vm0, %v9174_v21, %v9642_v39  ;;  %v6977_v18 = vcombine.high %v6969_v38, %v6969_v38  ;;  %v7013_v27 = vcombine.high %v6709_v56, %v6709_v56  ;;  %v7020_v0 = vrot.slane %v6709_v56, %v20549_v29 }
 0x3c4   :  { %9759 = vst.msk [vmem:[#allocation3 + $0x21] sm:$0xff] %vm8938_vm4, %v9643_v8  ;;  %vm6580_vm9 = vcmp.ge.f32.partialorder %v6516_v25, 0.0  ;;  %v6644_v48 = vmul.f32 0.01, %v6516_v25  ;;  %v6519_v50 = vadd.f32 %v18024_v28, %v20541_v34  ;;  %v18025_v37 = vadd.f32 %v20593_v11, %v20282_v45  ;;  %v20676_v58 = vpop.f32.mrb[26].mxu0 }
 0x3c5   :  { %v7027_v36 = vrot.slane %v7013_v27, %v20549_v29  ;;  %v7028_v24 = vcombine.high %v7020_v0, %v7020_v0  ;;  %v8190_v42 = vmax.f32 %v6986_v33, %v7020_v0  ;;  %v18026_v52 = vadd.f32 %v20602_v49, %v20288_v57  ;;  %v20681_v46 = vpop.f32.mrb[27].mxu0 }
 0x3c6   :  { %v6708_v30 = vsel %vm6580_vm9, %v6516_v25, %v6644_v48  ;;  %vm6583_vm1 = vcmp.ge.f32.partialorder %v6519_v50, 0.0  ;;  %v6647_v26 = vmul.f32 0.01, %v6519_v50  ;;  %v6518_v21 = vadd.f32 %v18025_v37, %v20541_v34 }
 0x3c7   :  { %v7029_v62 = vcombine.high %v7027_v36, %v7027_v36  ;;  %v8191_v55 = vmax.f32 %v6994_v5, %v7028_v24  ;;  %v8192_v41 = vmax.f32 %v6993_v35, %v7027_v36  ;;  %v15127_v45 = vrot.slane %v8190_v42, 9 }
 0x3c8   :  { %v6978_v11 = vcombine.high %v6976_v6, %v6976_v6  ;;  %v6996_v47 = vcombine.high %v6708_v30, %v6708_v30  ;;  %v7003_v4 = vrot.slane %v6708_v30, %v20549_v29  ;;  %v6711_v39 = vsel %vm6583_vm1, %v6519_v50, %v6647_v26  ;;  %v20685_v33 = vpop.f32.mrb[28].mxu0 }
 0x3c9   :  { %v8193_v56 = vmax.f32 %v6995_v51, %v7029_v62  ;;  %v15128_v57 = vrot.slane %v8191_v55, 9  ;;  %v15129_v49 = vrot.slane %v8192_v41, 9  ;;  %v20687_v28 = vmax.f32 %v8190_v42, %v15127_v45  ;;  %v20689_v25 = vpop.f32.mrb[29].mxu0 }
 0x3ca   :  { %v7010_v8 = vrot.slane %v6996_v47, %v20549_v29  ;;  %v7011_v27 = vcombine.high %v7003_v4, %v7003_v4  ;;  %v8186_v5 = vmax.f32 %v6969_v38, %v7003_v4  ;;  %vm6582_vm2 = vcmp.ge.f32.partialorder %v6518_v21, 0.0 }
 0x3cb   :  { %v15130_v35 = vrot.slane %v8193_v56, 9  ;;  %v8831_v0 = vmax.f32 %v8191_v55, %v15128_v57  ;;  %v20692_v48 = vmax.f32 %v8192_v41, %v15129_v49  ;;  %v7047_v37 = vcombine.high %v6711_v39, %v6711_v39  ;;  %v9796_v50 = vld [vmem:[#allocation3 + $0x21] sm:$0xff] }
 0x3cc   :  { %v7012_v36 = vcombine.high %v7010_v8, %v7010_v8  ;;  %v8187_v24 = vmax.f32 %v6977_v18, %v7011_v27  ;;  %v8188_v51 = vmax.f32 %v6976_v6, %v7010_v8  ;;  %v15123_v30 = vrot.slane %v8186_v5, 9  ;;  %17319 = vmatprep.mubr.msk.f32.mxu1 %vm8938_vm4, %v9796_v50  ;;  %v20695_v42 = vpop.f32.mrb[30].mxu0 }
 0x3cd   :  { %v8833_v26 = vmax.f32 %v8193_v56, %v15130_v35  ;;  %v9194_v62 = vrot.slane %v20687_v28, %v20560_v43  ;;  %v9198_v38 = vrot.slane %v8831_v0, %v20560_v43  ;;  %v7054_v55 = vrot.slane %v6711_v39, %v20549_v29  ;;  %v20701_v41 = vpop.f32.mrb[31].mxu0 }
 0x3ce   :  { %v8189_v45 = vmax.f32 %v6978_v11, %v7012_v36  ;;  %v15124_v47 = vrot.slane %v8187_v24, 9  ;;  %v15125_v4 = vrot.slane %v8188_v51, 9  ;;  %v8826_v18 = vmax.f32 %v8186_v5, %v15123_v30 }
 0x3cf   :  { %v9202_v6 = vrot.slane %v20692_v48, %v20560_v43  ;;  %v9206_v57 = vrot.slane %v8833_v26, %v20560_v43  ;;  %v7061_v56 = vrot.slane %v7047_v37, %v20549_v29  ;;  %v6646_v49 = vmul.f32 0.01, %v6518_v21 }
 0x3d0   :  { %v15126_v8 = vrot.slane %v8189_v45, 9  ;;  %v8827_v28 = vmax.f32 %v8187_v24, %v15124_v47  ;;  %v8828_v27 = vmax.f32 %v8188_v51, %v15125_v4  ;;  %v7062_v35 = vcombine.high %v7054_v55, %v7054_v55  ;;  %v20707_v0 = vpop.f32.mrb[32].mxu0 }
 0x3d1   :  { %v9178_v39 = vrot.slane %v8826_v18, %v20560_v43  ;;  %v6710_v11 = vsel %vm6582_vm2, %v6518_v21, %v6646_v49  ;;  %v6521_v5 = vadd.f32 %v18026_v52, %v20541_v34  ;;  %v18027_v48 = vadd.f32 %v20606_v20, %v20290_v61  ;;  %v20714_v50 = vpop.f32.mrb[33].mxu0 }
 0x3d2   :  { %v8829_v36 = vmax.f32 %v8189_v45, %v15126_v8  ;;  %v9182_v37 = vrot.slane %v8827_v28, %v20560_v43  ;;  %v9186_v24 = vrot.slane %v8828_v27, %v20560_v43  ;;  %v7030_v51 = vcombine.high %v6710_v11, %v6710_v11 }
 0x3d3   :  { %v7037_v30 = vrot.slane %v6710_v11, %v20549_v29  ;;  %vm6585_vm3 = vcmp.ge.f32.partialorder %v6521_v5, 0.0  ;;  %v6649_v26 = vmul.f32 0.01, %v6521_v5  ;;  %v6520_v47 = vadd.f32 %v18027_v48, %v20541_v34 }
 0x3d4   :  { %v9190_v21 = vrot.slane %v8829_v36, %v20560_v43  ;;  %v9644_v52 = vsel %vm9623_vm10, %v9182_v37, %v9178_v39  ;;  %v7063_v4 = vcombine.high %v7061_v56, %v7061_v56  ;;  %v18028_v61 = vadd.f32 %v20617_v1, %v20294_v3  ;;  %v20724_v20 = vpop.f32.mrb[34].mxu0 }
 0x3d5   :  { %v9645_v45 = vsel %vm9625_vm11, %v9186_v24, %v9644_v52  ;;  %v7044_v18 = vrot.slane %v7030_v51, %v20549_v29  ;;  %v7045_v49 = vcombine.high %v7037_v30, %v7037_v30  ;;  %v6713_v8 = vsel %vm6585_vm3, %v6521_v5, %v6649_v26  ;;  %v20728_v28 = vpop.f32.mrb[35].mxu0 }
 0x3d6   :  { %v9646_v27 = vsel %vm9627_vm12, %v9190_v21, %v9645_v45  ;;  %v7081_v11 = vcombine.high %v6713_v8, %v6713_v8  ;;  %v7088_v48 = vrot.slane %v6713_v8, %v20549_v29  ;;  %vm6584_vm5 = vcmp.ge.f32.partialorder %v6520_v47, 0.0 }
 0x3d7   :  { %v9647_v39 = vsel %vm9629_vm13, %v9194_v62, %v9646_v27  ;;  %v6648_v36 = vmul.f32 0.01, %v6520_v47  ;;  %v6523_v3 = vadd.f32 %v18028_v61, %v20541_v34  ;;  %v18029_v1 = vadd.f32 %v20621_v59, %v20296_v10 }
 0x3d8   :  { %v9648_v37 = vsel %vm9631_vm14, %v9198_v38, %v9647_v39  ;;  %v7095_v5 = vrot.slane %v7081_v11, %v20549_v29  ;;  %v7096_v24 = vcombine.high %v7088_v48, %v7088_v48  ;;  %v8198_v51 = vmax.f32 %v7054_v55, %v7088_v48  ;;  %v20738_v26 = vpop.f32.mrb[36].mxu0 }
 0x3d9   :  { %v9649_v21 = vsel %vm9633_vm15, %v9202_v6, %v9648_v37  ;;  %v6712_v52 = vsel %vm6584_vm5, %v6520_v47, %v6648_v36  ;;  %vm6587_vm6 = vcmp.ge.f32.partialorder %v6523_v3, 0.0  ;;  %v6651_v45 = vmul.f32 0.01, %v6523_v3  ;;  %v20741_v62 = vpop.f32.mrb[37].mxu0 }
 0x3da   :  { %v9650_v61 = vsel %vm9635_vm0, %v9206_v57, %v9649_v21  ;;  %v7097_v8 = vcombine.high %v7095_v5, %v7095_v5  ;;  %v8199_v27 = vmax.f32 %v7062_v35, %v7096_v24  ;;  %v8200_v10 = vmax.f32 %v7061_v56, %v7095_v5 }
 0x3db   :  { %9760 = vst.msk [vmem:[#allocation3 + $0x31] sm:$0xff] %vm8938_vm4, %v9650_v61  ;;  %v15135_v59 = vrot.slane %v8198_v51, 9  ;;  %v7064_v38 = vcombine.high %v6712_v52, %v6712_v52  ;;  %v7071_v55 = vrot.slane %v6712_v52, %v20549_v29  ;;  %v6715_v11 = vsel %vm6587_vm6, %v6523_v3, %v6651_v45 }
 0x3dc   :  { %v7046_v48 = vcombine.high %v7044_v18, %v7044_v18  ;;  %v8201_v39 = vmax.f32 %v7063_v4, %v7097_v8  ;;  %v15136_v6 = vrot.slane %v8199_v27, 9  ;;  %v15137_v47 = vrot.slane %v8200_v10, 9  ;;  %v20746_v36 = vpop.f32.mrb[38].mxu0 }
 0x3dd   :  { %22541 = vst [vmem:[#allocation43_spill] sm:$0xff] %v20746_v36  ;;  %v20748_v37 = vmax.f32 %v8198_v51, %v15135_v59  ;;  %v7078_v57 = vrot.slane %v7064_v38, %v20549_v29  ;;  %v7079_v21 = vcombine.high %v7071_v55, %v7071_v55  ;;  %v8194_v35 = vmax.f32 %v7037_v30, %v7071_v55  ;;  %v20751_v56 = vpop.f32.mrb[39].mxu0 }
 0x3de   :  { %v15138_v5 = vrot.slane %v8201_v39, 9  ;;  %v8839_v24 = vmax.f32 %v8199_v27, %v15136_v6  ;;  %v20753_v61 = vmax.f32 %v8200_v10, %v15137_v47  ;;  %v7115_v52 = vcombine.high %v6715_v11, %v6715_v11 }
 0x3df   :  { %v7080_v3 = vcombine.high %v7078_v57, %v7078_v57  ;;  %v8195_v45 = vmax.f32 %v7045_v49, %v7079_v21  ;;  %v8196_v4 = vmax.f32 %v7044_v18, %v7078_v57  ;;  %v20756_v8 = vrot.slane %v6715_v11, %v20549_v29 }
 0x3e0   :  { %v20758_v36 = vmax.f32 %v8201_v39, %v15138_v5  ;;  %v9226_v51 = vrot.slane %v20748_v37, %v20560_v43  ;;  %v9230_v30 = vrot.slane %v8839_v24, %v20560_v43  ;;  %v15131_v59 = vrot.slane %v8194_v35, 9  ;;  %v20763_v38 = vpop.f32.mrb[40].mxu0 }
 0x3e1   :  { %v9234_v27 = vrot.slane %v20753_v61, %v20560_v43  ;;  %v8197_v10 = vmax.f32 %v7046_v48, %v7080_v3  ;;  %v15132_v55 = vrot.slane %v8195_v45, 9  ;;  %v15133_v49 = vrot.slane %v8196_v4, 9  ;;  %v20767_v18 = vpop.f32.mrb[41].mxu0 }
 0x3e2   :  { %v9238_v11 = vrot.slane %v20758_v36, %v20560_v43  ;;  %v8834_v39 = vmax.f32 %v8194_v35, %v15131_v59  ;;  %v20772_v6 = vrot.slane %v7115_v52, %v20549_v29  ;;  %v6522_v47 = vadd.f32 %v18029_v1, %v20541_v34  ;;  %v9797_v37 = vld [vmem:[#allocation3 + $0x31] sm:$0xff] }
 0x3e3   :  { %v15134_v57 = vrot.slane %v8197_v10, 9  ;;  %v8835_v21 = vmax.f32 %v8195_v45, %v15132_v55  ;;  %v8836_v5 = vmax.f32 %v8196_v4, %v15133_v49  ;;  %v7130_v48 = vcombine.high %v20756_v8, %v20756_v8  ;;  %17320 = vmatmul.mubr.msk.f32.gmra.mrb[66].mxu1 %vm8938_vm4, %v9797_v37 }
 0x3e4   :  { %v9210_v24 = vrot.slane %v8834_v39, %v20560_v43  ;;  %vm6586_vm7 = vcmp.ge.f32.partialorder %v6522_v47, 0.0  ;;  %v6650_v61 = vmul.f32 0.01, %v6522_v47  ;;  %v18030_v36 = vadd.f32 %v20626_v63, %v20300_v54  ;;  %v20781_v35 = vpop.f32.mrb[42].mxu0 }
 0x3e5   :  { %v8837_v52 = vmax.f32 %v8197_v10, %v15134_v57  ;;  %v9214_v1 = vrot.slane %v8835_v21, %v20560_v43  ;;  %v9218_v3 = vrot.slane %v8836_v5, %v20560_v43  ;;  %v18031_v45 = vadd.f32 %v20628_v44, %v20302_v15  ;;  %v20787_v4 = vpop.f32.mrb[43].mxu0 }
 0x3e6   :  { %22542 = vst [vmem:[#allocation44_spill] sm:$0xff] %v20787_v4  ;;  %v6714_v59 = vsel %vm6586_vm7, %v6522_v47, %v6650_v61  ;;  %v6525_v55 = vadd.f32 %v18030_v36, %v20541_v34  ;;  %v18032_v49 = vadd.f32 %v20630_v32, %v20306_v7  ;;  %v18033_v54 = vadd.f32 %v20634_v17, %v20308_v14 }
 0x3e7   :  { %v9222_v63 = vrot.slane %v8837_v52, %v20560_v43  ;;  %v9651_v10 = vsel %vm9623_vm10, %v9214_v1, %v9210_v24  ;;  %v7098_v39 = vcombine.high %v6714_v59, %v6714_v59  ;;  %v7105_v37 = vrot.slane %v6714_v59, %v20549_v29 }
 0x3e8   :  { %v9652_v15 = vsel %vm9625_vm11, %v9218_v3, %v9651_v10  ;;  %vm6589_vm8 = vcmp.ge.f32.partialorder %v6525_v55, 0.0  ;;  %v6653_v44 = vmul.f32 0.01, %v6525_v55  ;;  %v6524_v47 = vadd.f32 %v18031_v45, %v20541_v34  ;;  %v20799_v57 = vpop.f32.mrb[44].mxu0 }
 0x3e9   :  { %22543 = vst [vmem:[#allocation45_spill] sm:$0xff] %v20799_v57  ;;  %v9653_v7 = vsel %vm9627_vm12, %v9222_v63, %v9652_v15  ;;  %v7131_v14 = vcombine.high %v20772_v6, %v20772_v6  ;;  %v7112_v32 = vrot.slane %v7098_v39, %v20549_v29  ;;  %v6527_v17 = vadd.f32 %v18032_v49, %v20541_v34  ;;  %v20806_v21 = vpop.f32.mrb[45].mxu0 }
 0x3ea   :  { %22544 = vst [vmem:[#allocation46_spill] sm:$0xff] %v20806_v21  ;;  %v9654_v5 = vsel %vm9629_vm13, %v9226_v51, %v9653_v7  ;;  %v6717_v24 = vsel %vm6589_vm8, %v6525_v55, %v6653_v44  ;;  %vm6588_vm9 = vcmp.ge.f32.partialorder %v6524_v47, 0.0  ;;  %v6652_v61 = vmul.f32 0.01, %v6524_v47 }
 0x3eb   :  { %v9655_v36 = vsel %vm9631_vm14, %v9230_v30, %v9654_v5  ;;  %v7113_v52 = vcombine.high %v7105_v37, %v7105_v37  ;;  %v7149_v1 = vcombine.high %v6717_v24, %v6717_v24  ;;  %v7156_v3 = vrot.slane %v6717_v24, %v20549_v29 }
 0x3ec   :  { %v9656_v45 = vsel %vm9633_vm15, %v9234_v27, %v9655_v36  ;;  %v6716_v59 = vsel %vm6588_vm9, %v6524_v47, %v6652_v61  ;;  %vm6591_vm1 = vcmp.ge.f32.partialorder %v6527_v17, 0.0  ;;  %v6655_v63 = vmul.f32 0.01, %v6527_v17  ;;  %v20812_v10 = vpop.f32.mrb[46].mxu0 }
 0x3ed   :  { %22545 = vst [vmem:[#allocation47_spill] sm:$0xff] %v20812_v10  ;;  %v9657_v49 = vsel %vm9635_vm0, %v9238_v11, %v9656_v45  ;;  %v7163_v51 = vrot.slane %v7149_v1, %v20549_v29  ;;  %v7164_v55 = vcombine.high %v7156_v3, %v7156_v3  ;;  %v8206_v39 = vmax.f32 %v20756_v8, %v7156_v3  ;;  %v20822_v45 = vpop.f32.mrb[47].mxu0 }
 0x3ee   :  { %9761 = vst.msk [vmem:[#allocation3 + $0x41] sm:$0xff] %vm8938_vm4, %v9657_v49  ;;  %v7114_v30 = vcombine.high %v7112_v32, %v7112_v32  ;;  %v7132_v15 = vcombine.high %v6716_v59, %v6716_v59  ;;  %v7139_v44 = vrot.slane %v6716_v59, %v20549_v29  ;;  %v6719_v7 = vsel %vm6591_vm1, %v6527_v17, %v6655_v63 }
 0x3ef   :  { %v7165_v27 = vcombine.high %v7163_v51, %v7163_v51  ;;  %v8207_v47 = vmax.f32 %v7130_v48, %v7164_v55  ;;  %v8208_v5 = vmax.f32 %v20772_v6, %v7163_v51  ;;  %v15143_v24 = vrot.slane %v8206_v39, 9 }
 0x3f0   :  { %v7146_v61 = vrot.slane %v7132_v15, %v20549_v29  ;;  %v7147_v11 = vcombine.high %v7139_v44, %v7139_v44  ;;  %v8202_v36 = vmax.f32 %v7105_v37, %v7139_v44  ;;  %v6526_v1 = vadd.f32 %v18033_v54, %v20541_v34  ;;  %v20824_v57 = vpop.f32.mrb[48].mxu0 }
 0x3f1   :  { %v8209_v8 = vmax.f32 %v7131_v14, %v7165_v27  ;;  %v15144_v3 = vrot.slane %v8207_v47, 9  ;;  %v15145_v49 = vrot.slane %v8208_v5, 9  ;;  %v8846_v10 = vmax.f32 %v8206_v39, %v15143_v24 }
 0x3f2   :  { %v7148_v21 = vcombine.high %v7146_v61, %v7146_v61  ;;  %v8203_v59 = vmax.f32 %v7113_v52, %v7147_v11  ;;  %v8204_v17 = vmax.f32 %v7112_v32, %v7146_v61  ;;  %v15139_v63 = vrot.slane %v8202_v36, 9 }
 0x3f3   :  { %v15146_v48 = vrot.slane %v8209_v8, 9  ;;  %v8847_v55 = vmax.f32 %v8207_v47, %v15144_v3  ;;  %v8848_v6 = vmax.f32 %v8208_v5, %v15145_v49  ;;  %v7183_v51 = vcombine.high %v6719_v7, %v6719_v7 }
 0x3f4   :  { %v8205_v15 = vmax.f32 %v7114_v30, %v7148_v21  ;;  %v15140_v37 = vrot.slane %v8203_v59, 9  ;;  %v15141_v44 = vrot.slane %v8204_v17, 9  ;;  %v8842_v54 = vmax.f32 %v8202_v36, %v15139_v63 }
 0x3f5   :  { %v8849_v4 = vmax.f32 %v8209_v8, %v15146_v48  ;;  %v9258_v14 = vrot.slane %v8846_v10, %v20560_v43  ;;  %v9262_v27 = vrot.slane %v8847_v55, %v20560_v43  ;;  %v20829_v39 = vrot.slane %v6719_v7, %v20549_v29  ;;  %v9798_v32 = vld [vmem:[#allocation3 + $0x41] sm:$0xff] }
 0x3f6   :  { %v9266_v52 = vrot.slane %v8848_v6, %v20560_v43  ;;  %v15142_v47 = vrot.slane %v8205_v15, 9  ;;  %v8843_v5 = vmax.f32 %v8203_v59, %v15140_v37  ;;  %v8844_v24 = vmax.f32 %v8204_v17, %v15141_v44  ;;  %17322 = vmatprep.mubr.msk.f32.mxu1 %vm8938_vm4, %v9798_v32  ;;  %v20848_v59 = vpop.f32.mrb[49].mxu0 }
 0x3f7   :  { %v9270_v21 = vrot.slane %v8849_v4, %v20560_v43  ;;  %v9242_v30 = vrot.slane %v8842_v54, %v20560_v43  ;;  %v20836_v61 = vrot.slane %v7183_v51, %v20549_v29  ;;  %vm6590_vm2 = vcmp.ge.f32.partialorder %v6526_v1, 0.0 }
 0x3f8   :  { %v8845_v10 = vmax.f32 %v8205_v15, %v15142_v47  ;;  %v9246_v7 = vrot.slane %v8843_v5, %v20560_v43  ;;  %v9250_v11 = vrot.slane %v8844_v24, %v20560_v43  ;;  %v6654_v36 = vmul.f32 0.01, %v6526_v1  ;;  %v20869_v5 = vpop.f32.mrb[50].mxu0 }
 0x3f9   :  { %v7198_v8 = vcombine.high %v20829_v39, %v20829_v39  ;;  %v18034_v3 = vadd.f32 %v20644_v53, %v20312_v12  ;;  %v18035_v4 = vadd.f32 %v20649_v60, %v20314_v13  ;;  %v18036_v49 = vadd.f32 %v20660_v19, %v20318_v31 }
 0x3fa   :  { %v9254_v17 = vrot.slane %v8845_v10, %v20560_v43  ;;  %v9658_v63 = vsel %vm9623_vm10, %v9246_v7, %v9242_v30  ;;  %v6718_v48 = vsel %vm6590_vm2, %v6526_v1, %v6654_v36  ;;  %v18037_v55 = vadd.f32 %v20664_v40, %v20320_v2 }
 0x3fb   :  { %v9659_v6 = vsel %vm9625_vm11, %v9250_v11, %v9658_v63  ;;  %v7166_v51 = vcombine.high %v6718_v48, %v6718_v48  ;;  %v7173_v12 = vrot.slane %v6718_v48, %v20549_v29  ;;  %v6529_v13 = vadd.f32 %v18034_v3, %v20541_v34  ;;  %v20884_v48 = vpop.f32.mrb[51].mxu0 }
 0x3fc   :  { %v9660_v53 = vsel %vm9627_vm12, %v9254_v17, %v9659_v6  ;;  %v7199_v31 = vcombine.high %v20836_v61, %v20836_v61  ;;  %v6528_v60 = vadd.f32 %v18035_v4, %v20541_v34  ;;  %v6531_v19 = vadd.f32 %v18036_v49, %v20541_v34 }
 0x3fd   :  { %v9661_v1 = vsel %vm9629_vm13, %v9258_v14, %v9660_v53  ;;  %v7180_v2 = vrot.slane %v7166_v51, %v20549_v29  ;;  %vm6593_vm3 = vcmp.ge.f32.partialorder %v6529_v13, 0.0  ;;  %v20865_v40 = vadd.f32 %v18037_v55, %v20541_v34 }
 0x3fe   :  { %v9662_v15 = vsel %vm9631_vm14, %v9262_v27, %v9661_v1  ;;  %v6657_v37 = vmul.f32 0.01, %v6529_v13  ;;  %vm6592_vm5 = vcmp.ge.f32.partialorder %v6528_v60, 0.0  ;;  %v6656_v44 = vmul.f32 0.01, %v6528_v60 }
 0x3ff   :  { %v9663_v54 = vsel %vm9633_vm15, %v9266_v52, %v9662_v15  ;;  %v7181_v32 = vcombine.high %v7173_v12, %v7173_v12  ;;  %vm6595_vm6 = vcmp.ge.f32.partialorder %v6531_v19, 0.0  ;;  %v6659_v47 = vmul.f32 0.01, %v6531_v19 }
 0x400   :  { %v9664_v14 = vsel %vm9635_vm0, %v9270_v21, %v9663_v54  ;;  %v7182_v24 = vcombine.high %v7180_v2, %v7180_v2  ;;  %v6721_v30 = vsel %vm6593_vm3, %v6529_v13, %v6657_v37  ;;  %v6720_v10 = vsel %vm6592_vm5, %v6528_v60, %v6656_v44 }
 0x401   :  { %9762 = vst.msk [vmem:[#allocation3 + $0x51] sm:$0xff] %vm8938_vm4, %v9664_v14  ;;  %v7217_v34 = vcombine.high %v6721_v30, %v6721_v30  ;;  %v7224_v27 = vrot.slane %v6721_v30, %v20549_v29  ;;  %v7200_v7 = vcombine.high %v6720_v10, %v6720_v10  ;;  %v7207_v11 = vrot.slane %v6720_v10, %v20549_v29  ;;  %v20890_v10 = vpop.f32.mrb[52].mxu0 }
 0x402   :  { %v6723_v36 = vsel %vm6595_vm6, %v6531_v19, %v6659_v47  ;;  %vm6594_vm7 = vcmp.ge.f32.partialorder %v20865_v40, 0.0  ;;  %v6658_v52 = vmul.f32 0.01, %v20865_v40  ;;  %v18038_v3 = vadd.f32 %v20676_v58, %v20324_v9 }
 0x403   :  { %v18039_v21 = vadd.f32 %v20681_v46, %v20326_v16  ;;  %v7231_v4 = vrot.slane %v7217_v34, %v20549_v29  ;;  %v7232_v49 = vcombine.high %v7224_v27, %v7224_v27  ;;  %v8214_v17 = vmax.f32 %v20829_v39, %v7224_v27 }
 0x404   :  { %v7214_v63 = vrot.slane %v7200_v7, %v20549_v29  ;;  %v7215_v55 = vcombine.high %v7207_v11, %v7207_v11  ;;  %v8210_v6 = vmax.f32 %v7173_v12, %v7207_v11  ;;  %v7251_v51 = vcombine.high %v6723_v36, %v6723_v36 }
 0x405   :  { %v20887_v13 = vrot.slane %v6723_v36, %v20549_v29  ;;  %v7233_v53 = vcombine.high %v7231_v4, %v7231_v4  ;;  %v8215_v9 = vmax.f32 %v7198_v8, %v7232_v49  ;;  %v8216_v58 = vmax.f32 %v20836_v61, %v7231_v4 }
 0x406   :  { %v15151_v16 = vrot.slane %v8214_v17, 9  ;;  %v7216_v46 = vcombine.high %v7214_v63, %v7214_v63  ;;  %v8211_v60 = vmax.f32 %v7181_v32, %v7215_v55  ;;  %v8212_v19 = vmax.f32 %v7180_v2, %v7214_v63 }
 0x407   :  { %v15147_v1 = vrot.slane %v8210_v6, 9  ;;  %v8217_v39 = vmax.f32 %v7199_v31, %v7233_v53  ;;  %v15152_v15 = vrot.slane %v8215_v9, 9  ;;  %v15153_v37 = vrot.slane %v8216_v58, 9 }
 0x408   :  { %v8854_v44 = vmax.f32 %v8214_v17, %v15151_v16  ;;  %v8213_v54 = vmax.f32 %v7182_v24, %v7216_v46  ;;  %v15148_v47 = vrot.slane %v8211_v60, 9  ;;  %v15149_v12 = vrot.slane %v8212_v19, 9  ;;  %v9799_v30 = vld [vmem:[#allocation3 + $0x51] sm:$0xff]  ;;  %v20912_v16 = vpop.f32.mrb[53].mxu0 }
 0x409   :  { %v8850_v14 = vmax.f32 %v8210_v6, %v15147_v1  ;;  %v15154_v34 = vrot.slane %v8217_v39, 9  ;;  %v8855_v8 = vmax.f32 %v8215_v9, %v15152_v15  ;;  %v8856_v27 = vmax.f32 %v8216_v58, %v15153_v37  ;;  %17323 = vmatmul.mubr.msk.f32.gmra.mrb[68].mxu1 %vm8938_vm4, %v9799_v30  ;;  %v20909_v58 = vld [vmem:[%s22462_s2] ss:$0 sm:$0xff] }
 0x40a   :  { %v9290_v61 = vrot.slane %v8854_v44, %v20560_v43  ;;  %v15150_v2 = vrot.slane %v8213_v54, 9  ;;  %v8851_v32 = vmax.f32 %v8211_v60, %v15148_v47  ;;  %v8852_v31 = vmax.f32 %v8212_v19, %v15149_v12 }
 0x40b   :  { %v9274_v7 = vrot.slane %v8850_v14, %v20560_v43  ;;  %v8857_v11 = vmax.f32 %v8217_v39, %v15154_v34  ;;  %v9294_v24 = vrot.slane %v8855_v8, %v20560_v43  ;;  %v9298_v36 = vrot.slane %v8856_v27, %v20560_v43 }
 0x40c   :  { %v7265_v4 = vrot.slane %v7251_v51, %v20549_v29  ;;  %v8853_v49 = vmax.f32 %v8213_v54, %v15150_v2  ;;  %v9278_v17 = vrot.slane %v8851_v32, %v20560_v43  ;;  %v9282_v63 = vrot.slane %v8852_v31, %v20560_v43 }
 0x40d   :  { %v7266_v55 = vcombine.high %v20887_v13, %v20887_v13  ;;  %v9302_v6 = vrot.slane %v8857_v11, %v20560_v43  ;;  %v6722_v9 = vsel %vm6594_vm7, %v20865_v40, %v6658_v52  ;;  %v6533_v51 = vadd.f32 %v20909_v58, %v18038_v3 }
 0x40e   :  { %v7267_v53 = vcombine.high %v7265_v4, %v7265_v4  ;;  %v9286_v46 = vrot.slane %v8853_v49, %v20560_v43  ;;  %v9665_v60 = vsel %vm9623_vm10, %v9278_v17, %v9274_v7  ;;  %v7234_v19 = vcombine.high %v6722_v9, %v6722_v9 }
 0x40f   :  { %v7241_v1 = vrot.slane %v6722_v9, %v20549_v29  ;;  %v9666_v39 = vsel %vm9625_vm11, %v9282_v63, %v9665_v60  ;;  %vm6597_vm8 = vcmp.ge.f32.partialorder %v6533_v51, 0.0  ;;  %v6661_v40 = vmul.f32 0.01, %v6533_v51 }
 0x410   :  { %v6532_v52 = vadd.f32 %v20909_v58, %v18039_v21  ;;  %v9667_v15 = vsel %vm9627_vm12, %v9286_v46, %v9666_v39  ;;  %v7248_v37 = vrot.slane %v7234_v19, %v20549_v29  ;;  %v18040_v44 = vadd.f32 %v20685_v33, %v20330_v22  ;;  %v20926_v21 = vpop.f32.mrb[54].mxu0 }
 0x411   :  { %v7249_v3 = vcombine.high %v7241_v1, %v7241_v1  ;;  %v9668_v54 = vsel %vm9629_vm13, %v9290_v61, %v9667_v15  ;;  %v6725_v47 = vsel %vm6597_vm8, %v6533_v51, %v6661_v40  ;;  %v18041_v22 = vadd.f32 %v20689_v25, %v20332_v23  ;;  %v20937_v51 = vpop.f32.mrb[55].mxu0 }
 0x412   :  { %vm6596_vm9 = vcmp.ge.f32.partialorder %v6532_v52, 0.0  ;;  %v6660_v12 = vmul.f32 0.01, %v6532_v52  ;;  %v9669_v14 = vsel %vm9631_vm14, %v9294_v24, %v9668_v54  ;;  %v7250_v30 = vcombine.high %v7248_v37, %v7248_v37 }
 0x413   :  { %v7285_v34 = vcombine.high %v6725_v47, %v6725_v47  ;;  %v7292_v8 = vrot.slane %v6725_v47, %v20549_v29  ;;  %v9670_v27 = vsel %vm9633_vm15, %v9298_v36, %v9669_v14  ;;  %v6535_v32 = vadd.f32 %v20909_v58, %v18040_v44 }
 0x414   :  { %v6724_v2 = vsel %vm6596_vm9, %v6532_v52, %v6660_v12  ;;  %v9671_v33 = vsel %vm9635_vm0, %v9302_v6, %v9670_v27 }
 0x415   :  { %v7299_v61 = vrot.slane %v7285_v34, %v20549_v29  ;;  %v7300_v31 = vcombine.high %v7292_v8, %v7292_v8  ;;  %v8222_v7 = vmax.f32 %v20887_v13, %v7292_v8  ;;  %9763 = vst.msk [vmem:[#allocation3 + $0x61] sm:$0xff] %vm8938_vm4, %v9671_v33  ;;  %v7268_v11 = vcombine.high %v6724_v2, %v6724_v2 }
 0x416   :  { %v7275_v24 = vrot.slane %v6724_v2, %v20549_v29  ;;  %vm6599_vm1 = vcmp.ge.f32.partialorder %v6535_v32, 0.0  ;;  %v6663_v36 = vmul.f32 0.01, %v6535_v32 }
 0x417   :  { %v7301_v49 = vcombine.high %v7299_v61, %v7299_v61  ;;  %v8223_v17 = vmax.f32 %v7266_v55, %v7300_v31  ;;  %v8224_v63 = vmax.f32 %v7265_v4, %v7299_v61  ;;  %v15159_v9 = vrot.slane %v8222_v7, 9  ;;  %v20944_v61 = vpop.f32.mrb[56].mxu0 }
 0x418   :  { %v7282_v23 = vrot.slane %v7268_v11, %v20549_v29  ;;  %v7283_v25 = vcombine.high %v7275_v24, %v7275_v24  ;;  %v8218_v6 = vmax.f32 %v7241_v1, %v7275_v24  ;;  %v6727_v46 = vsel %vm6599_vm1, %v6535_v32, %v6663_v36  ;;  %v20950_v24 = vpop.f32.mrb[57].mxu0 }
 0x419   :  { %v8225_v60 = vmax.f32 %v7267_v53, %v7301_v49  ;;  %v15160_v13 = vrot.slane %v8223_v17, 9  ;;  %v15161_v19 = vrot.slane %v8224_v63, 9  ;;  %v8862_v39 = vmax.f32 %v8222_v7, %v15159_v9 }
 0x41a   :  { %v7284_v40 = vcombine.high %v7282_v23, %v7282_v23  ;;  %v8219_v52 = vmax.f32 %v7249_v3, %v7283_v25  ;;  %v8220_v15 = vmax.f32 %v7248_v37, %v7282_v23  ;;  %v15155_v44 = vrot.slane %v8218_v6, 9 }
 0x41b   :  { %v15162_v54 = vrot.slane %v8225_v60, 9  ;;  %v8863_v47 = vmax.f32 %v8223_v17, %v15160_v13  ;;  %v8864_v55 = vmax.f32 %v8224_v63, %v15161_v19  ;;  %v9322_v27 = vrot.slane %v8862_v39, %v20560_v43  ;;  %v22546_v63 = vld [vmem:[#allocation8_spill] sm:$0xff]  ;;  %v22547_v13 = vld [vmem:[#allocation9_spill] sm:$0xff] }
 0x41c   :  { %v8221_v4 = vmax.f32 %v7250_v30, %v7284_v40  ;;  %v15156_v12 = vrot.slane %v8219_v52, 9  ;;  %v15157_v14 = vrot.slane %v8220_v15, 9  ;;  %v8858_v34 = vmax.f32 %v8218_v6, %v15155_v44  ;;  %v9800_v2 = vld [vmem:[#allocation3 + $0x61] sm:$0xff] }
 0x41d   :  { %v8865_v8 = vmax.f32 %v8225_v60, %v15162_v54  ;;  %v9326_v1 = vrot.slane %v8863_v47, %v20560_v43  ;;  %v7319_v53 = vcombine.high %v6727_v46, %v6727_v46  ;;  %v9330_v32 = vrot.slane %v8864_v55, %v20560_v43  ;;  %17325 = vmatprep.mubr.msk.f32.mxu1 %vm8938_vm4, %v9800_v2 }
 0x41e   :  { %v15158_v33 = vrot.slane %v8221_v4, 9  ;;  %v8859_v3 = vmax.f32 %v8219_v52, %v15156_v12  ;;  %v8860_v37 = vmax.f32 %v8220_v15, %v15157_v14  ;;  %v9306_v31 = vrot.slane %v8858_v34, %v20560_v43  ;;  %v22548_v52 = vld [vmem:[#allocation10_spill] sm:$0xff]  ;;  %v22549_v15 = vld [vmem:[#allocation11_spill] sm:$0xff] }
 0x41f   :  { %v9334_v30 = vrot.slane %v8865_v8, %v20560_v43  ;;  %v7326_v7 = vrot.slane %v6727_v46, %v20549_v29  ;;  %v6534_v11 = vadd.f32 %v20909_v58, %v18041_v22  ;;  %v18042_v9 = vadd.f32 %v20695_v42, %v22546_v63 }
 0x420   :  { %v8861_v36 = vmax.f32 %v8221_v4, %v15158_v33  ;;  %v9310_v49 = vrot.slane %v8859_v3, %v20560_v43  ;;  %v9314_v17 = vrot.slane %v8860_v37, %v20560_v43  ;;  %v7333_v23 = vrot.slane %v7319_v53, %v20549_v29 }
 0x421   :  { %v7334_v25 = vcombine.high %v7326_v7, %v7326_v7  ;;  %vm6598_vm2 = vcmp.ge.f32.partialorder %v6534_v11, 0.0  ;;  %v6662_v6 = vmul.f32 0.01, %v6534_v11  ;;  %v6537_v22 = vadd.f32 %v20909_v58, %v18042_v9 }
 0x422   :  { %v9318_v60 = vrot.slane %v8861_v36, %v20560_v43  ;;  %v9672_v46 = vsel %vm9623_vm10, %v9310_v49, %v9306_v31  ;;  %v18043_v19 = vadd.f32 %v20701_v41, %v22547_v13  ;;  %v18044_v42 = vadd.f32 %v20707_v0, %v22548_v52  ;;  %v20981_v49 = vpop.f32.mrb[58].mxu0 }
 0x423   :  { %v9673_v39 = vsel %vm9625_vm11, %v9314_v17, %v9672_v46  ;;  %v6726_v40 = vsel %vm6598_vm2, %v6534_v11, %v6662_v6  ;;  %v18045_v44 = vadd.f32 %v20714_v50, %v22549_v15  ;;  %vm6601_vm3 = vcmp.ge.f32.partialorder %v6537_v22, 0.0  ;;  %v20984_v6 = vpop.f32.mrb[59].mxu0  ;;  %v22550_v46 = vld [vmem:[#allocation12_spill] sm:$0xff] }
 0x424   :  { %v9674_v54 = vsel %vm9627_vm12, %v9318_v60, %v9673_v39  ;;  %v7302_v47 = vcombine.high %v6726_v40, %v6726_v40  ;;  %v7309_v55 = vrot.slane %v6726_v40, %v20549_v29  ;;  %v6665_v12 = vmul.f32 0.01, %v6537_v22 }
 0x425   :  { %v9675_v4 = vsel %vm9629_vm13, %v9322_v27, %v9674_v54  ;;  %v6536_v41 = vadd.f32 %v20909_v58, %v18043_v19  ;;  %v6539_v14 = vadd.f32 %v20909_v58, %v18044_v42  ;;  %v7335_v8 = vcombine.high %v7333_v23, %v7333_v23 }
 0x426   :  { %v9676_v34 = vsel %vm9631_vm14, %v9326_v1, %v9675_v4  ;;  %v7316_v0 = vrot.slane %v7302_v47, %v20549_v29  ;;  %v20975_v50 = vadd.f32 %v20909_v58, %v18045_v44  ;;  %v6729_v2 = vsel %vm6601_vm3, %v6537_v22, %v6665_v12 }
 0x427   :  { %v9677_v53 = vsel %vm9633_vm15, %v9330_v32, %v9676_v34  ;;  %vm6600_vm5 = vcmp.ge.f32.partialorder %v6536_v41, 0.0  ;;  %v6664_v33 = vmul.f32 0.01, %v6536_v41  ;;  %v7317_v3 = vcombine.high %v7309_v55, %v7309_v55 }
 0x428   :  { %v9678_v27 = vsel %vm9635_vm0, %v9334_v30, %v9677_v53  ;;  %v7353_v37 = vcombine.high %v6729_v2, %v6729_v2  ;;  %v7360_v31 = vrot.slane %v6729_v2, %v20549_v29  ;;  %v7318_v1 = vcombine.high %v7316_v0, %v7316_v0  ;;  %v9802_v53 = vld [vmem:[#allocation3 + $0xa1] sm:$0xff] }
 0x429   :  { %9764 = vst.msk [vmem:[#allocation3 + $0x71] sm:$0xff] %vm8938_vm4, %v9678_v27  ;;  %v6728_v11 = vsel %vm6600_vm5, %v6536_v41, %v6664_v33  ;;  %vm6603_vm6 = vcmp.ge.f32.partialorder %v6539_v14, 0.0  ;;  %v6667_v36 = vmul.f32 0.01, %v6539_v14  ;;  %vm6602_vm7 = vcmp.ge.f32.partialorder %v20975_v50, 0.0 }
 0x42a   :  { %v7367_v17 = vrot.slane %v7353_v37, %v20549_v29  ;;  %v7368_v32 = vcombine.high %v7360_v31, %v7360_v31  ;;  %v8230_v63 = vmax.f32 %v7326_v7, %v7360_v31  ;;  %v7336_v9 = vcombine.high %v6728_v11, %v6728_v11 }
 0x42b   :  { %v7343_v30 = vrot.slane %v6728_v11, %v20549_v29  ;;  %v6731_v60 = vsel %vm6603_vm6, %v6539_v14, %v6667_v36  ;;  %v18046_v22 = vadd.f32 %v20724_v20, %v22550_v46  ;;  %v6666_v7 = vmul.f32 0.01, %v20975_v50  ;;  %v20992_v20 = vpop.f32.mrb[60].mxu0 }
 0x42c   :  { %v7369_v13 = vcombine.high %v7367_v17, %v7367_v17  ;;  %v8231_v19 = vmax.f32 %v7334_v25, %v7368_v32  ;;  %v8232_v39 = vmax.f32 %v7333_v23, %v7367_v17  ;;  %v15167_v40 = vrot.slane %v8230_v63, 9 }
 0x42d   :  { %v7350_v52 = vrot.slane %v7336_v9, %v20549_v29  ;;  %v7351_v42 = vcombine.high %v7343_v30, %v7343_v30  ;;  %v8226_v15 = vmax.f32 %v7309_v55, %v7343_v30  ;;  %v7387_v33 = vcombine.high %v6731_v60, %v6731_v60 }
 0x42e   :  { %v8233_v44 = vmax.f32 %v7335_v8, %v7369_v13  ;;  %v15168_v54 = vrot.slane %v8231_v19, 9  ;;  %v15169_v47 = vrot.slane %v8232_v39, 9  ;;  %v8870_v4 = vmax.f32 %v8230_v63, %v15167_v40 }
 0x42f   :  { %v7352_v12 = vcombine.high %v7350_v52, %v7350_v52  ;;  %v8227_v41 = vmax.f32 %v7317_v3, %v7351_v42  ;;  %v8228_v14 = vmax.f32 %v7316_v0, %v7350_v52  ;;  %v15163_v34 = vrot.slane %v8226_v15, 9 }
 0x430   :  { %v15170_v25 = vrot.slane %v8233_v44, 9  ;;  %v8871_v23 = vmax.f32 %v8231_v19, %v15168_v54  ;;  %v8872_v2 = vmax.f32 %v8232_v39, %v15169_v47  ;;  %v9801_v27 = vld [vmem:[#allocation3 + $0x71] sm:$0xff]  ;;  %v9354_v36 = vrot.slane %v8870_v4, %v20560_v43 }
 0x431   :  { %v8229_v37 = vmax.f32 %v7318_v1, %v7352_v12  ;;  %v15164_v55 = vrot.slane %v8227_v41, 9  ;;  %v15165_v31 = vrot.slane %v8228_v14, 9  ;;  %v8866_v11 = vmax.f32 %v8226_v15, %v15163_v34  ;;  %17326 = vmatmul.mubr.msk.f32.gmra.mrb[70].mxu1 %vm8938_vm4, %v9801_v27 }
 0x432   :  { %v8873_v8 = vmax.f32 %v8233_v44, %v15170_v25  ;;  %v9358_v0 = vrot.slane %v8871_v23, %v20560_v43  ;;  %v7394_v3 = vrot.slane %v6731_v60, %v20549_v29  ;;  %17328 = vmatprep.mubr.msk.f32.mxu1 %vm8938_vm4, %v9802_v53  ;;  %v9362_v17 = vrot.slane %v8872_v2, %v20560_v43  ;;  %v22551_v44 = vld [vmem:[#allocation13_spill] sm:$0xff] }
 0x433   :  { %v15166_v32 = vrot.slane %v8229_v37, 9  ;;  %v8867_v63 = vmax.f32 %v8227_v41, %v15164_v55  ;;  %v8868_v9 = vmax.f32 %v8228_v14, %v15165_v31  ;;  %v9338_v30 = vrot.slane %v8866_v11, %v20560_v43  ;;  %v21026_v31 = vpop.f32.mrb[61].mxu0 }
 0x434   :  { %v9366_v1 = vrot.slane %v8873_v8, %v20560_v43  ;;  %v7401_v46 = vrot.slane %v7387_v33, %v20549_v29  ;;  %v6730_v13 = vsel %vm6602_vm7, %v20975_v50, %v6666_v7  ;;  %v7402_v52 = vcombine.high %v7394_v3, %v7394_v3  ;;  %v22552_v50 = vld [vmem:[#allocation14_spill] sm:$0xff]  ;;  %v22553_v33 = vld [vmem:[#allocation15_spill] sm:$0xff] }
 0x435   :  { %v8869_v19 = vmax.f32 %v8229_v37, %v15166_v32  ;;  %v9342_v60 = vrot.slane %v8867_v63, %v20560_v43  ;;  %v9346_v39 = vrot.slane %v8868_v9, %v20560_v43  ;;  %v7370_v40 = vcombine.high %v6730_v13, %v6730_v13  ;;  %v22555_v37 = vld [vmem:[#allocation43_spill] sm:$0xff] }
 0x436   :  { %v7377_v42 = vrot.slane %v6730_v13, %v20549_v29  ;;  %v6541_v15 = vadd.f32 %v20909_v58, %v18046_v22  ;;  %v18047_v54 = vadd.f32 %v20728_v28, %v22551_v44  ;;  %v7403_v12 = vcombine.high %v7401_v46, %v7401_v46 }
 0x437   :  { %v9350_v47 = vrot.slane %v8869_v19, %v20560_v43  ;;  %v9679_v4 = vsel %vm9623_vm10, %v9342_v60, %v9338_v30  ;;  %v18048_v7 = vadd.f32 %v20738_v26, %v22552_v50  ;;  %v7384_v14 = vrot.slane %v7370_v40, %v20549_v29  ;;  %v22554_v26 = vld [vmem:[#allocation16_spill] sm:$0xff]  ;;  %v21033_v60 = vpop.f32.mrb[62].mxu0 }
 0x438   :  { %v9680_v41 = vsel %vm9625_vm11, %v9346_v39, %v9679_v4  ;;  %vm6605_vm8 = vcmp.ge.f32.partialorder %v6541_v15, 0.0  ;;  %v6669_v34 = vmul.f32 0.01, %v6541_v15  ;;  %v7385_v22 = vcombine.high %v7377_v42, %v7377_v42  ;;  %v21037_v4 = vpop.f32.mrb[63].mxu0 }
 0x439   :  { %v9681_v53 = vsel %vm9627_vm12, %v9350_v47, %v9680_v41  ;;  %v6540_v25 = vadd.f32 %v20909_v58, %v18047_v54  ;;  %v6543_v28 = vadd.f32 %v20909_v58, %v18048_v7  ;;  %v18049_v27 = vadd.f32 %v20741_v62, %v22553_v33 }
 0x43a   :  { %v9682_v23 = vsel %vm9629_vm13, %v9354_v36, %v9681_v53  ;;  %v6733_v2 = vsel %vm6605_vm8, %v6541_v15, %v6669_v34  ;;  %v18050_v55 = vadd.f32 %v22555_v37, %v22554_v26 }
 0x43b   :  { %v9683_v11 = vsel %vm9631_vm14, %v9358_v0, %v9682_v23  ;;  %v7421_v8 = vcombine.high %v6733_v2, %v6733_v2  ;;  %v7428_v32 = vrot.slane %v6733_v2, %v20549_v29  ;;  %vm6604_vm9 = vcmp.ge.f32.partialorder %v6540_v25, 0.0 }
 0x43c   :  { %v9684_v63 = vsel %vm9633_vm15, %v9362_v17, %v9683_v11  ;;  %v6668_v9 = vmul.f32 0.01, %v6540_v25  ;;  %vm6607_vm1 = vcmp.ge.f32.partialorder %v6543_v28, 0.0  ;;  %v6671_v36 = vmul.f32 0.01, %v6543_v28 }
 0x43d   :  { %v9685_v30 = vsel %vm9635_vm0, %v9366_v1, %v9684_v63  ;;  %v7435_v62 = vrot.slane %v7421_v8, %v20549_v29  ;;  %v7436_v13 = vcombine.high %v7428_v32, %v7428_v32  ;;  %v8238_v19 = vmax.f32 %v7394_v3, %v7428_v32 }
 0x43e   :  { %9765 = vst.msk [vmem:[#allocation3 + $0x81] sm:$0xff] %vm8938_vm4, %v9685_v30  ;;  %v7386_v0 = vcombine.high %v7384_v14, %v7384_v14  ;;  %v6732_v39 = vsel %vm6604_vm9, %v6540_v25, %v6668_v9  ;;  %v6735_v40 = vsel %vm6607_vm1, %v6543_v28, %v6671_v36  ;;  %v6542_v15 = vadd.f32 %v20909_v58, %v18049_v27 }
 0x43f   :  { %v7437_v44 = vcombine.high %v7435_v62, %v7435_v62  ;;  %v8239_v17 = vmax.f32 %v7402_v52, %v7436_v13  ;;  %v8240_v54 = vmax.f32 %v7401_v46, %v7435_v62  ;;  %v15175_v47 = vrot.slane %v8238_v19, 9 }
 0x440   :  { %v7404_v1 = vcombine.high %v6732_v39, %v6732_v39  ;;  %v7411_v50 = vrot.slane %v6732_v39, %v20549_v29  ;;  %v7455_v7 = vcombine.high %v6735_v40, %v6735_v40  ;;  %v6545_v3 = vadd.f32 %v20909_v58, %v18050_v55 }
 0x441   :  { %v8241_v41 = vmax.f32 %v7403_v12, %v7437_v44  ;;  %v15176_v34 = vrot.slane %v8239_v17, 9  ;;  %v15177_v53 = vrot.slane %v8240_v54, 9  ;;  %v8878_v23 = vmax.f32 %v8238_v19, %v15175_v47  ;;  %v22556_v47 = vld [vmem:[#allocation17_spill] sm:$0xff] }
 0x442   :  { %v7418_v25 = vrot.slane %v7404_v1, %v20549_v29  ;;  %v7419_v28 = vcombine.high %v7411_v50, %v7411_v50  ;;  %v8234_v2 = vmax.f32 %v7377_v42, %v7411_v50  ;;  %v7462_v52 = vrot.slane %v6735_v40, %v20549_v29 }
 0x443   :  { %v15178_v46 = vrot.slane %v8241_v41, 9  ;;  %v8879_v33 = vmax.f32 %v8239_v17, %v15176_v34  ;;  %v8880_v27 = vmax.f32 %v8240_v54, %v15177_v53  ;;  %v7469_v26 = vrot.slane %v7455_v7, %v20549_v29 }
 0x444   :  { %v7420_v37 = vcombine.high %v7418_v25, %v7418_v25  ;;  %v8235_v11 = vmax.f32 %v7385_v22, %v7419_v28  ;;  %v8236_v8 = vmax.f32 %v7384_v14, %v7418_v25  ;;  %v15171_v32 = vrot.slane %v8234_v2, 9  ;;  %v22557_v25 = vld [vmem:[#allocation18_spill] sm:$0xff] }
 0x445   :  { %v8881_v55 = vmax.f32 %v8241_v41, %v15178_v46  ;;  %v9386_v12 = vrot.slane %v8878_v23, %v20560_v43  ;;  %v9390_v63 = vrot.slane %v8879_v33, %v20560_v43  ;;  %v9394_v9 = vrot.slane %v8880_v27, %v20560_v43 }
 0x446   :  { %v8237_v36 = vmax.f32 %v7386_v0, %v7420_v37  ;;  %v15172_v42 = vrot.slane %v8235_v11, 9  ;;  %v15173_v30 = vrot.slane %v8236_v8, 9  ;;  %v8874_v62 = vmax.f32 %v8234_v2, %v15171_v32 }
 0x447   :  { %v9398_v13 = vrot.slane %v8881_v55, %v20560_v43  ;;  %v7470_v19 = vcombine.high %v7462_v52, %v7462_v52  ;;  %vm6606_vm2 = vcmp.ge.f32.partialorder %v6542_v15, 0.0  ;;  %v6670_v39 = vmul.f32 0.01, %v6542_v15 }
 0x448   :  { %v15174_v40 = vrot.slane %v8237_v36, 9  ;;  %v8875_v22 = vmax.f32 %v8235_v11, %v15172_v42  ;;  %v8876_v14 = vmax.f32 %v8236_v8, %v15173_v30  ;;  %v9370_v44 = vrot.slane %v8874_v62, %v20560_v43 }
 0x449   :  { %v6734_v17 = vsel %vm6606_vm2, %v6542_v15, %v6670_v39  ;;  %vm6609_vm3 = vcmp.ge.f32.partialorder %v6545_v3, 0.0  ;;  %v6673_v54 = vmul.f32 0.01, %v6545_v3  ;;  %v18051_v1 = vadd.f32 %v20751_v56, %v22556_v47 }
 0x44a   :  { %v8877_v0 = vmax.f32 %v8237_v36, %v15174_v40  ;;  %v9374_v50 = vrot.slane %v8875_v22, %v20560_v43  ;;  %v9378_v7 = vrot.slane %v8876_v14, %v20560_v43  ;;  %v7438_v41 = vcombine.high %v6734_v17, %v6734_v17 }
 0x44b   :  { %v7445_v34 = vrot.slane %v6734_v17, %v20549_v29  ;;  %v6737_v53 = vsel %vm6609_vm3, %v6545_v3, %v6673_v54  ;;  %v6544_v23 = vadd.f32 %v20909_v58, %v18051_v1  ;;  %v18052_v28 = vadd.f32 %v20763_v38, %v22557_v25 }
 0x44c   :  { %v9382_v15 = vrot.slane %v8877_v0, %v20560_v43  ;;  %v9686_v2 = vsel %vm9623_vm10, %v9374_v50, %v9370_v44  ;;  %v7471_v46 = vcombine.high %v7469_v26, %v7469_v26  ;;  %v7489_v56 = vcombine.high %v6737_v53, %v6737_v53 }
 0x44d   :  { %v9687_v33 = vsel %vm9625_vm11, %v9378_v7, %v9686_v2  ;;  %v7452_v27 = vrot.slane %v7438_v41, %v20549_v29  ;;  %v7496_v37 = vrot.slane %v6737_v53, %v20549_v29  ;;  %vm6608_vm5 = vcmp.ge.f32.partialorder %v6544_v23, 0.0 }
 0x44e   :  { %v9688_v3 = vsel %vm9627_vm12, %v9382_v15, %v9687_v33  ;;  %v7453_v11 = vcombine.high %v7445_v34, %v7445_v34  ;;  %v7503_v8 = vrot.slane %v7489_v56, %v20549_v29  ;;  %v6672_v32 = vmul.f32 0.01, %v6544_v23 }
 0x44f   :  { %v9689_v38 = vsel %vm9629_vm13, %v9386_v12, %v9688_v3  ;;  %v7504_v55 = vcombine.high %v7496_v37, %v7496_v37  ;;  %v8246_v36 = vmax.f32 %v7462_v52, %v7496_v37  ;;  %v6547_v42 = vadd.f32 %v20909_v58, %v18052_v28 }
 0x450   :  { %v9690_v30 = vsel %vm9631_vm14, %v9390_v63, %v9689_v38  ;;  %v7505_v62 = vcombine.high %v7503_v8, %v7503_v8  ;;  %v8248_v39 = vmax.f32 %v7469_v26, %v7503_v8  ;;  %v6736_v40 = vsel %vm6608_vm5, %v6544_v23, %v6672_v32 }
 0x451   :  { %v9691_v22 = vsel %vm9633_vm15, %v9394_v9, %v9690_v30  ;;  %v8247_v14 = vmax.f32 %v7470_v19, %v7504_v55  ;;  %v15183_v44 = vrot.slane %v8246_v36, 9  ;;  %v7472_v17 = vcombine.high %v6736_v40, %v6736_v40 }
 0x452   :  { %v9692_v54 = vsel %vm9635_vm0, %v9398_v13, %v9691_v22  ;;  %v8249_v47 = vmax.f32 %v7471_v46, %v7505_v62  ;;  %v15185_v1 = vrot.slane %v8248_v39, 9  ;;  %v7479_v12 = vrot.slane %v6736_v40, %v20549_v29 }
 0x453   :  { %9766 = vst.msk [vmem:[#allocation3 + $0xb1] sm:$0xff] %vm8938_vm4, %v9692_v54  ;;  %v7454_v52 = vcombine.high %v7452_v27, %v7452_v27  ;;  %v15184_v0 = vrot.slane %v8247_v14, 9  ;;  %v8886_v50 = vmax.f32 %v8246_v36, %v15183_v44  ;;  %v7486_v63 = vrot.slane %v7472_v17, %v20549_v29  ;;  %v22559_v36 = vld [vmem:[#allocation20_spill] sm:$0xff] }
 0x454   :  { %v15186_v26 = vrot.slane %v8249_v47, 9  ;;  %v21072_v7 = vmax.f32 %v8248_v39, %v15185_v1  ;;  %v7487_v9 = vcombine.high %v7479_v12, %v7479_v12  ;;  %v8242_v19 = vmax.f32 %v7445_v34, %v7479_v12  ;;  %v22558_v34 = vld [vmem:[#allocation19_spill] sm:$0xff]  ;;  %v22561_v1 = vld [vmem:[#allocation44_spill] sm:$0xff] }
 0x455   :  { %v8887_v41 = vmax.f32 %v8247_v14, %v15184_v0  ;;  %v7488_v53 = vcombine.high %v7486_v63, %v7486_v63  ;;  %v8244_v23 = vmax.f32 %v7452_v27, %v7486_v63  ;;  %vm6611_vm6 = vcmp.ge.f32.partialorder %v6547_v42, 0.0 }
 0x456   :  { %v8889_v13 = vmax.f32 %v8249_v47, %v15186_v26  ;;  %v9418_v25 = vrot.slane %v8886_v50, %v20560_v43  ;;  %v8243_v28 = vmax.f32 %v7453_v11, %v7487_v9  ;;  %v15179_v15 = vrot.slane %v8242_v19, 9  ;;  %v22560_v47 = vld [vmem:[#allocation21_spill] sm:$0xff] }
 0x457   :  { %v9426_v2 = vrot.slane %v21072_v7, %v20560_v43  ;;  %v8245_v46 = vmax.f32 %v7454_v52, %v7488_v53  ;;  %v15181_v56 = vrot.slane %v8244_v23, 9  ;;  %v6675_v33 = vmul.f32 0.01, %v6547_v42  ;;  %v22563_v53 = vld [vmem:[#allocation45_spill] sm:$0xff] }
 0x458   :  { %v9422_v37 = vrot.slane %v8887_v41, %v20560_v43  ;;  %v15180_v3 = vrot.slane %v8243_v28, 9  ;;  %v8882_v8 = vmax.f32 %v8242_v19, %v15179_v15  ;;  %v18053_v32 = vadd.f32 %v20767_v18, %v22558_v34  ;;  %v22562_v41 = vld [vmem:[#allocation22_spill] sm:$0xff] }
 0x459   :  { %v15182_v27 = vrot.slane %v8245_v46, 9  ;;  %v8884_v38 = vmax.f32 %v8244_v23, %v15181_v56  ;;  %v6739_v55 = vsel %vm6611_vm6, %v6547_v42, %v6675_v33  ;;  %v18054_v11 = vadd.f32 %v20781_v35, %v22559_v36 }
 0x45a   :  { %v9430_v30 = vrot.slane %v8889_v13, %v20560_v43  ;;  %v8883_v62 = vmax.f32 %v8243_v28, %v15180_v3  ;;  %v7523_v39 = vcombine.high %v6739_v55, %v6739_v55  ;;  %v7530_v40 = vrot.slane %v6739_v55, %v20549_v29  ;;  %v9803_v22 = vld [vmem:[#allocation3 + $0xb1] sm:$0xff]  ;;  %v22564_v13 = vld [vmem:[#allocation23_spill] sm:$0xff] }
 0x45b   :  { %v8885_v14 = vmax.f32 %v8245_v46, %v15182_v27  ;;  %v9410_v44 = vrot.slane %v8884_v38, %v20560_v43  ;;  %v6546_v17 = vadd.f32 %v20909_v58, %v18053_v32  ;;  %v6549_v18 = vadd.f32 %v20909_v58, %v18054_v11  ;;  %17329 = vmatmul.mubr.msk.f32.gmra.mrb[72].mxu1 %vm8938_vm4, %v9803_v22  ;;  %v22565_v28 = vld [vmem:[#allocation46_spill] sm:$0xff] }
 0x45c   :  { %v9402_v42 = vrot.slane %v8882_v8, %v20560_v43  ;;  %v9406_v35 = vrot.slane %v8883_v62, %v20560_v43  ;;  %v7537_v54 = vrot.slane %v7523_v39, %v20549_v29  ;;  %v18055_v12 = vadd.f32 %v22561_v1, %v22560_v47 }
 0x45d   :  { %v9414_v52 = vrot.slane %v8885_v14, %v20560_v43  ;;  %vm6610_vm7 = vcmp.ge.f32.partialorder %v6546_v17, 0.0  ;;  %v6674_v0 = vmul.f32 0.01, %v6546_v17  ;;  %vm6613_vm8 = vcmp.ge.f32.partialorder %v6549_v18, 0.0 }
 0x45e   :  { %v9693_v50 = vsel %vm9623_vm10, %v9406_v35, %v9402_v42  ;;  %v7538_v63 = vcombine.high %v7530_v40, %v7530_v40  ;;  %v6677_v26 = vmul.f32 0.01, %v6549_v18  ;;  %v6548_v7 = vadd.f32 %v20909_v58, %v18055_v12 }
 0x45f   :  { %v9694_v9 = vsel %vm9625_vm11, %v9410_v44, %v9693_v50  ;;  %v6738_v19 = vsel %vm6610_vm7, %v6546_v17, %v6674_v0  ;;  %v18056_v23 = vadd.f32 %v22563_v53, %v22562_v41  ;;  %v18057_v15 = vadd.f32 %v22565_v28, %v22564_v13 }
 0x460   :  { %v9695_v46 = vsel %vm9627_vm12, %v9414_v52, %v9694_v9  ;;  %v7506_v56 = vcombine.high %v6738_v19, %v6738_v19  ;;  %v7513_v33 = vrot.slane %v6738_v19, %v20549_v29  ;;  %v6741_v3 = vsel %vm6613_vm8, %v6549_v18, %v6677_v26 }
 0x461   :  { %v9696_v8 = vsel %vm9629_vm13, %v9418_v25, %v9695_v46  ;;  %v7557_v34 = vcombine.high %v6741_v3, %v6741_v3  ;;  %v7564_v32 = vrot.slane %v6741_v3, %v20549_v29  ;;  %vm6612_vm9 = vcmp.ge.f32.partialorder %v6548_v7, 0.0 }
 0x462   :  { %v9697_v27 = vsel %vm9631_vm14, %v9422_v37, %v9696_v8  ;;  %v7539_v38 = vcombine.high %v7537_v54, %v7537_v54  ;;  %v7520_v55 = vrot.slane %v7506_v56, %v20549_v29  ;;  %v6676_v36 = vmul.f32 0.01, %v6548_v7 }
 0x463   :  { %v9698_v11 = vsel %vm9633_vm15, %v9426_v2, %v9697_v27  ;;  %v7571_v62 = vrot.slane %v7557_v34, %v20549_v29  ;;  %v7572_v39 = vcombine.high %v7564_v32, %v7564_v32  ;;  %v8254_v22 = vmax.f32 %v7530_v40, %v7564_v32 }
 0x464   :  { %v9699_v14 = vsel %vm9635_vm0, %v9430_v30, %v9698_v11  ;;  %v7521_v44 = vcombine.high %v7513_v33, %v7513_v33  ;;  %v6740_v25 = vsel %vm6612_vm9, %v6548_v7, %v6676_v36  ;;  %v6551_v17 = vadd.f32 %v20909_v58, %v18056_v23 }
 0x465   :  { %9767 = vst.msk [vmem:[#allocation3 + $0xc1] sm:$0xff] %vm8938_vm4, %v9699_v14  ;;  %v7573_v18 = vcombine.high %v7571_v62, %v7571_v62  ;;  %v8255_v37 = vmax.f32 %v7538_v63, %v7572_v39  ;;  %v8256_v42 = vmax.f32 %v7537_v54, %v7571_v62  ;;  %v15191_v35 = vrot.slane %v8254_v22, 9 }
 0x466   :  { %v7540_v47 = vcombine.high %v6740_v25, %v6740_v25  ;;  %v7547_v1 = vrot.slane %v6740_v25, %v20549_v29  ;;  %vm6615_vm1 = vcmp.ge.f32.partialorder %v6551_v17, 0.0  ;;  %v6679_v2 = vmul.f32 0.01, %v6551_v17 }
 0x467   :  { %v8257_v12 = vmax.f32 %v7539_v38, %v7573_v18  ;;  %v15192_v52 = vrot.slane %v8255_v37, 9  ;;  %v15193_v40 = vrot.slane %v8256_v42, 9  ;;  %v8894_v0 = vmax.f32 %v8254_v22, %v15191_v35  ;;  %v22567_v35 = vld [vmem:[#allocation47_spill] sm:$0xff] }
 0x468   :  { %v7554_v30 = vrot.slane %v7540_v47, %v20549_v29  ;;  %v7555_v50 = vcombine.high %v7547_v1, %v7547_v1  ;;  %v8250_v26 = vmax.f32 %v7513_v33, %v7547_v1  ;;  %v6743_v7 = vsel %vm6615_vm1, %v6551_v17, %v6679_v2  ;;  %v22568_v2 = vld [vmem:[#allocation25_spill] sm:$0xff] }
 0x469   :  { %v7522_v9 = vcombine.high %v7520_v55, %v7520_v55  ;;  %v15194_v19 = vrot.slane %v8257_v12, 9  ;;  %v8895_v41 = vmax.f32 %v8255_v37, %v15192_v52  ;;  %v8896_v63 = vmax.f32 %v8256_v42, %v15193_v40  ;;  %v22566_v42 = vld [vmem:[#allocation24_spill] sm:$0xff]  ;;  %v22569_v52 = vld [vmem:[#allocation26_spill] sm:$0xff] }
 0x46a   :  { %v7556_v54 = vcombine.high %v7554_v30, %v7554_v30  ;;  %v8251_v53 = vmax.f32 %v7521_v44, %v7555_v50  ;;  %v8252_v23 = vmax.f32 %v7520_v55, %v7554_v30  ;;  %v15187_v13 = vrot.slane %v8250_v26, 9 }
 0x46b   :  { %v8897_v28 = vmax.f32 %v8257_v12, %v15194_v19  ;;  %v9450_v46 = vrot.slane %v8894_v0, %v20560_v43  ;;  %v9454_v56 = vrot.slane %v8895_v41, %v20560_v43  ;;  %v7591_v3 = vcombine.high %v6743_v7, %v6743_v7  ;;  %v22570_v0 = vld [vmem:[#allocation27_spill] sm:$0xff] }
 0x46c   :  { %v8253_v8 = vmax.f32 %v7522_v9, %v7556_v54  ;;  %v15188_v34 = vrot.slane %v8251_v53, 9  ;;  %v15189_v32 = vrot.slane %v8252_v23, 9  ;;  %v8890_v27 = vmax.f32 %v8250_v26, %v15187_v13  ;;  %v9804_v33 = vld [vmem:[#allocation3 + $0xc1] sm:$0xff] }
 0x46d   :  { %v9458_v38 = vrot.slane %v8896_v63, %v20560_v43  ;;  %v9462_v36 = vrot.slane %v8897_v28, %v20560_v43  ;;  %v21119_v11 = vrot.slane %v6743_v7, %v20549_v29  ;;  %v6550_v55 = vadd.f32 %v20909_v58, %v18057_v15  ;;  %17331 = vmatprep.mubr.msk.f32.mxu1 %vm8938_vm4, %v9804_v33 }
 0x46e   :  { %v15190_v62 = vrot.slane %v8253_v8, 9  ;;  %v8891_v39 = vmax.f32 %v8251_v53, %v15188_v34  ;;  %v8892_v22 = vmax.f32 %v8252_v23, %v15189_v32  ;;  %v21124_v14 = vrot.slane %v7591_v3, %v20549_v29 }
 0x46f   :  { %v9434_v44 = vrot.slane %v8890_v27, %v20560_v43  ;;  %v7606_v25 = vcombine.high %v21119_v11, %v21119_v11  ;;  %vm6614_vm2 = vcmp.ge.f32.partialorder %v6550_v55, 0.0  ;;  %v6678_v17 = vmul.f32 0.01, %v6550_v55 }
 0x470   :  { %v8893_v18 = vmax.f32 %v8253_v8, %v15190_v62  ;;  %v9438_v37 = vrot.slane %v8891_v39, %v20560_v43  ;;  %v9442_v15 = vrot.slane %v8892_v22, %v20560_v43  ;;  %v18058_v47 = vadd.f32 %v22567_v35, %v22566_v42 }
 0x471   :  { %v6742_v1 = vsel %vm6614_vm2, %v6550_v55, %v6678_v17  ;;  %v18059_v12 = vadd.f32 %v20822_v45, %v22568_v2  ;;  %v18060_v40 = vadd.f32 %v20824_v57, %v22569_v52  ;;  %v18061_v30 = vadd.f32 %v20848_v59, %v22570_v0 }
 0x472   :  { %v9446_v50 = vrot.slane %v8893_v18, %v20560_v43  ;;  %v9700_v26 = vsel %vm9623_vm10, %v9438_v37, %v9434_v44  ;;  %v7574_v7 = vcombine.high %v6742_v1, %v6742_v1  ;;  %v7581_v9 = vrot.slane %v6742_v1, %v20549_v29 }
 0x473   :  { %v9701_v19 = vsel %vm9625_vm11, %v9442_v15, %v9700_v26  ;;  %v6553_v41 = vadd.f32 %v20909_v58, %v18058_v47  ;;  %v6552_v63 = vadd.f32 %v20909_v58, %v18059_v12  ;;  %v6555_v45 = vadd.f32 %v20909_v58, %v18060_v40 }
 0x474   :  { %v9702_v57 = vsel %vm9627_vm12, %v9446_v50, %v9701_v19  ;;  %v7607_v59 = vcombine.high %v21124_v14, %v21124_v14  ;;  %v7588_v54 = vrot.slane %v7574_v7, %v20549_v29  ;;  %v21151_v53 = vadd.f32 %v20909_v58, %v18061_v30 }
 0x475   :  { %v9703_v23 = vsel %vm9629_vm13, %v9450_v46, %v9702_v57  ;;  %vm6617_vm3 = vcmp.ge.f32.partialorder %v6553_v41, 0.0  ;;  %v6681_v13 = vmul.f32 0.01, %v6553_v41  ;;  %vm6616_vm5 = vcmp.ge.f32.partialorder %v6552_v63, 0.0 }
 0x476   :  { %v9704_v28 = vsel %vm9631_vm14, %v9454_v56, %v9703_v23  ;;  %v7589_v3 = vcombine.high %v7581_v9, %v7581_v9  ;;  %v6680_v8 = vmul.f32 0.01, %v6552_v63  ;;  %vm6619_vm6 = vcmp.ge.f32.partialorder %v6555_v45, 0.0 }
 0x477   :  { %v9705_v34 = vsel %vm9633_vm15, %v9458_v38, %v9704_v28  ;;  %v7590_v32 = vcombine.high %v7588_v54, %v7588_v54  ;;  %v6745_v27 = vsel %vm6617_vm3, %v6553_v41, %v6681_v13  ;;  %v6683_v33 = vmul.f32 0.01, %v6555_v45 }
 0x478   :  { %v9706_v55 = vsel %vm9635_vm0, %v9462_v36, %v9705_v34  ;;  %v7625_v62 = vcombine.high %v6745_v27, %v6745_v27  ;;  %v7632_v39 = vrot.slane %v6745_v27, %v20549_v29  ;;  %v6744_v22 = vsel %vm6616_vm5, %v6552_v63, %v6680_v8 }
 0x479   :  { %9768 = vst.msk [vmem:[#allocation3 + $0xd1] sm:$0xff] %vm8938_vm4, %v9706_v55  ;;  %v7608_v46 = vcombine.high %v6744_v22, %v6744_v22  ;;  %v7615_v44 = vrot.slane %v6744_v22, %v20549_v29  ;;  %v6747_v56 = vsel %vm6619_vm6, %v6555_v45, %v6683_v33  ;;  %vm6618_vm7 = vcmp.ge.f32.partialorder %v21151_v53, 0.0 }
 0x47a   :  { %v6682_v17 = vmul.f32 0.01, %v21151_v53  ;;  %v7639_v38 = vrot.slane %v7625_v62, %v20549_v29  ;;  %v7640_v18 = vcombine.high %v7632_v39, %v7632_v39  ;;  %v8262_v37 = vmax.f32 %v21119_v11, %v7632_v39 }
 0x47b   :  { %v7659_v36 = vcombine.high %v6747_v56, %v6747_v56  ;;  %v7622_v15 = vrot.slane %v7608_v46, %v20549_v29  ;;  %v7623_v42 = vcombine.high %v7615_v44, %v7615_v44  ;;  %v8258_v35 = vmax.f32 %v7581_v9, %v7615_v44 }
 0x47c   :  { %v21166_v47 = vrot.slane %v6747_v56, %v20549_v29  ;;  %v7641_v1 = vcombine.high %v7639_v38, %v7639_v38  ;;  %v8263_v2 = vmax.f32 %v7606_v25, %v7640_v18  ;;  %v8264_v12 = vmax.f32 %v21124_v14, %v7639_v38  ;;  %v22571_v56 = vld [vmem:[#allocation28_spill] sm:$0xff] }
 0x47d   :  { %v15199_v52 = vrot.slane %v8262_v37, 9  ;;  %v7624_v40 = vcombine.high %v7622_v15, %v7622_v15  ;;  %v8259_v0 = vmax.f32 %v7589_v3, %v7623_v42  ;;  %v8260_v30 = vmax.f32 %v7588_v54, %v7622_v15 }
 0x47e   :  { %v15195_v50 = vrot.slane %v8258_v35, 9  ;;  %v8265_v26 = vmax.f32 %v7607_v59, %v7641_v1  ;;  %v15200_v7 = vrot.slane %v8263_v2, 9  ;;  %v15201_v11 = vrot.slane %v8264_v12, 9  ;;  %v22572_v1 = vld [vmem:[#allocation29_spill] sm:$0xff] }
 0x47f   :  { %v8902_v19 = vmax.f32 %v8262_v37, %v15199_v52  ;;  %v8261_v41 = vmax.f32 %v7590_v32, %v7624_v40  ;;  %v15196_v63 = vrot.slane %v8259_v0, 9  ;;  %v15197_v45 = vrot.slane %v8260_v30, 9  ;;  %v22574_v40 = vld [vmem:[#allocation31_spill] sm:$0xff] }
 0x480   :  { %v8898_v9 = vmax.f32 %v8258_v35, %v15195_v50  ;;  %v15202_v57 = vrot.slane %v8265_v26, 9  ;;  %v8903_v23 = vmax.f32 %v8263_v2, %v15200_v7  ;;  %v8904_v13 = vmax.f32 %v8264_v12, %v15201_v11  ;;  %v9805_v28 = vld [vmem:[#allocation3 + $0xd1] sm:$0xff] }
 0x481   :  { %v9482_v25 = vrot.slane %v8902_v19, %v20560_v43  ;;  %v15198_v14 = vrot.slane %v8261_v41, 9  ;;  %v8899_v8 = vmax.f32 %v8259_v0, %v15196_v63  ;;  %v8900_v34 = vmax.f32 %v8260_v30, %v15197_v45  ;;  %17332 = vmatmul.mubr.msk.f32.gmra.mrb[74].mxu1 %vm8938_vm4, %v9805_v28  ;;  %v22573_v12 = vld [vmem:[#allocation30_spill] sm:$0xff] }
 0x482   :  { %v9466_v54 = vrot.slane %v8898_v9, %v20560_v43  ;;  %v8905_v59 = vmax.f32 %v8265_v26, %v15202_v57  ;;  %v9486_v3 = vrot.slane %v8903_v23, %v20560_v43  ;;  %v9490_v32 = vrot.slane %v8904_v13, %v20560_v43 }
 0x483   :  { %v7673_v27 = vrot.slane %v7659_v36, %v20549_v29  ;;  %v8901_v33 = vmax.f32 %v8261_v41, %v15198_v14  ;;  %v9470_v55 = vrot.slane %v8899_v8, %v20560_v43  ;;  %v9474_v62 = vrot.slane %v8900_v34, %v20560_v43 }
 0x484   :  { %v7674_v39 = vcombine.high %v21166_v47, %v21166_v47  ;;  %v9494_v22 = vrot.slane %v8905_v59, %v20560_v43  ;;  %v6746_v44 = vsel %vm6618_vm7, %v21151_v53, %v6682_v17  ;;  %v18062_v38 = vadd.f32 %v20869_v5, %v22571_v56 }
 0x485   :  { %v7675_v46 = vcombine.high %v7673_v27, %v7673_v27  ;;  %v9478_v18 = vrot.slane %v8901_v33, %v20560_v43  ;;  %v9707_v37 = vsel %vm9623_vm10, %v9470_v55, %v9466_v54  ;;  %v7642_v36 = vcombine.high %v6746_v44, %v6746_v44 }
 0x486   :  { %v7649_v15 = vrot.slane %v6746_v44, %v20549_v29  ;;  %v9708_v42 = vsel %vm9625_vm11, %v9474_v62, %v9707_v37  ;;  %v6557_v35 = vadd.f32 %v20909_v58, %v18062_v38  ;;  %v18063_v2 = vadd.f32 %v20884_v48, %v22572_v1  ;;  %v21202_v58 = vld [vmem:[%s22462_s2] ss:$0 sm:$0xff]  ;;  %s18804_s2 = smov 28  }
 0x487   :  { %v18064_v53 = vadd.f32 %v20890_v10, %v22573_v12  ;;  %v9709_v17 = vsel %vm9627_vm12, %v9478_v18, %v9708_v42  ;;  %v7656_v5 = vrot.slane %v7642_v36, %v20549_v29  ;;  %v18065_v0 = vadd.f32 %v20912_v16, %v22574_v40 }
 0x488   :  { %v7657_v52 = vcombine.high %v7649_v15, %v7649_v15  ;;  %v9710_v30 = vsel %vm9629_vm13, %v9482_v25, %v9709_v17  ;;  %vm6621_vm8 = vcmp.ge.f32.partialorder %v6557_v35, 0.0  ;;  %v6685_v50 = vmul.f32 0.01, %v6557_v35 }
 0x489   :  { %v6556_v48 = vadd.f32 %v21202_v58, %v18063_v2  ;;  %v9711_v10 = vsel %vm9631_vm14, %v9486_v3, %v9710_v30  ;;  %v7658_v26 = vcombine.high %v7656_v5, %v7656_v5  ;;  %v6559_v7 = vadd.f32 %v21202_v58, %v18064_v53  ;;  %v22575_v3 = vld [vmem:[#allocation32_spill] sm:$0xff] }
 0x48a   :  { %v6558_v11 = vadd.f32 %v21202_v58, %v18065_v0  ;;  %v9712_v16 = vsel %vm9633_vm15, %v9490_v32, %v9711_v10  ;;  %v6749_v19 = vsel %vm6621_vm8, %v6557_v35, %v6685_v50  ;;  %v18066_v32 = vadd.f32 %v20926_v21, %v22575_v3  ;;  %v22577_v3 = vld [vmem:[#allocation34_spill] sm:$0xff] }
 0x48b   :  { %vm6620_vm9 = vcmp.ge.f32.partialorder %v6556_v48, 0.0  ;;  %v6684_v41 = vmul.f32 0.01, %v6556_v48  ;;  %v9713_v63 = vsel %vm9635_vm0, %v9494_v22, %v9712_v16  ;;  %v7693_v45 = vcombine.high %v6749_v19, %v6749_v19 }
 0x48c   :  { %v7700_v9 = vrot.slane %v6749_v19, %v20549_v29  ;;  %vm6623_vm1 = vcmp.ge.f32.partialorder %v6559_v7, 0.0  ;;  %9769 = vst.msk [vmem:[#allocation3 + $0xe1] sm:$0xff] %vm8938_vm4, %v9713_v63  ;;  %v6687_v23 = vmul.f32 0.01, %v6559_v7  ;;  %vm6622_vm2 = vcmp.ge.f32.partialorder %v6558_v11, 0.0 }
 0x48d   :  { %v6748_v57 = vsel %vm6620_vm9, %v6556_v48, %v6684_v41  ;;  %v6686_v13 = vmul.f32 0.01, %v6558_v11  ;;  %v7707_v25 = vrot.slane %v7693_v45, %v20549_v29 }
 0x48e   :  { %v7708_v28 = vcombine.high %v7700_v9, %v7700_v9  ;;  %v8270_v14 = vmax.f32 %v21166_v47, %v7700_v9  ;;  %v7676_v8 = vcombine.high %v6748_v57, %v6748_v57  ;;  %v7683_v34 = vrot.slane %v6748_v57, %v20549_v29 }
 0x48f   :  { %v6751_v54 = vsel %vm6623_vm1, %v6559_v7, %v6687_v23  ;;  %v6750_v59 = vsel %vm6622_vm2, %v6558_v11, %v6686_v13  ;;  %v7709_v33 = vcombine.high %v7707_v25, %v7707_v25  ;;  %v8272_v62 = vmax.f32 %v7673_v27, %v7707_v25 }
 0x490   :  { %v8271_v55 = vmax.f32 %v7674_v39, %v7708_v28  ;;  %v15207_v22 = vrot.slane %v8270_v14, 9  ;;  %v7690_v44 = vrot.slane %v7676_v8, %v20549_v29  ;;  %v7691_v56 = vcombine.high %v7683_v34, %v7683_v34  ;;  %v22576_v28 = vld [vmem:[#allocation33_spill] sm:$0xff] }
 0x491   :  { %v8266_v38 = vmax.f32 %v7649_v15, %v7683_v34  ;;  %v7727_v18 = vcombine.high %v6751_v54, %v6751_v54  ;;  %v8273_v37 = vmax.f32 %v7675_v46, %v7709_v33  ;;  %v15209_v47 = vrot.slane %v8272_v62, 9 }
 0x492   :  { %v15208_v36 = vrot.slane %v8271_v55, 9  ;;  %v8910_v42 = vmax.f32 %v8270_v14, %v15207_v22  ;;  %v7692_v35 = vcombine.high %v7690_v44, %v7690_v44  ;;  %v8267_v1 = vmax.f32 %v7657_v52, %v7691_v56 }
 0x493   :  { %v8268_v2 = vmax.f32 %v7656_v5, %v7690_v44  ;;  %v15203_v12 = vrot.slane %v8266_v38, 9  ;;  %v15210_v53 = vrot.slane %v8273_v37, 9  ;;  %v8912_v21 = vmax.f32 %v8272_v62, %v15209_v47  ;;  %v21219_v27 = vld [vmem:[#allocation3 + $0xe1] sm:$0xff] }
 0x494   :  { %v8911_v17 = vmax.f32 %v8271_v55, %v15208_v36  ;;  %v9514_v39 = vrot.slane %v8910_v42, %v20560_v43  ;;  %v8269_v40 = vmax.f32 %v7658_v26, %v7692_v35  ;;  %v15204_v0 = vrot.slane %v8267_v1, 9  ;;  %17334 = vmatprep.mubr.msk.f32.mxu1 %vm8938_vm4, %v21219_v27  ;;  %v22578_v44 = vld [vmem:[#allocation35_spill] sm:$0xff]  ;;  %v22580_v36 = vld [vmem:[#allocation37_spill] sm:$0xff] }
 0x495   :  { %v15205_v30 = vrot.slane %v8268_v2, 9  ;;  %v8906_v15 = vmax.f32 %v8266_v38, %v15203_v12  ;;  %v8913_v46 = vmax.f32 %v8273_v37, %v15210_v53  ;;  %v9522_v5 = vrot.slane %v8912_v21, %v20560_v43 }
 0x496   :  { %v9518_v50 = vrot.slane %v8911_v17, %v20560_v43  ;;  %v7734_v52 = vrot.slane %v6751_v54, %v20549_v29  ;;  %v15206_v48 = vrot.slane %v8269_v40, 9  ;;  %v8907_v10 = vmax.f32 %v8267_v1, %v15204_v0 }
 0x497   :  { %v8908_v7 = vmax.f32 %v8268_v2, %v15205_v30  ;;  %v9498_v11 = vrot.slane %v8906_v15, %v20560_v43  ;;  %v9526_v26 = vrot.slane %v8913_v46, %v20560_v43  ;;  %v7741_v16 = vrot.slane %v7727_v18, %v20549_v29 }
 0x498   :  { %v7742_v19 = vcombine.high %v7734_v52, %v7734_v52  ;;  %v7710_v41 = vcombine.high %v6750_v59, %v6750_v59  ;;  %v8909_v63 = vmax.f32 %v8269_v40, %v15206_v48  ;;  %v9502_v45 = vrot.slane %v8907_v10, %v20560_v43 }
 0x499   :  { %v9506_v9 = vrot.slane %v8908_v7, %v20560_v43  ;;  %v7717_v57 = vrot.slane %v6750_v59, %v20549_v29  ;;  %v7743_v23 = vcombine.high %v7741_v16, %v7741_v16  ;;  %v6561_v25 = vadd.f32 %v21202_v58, %v18066_v32 }
 0x49a   :  { %v21233_v13 = vrot.slane %v7710_v41, %v20549_v29  ;;  %v18067_v14 = vadd.f32 %v20937_v51, %v22576_v28  ;;  %v9510_v8 = vrot.slane %v8909_v63, %v20560_v43  ;;  %v9714_v34 = vsel %vm9623_vm10, %v9502_v45, %v9498_v11 }
 0x49b   :  { %v7725_v54 = vcombine.high %v7717_v57, %v7717_v57  ;;  %v18068_v33 = vadd.f32 %v20944_v61, %v22577_v3  ;;  %v9715_v55 = vsel %vm9625_vm11, %v9506_v9, %v9714_v34  ;;  %vm6625_vm3 = vcmp.ge.f32.partialorder %v6561_v25, 0.0  ;;  %v22579_v61 = vld [vmem:[#allocation36_spill] sm:$0xff] }
 0x49c   :  { %v7726_v59 = vcombine.high %v21233_v13, %v21233_v13  ;;  %v6689_v62 = vmul.f32 0.01, %v6561_v25  ;;  %v9716_v32 = vsel %vm9627_vm12, %v9510_v8, %v9715_v55  ;;  %v6560_v22 = vadd.f32 %v21202_v58, %v18067_v14 }
 0x49d   :  { %v6563_v51 = vadd.f32 %v21202_v58, %v18068_v33  ;;  %v18069_v56 = vadd.f32 %v20950_v24, %v22578_v44  ;;  %v9717_v38 = vsel %vm9629_vm13, %v9514_v39, %v9716_v32  ;;  %v18070_v37 = vadd.f32 %v20981_v49, %v22579_v61 }
 0x49e   :  { %v6753_v18 = vsel %vm6625_vm3, %v6561_v25, %v6689_v62  ;;  %v21255_v47 = vadd.f32 %v20984_v6, %v22580_v36  ;;  %v9718_v42 = vsel %vm9631_vm14, %v9518_v50, %v9717_v38  ;;  %vm6624_vm5 = vcmp.ge.f32.partialorder %v6560_v22, 0.0 }
 0x49f   :  { %v7761_v35 = vcombine.high %v6753_v18, %v6753_v18  ;;  %v7768_v1 = vrot.slane %v6753_v18, %v20549_v29  ;;  %v9719_v2 = vsel %vm9633_vm15, %v9522_v5, %v9718_v42  ;;  %v6688_v12 = vmul.f32 0.01, %v6560_v22 }
 0x4a0   :  { %vm6627_vm6 = vcmp.ge.f32.partialorder %v6563_v51, 0.0  ;;  %v6691_v24 = vmul.f32 0.01, %v6563_v51  ;;  %v9720_v53 = vsel %vm9635_vm0, %v9526_v26, %v9719_v2  ;;  %v6562_v40 = vadd.f32 %v21202_v58, %v18069_v56 }
 0x4a1   :  { %v7775_v17 = vrot.slane %v7761_v35, %v20549_v29  ;;  %v7776_v49 = vcombine.high %v7768_v1, %v7768_v1  ;;  %v8278_v21 = vmax.f32 %v7734_v52, %v7768_v1  ;;  %9770 = vst.msk [vmem:[#allocation3 + $0xf1] sm:$0xff] %vm8938_vm4, %v9720_v53  ;;  %v6752_v6 = vsel %vm6624_vm5, %v6560_v22, %v6688_v12 }
 0x4a2   :  { %v6755_v39 = vsel %vm6627_vm6, %v6563_v51, %v6691_v24  ;;  %v6565_v0 = vadd.f32 %v21202_v58, %v18070_v37  ;;  %v7744_v5 = vcombine.high %v6752_v6, %v6752_v6  ;;  %v7751_v48 = vrot.slane %v6752_v6, %v20549_v29 }
 0x4a3   :  { %v7777_v30 = vcombine.high %v7775_v17, %v7775_v17  ;;  %v8279_v15 = vmax.f32 %v7742_v19, %v7776_v49  ;;  %v8280_v46 = vmax.f32 %v7741_v16, %v7775_v17  ;;  %v15215_v50 = vrot.slane %v8278_v21, 9 }
 0x4a4   :  { %v7795_v10 = vcombine.high %v6755_v39, %v6755_v39  ;;  %v21267_v7 = vrot.slane %v6755_v39, %v20549_v29  ;;  %v7758_v63 = vrot.slane %v7744_v5, %v20549_v29  ;;  %v7759_v45 = vcombine.high %v7751_v48, %v7751_v48 }
 0x4a5   :  { %v8281_v52 = vmax.f32 %v7743_v23, %v7777_v30  ;;  %v15216_v11 = vrot.slane %v8279_v15, 9  ;;  %v15217_v26 = vrot.slane %v8280_v46, 9  ;;  %v8918_v41 = vmax.f32 %v8278_v21, %v15215_v50 }
 0x4a6   :  { %v8274_v9 = vmax.f32 %v7717_v57, %v7751_v48  ;;  %v21271_v25 = vrot.slane %v7795_v10, %v20549_v29  ;;  %v7760_v8 = vcombine.high %v7758_v63, %v7758_v63  ;;  %v8275_v34 = vmax.f32 %v7725_v54, %v7759_v45 }
 0x4a7   :  { %v15218_v16 = vrot.slane %v8281_v52, 9  ;;  %v8919_v19 = vmax.f32 %v8279_v15, %v15216_v11  ;;  %v8920_v28 = vmax.f32 %v8280_v46, %v15217_v26  ;;  %v9546_v14 = vrot.slane %v8918_v41, %v20560_v43 }
 0x4a8   :  { %v8276_v3 = vmax.f32 %v21233_v13, %v7758_v63  ;;  %v15211_v23 = vrot.slane %v8274_v9, 9  ;;  %v7810_v57 = vcombine.high %v21267_v7, %v21267_v7  ;;  %v21279_v32 = vld [vmem:[#allocation3 + $0xf1] sm:$0xff]  ;;  %v8277_v22 = vmax.f32 %v7726_v59, %v7760_v8 }
 0x4a9   :  { %v8921_v33 = vmax.f32 %v8281_v52, %v15218_v16  ;;  %v9550_v55 = vrot.slane %v8919_v19, %v20560_v43  ;;  %v9554_v62 = vrot.slane %v8920_v28, %v20560_v43  ;;  %v15212_v51 = vrot.slane %v8275_v34, 9  ;;  %17335 = vmatmul.mubr.msk.f32.gmra.mrb[76].mxu1 %vm8938_vm4, %v21279_v32 }
 0x4aa   :  { %v15213_v44 = vrot.slane %v8276_v3, 9  ;;  %v8914_v56 = vmax.f32 %v8274_v9, %v15211_v23  ;;  %v7811_v54 = vcombine.high %v21271_v25, %v21271_v25  ;;  %vm6626_vm7 = vcmp.ge.f32.partialorder %v6562_v40, 0.0 }
 0x4ab   :  { %v9558_v13 = vrot.slane %v8921_v33, %v20560_v43  ;;  %v6690_v38 = vmul.f32 0.01, %v6562_v40  ;;  %v15214_v18 = vrot.slane %v8277_v22, 9  ;;  %v8915_v61 = vmax.f32 %v8275_v34, %v15212_v51 }
 0x4ac   :  { %v8916_v37 = vmax.f32 %v8276_v3, %v15213_v44  ;;  %v9530_v36 = vrot.slane %v8914_v56, %v20560_v43  ;;  %vm6629_vm8 = vcmp.ge.f32.partialorder %v6565_v0, 0.0  ;;  %v6693_v59 = vmul.f32 0.01, %v6565_v0 }
 0x4ad   :  { %v6754_v42 = vsel %vm6626_vm7, %v6562_v40, %v6690_v38  ;;  %v6564_v35 = vadd.f32 %v21202_v58, %v21255_v47  ;;  %v8917_v1 = vmax.f32 %v8277_v22, %v15214_v18  ;;  %v9534_v2 = vrot.slane %v8915_v61, %v20560_v43 }
 0x4ae   :  { %v9538_v12 = vrot.slane %v8916_v37, %v20560_v43  ;;  %v7778_v24 = vcombine.high %v6754_v42, %v6754_v42  ;;  %v7785_v53 = vrot.slane %v6754_v42, %v20549_v29  ;;  %v6757_v17 = vsel %vm6629_vm8, %v6565_v0, %v6693_v59  ;;  %v9791_v37 = vld [vmem:[%s22463_s3 + $0x8] sm:$0xff] }
 0x4af   :  { %vm6628_vm9 = vcmp.ge.f32.partialorder %v6564_v35, 0.0  ;;  %v6692_v49 = vmul.f32 0.01, %v6564_v35  ;;  %v9542_v21 = vrot.slane %v8917_v1, %v20560_v43  ;;  %v9721_v6 = vsel %vm9623_vm10, %v9534_v2, %v9530_v36 }
 0x4b0   :  { %v7792_v39 = vrot.slane %v7778_v24, %v20549_v29  ;;  %v7829_v40 = vcombine.high %v6757_v17, %v6757_v17  ;;  %v9722_v47 = vsel %vm9625_vm11, %v9538_v12, %v9721_v6  ;;  %v7793_v30 = vcombine.high %v7785_v53, %v7785_v53 }
 0x4b1   :  { %v7836_v15 = vrot.slane %v6757_v17, %v20549_v29  ;;  %v6756_v46 = vsel %vm6628_vm9, %v6564_v35, %v6692_v49  ;;  %v9723_v50 = vsel %vm9627_vm12, %v9542_v21, %v9722_v47  ;;  %v22581_v35 = vld [vmem:[#allocation38_spill] sm:$0xff]  ;;  %vm8950_vm6 = vcmask 253952  }
 0x4b2   :  { %v7794_v5 = vcombine.high %v7792_v39, %v7792_v39  ;;  %v7843_v0 = vrot.slane %v7829_v40, %v20549_v29  ;;  %v7812_v48 = vcombine.high %v6756_v46, %v6756_v46  ;;  %v9724_v10 = vsel %vm9629_vm13, %v9546_v14, %v9723_v50 }
 0x4b3   :  { %v7844_v52 = vcombine.high %v7836_v15, %v7836_v15  ;;  %v8286_v11 = vmax.f32 %v21267_v7, %v7836_v15  ;;  %v7819_v26 = vrot.slane %v6756_v46, %v20549_v29  ;;  %v9725_v41 = vsel %vm9631_vm14, %v9550_v55, %v9724_v10  ;;  %v9793_v46 = vld [vmem:[%s22463_s3 + $0x18] sm:$0xff] }
 0x4b4   :  { %v7845_v63 = vcombine.high %v7843_v0, %v7843_v0  ;;  %v8288_v45 = vmax.f32 %v21271_v25, %v7843_v0  ;;  %v7826_v9 = vrot.slane %v7812_v48, %v20549_v29  ;;  %v9726_v16 = vsel %vm9633_vm15, %v9554_v62, %v9725_v41  ;;  %v22584_v48 = vld [vmem:[#allocation41_spill] sm:$0xff] }
 0x4b5   :  { %v8287_v19 = vmax.f32 %v7810_v57, %v7844_v52  ;;  %v15223_v28 = vrot.slane %v8286_v11, 9  ;;  %v7827_v8 = vcombine.high %v7819_v26, %v7819_v26  ;;  %v9727_v34 = vsel %vm9635_vm0, %v9558_v13, %v9726_v16 }
 0x4b6   :  { %v8289_v14 = vmax.f32 %v7811_v54, %v7845_v63  ;;  %v15225_v3 = vrot.slane %v8288_v45, 9  ;;  %v7828_v23 = vcombine.high %v7826_v9, %v7826_v9  ;;  %9771 = vst.msk [vmem:[#allocation3 + $0x101] sm:$0xff] %vm8938_vm4, %v9727_v34  ;;  %v8282_v55 = vmax.f32 %v7785_v53, %v7819_v26  ;;  %v9790_v54 = vld [vmem:[%s22463_s3] sm:$0xff] }
 0x4b7   :  { %v15224_v7 = vrot.slane %v8287_v19, 9  ;;  %v8926_v33 = vmax.f32 %v8286_v11, %v15223_v28  ;;  %v8283_v22 = vmax.f32 %v7793_v30, %v7827_v8  ;;  %v8284_v25 = vmax.f32 %v7792_v39, %v7826_v9  ;;  %v22582_v53 = vld [vmem:[#allocation39_spill] sm:$0xff]  ;;  %v22583_v30 = vld [vmem:[#allocation40_spill] sm:$0xff] }
 0x4b8   :  { %v15226_v51 = vrot.slane %v8289_v14, 9  ;;  %v8285_v44 = vmax.f32 %v7794_v5, %v7828_v23  ;;  %v15219_v38 = vrot.slane %v8282_v55, 9  ;;  %v8928_v57 = vmax.f32 %v8288_v45, %v15225_v3  ;;  %v15271_v34 = vld [vmem:[%s22463_s3 + $0x40] sm:$0xff] }
 0x4b9   :  { %v8927_v56 = vmax.f32 %v8287_v19, %v15224_v7  ;;  %v15220_v62 = vrot.slane %v8283_v22, 9  ;;  %v9578_v18 = vrot.slane %v8926_v33, %v20560_v43  ;;  %v15221_v61 = vrot.slane %v8284_v25, 9 }
 0x4ba   :  { %v15222_v13 = vrot.slane %v8285_v44, 9  ;;  %v8929_v36 = vmax.f32 %v8289_v14, %v15226_v51  ;;  %v8922_v42 = vmax.f32 %v8282_v55, %v15219_v38  ;;  %v18072_v1 = vadd.f32 %v20992_v20, %v22581_v35 }
 0x4bb   :  { %v8923_v59 = vmax.f32 %v8283_v22, %v15220_v62  ;;  %v9582_v2 = vrot.slane %v8927_v56, %v20560_v43  ;;  %v8924_v12 = vmax.f32 %v8284_v25, %v15221_v61  ;;  %v18073_v17 = vadd.f32 %v21026_v31, %v22582_v53  ;;  %v9792_v31 = vld [vmem:[%s22463_s3 + $0x10] sm:$0xff] }
 0x4bc   :  { %v8925_v24 = vmax.f32 %v8285_v44, %v15222_v13  ;;  %v9562_v49 = vrot.slane %v8922_v42, %v20560_v43  ;;  %v6567_v6 = vadd.f32 %v21202_v58, %v18072_v1  ;;  %v17802_v39 = vpack.c.bf16 %v9791_v37, %v9790_v54 }
 0x4bd   :  { %v9566_v21 = vrot.slane %v8923_v59, %v20560_v43  ;;  %v9570_v40 = vrot.slane %v8924_v12, %v20560_v43  ;;  %v6566_v20 = vadd.f32 %v21202_v58, %v18073_v17  ;;  %v18074_v15 = vadd.f32 %v21033_v60, %v22583_v30  ;;  %v21334_v50 = vld [vmem:[#allocation3 + $0x101] sm:$0xff] }
 0x4be   :  { %v9574_v47 = vrot.slane %v8925_v24, %v20560_v43  ;;  %vm6631_vm1 = vcmp.ge.f32.partialorder %v6567_v6, 0.0  ;;  %v6695_v0 = vmul.f32 0.01, %v6567_v6  ;;  %17803 = vmatprep.subr.bf16.mxu1 %v17802_v39  ;;  %v18075_v10 = vadd.f32 %v21037_v4, %v22584_v48  ;;  %17337 = vmatprep.mubr.msk.f32.mxu1 %vm8938_vm4, %v21334_v50 }
 0x4bf   :  { %v9728_v5 = vsel %vm9623_vm10, %v9566_v21, %v9562_v49  ;;  %vm6630_vm2 = vcmp.ge.f32.partialorder %v6566_v20, 0.0  ;;  %v6694_v52 = vmul.f32 0.01, %v6566_v20  ;;  %v6569_v11 = vadd.f32 %v21202_v58, %v18074_v15  ;;  %17805 = vmatpush3.bf16.msra.mxu1 %v17802_v39  ;;  %v9774_v49 = vld [vmem:[#allocation3] sm:$0xff]  ;;  %v15273_v21 = vld [vmem:[%s22463_s3 + $0x50] sm:$0xff] }
 0x4c0   :  { %v9729_v60 = vsel %vm9625_vm11, %v9570_v40, %v9728_v5  ;;  %v6759_v41 = vsel %vm6631_vm1, %v6567_v6, %v6695_v0  ;;  %v6568_v63 = vadd.f32 %v21202_v58, %v18075_v10  ;;  %v17806_v45 = vpack.c.bf16 %v9793_v46, %v9792_v31  ;;  %v15272_v58 = vld [vmem:[%s22463_s3 + $0x48] sm:$0xff]  ;;  %v15274_v6 = vld [vmem:[%s22463_s3 + $0x58] sm:$0xff] }
 0x4c1   :  { %v9730_v26 = vsel %vm9627_vm12, %v9574_v47, %v9729_v60  ;;  %v9586_v9 = vrot.slane %v8928_v57, %v20560_v43  ;;  %v6758_v16 = vsel %vm6630_vm2, %v6566_v20, %v6694_v52  ;;  %v9590_v19 = vrot.slane %v8929_v36, %v20560_v43 }
 0x4c2   :  { %v9731_v4 = vsel %vm9629_vm13, %v9578_v18, %v9730_v26  ;;  %v7863_v8 = vcombine.high %v6759_v41, %v6759_v41  ;;  %vm6633_vm3 = vcmp.ge.f32.partialorder %v6569_v11, 0.0  ;;  %17807 = vmatprep.subr.bf16.mxu1 %v17806_v45  ;;  %v7870_v3 = vrot.slane %v6759_v41, %v20549_v29  ;;  %v15292_v26 = vld [vmem:[%s22463_s3 + $0x68] sm:$0xff] }
 0x4c3   :  { %v9732_v28 = vsel %vm9631_vm14, %v9582_v2, %v9731_v4  ;;  %v7846_v23 = vcombine.high %v6758_v16, %v6758_v16  ;;  %v6697_v7 = vmul.f32 0.01, %v6569_v11  ;;  %17809 = vmatpush3.bf16.msra.mxu1 %v17806_v45  ;;  %vm6632_vm5 = vcmp.ge.f32.partialorder %v6568_v63, 0.0 }
 0x4c4   :  { %v9733_v14 = vsel %vm9633_vm15, %v9586_v9, %v9732_v28  ;;  %v6696_v22 = vmul.f32 0.01, %v6568_v63  ;;  %v21359_v51 = vpack.c.bf16 %v15272_v58, %v15271_v34  ;;  %v7877_v25 = vrot.slane %v7863_v8, %v20549_v29 }
 0x4c5   :  { %v9734_v33 = vsel %vm9635_vm0, %v9590_v19, %v9733_v14  ;;  %v6761_v55 = vsel %vm6633_vm3, %v6569_v11, %v6697_v7  ;;  %v7878_v38 = vcombine.high %v7870_v3, %v7870_v3  ;;  %v7853_v62 = vrot.slane %v6758_v16, %v20549_v29  ;;  %v15291_v11 = vld [vmem:[%s22463_s3 + $0x60] sm:$0xff] }
 0x4c6   :  { %9772 = vst.msk [vmem:[#allocation3 + $0x111] sm:$0xff] %vm8938_vm4, %v9734_v33  ;;  %v7897_v44 = vcombine.high %v6761_v55, %v6761_v55  ;;  %v7904_v56 = vrot.slane %v6761_v55, %v20549_v29  ;;  %v21365_v57 = vrot.slane %v7846_v23, %v20549_v29  ;;  %v6760_v18 = vsel %vm6632_vm5, %v6568_v63, %v6696_v22 }
 0x4c7   :  { %17811 = vmatprep.subr.bf16.mxu1 %v21359_v51  ;;  %v22585_v61 = vmov 0.0   ;;  %v7880_v36 = vcombine.high %v6760_v18, %v6760_v18  ;;  %v7887_v42 = vrot.slane %v6760_v18, %v20549_v29  ;;  %v7879_v59 = vcombine.high %v7877_v25, %v7877_v25 }
 0x4c8   :  { %8951 = vst.msk [vmem:[#allocation3 + $0x10] sm:$0x1] %vm8950_vm6, %v22585_v61  ;;  %8952 = vst.msk [vmem:[#allocation3 + $0x20] sm:$0x1] %vm8950_vm6, %v22585_v61  ;;  %v7911_v13 = vrot.slane %v7897_v44, %v20549_v29  ;;  %v7912_v54 = vcombine.high %v7904_v56, %v7904_v56  ;;  %v8294_v37 = vmax.f32 %v7870_v3, %v7904_v56  ;;  %vm12643_vm9 = vcmask 519168  }
 0x4c9   :  { %8953 = vst.msk [vmem:[#allocation3 + $0x30] sm:$0x1] %vm8950_vm6, %v22585_v61  ;;  %8954 = vst.msk [vmem:[#allocation3 + $0x40] sm:$0x1] %vm8950_vm6, %v22585_v61  ;;  %v7861_v12 = vcombine.high %v7853_v62, %v7853_v62  ;;  %v7894_v24 = vrot.slane %v7880_v36, %v20549_v29  ;;  %v7895_v53 = vcombine.high %v7887_v42, %v7887_v42  ;;  %vm12697_vm2 = vcmask 523264  }
 0x4ca   :  { %8955 = vst.msk [vmem:[#allocation3 + $0x50] sm:$0x1] %vm8950_vm6, %v22585_v61  ;;  %8956 = vst.msk [vmem:[#allocation3 + $0x60] sm:$0x1] %vm8950_vm6, %v22585_v61  ;;  %v7913_v35 = vcombine.high %v7911_v13, %v7911_v13  ;;  %v8295_v1 = vmax.f32 %v7878_v38, %v7912_v54  ;;  %v8296_v2 = vmax.f32 %v7877_v25, %v7911_v13  ;;  %v15231_v46 = vrot.slane %v8294_v37, 9 }
 0x4cb   :  { %8957 = vst.msk [vmem:[#allocation3 + $0x70] sm:$0x1] %vm8950_vm6, %v22585_v61  ;;  %8958 = vst.msk [vmem:[#allocation3 + $0x80] sm:$0x1] %vm8950_vm6, %v22585_v61  ;;  %v8290_v17 = vmax.f32 %v7853_v62, %v7887_v42  ;;  %v7862_v39 = vcombine.high %v21365_v57, %v21365_v57  ;;  %v7896_v20 = vcombine.high %v7894_v24, %v7894_v24 }
 0x4cc   :  { %8959 = vst.msk [vmem:[#allocation3 + $0xb0] sm:$0x1] %vm8950_vm6, %v22585_v61  ;;  %8960 = vst.msk [vmem:[#allocation3 + $0xc0] sm:$0x1] %vm8950_vm6, %v22585_v61  ;;  %v8297_v40 = vmax.f32 %v7879_v59, %v7913_v35  ;;  %v8291_v30 = vmax.f32 %v7861_v12, %v7895_v53  ;;  %v8292_v15 = vmax.f32 %v21365_v57, %v7894_v24  ;;  %v15232_v5 = vrot.slane %v8295_v1, 9  ;;  %v9782_v35 = vld [vmem:[#allocation3 + $0xa0] sm:$0xff] }
 0x4cd   :  { %8961 = vst.msk [vmem:[#allocation3 + $0xd0] sm:$0x1] %vm8950_vm6, %v22585_v61  ;;  %8962 = vst.msk [vmem:[#allocation3 + $0xe0] sm:$0x1] %vm8950_vm6, %v22585_v61  ;;  %v21443_v47 = vld [vmem:[#allocation3 + $0x111] sm:$0xff]  ;;  %v15227_v31 = vrot.slane %v8290_v17, 9  ;;  %v17814_v0 = vpack.c.bf16 %v15274_v6, %v15273_v21  ;;  %v8293_v48 = vmax.f32 %v7862_v39, %v7896_v20  ;;  %v8934_v28 = vmax.f32 %v8294_v37, %v15231_v46 }
 0x4ce   :  { %8963 = vst.msk [vmem:[#allocation3 + $0xf0] sm:$0x1] %vm8950_vm6, %v22585_v61  ;;  %8964 = vst.msk [vmem:[#allocation3 + $0x100] sm:$0x1] %vm8950_vm6, %v22585_v61  ;;  %17338 = vmatmul.mubr.msk.f32.gmra.mrb[78].mxu1 %vm8938_vm4, %v21443_v47  ;;  %v15228_v10 = vrot.slane %v8291_v30, 9  ;;  %v15229_v60 = vrot.slane %v8292_v15, 9  ;;  %v8935_v8 = vmax.f32 %v8295_v1, %v15232_v5  ;;  %v17818_v34 = vpack.c.bf16 %v15292_v26, %v15291_v11 }
 0x4cf   :  { %8965 = vst.msk [vmem:[#allocation3 + $0x110] sm:$0x1] %vm8950_vm6, %v22585_v61  ;;  %8966 = vst.msk [vmem:[#allocation3 + $0x120] sm:$0x1] %vm8950_vm6, %v22585_v61  ;;  %17348 = vmatprep.mubr.msk.f32.mxu1 %vm8938_vm4, %v9774_v49  ;;  %v8930_v52 = vmax.f32 %v8290_v17, %v15227_v31  ;;  %v15233_v41 = vrot.slane %v8296_v2, 9  ;;  %v21455_v63 = vld [vmem:[#allocation3 + $0x10] sm:$0xff]  ;;  %v9610_v44 = vrot.slane %v8934_v28, %v20560_v43 }
 0x4d0   :  { %8967 = vst.msk [vmem:[#allocation3 + $0x19] sm:$0x1] %vm8950_vm6, %v22585_v61  ;;  %8968 = vst.msk [vmem:[#allocation3 + $0x29] sm:$0x1] %vm8950_vm6, %v22585_v61  ;;  %v15234_v45 = vrot.slane %v8297_v40, 9  ;;  %v15230_v9 = vrot.slane %v8293_v48, 9  ;;  %v8931_v4 = vmax.f32 %v8291_v30, %v15228_v10  ;;  %v8932_v16 = vmax.f32 %v8292_v15, %v15229_v60 }
 0x4d1   :  { %8969 = vst.msk [vmem:[#allocation3 + $0x39] sm:$0x1] %vm8950_vm6, %v22585_v61  ;;  %8970 = vst.msk [vmem:[#allocation3 + $0x49] sm:$0x1] %vm8950_vm6, %v22585_v61  ;;  %v21459_v19 = vld [vmem:[#allocation3 + $0x20] sm:$0xff]  ;;  %v9594_v14 = vrot.slane %v8930_v52, %v20560_v43  ;;  %v8936_v7 = vmax.f32 %v8296_v2, %v15233_v41  ;;  %v21467_v33 = vld [vmem:[#allocation3 + $0x30] sm:$0xff]  ;;  %v9614_v38 = vrot.slane %v8935_v8, %v20560_v43 }
 0x4d2   :  { %8971 = vst.msk [vmem:[#allocation3 + $0x59] sm:$0x1] %vm8950_vm6, %v22585_v61  ;;  %8972 = vst.msk [vmem:[#allocation3 + $0x69] sm:$0x1] %vm8950_vm6, %v22585_v61  ;;  %17349 = vmatmul.mubr.msk.f32.vlgmr.msra.gmra.mrb[64].mxu1 %vm8938_vm4, %v21455_v63  ;;  %v8933_v58 = vmax.f32 %v8293_v48, %v15230_v9  ;;  %v9598_v3 = vrot.slane %v8931_v4, %v20560_v43  ;;  %v9602_v23 = vrot.slane %v8932_v16, %v20560_v43  ;;  %v21473_v25 = vld [vmem:[#allocation3 + $0x40] sm:$0xff]  ;;  %v21483_v13 = vld [vmem:[#allocation3 + $0x50] sm:$0xff] }
 0x4d3   :  { %8973 = vst.msk [vmem:[#allocation3 + $0x79] sm:$0x1] %vm8950_vm6, %v22585_v61  ;;  %8974 = vst.msk [vmem:[#allocation3 + $0x89] sm:$0x1] %vm8950_vm6, %v22585_v61  ;;  %17813 = vmatpush3.bf16.msra.mxu1 %v21359_v51  ;;  %17351 = vmatprep.mubr.msk.f32.mxu1 %vm8938_vm4, %v21459_v19  ;;  %v8937_v55 = vmax.f32 %v8297_v40, %v15234_v45  ;;  %v9618_v57 = vrot.slane %v8936_v7, %v20560_v43  ;;  %v21489_v36 = vld [vmem:[#allocation3 + $0x60] sm:$0xff]  ;;  %v21496_v1 = vld [vmem:[#allocation3 + $0x70] sm:$0xff] }
 0x4d4   :  { %8975 = vst.msk [vmem:[#allocation3 + $0xb9] sm:$0x1] %vm8950_vm6, %v22585_v61  ;;  %8976 = vst.msk [vmem:[#allocation3 + $0xc9] sm:$0x1] %vm8950_vm6, %v22585_v61  ;;  %17815 = vmatprep.subr.bf16.mxu1 %v17814_v0  ;;  %v9606_v22 = vrot.slane %v8933_v58, %v20560_v43  ;;  %v9735_v51 = vsel %vm9623_vm10, %v9598_v3, %v9594_v14  ;;  %v21501_v2 = vld [vmem:[#allocation3 + $0xb0] sm:$0xff]  ;;  %v21505_v12 = vld [vmem:[#allocation3 + $0xc0] sm:$0xff] }
 0x4d5   :  { %8977 = vst.msk [vmem:[#allocation3 + $0xd9] sm:$0x1] %vm8950_vm6, %v22585_v61  ;;  %8978 = vst.msk [vmem:[#allocation3 + $0xe9] sm:$0x1] %vm8950_vm6, %v22585_v61  ;;  %v9736_v56 = vsel %vm9625_vm11, %v9602_v23, %v9735_v51  ;;  %v9622_v54 = vrot.slane %v8937_v55, %v20560_v43  ;;  %v21509_v24 = vld [vmem:[#allocation3 + $0xd0] sm:$0xff]  ;;  %v21513_v53 = vld [vmem:[#allocation3 + $0xe0] sm:$0xff] }
 0x4d6   :  { %8979 = vst.msk [vmem:[#allocation3 + $0xf9] sm:$0x1] %vm8950_vm6, %v22585_v61  ;;  %8980 = vst.msk [vmem:[#allocation3 + $0x109] sm:$0x1] %vm8950_vm6, %v22585_v61  ;;  %17352 = vmatmul.mubr.msk.f32.gmra.mrb[66].mxu1 %vm8938_vm4, %v21467_v33  ;;  %v9737_v62 = vsel %vm9627_vm12, %v9606_v22, %v9736_v56  ;;  %v21517_v17 = vld [vmem:[#allocation3 + $0xf0] sm:$0xff]  ;;  %v21521_v49 = vld [vmem:[#allocation3 + $0x100] sm:$0xff] }
 0x4d7   :  { %8981 = vst.msk [vmem:[#allocation3 + $0x119] sm:$0x1] %vm8950_vm6, %v22585_v61  ;;  %8982 = vst.msk [vmem:[#allocation3 + $0x129] sm:$0x1] %vm8950_vm6, %v22585_v61  ;;  %17354 = vmatprep.mubr.msk.f32.mxu1 %vm8938_vm4, %v21473_v25  ;;  %17817 = vmatpush3.bf16.msra.mxu1 %v17814_v0  ;;  %v9738_v18 = vsel %vm9629_vm13, %v9610_v44, %v9737_v62  ;;  %v10201_v21 = vld [vmem:[#allocation3 + $0x2] sm:$0xff]  ;;  %v21525_v6 = vld [vmem:[#allocation3 + $0x110] sm:$0xff] }
 0x4d8   :  { %17819 = vmatprep.subr.bf16.mxu1 %v17818_v34  ;;  %v9739_v37 = vsel %vm9631_vm14, %v9614_v38, %v9738_v18  ;;  %v15293_v39 = vld [vmem:[%s22463_s3 + $0x70] sm:$0xff]  ;;  %v15294_v40 = vld [vmem:[%s22463_s3 + $0x78] sm:$0xff]  ;;  %v15311_v15 = vld [vmem:[%s22463_s3 + $0x80] sm:$0xff]  ;;  %vm12427_vm13 = vcmask 521216   ;;  %vm12434_vm14 = vcmask 516096  }
 0x4d9   :  { %v9740_v42 = vsel %vm9633_vm15, %v9618_v57, %v9739_v37  ;;  %v17822_v20 = vpack.c.bf16 %v15294_v40, %v15293_v39  ;;  %v21536_v30 = vld [vmem:[#allocation3 + $0x12] sm:$0xff]  ;;  %v15312_v31 = vld [vmem:[%s22463_s3 + $0x88] sm:$0xff]  ;;  %v15331_v14 = vld [vmem:[%s22463_s3 + $0xa0] sm:$0xff]  ;;  %12428 = vst.msk [vmem:[#allocation4] sm:$0x3f] %vm12427_vm13, %v22585_v61 }
 0x4da   :  { %17355 = vmatmul.mubr.msk.f32.gmra.mrb[68].mxu1 %vm8938_vm4, %v21483_v13  ;;  %v9741_v59 = vsel %vm9635_vm0, %v9622_v54, %v9740_v42  ;;  %v21546_v46 = vld [vmem:[#allocation3 + $0x22] sm:$0xff]  ;;  %v17826_v5 = vpack.c.bf16 %v15312_v31, %v15311_v15  ;;  %v21550_v0 = vld [vmem:[#allocation3 + $0x32] sm:$0xff]  ;;  %12431 = vst.msk [vmem:[#allocation4 + $0x28] sm:$0x3f] %vm12427_vm13, %v22585_v61  ;;  %12429 = vst.msk [vmem:[#allocation4 + $0x30] sm:$0x3f] %vm12427_vm13, %v22585_v61 }
 0x4db   :  { %17357 = vmatprep.mubr.msk.f32.mxu1 %vm8938_vm4, %v21489_v36  ;;  %9773 = vst.msk [vmem:[#allocation3 + $0x121] sm:$0xff] %vm8938_vm4, %v9741_v59  ;;  %v21554_v48 = vld [vmem:[#allocation3 + $0x42] sm:$0xff]  ;;  %v21558_v10 = vld [vmem:[#allocation3 + $0x52] sm:$0xff] }
 0x4dc   :  { %v21562_v60 = vld [vmem:[#allocation3 + $0x62] sm:$0xff]  ;;  %v21566_v11 = vld [vmem:[#allocation3 + $0x72] sm:$0xff]  ;;  %12432 = vst.msk [vmem:[#allocation4 + $0x58] sm:$0x3f] %vm12427_vm13, %v22585_v61 }
 0x4dd   :  { %v10209_v52 = vld [vmem:[#allocation3 + $0xa2] sm:$0xff]  ;;  %v21571_v26 = vld [vmem:[#allocation3 + $0xb2] sm:$0xff]  ;;  %12435 = vst.msk [vmem:[#allocation4 + $0x8] sm:$0x1] %vm12434_vm14, %v22585_v61  ;;  %12436 = vst.msk [vmem:[#allocation4 + $0x10] sm:$0x1] %vm12434_vm14, %v22585_v61 }
 0x4de   :  { %17358 = vmatmul.mubr.msk.f32.gmra.mrb[70].mxu1 %vm8938_vm4, %v21496_v1  ;;  %v21575_v41 = vld [vmem:[#allocation3 + $0xc2] sm:$0xff]  ;;  %v21579_v45 = vld [vmem:[#allocation3 + $0xd2] sm:$0xff]  ;;  %12437 = vst.msk [vmem:[#allocation4 + $0x18] sm:$0x1] %vm12434_vm14, %v22585_v61  ;;  %12438 = vst.msk [vmem:[#allocation4 + $0x20] sm:$0x1] %vm12434_vm14, %v22585_v61 }
 0x4df   :  { %17360 = vmatprep.mubr.msk.f32.mxu1 %vm8938_vm4, %v9782_v35  ;;  %v21583_v9 = vld [vmem:[#allocation3 + $0xe2] sm:$0xff]  ;;  %v21587_v4 = vld [vmem:[#allocation3 + $0xf2] sm:$0xff]  ;;  %12439 = vst.msk [vmem:[#allocation4 + $0x38] sm:$0x1] %vm12434_vm14, %v22585_v61  ;;  %12440 = vst.msk [vmem:[#allocation4 + $0x40] sm:$0x1] %vm12434_vm14, %v22585_v61 }
 0x4e0   :  { %v21591_v16 = vld [vmem:[#allocation3 + $0x102] sm:$0xff]  ;;  %v21595_v28 = vld [vmem:[#allocation3 + $0x112] sm:$0xff]  ;;  %12441 = vst.msk [vmem:[#allocation4 + $0x48] sm:$0x1] %vm12434_vm14, %v22585_v61  ;;  %12442 = vst.msk [vmem:[#allocation4 + $0x50] sm:$0x1] %vm12434_vm14, %v22585_v61 }
 0x4e1   :  { %v15313_v8 = vld [vmem:[%s22463_s3 + $0x90] sm:$0xff]  ;;  %v15332_v3 = vld [vmem:[%s22463_s3 + $0xa8] sm:$0xff]  ;;  %v15334_v22 = vld [vmem:[%s22463_s3 + $0xb8] sm:$0xff]  ;;  %12443 = vst.msk [vmem:[#allocation4 + $0xd] sm:$0x1] %vm12434_vm14, %v22585_v61 }
 0x4e2   :  { %17361 = vmatmul.mubr.msk.f32.gmra.mrb[72].mxu1 %vm8938_vm4, %v21501_v2  ;;  %v17834_v23 = vpack.c.bf16 %v15332_v3, %v15331_v14  ;;  %v21643_v7 = vld [vmem:[#allocation3 + $0x120] sm:$0xff]  ;;  %v15333_v55 = vld [vmem:[%s22463_s3 + $0xb0] sm:$0xff]  ;;  %v15352_v62 = vld [vmem:[%s22463_s3 + $0xc8] sm:$0xff]  ;;  %12444 = vst.msk [vmem:[#allocation4 + $0x15] sm:$0x1] %vm12434_vm14, %v22585_v61 }
 0x4e3   :  { %17363 = vmatprep.mubr.msk.f32.mxu1 %vm8938_vm4, %v21505_v12  ;;  %v10661_v51 = vld [vmem:[#allocation3 + $0x11] sm:$0xff]  ;;  %v17838_v44 = vpack.c.bf16 %v15334_v22, %v15333_v55  ;;  %v21654_v56 = vld [vmem:[#allocation3 + $0x21] sm:$0xff]  ;;  %12445 = vst.msk [vmem:[#allocation4 + $0x1d] sm:$0x1] %vm12434_vm14, %v22585_v61  ;;  %12446 = vst.msk [vmem:[#allocation4 + $0x25] sm:$0x1] %vm12434_vm14, %v22585_v61 }
 0x4e4   :  { %v15351_v38 = vld [vmem:[%s22463_s3 + $0xc0] sm:$0xff]  ;;  %v21664_v57 = vld [vmem:[#allocation3 + $0x31] sm:$0xff]  ;;  %v15392_v3 = vld [vmem:[%s22463_s3 + $0x108] sm:$0xff]  ;;  %12447 = vst.msk [vmem:[#allocation4 + $0x3d] sm:$0x1] %vm12434_vm14, %v22585_v61 }
 0x4e5   :  { %v17842_v18 = vpack.c.bf16 %v15352_v62, %v15351_v38  ;;  %v21668_v54 = vld [vmem:[#allocation3 + $0x41] sm:$0xff]  ;;  %v21672_v37 = vld [vmem:[#allocation3 + $0x51] sm:$0xff]  ;;  %12448 = vst.msk [vmem:[#allocation4 + $0x45] sm:$0x1] %vm12434_vm14, %v22585_v61  ;;  %12449 = vst.msk [vmem:[#allocation4 + $0x4d] sm:$0x1] %vm12434_vm14, %v22585_v61 }
 0x4e6   :  { %17364 = vmatmul.mubr.msk.f32.gmra.mrb[74].mxu1 %vm8938_vm4, %v21509_v24  ;;  %v21676_v42 = vld [vmem:[#allocation3 + $0x61] sm:$0xff]  ;;  %v21680_v59 = vld [vmem:[#allocation3 + $0x71] sm:$0xff]  ;;  %12450 = vst.msk [vmem:[#allocation4 + $0x55] sm:$0x1] %vm12434_vm14, %v22585_v61 }
 0x4e7   :  { %17366 = vmatprep.mubr.msk.f32.mxu1 %vm8938_vm4, %v21513_v53  ;;  %v21684_v35 = vld [vmem:[#allocation3 + $0x81] sm:$0xff]  ;;  %v21693_v39 = vld [vmem:[#allocation3 + $0xd1] sm:$0xff] }
 0x4e8   :  { %v21705_v40 = vld [vmem:[#allocation3 + $0x121] sm:$0xff]  ;;  %v15354_v15 = vld [vmem:[%s22463_s3 + $0xd8] sm:$0xff]  ;;  %v12662_v55 = vld [vmem:[%s22465_s5 + $0x10] sm:$0xff] }
 0x4e9   :  { %v15371_v31 = vld [vmem:[%s22463_s3 + $0xe0] sm:$0xff] }
 0x4ea   :  { %17367 = vmatmul.mubr.msk.f32.gmra.mrb[76].mxu1 %vm8938_vm4, %v21517_v17  ;;  %v15391_v14 = vld [vmem:[%s22463_s3 + $0x100] sm:$0xff] }
 0x4eb   :  { %17369 = vmatprep.mubr.msk.f32.mxu1 %vm8938_vm4, %v21521_v49 }
 0x4ee   :  { %17370 = vmatmul.mubr.msk.f32.gmra.mrb[78].mxu1 %vm8938_vm4, %v21525_v6 }
 0x4ef   :  { %17380 = vmatprep.mubr.msk.f32.mxu1 %vm8938_vm4, %v10201_v21  ;;  %v21689_v21 = vld [vmem:[#allocation3 + $0xc1] sm:$0xff] }
 0x4f2   :  { %17381 = vmatmul.mubr.msk.f32.vlgmr.msra.gmra.mrb[64].mxu1 %vm8938_vm4, %v21536_v30 }
 0x4f3   :  { %17821 = vmatpush3.bf16.msra.mxu1 %v17818_v34  ;;  %17383 = vmatprep.mubr.msk.f32.mxu1 %vm8938_vm4, %v21546_v46  ;;  %v15314_v34 = vld [vmem:[%s22463_s3 + $0x98] sm:$0xff] }
 0x4f4   :  { %17823 = vmatprep.subr.bf16.mxu1 %v17822_v20  ;;  %v17830_v58 = vpack.c.bf16 %v15314_v34, %v15313_v8  ;;  %v21753_v8 = vld [vmem:[#allocation3 + $0x122] sm:$0xff]  ;;  %v15374_v34 = vld [vmem:[%s22463_s3 + $0xf8] sm:$0xff] }
 0x4f6   :  { %17384 = vmatmul.mubr.msk.f32.gmra.mrb[66].mxu1 %vm8938_vm4, %v21550_v0 }
 0x4f7   :  { %17386 = vmatprep.mubr.msk.f32.mxu1 %vm8938_vm4, %v21554_v48  ;;  %17825 = vmatpush3.bf16.msra.mxu1 %v17822_v20  ;;  %v15353_v20 = vld [vmem:[%s22463_s3 + $0xd0] sm:$0xff] }
 0x4f8   :  { %17827 = vmatprep.subr.bf16.mxu1 %v17826_v5 }
 0x4fa   :  { %17387 = vmatmul.mubr.msk.f32.gmra.mrb[68].mxu1 %vm8938_vm4, %v21558_v10 }
 0x4fb   :  { %17389 = vmatprep.mubr.msk.f32.mxu1 %vm8938_vm4, %v21562_v60 }
 0x4fe   :  { %17390 = vmatmul.mubr.msk.f32.gmra.mrb[70].mxu1 %vm8938_vm4, %v21566_v11 }
 0x4ff   :  { %17392 = vmatprep.mubr.msk.f32.mxu1 %vm8938_vm4, %v10209_v52 }
 0x502   :  { %17393 = vmatmul.mubr.msk.f32.gmra.mrb[72].mxu1 %vm8938_vm4, %v21571_v26 }
 0x503   :  { %17395 = vmatprep.mubr.msk.f32.mxu1 %vm8938_vm4, %v21575_v41 }
 0x506   :  { %17396 = vmatmul.mubr.msk.f32.gmra.mrb[74].mxu1 %vm8938_vm4, %v21579_v45 }
 0x507   :  { %17398 = vmatprep.mubr.msk.f32.mxu1 %vm8938_vm4, %v21583_v9 }
 0x50a   :  { %17399 = vmatmul.mubr.msk.f32.gmra.mrb[76].mxu1 %vm8938_vm4, %v21587_v4 }
 0x50b   :  { %17401 = vmatprep.mubr.msk.f32.mxu1 %vm8938_vm4, %v21591_v16 }
 0x50e   :  { %17402 = vmatmul.mubr.msk.f32.gmra.mrb[78].mxu1 %vm8938_vm4, %v21595_v28 }
 0x50f   :  { %17412 = vmatprep.mubr.msk.f32.mxu1 %vm8938_vm4, %v21455_v63  ;;  %v21625_v63 = vld [vmem:[#allocation3 + $0x80] sm:$0xff] }
 0x512   :  { %17413 = vmatmul.mubr.msk.f32.vlgmr.msra.gmra.mrb[64].mxu1 %vm8938_vm4, %v21459_v19 }
 0x513   :  { %17829 = vmatpush3.bf16.msra.mxu1 %v17826_v5  ;;  %17415 = vmatprep.mubr.msk.f32.mxu1 %vm8938_vm4, %v21467_v33  ;;  %v15372_v5 = vld [vmem:[%s22463_s3 + $0xe8] sm:$0xff] }
 0x514   :  { %17831 = vmatprep.subr.bf16.mxu1 %v17830_v58  ;;  %v17850_v52 = vpack.c.bf16 %v15372_v5, %v15371_v31 }
 0x516   :  { %17416 = vmatmul.mubr.msk.f32.gmra.mrb[66].mxu1 %vm8938_vm4, %v21473_v25 }
 0x517   :  { %17418 = vmatprep.mubr.msk.f32.mxu1 %vm8938_vm4, %v21483_v13  ;;  %17833 = vmatpush3.bf16.msra.mxu1 %v17830_v58 }
 0x518   :  { %17835 = vmatprep.subr.bf16.mxu1 %v17834_v23 }
 0x51a   :  { %17419 = vmatmul.mubr.msk.f32.gmra.mrb[68].mxu1 %vm8938_vm4, %v21489_v36 }
 0x51b   :  { %17421 = vmatprep.mubr.msk.f32.mxu1 %vm8938_vm4, %v21496_v1 }
 0x51e   :  { %17422 = vmatmul.mubr.msk.f32.gmra.mrb[70].mxu1 %vm8938_vm4, %v21625_v63 }
 0x51f   :  { %17424 = vmatprep.mubr.msk.f32.mxu1 %vm8938_vm4, %v21501_v2  ;;  %v18764_v2 = vld [vmem:[#allocation3 + $0xb1] sm:$0xff] }
 0x522   :  { %17425 = vmatmul.mubr.msk.f32.gmra.mrb[72].mxu1 %vm8938_vm4, %v21505_v12 }
 0x523   :  { %17427 = vmatprep.mubr.msk.f32.mxu1 %vm8938_vm4, %v21509_v24 }
 0x526   :  { %17428 = vmatmul.mubr.msk.f32.gmra.mrb[74].mxu1 %vm8938_vm4, %v21513_v53 }
 0x527   :  { %17430 = vmatprep.mubr.msk.f32.mxu1 %vm8938_vm4, %v21517_v17 }
 0x52a   :  { %17431 = vmatmul.mubr.msk.f32.gmra.mrb[76].mxu1 %vm8938_vm4, %v21521_v49 }
 0x52b   :  { %17433 = vmatprep.mubr.msk.f32.mxu1 %vm8938_vm4, %v21525_v6 }
 0x52e   :  { %17434 = vmatmul.mubr.msk.f32.gmra.mrb[78].mxu1 %vm8938_vm4, %v21643_v7 }
 0x52f   :  { %17444 = vmatprep.mubr.msk.f32.mxu1 %vm8938_vm4, %v10661_v51  ;;  %v12663_v51 = vld [vmem:[%s22465_s5 + $0x18] sm:$0xff] }
 0x532   :  { %17445 = vmatmul.mubr.msk.f32.vlgmr.msra.gmra.mrb[64].mxu1 %vm8938_vm4, %v21654_v56 }
 0x533   :  { %17837 = vmatpush3.bf16.msra.mxu1 %v17834_v23  ;;  %17447 = vmatprep.mubr.msk.f32.mxu1 %vm8938_vm4, %v21664_v57  ;;  %v17858_v23 = vpack.c.bf16 %v15392_v3, %v15391_v14 }
 0x534   :  { %17839 = vmatprep.subr.bf16.mxu1 %v17838_v44 }
 0x536   :  { %17448 = vmatmul.mubr.msk.f32.gmra.mrb[66].mxu1 %vm8938_vm4, %v21668_v54 }
 0x537   :  { %17450 = vmatprep.mubr.msk.f32.mxu1 %vm8938_vm4, %v21672_v37  ;;  %17841 = vmatpush3.bf16.msra.mxu1 %v17838_v44  ;;  %v12664_v44 = vld [vmem:[%s22465_s5 + $0x20] sm:$0xff] }
 0x538   :  { %17843 = vmatprep.subr.bf16.mxu1 %v17842_v18 }
 0x53a   :  { %17451 = vmatmul.mubr.msk.f32.gmra.mrb[68].mxu1 %vm8938_vm4, %v21676_v42 }
 0x53b   :  { %17453 = vmatprep.mubr.msk.f32.mxu1 %vm8938_vm4, %v21680_v59 }
 0x53e   :  { %17454 = vmatmul.mubr.msk.f32.gmra.mrb[70].mxu1 %vm8938_vm4, %v21684_v35 }
 0x53f   :  { %17456 = vmatprep.mubr.msk.f32.mxu1 %vm8938_vm4, %v18764_v2 }
 0x542   :  { %17457 = vmatmul.mubr.msk.f32.gmra.mrb[72].mxu1 %vm8938_vm4, %v21689_v21 }
 0x543   :  { %17459 = vmatprep.mubr.msk.f32.mxu1 %vm8938_vm4, %v21693_v39 }
 0x546   :  { %17460 = vmatmul.mubr.msk.f32.gmra.mrb[74].mxu1 %vm8938_vm4, %v21219_v27  ;;  %v17846_v27 = vpack.c.bf16 %v15354_v15, %v15353_v20 }
 0x547   :  { %17462 = vmatprep.mubr.msk.f32.mxu1 %vm8938_vm4, %v21279_v32 }
 0x54a   :  { %17463 = vmatmul.mubr.msk.f32.gmra.mrb[76].mxu1 %vm8938_vm4, %v21334_v50 }
 0x54b   :  { %17465 = vmatprep.mubr.msk.f32.mxu1 %vm8938_vm4, %v21443_v47 }
 0x54e   :  { %17466 = vmatmul.mubr.msk.f32.gmra.mrb[78].mxu1 %vm8938_vm4, %v21705_v40 }
 0x54f   :  { %17476 = vmatprep.mubr.msk.f32.mxu1 %vm8938_vm4, %v21536_v30  ;;  %v21735_v30 = vld [vmem:[#allocation3 + $0x82] sm:$0xff] }
 0x552   :  { %17477 = vmatmul.mubr.msk.f32.vlgmr.msra.gmra.mrb[64].mxu1 %vm8938_vm4, %v21546_v46 }
 0x553   :  { %17845 = vmatpush3.bf16.msra.mxu1 %v17842_v18  ;;  %17479 = vmatprep.mubr.msk.f32.mxu1 %vm8938_vm4, %v21550_v0 }
 0x554   :  { %17847 = vmatprep.subr.bf16.mxu1 %v17846_v27 }
 0x556   :  { %17480 = vmatmul.mubr.msk.f32.gmra.mrb[66].mxu1 %vm8938_vm4, %v21554_v48 }
 0x557   :  { %17482 = vmatprep.mubr.msk.f32.mxu1 %vm8938_vm4, %v21558_v10  ;;  %17849 = vmatpush3.bf16.msra.mxu1 %v17846_v27 }
 0x558   :  { %17851 = vmatprep.subr.bf16.mxu1 %v17850_v52 }
 0x55a   :  { %17483 = vmatmul.mubr.msk.f32.gmra.mrb[68].mxu1 %vm8938_vm4, %v21562_v60 }
 0x55b   :  { %17485 = vmatprep.mubr.msk.f32.mxu1 %vm8938_vm4, %v21566_v11 }
 0x55e   :  { %17486 = vmatmul.mubr.msk.f32.gmra.mrb[70].mxu1 %vm8938_vm4, %v21735_v30 }
 0x55f   :  { %17488 = vmatprep.mubr.msk.f32.mxu1 %vm8938_vm4, %v21571_v26  ;;  %v15373_v26 = vld [vmem:[%s22463_s3 + $0xf0] sm:$0xff] }
 0x560   :  { %v17854_v58 = vpack.c.bf16 %v15374_v34, %v15373_v26 }
 0x562   :  { %17489 = vmatmul.mubr.msk.f32.gmra.mrb[72].mxu1 %vm8938_vm4, %v21575_v41 }
 0x563   :  { %17491 = vmatprep.mubr.msk.f32.mxu1 %vm8938_vm4, %v21579_v45 }
 0x566   :  { %17492 = vmatmul.mubr.msk.f32.gmra.mrb[74].mxu1 %vm8938_vm4, %v21583_v9 }
 0x567   :  { %17494 = vmatprep.mubr.msk.f32.mxu1 %vm8938_vm4, %v21587_v4 }
 0x56a   :  { %17495 = vmatmul.mubr.msk.f32.gmra.mrb[76].mxu1 %vm8938_vm4, %v21591_v16 }
 0x56b   :  { %17497 = vmatprep.mubr.msk.f32.mxu1 %vm8938_vm4, %v21595_v28 }
 0x56e   :  { %17498 = vmatmul.mubr.msk.f32.gmra.mrb[78].mxu1 %vm8938_vm4, %v21753_v8 }
 0x56f   :  { %17508 = vmatprep.mubr.msk.f32.mxu1 %vm8938_vm4, %v21459_v19  ;;  %v11129_v19 = vld [vmem:[#allocation3 + $0x90] sm:$0xff] }
 0x572   :  { %17509 = vmatmul.mubr.msk.f32.vlgmr.msra.gmra.mrb[64].mxu1 %vm8938_vm4, %v21467_v33  ;;  %v11137_v33 = vld [vmem:[#allocation3 + $0x130] sm:$0xff] }
 0x573   :  { %17853 = vmatpush3.bf16.msra.mxu1 %v17850_v52  ;;  %17511 = vmatprep.mubr.msk.f32.mxu1 %vm8938_vm4, %v21473_v25  ;;  %v15393_v25 = vld [vmem:[%s22463_s3 + $0x110] sm:$0xff] }
 0x574   :  { %17855 = vmatprep.subr.bf16.mxu1 %v17854_v58 }
 0x576   :  { %17512 = vmatmul.mubr.msk.f32.gmra.mrb[66].mxu1 %vm8938_vm4, %v21483_v13  ;;  %v15394_v13 = vld [vmem:[%s22463_s3 + $0x118] sm:$0xff]  ;;  %s18816_s3 = smov 64  }
 0x577   :  { %17514 = vmatprep.mubr.msk.f32.mxu1 %vm8938_vm4, %v21489_v36  ;;  %17857 = vmatpush3.bf16.msra.mxu1 %v17854_v58  ;;  %v17862_v36 = vpack.c.bf16 %v15394_v13, %v15393_v25 }
 0x578   :  { %17859 = vmatprep.subr.bf16.mxu1 %v17858_v23 }
 0x57a   :  { %17515 = vmatmul.mubr.msk.f32.gmra.mrb[68].mxu1 %vm8938_vm4, %v21496_v1  ;;  %v11359_v1 = vld [vmem:[#allocation3 + $0x91] sm:$0xff] }
 0x57b   :  { %17517 = vmatprep.mubr.msk.f32.mxu1 %vm8938_vm4, %v21625_v63 }
 0x57e   :  { %17518 = vmatmul.mubr.msk.f32.gmra.mrb[70].mxu1 %vm8938_vm4, %v11129_v19 }
 0x57f   :  { %17520 = vmatprep.mubr.msk.f32.mxu1 %vm8938_vm4, %v21505_v12  ;;  %v18767_v12 = vld [vmem:[#allocation3 + $0xe1] sm:$0xff] }
 0x582   :  { %17521 = vmatmul.mubr.msk.f32.gmra.mrb[72].mxu1 %vm8938_vm4, %v21509_v24  ;;  %v11367_v24 = vld [vmem:[#allocation3 + $0x131] sm:$0xff] }
 0x583   :  { %17523 = vmatprep.mubr.msk.f32.mxu1 %vm8938_vm4, %v21513_v53  ;;  %v15445_v53 = vld [vmem:[%s22465_s5 + $0x48] sm:$0xff] }
 0x586   :  { %17524 = vmatmul.mubr.msk.f32.gmra.mrb[74].mxu1 %vm8938_vm4, %v21517_v17 }
 0x587   :  { %17526 = vmatprep.mubr.msk.f32.mxu1 %vm8938_vm4, %v21521_v49  ;;  %v15446_v49 = vld [vmem:[%s22465_s5 + $0x50] sm:$0xff] }
 0x58a   :  { %17527 = vmatmul.mubr.msk.f32.gmra.mrb[76].mxu1 %vm8938_vm4, %v21525_v6  ;;  %v15447_v6 = vld [vmem:[%s22465_s5 + $0x58] sm:$0xff] }
 0x58b   :  { %17529 = vmatprep.mubr.msk.f32.mxu1 %vm8938_vm4, %v21643_v7 }
 0x58e   :  { %17530 = vmatmul.mubr.msk.f32.gmra.mrb[78].mxu1 %vm8938_vm4, %v11137_v33 }
 0x58f   :  { %17540 = vmatprep.mubr.msk.f32.mxu1 %vm8938_vm4, %v21654_v56  ;;  %v12665_v56 = vld [vmem:[%s22465_s5 + $0x28] sm:$0xff] }
 0x592   :  { %17541 = vmatmul.mubr.msk.f32.vlgmr.msra.gmra.mrb[64].mxu1 %vm8938_vm4, %v21664_v57 }
 0x593   :  { %17861 = vmatpush3.bf16.msra.mxu1 %v17858_v23  ;;  %17543 = vmatprep.mubr.msk.f32.mxu1 %vm8938_vm4, %v21668_v54 }
 0x594   :  { %17863 = vmatprep.subr.bf16.mxu1 %v17862_v36 }
 0x596   :  { %17544 = vmatmul.mubr.msk.f32.gmra.mrb[66].mxu1 %vm8938_vm4, %v21672_v37 }
 0x597   :  { %17546 = vmatprep.mubr.msk.f32.mxu1 %vm8938_vm4, %v21676_v42  ;;  %17865 = vmatpush3.bf16.msra.mxu1 %v17862_v36  ;;  %v21953_v42 = vpack.c.bf16 %v12663_v51, %v12662_v55 }
 0x59a   :  { %17547 = vmatmul.mubr.msk.f32.gmra.mrb[68].mxu1 %vm8938_vm4, %v21680_v59  ;;  %v21955_v59 = vpack.c.bf16 %v12665_v56, %v12664_v44 }
 0x59b   :  { %17549 = vmatprep.mubr.msk.f32.mxu1 %vm8938_vm4, %v21684_v35 }
 0x59e   :  { %17550 = vmatmul.mubr.msk.f32.gmra.mrb[70].mxu1 %vm8938_vm4, %v11359_v1 }
 0x59f   :  { %17552 = vmatprep.mubr.msk.f32.mxu1 %vm8938_vm4, %v21689_v21 }
 0x5a2   :  { %17553 = vmatmul.mubr.msk.f32.gmra.mrb[72].mxu1 %vm8938_vm4, %v21693_v39 }
 0x5a3   :  { %17555 = vmatprep.mubr.msk.f32.mxu1 %vm8938_vm4, %v18767_v12 }
 0x5a6   :  { %17556 = vmatmul.mubr.msk.f32.gmra.mrb[74].mxu1 %vm8938_vm4, %v21279_v32  ;;  %v11589_v32 = vld [vmem:[#allocation3 + $0x92] sm:$0xff] }
 0x5a7   :  { %17558 = vmatprep.mubr.msk.f32.mxu1 %vm8938_vm4, %v21334_v50  ;;  %v11597_v50 = vld [vmem:[#allocation3 + $0x132] sm:$0xff] }
 0x5aa   :  { %17559 = vmatmul.mubr.msk.f32.gmra.mrb[76].mxu1 %vm8938_vm4, %v21443_v47  ;;  %v15444_v47 = vld [vmem:[%s22465_s5 + $0x40] sm:$0xff] }
 0x5ab   :  { %17561 = vmatprep.mubr.msk.f32.mxu1 %vm8938_vm4, %v21705_v40  ;;  %v17866_v17 = vpack.c.bf16 %v15445_v53, %v15444_v47 }
 0x5ad   :  { %17867 = vmatprep.subr.bf16.mxu1 %v17866_v17 }
 0x5ae   :  { %17562 = vmatmul.mubr.msk.f32.gmra.mrb[78].mxu1 %vm8938_vm4, %v11367_v24 }
 0x5af   :  { %17572 = vmatprep.mubr.msk.f32.mxu1 %vm8938_vm4, %v21546_v46  ;;  %v17870_v46 = vpack.c.bf16 %v15447_v6, %v15446_v49 }
 0x5b2   :  { %17573 = vmatmul.mubr.msk.f32.vlgmr.msra.gmra.mrb[64].mxu1 %vm8938_vm4, %v21550_v0  ;;  %v15448_v0 = vld [vmem:[%s22465_s5 + $0x60] sm:$0xff] }
 0x5b3   :  { %17575 = vmatprep.mubr.msk.f32.mxu1 %vm8938_vm4, %v21554_v48  ;;  %17869 = vmatpush3.bf16.msra.mxu1 %v17866_v17  ;;  %v15449_v48 = vld [vmem:[%s22465_s5 + $0x68] sm:$0xff] }
 0x5b4   :  { %17871 = vmatprep.subr.bf16.mxu1 %v17870_v46 }
 0x5b6   :  { %17576 = vmatmul.mubr.msk.f32.gmra.mrb[66].mxu1 %vm8938_vm4, %v21558_v10  ;;  %v17874_v10 = vpack.c.bf16 %v15449_v48, %v15448_v0 }
 0x5b7   :  { %17578 = vmatprep.mubr.msk.f32.mxu1 %vm8938_vm4, %v21562_v60  ;;  %17873 = vmatpush3.bf16.msra.mxu1 %v17870_v46  ;;  %v15450_v60 = vld [vmem:[%s22465_s5 + $0x70] sm:$0xff] }
 0x5b8   :  { %17875 = vmatprep.subr.bf16.mxu1 %v17874_v10 }
 0x5ba   :  { %17579 = vmatmul.mubr.msk.f32.gmra.mrb[68].mxu1 %vm8938_vm4, %v21566_v11  ;;  %v15451_v11 = vld [vmem:[%s22465_s5 + $0x78] sm:$0xff] }
 0x5bb   :  { %17581 = vmatprep.mubr.msk.f32.mxu1 %vm8938_vm4, %v21735_v30  ;;  %17877 = vmatpush3.bf16.msra.mxu1 %v17874_v10 }
 0x5be   :  { %17582 = vmatmul.mubr.msk.f32.gmra.mrb[70].mxu1 %vm8938_vm4, %v11589_v32 }
 0x5bf   :  { %17584 = vmatprep.mubr.msk.f32.mxu1 %vm8938_vm4, %v21575_v41  ;;  %v12660_v41 = vld [vmem:[%s22465_s5] sm:$0xff] }
 0x5c2   :  { %17585 = vmatmul.mubr.msk.f32.gmra.mrb[72].mxu1 %vm8938_vm4, %v21579_v45  ;;  %v17878_v45 = vpack.c.bf16 %v15451_v11, %v15450_v60 }
 0x5c3   :  { %17587 = vmatprep.mubr.msk.f32.mxu1 %vm8938_vm4, %v21583_v9  ;;  %v12661_v9 = vld [vmem:[%s22465_s5 + $0x8] sm:$0xff] }
 0x5c4   :  { %17879 = vmatprep.subr.bf16.mxu1 %v17878_v45 }
 0x5c5   :  { %17881 = vmatpush3.bf16.msra.mxu1 %v17878_v45 }
 0x5c6   :  { %17588 = vmatmul.mubr.msk.f32.gmra.mrb[74].mxu1 %vm8938_vm4, %v21587_v4  ;;  %v21930_v4 = vpack.c.bf16 %v12661_v9, %v12660_v41 }
 0x5c7   :  { %17590 = vmatprep.mubr.msk.f32.mxu1 %vm8938_vm4, %v21591_v16  ;;  %v21936_v16 = vld [vmem:[%s22464_s4] ss:$0 sm:$0xff]  ;;  %s18817_s4 = smov 72  }
 0x5c8   :  { %17883 = vmatprep.subr.bf16.mxu1 %v21930_v4 }
 0x5ca   :  { %17591 = vmatmul.mubr.msk.f32.gmra.mrb[76].mxu1 %vm8938_vm4, %v21595_v28 }
 0x5cb   :  { %17593 = vmatprep.mubr.msk.f32.mxu1 %vm8938_vm4, %v21753_v8 }
 0x5ce   :  { %17594 = vmatmul.mubr.msk.f32.gmra.mrb[78].mxu1 %vm8938_vm4, %v11597_v50 }
 0x685   :  { %v17574_v28 = vpop.f32.mrb[64].mxu1 }
 0x686   :  { %v11820_v63 = vadd.f32 %v17574_v28, %v21936_v16  ;;  %v11717_v7 = vpop.f32.mrb[65].mxu1 }
 0x687   :  { %v11819_v22 = vadd.f32 %v21936_v16, %v11717_v7 }
 0x688   :  { %vm11836_vm15 = vcmp.ge.f32.partialorder %v11820_v63, 0.0  ;;  %v11852_v38 = vmul.f32 0.01, %v11820_v63 }
 0x689   :  { %vm11835_vm0 = vcmp.ge.f32.partialorder %v11819_v22, 0.0  ;;  %v11851_v62 = vmul.f32 0.01, %v11819_v22  ;;  %v17577_v57 = vpop.f32.mrb[66].mxu1 }
 0x68a   :  { %v11868_v18 = vsel %vm11836_vm15, %v11820_v63, %v11852_v38  ;;  %v11822_v54 = vadd.f32 %v17577_v57, %v21936_v16  ;;  %v11727_v37 = vpop.f32.mrb[67].mxu1 }
 0x68b   :  { %v11916_v35 = vcombine.high %v11868_v18, %v11868_v18  ;;  %v11923_v2 = vrot.slane %v11868_v18, %v20549_v29  ;;  %v11867_v21 = vsel %vm11835_vm0, %v11819_v22, %v11851_v62  ;;  %v11821_v39 = vadd.f32 %v21936_v16, %v11727_v37 }
 0x68c   :  { %v11899_v40 = vcombine.high %v11867_v21, %v11867_v21  ;;  %v11906_v20 = vrot.slane %v11867_v21, %v20549_v29  ;;  %vm11838_vm7 = vcmp.ge.f32.partialorder %v11822_v54, 0.0  ;;  %v11854_v15 = vmul.f32 0.01, %v11822_v54 }
 0x68d   :  { %v11930_v27 = vrot.slane %v11916_v35, %v20549_v29  ;;  %v11931_v31 = vcombine.high %v11923_v2, %v11923_v2  ;;  %vm11837_vm8 = vcmp.ge.f32.partialorder %v11821_v39, 0.0  ;;  %v11853_v5 = vmul.f32 0.01, %v11821_v39  ;;  %v17580_v52 = vpop.f32.mrb[68].mxu1 }
 0x68e   :  { %v11913_v30 = vrot.slane %v11899_v40, %v20549_v29  ;;  %v11914_v8 = vcombine.high %v11906_v20, %v11906_v20  ;;  %v12235_v26 = vmax.f32 %v11906_v20, %v11923_v2  ;;  %v11870_v34 = vsel %vm11838_vm7, %v11822_v54, %v11854_v15  ;;  %v11737_v58 = vpop.f32.mrb[69].mxu1 }
 0x68f   :  { %v11932_v14 = vcombine.high %v11930_v27, %v11930_v27  ;;  %v11950_v3 = vcombine.high %v11870_v34, %v11870_v34  ;;  %v11957_v23 = vrot.slane %v11870_v34, %v20549_v29  ;;  %v11869_v19 = vsel %vm11837_vm8, %v11821_v39, %v11853_v5 }
 0x690   :  { %v11915_v33 = vcombine.high %v11913_v30, %v11913_v30  ;;  %v12236_v25 = vmax.f32 %v11914_v8, %v11931_v31  ;;  %v12237_v13 = vmax.f32 %v11913_v30, %v11930_v27  ;;  %v15412_v36 = vrot.slane %v12235_v26, 9 }
 0x691   :  { %v11964_v1 = vrot.slane %v11950_v3, %v20549_v29  ;;  %v11965_v12 = vcombine.high %v11957_v23, %v11957_v23  ;;  %v11933_v24 = vcombine.high %v11869_v19, %v11869_v19  ;;  %v11940_v32 = vrot.slane %v11869_v19, %v20549_v29  ;;  %v17583_v50 = vpop.f32.mrb[70].mxu1 }
 0x692   :  { %v12238_v47 = vmax.f32 %v11915_v33, %v11932_v14  ;;  %v15413_v53 = vrot.slane %v12236_v25, 9  ;;  %v15414_v17 = vrot.slane %v12237_v13, 9  ;;  %v12395_v49 = vmax.f32 %v12235_v26, %v15412_v36  ;;  %v11747_v6 = vpop.f32.mrb[71].mxu1 }
 0x693   :  { %v11966_v46 = vcombine.high %v11964_v1, %v11964_v1  ;;  %v11947_v0 = vrot.slane %v11933_v24, %v20549_v29  ;;  %v11948_v48 = vcombine.high %v11940_v32, %v11940_v32  ;;  %v12239_v10 = vmax.f32 %v11940_v32, %v11957_v23 }
 0x694   :  { %v15415_v60 = vrot.slane %v12238_v47, 9  ;;  %v12396_v11 = vmax.f32 %v12236_v25, %v15413_v53  ;;  %v12397_v41 = vmax.f32 %v12237_v13, %v15414_v17  ;;  %v12486_v45 = vrot.slane %v12395_v49, %v20560_v43 }
 0x695   :  { %v11949_v9 = vcombine.high %v11947_v0, %v11947_v0  ;;  %v12240_v28 = vmax.f32 %v11948_v48, %v11965_v12  ;;  %v12241_v63 = vmax.f32 %v11947_v0, %v11964_v1  ;;  %v15416_v7 = vrot.slane %v12239_v10, 9  ;;  %v17586_v55 = vpop.f32.mrb[72].mxu1 }
 0x696   :  { %v12398_v22 = vmax.f32 %v12238_v47, %v15415_v60  ;;  %v12490_v51 = vrot.slane %v12396_v11, %v20560_v43  ;;  %v12494_v44 = vrot.slane %v12397_v41, %v20560_v43  ;;  %v11824_v56 = vadd.f32 %v17580_v52, %v21936_v16  ;;  %v11757_v38 = vpop.f32.mrb[73].mxu1 }
 0x697   :  { %v12242_v62 = vmax.f32 %v11949_v9, %v11966_v46  ;;  %v15417_v57 = vrot.slane %v12240_v28, 9  ;;  %v15418_v18 = vrot.slane %v12241_v63, 9  ;;  %v12399_v54 = vmax.f32 %v12239_v10, %v15416_v7 }
 0x698   :  { %v12498_v37 = vrot.slane %v12398_v22, %v20560_v43  ;;  %v12611_v35 = vsel %vm9623_vm10, %v12490_v51, %v12486_v45  ;;  %vm11840_vm1 = vcmp.ge.f32.partialorder %v11824_v56, 0.0  ;;  %v11856_v2 = vmul.f32 0.01, %v11824_v56 }
 0x699   :  { %v12612_v21 = vsel %vm9625_vm11, %v12494_v44, %v12611_v35  ;;  %v15419_v39 = vrot.slane %v12242_v62, 9  ;;  %v12400_v40 = vmax.f32 %v12240_v28, %v15417_v57  ;;  %v12401_v20 = vmax.f32 %v12241_v63, %v15418_v18  ;;  %v21973_v15 = vpop.f32.mrb[74].mxu1 }
 0x69a   :  { %v12613_v27 = vsel %vm9627_vm12, %v12498_v37, %v12612_v21  ;;  %v12502_v31 = vrot.slane %v12399_v54, %v20560_v43  ;;  %v11872_v5 = vsel %vm11840_vm1, %v11824_v56, %v11856_v2  ;;  %v11823_v52 = vadd.f32 %v21936_v16, %v11737_v58  ;;  %v21978_v30 = vpop.f32.mrb[75].mxu1 }
 0x69b   :  { %12644 = vst.msk [vmem:[#allocation4 + $0x9] sm:$0xf] %vm12643_vm9, %v12613_v27  ;;  %v12402_v8 = vmax.f32 %v12242_v62, %v15419_v39  ;;  %v12506_v26 = vrot.slane %v12400_v40, %v20560_v43  ;;  %v12510_v34 = vrot.slane %v12401_v20, %v20560_v43  ;;  %v11984_v14 = vcombine.high %v11872_v5, %v11872_v5 }
 0x69c   :  { %v11991_v3 = vrot.slane %v11872_v5, %v20549_v29  ;;  %vm11839_vm3 = vcmp.ge.f32.partialorder %v11823_v52, 0.0  ;;  %v11855_v23 = vmul.f32 0.01, %v11823_v52  ;;  %v11826_v19 = vadd.f32 %v17583_v50, %v21936_v16 }
 0x69d   :  { %v12514_v33 = vrot.slane %v12402_v8, %v20560_v43  ;;  %v12614_v58 = vsel %vm9623_vm10, %v12506_v26, %v12502_v31  ;;  %v11998_v25 = vrot.slane %v11984_v14, %v20549_v29  ;;  %v11825_v13 = vadd.f32 %v21936_v16, %v11747_v6  ;;  %v21989_v36 = vpop.f32.mrb[76].mxu1 }
 0x69e   :  { %v12615_v1 = vsel %vm9625_vm11, %v12510_v34, %v12614_v58  ;;  %v11999_v12 = vcombine.high %v11991_v3, %v11991_v3  ;;  %v11871_v24 = vsel %vm11839_vm3, %v11823_v52, %v11855_v23  ;;  %vm11842_vm5 = vcmp.ge.f32.partialorder %v11826_v19, 0.0  ;;  %v21992_v32 = vpop.f32.mrb[77].mxu1 }
 0x69f   :  { %v12616_v47 = vsel %vm9627_vm12, %v12514_v33, %v12615_v1  ;;  %v12000_v50 = vcombine.high %v11998_v25, %v11998_v25  ;;  %v11967_v53 = vcombine.high %v11871_v24, %v11871_v24  ;;  %v11974_v17 = vrot.slane %v11871_v24, %v20549_v29  ;;  %v12667_v1 = vld [vmem:[%s22465_s5 + $0x38] sm:$0xff] }
 0x6a0   :  { %12645 = vst.msk [vmem:[#allocation4 + $0x11] sm:$0xf] %vm12643_vm9, %v12616_v47  ;;  %v11858_v49 = vmul.f32 0.01, %v11826_v19  ;;  %vm11841_vm6 = vcmp.ge.f32.partialorder %v11825_v13, 0.0  ;;  %v11828_v46 = vadd.f32 %v17586_v55, %v21936_v16  ;;  %v22000_v60 = vadd.f32 %v21936_v16, %v11757_v38 }
 0x6a1   :  { %v11857_v6 = vmul.f32 0.01, %v11825_v13  ;;  %v11981_v0 = vrot.slane %v11967_v53, %v20549_v29  ;;  %v11982_v48 = vcombine.high %v11974_v17, %v11974_v17  ;;  %v12243_v10 = vmax.f32 %v11974_v17, %v11991_v3  ;;  %v22002_v11 = vpop.f32.mrb[78].mxu1 }
 0x6a2   :  { %v11874_v41 = vsel %vm11842_vm5, %v11826_v19, %v11858_v49  ;;  %vm11844_vm13 = vcmp.ge.f32.partialorder %v11828_v46, 0.0  ;;  %v11860_v9 = vmul.f32 0.01, %v11828_v46  ;;  %v22005_v28 = vpop.f32.mrb[79].mxu1  ;;  %v18719_v51 = vld [vmem:[#allocation4 + $0x1] ss:$8 sps:$4 sm:$0xff]  }
 0x6a3   :  { %v11873_v45 = vsel %vm11841_vm6, %v11825_v13, %v11857_v6  ;;  %v11983_v63 = vcombine.high %v11981_v0, %v11981_v0  ;;  %v12244_v7 = vmax.f32 %v11982_v48, %v11999_v12  ;;  %v12245_v22 = vmax.f32 %v11981_v0, %v11998_v25  ;;  %17612 = vmatprep.mubr.msk.f32.mxu1 %vm12697_vm2, %v18719_v51  ;;  %v12666_v13 = vld [vmem:[%s22465_s5 + $0x30] sm:$0xff] }
 0x6a4   :  { %v15420_v55 = vrot.slane %v12243_v10, 9  ;;  %v12018_v44 = vcombine.high %v11874_v41, %v11874_v41  ;;  %v12025_v56 = vrot.slane %v11874_v41, %v20549_v29  ;;  %v12001_v62 = vcombine.high %v11873_v45, %v11873_v45 }
 0x6a5   :  { %v12008_v38 = vrot.slane %v11873_v45, %v20549_v29  ;;  %v12246_v57 = vmax.f32 %v11983_v63, %v12000_v50  ;;  %v15421_v18 = vrot.slane %v12244_v7, 9  ;;  %v15422_v54 = vrot.slane %v12245_v22, 9 }
 0x6a6   :  { %v12403_v37 = vmax.f32 %v12243_v10, %v15420_v55  ;;  %v12032_v35 = vrot.slane %v12018_v44, %v20549_v29  ;;  %v12033_v2 = vcombine.high %v12025_v56, %v12025_v56  ;;  %v12015_v21 = vrot.slane %v12001_v62, %v20549_v29 }
 0x6a7   :  { %v12016_v39 = vcombine.high %v12008_v38, %v12008_v38  ;;  %v15423_v40 = vrot.slane %v12246_v57, 9  ;;  %v12404_v20 = vmax.f32 %v12244_v7, %v15421_v18  ;;  %v12405_v27 = vmax.f32 %v12245_v22, %v15422_v54 }
 0x6a8   :  { %v12518_v31 = vrot.slane %v12403_v37, %v20560_v43  ;;  %v12034_v5 = vcombine.high %v12032_v35, %v12032_v35  ;;  %v12017_v52 = vcombine.high %v12015_v21, %v12015_v21  ;;  %v12247_v8 = vmax.f32 %v12008_v38, %v12025_v56 }
 0x6a9   :  { %v12248_v26 = vmax.f32 %v12016_v39, %v12033_v2  ;;  %v12406_v34 = vmax.f32 %v12246_v57, %v15423_v40  ;;  %v12522_v14 = vrot.slane %v12404_v20, %v20560_v43  ;;  %v12526_v3 = vrot.slane %v12405_v27, %v20560_v43 }
 0x6aa   :  { %v12249_v23 = vmax.f32 %v12015_v21, %v12032_v35  ;;  %v12250_v19 = vmax.f32 %v12017_v52, %v12034_v5  ;;  %v15424_v33 = vrot.slane %v12247_v8, 9  ;;  %v11876_v25 = vsel %vm11844_vm13, %v11828_v46, %v11860_v9 }
 0x6ab   :  { %v15425_v58 = vrot.slane %v12248_v26, 9  ;;  %v12530_v12 = vrot.slane %v12406_v34, %v20560_v43  ;;  %v12617_v24 = vsel %vm9623_vm10, %v12522_v14, %v12518_v31  ;;  %v12052_v50 = vcombine.high %v11876_v25, %v11876_v25 }
 0x6ac   :  { %v15426_v47 = vrot.slane %v12249_v23, 9  ;;  %v12618_v53 = vsel %vm9625_vm11, %v12526_v3, %v12617_v24  ;;  %v15427_v17 = vrot.slane %v12250_v19, 9  ;;  %v12407_v49 = vmax.f32 %v12247_v8, %v15424_v33 }
 0x6ad   :  { %v12408_v6 = vmax.f32 %v12248_v26, %v15425_v58  ;;  %v12619_v46 = vsel %vm9627_vm12, %v12530_v12, %v12618_v53  ;;  %v12059_v48 = vrot.slane %v11876_v25, %v20549_v29  ;;  %v22027_v10 = vpack.c.bf16 %v12667_v1, %v12666_v13 }
 0x6ae   :  { %v12409_v0 = vmax.f32 %v12249_v23, %v15426_v47  ;;  %12646 = vst.msk [vmem:[#allocation4 + $0x19] sm:$0xf] %vm12643_vm9, %v12619_v46  ;;  %v12410_v41 = vmax.f32 %v12250_v19, %v15427_v17  ;;  %v12534_v45 = vrot.slane %v12407_v49, %v20560_v43  ;;  %vm11843_vm14 = vcmp.ge.f32.partialorder %v22000_v60, 0.0 }
 0x6af   :  { %v12538_v9 = vrot.slane %v12408_v6, %v20560_v43  ;;  %v12066_v7 = vrot.slane %v12052_v50, %v20549_v29  ;;  %v12067_v22 = vcombine.high %v12059_v48, %v12059_v48  ;;  %v11859_v55 = vmul.f32 0.01, %v22000_v60 }
 0x6b0   :  { %v12542_v63 = vrot.slane %v12409_v0, %v20560_v43  ;;  %v12546_v51 = vrot.slane %v12410_v41, %v20560_v43  ;;  %v11830_v56 = vadd.f32 %v21973_v15, %v21936_v16  ;;  %v11829_v62 = vadd.f32 %v21936_v16, %v21978_v30 }
 0x6b1   :  { %v12620_v44 = vsel %vm9623_vm10, %v12538_v9, %v12534_v45  ;;  %v11875_v57 = vsel %vm11843_vm14, %v22000_v60, %v11859_v55  ;;  %v11832_v18 = vadd.f32 %v21989_v36, %v21936_v16  ;;  %v22048_v54 = vadd.f32 %v21936_v16, %v21992_v32 }
 0x6b2   :  { %v12621_v38 = vsel %vm9625_vm11, %v12542_v63, %v12620_v44  ;;  %v12035_v35 = vcombine.high %v11875_v57, %v11875_v57  ;;  %v12042_v2 = vrot.slane %v11875_v57, %v20549_v29  ;;  %vm11846_vm15 = vcmp.ge.f32.partialorder %v11830_v56, 0.0 }
 0x6b3   :  { %v12622_v37 = vsel %vm9627_vm12, %v12546_v51, %v12621_v38  ;;  %v12068_v15 = vcombine.high %v12066_v7, %v12066_v7  ;;  %v11862_v30 = vmul.f32 0.01, %v11830_v56  ;;  %vm11845_vm0 = vcmp.ge.f32.partialorder %v11829_v62, 0.0 }
 0x6b4   :  { %12647 = vst.msk [vmem:[#allocation4 + $0x21] sm:$0xf] %vm12643_vm9, %v12622_v37  ;;  %v11861_v21 = vmul.f32 0.01, %v11829_v62  ;;  %v12049_v60 = vrot.slane %v12035_v35, %v20549_v29  ;;  %v12050_v39 = vcombine.high %v12042_v2, %v12042_v2  ;;  %v12251_v36 = vmax.f32 %v12042_v2, %v12059_v48  ;;  %v15460_v35 = vld [vmem:[%s22465_s5 + $0x80] sm:$0xff] }
 0x6b5   :  { %vm11848_vm7 = vcmp.ge.f32.partialorder %v11832_v18, 0.0  ;;  %v11878_v40 = vsel %vm11846_vm15, %v11830_v56, %v11862_v30  ;;  %v11864_v20 = vmul.f32 0.01, %v11832_v18  ;;  %v11863_v27 = vmul.f32 0.01, %v22048_v54 }
 0x6b6   :  { %v11877_v32 = vsel %vm11845_vm0, %v11829_v62, %v11861_v21  ;;  %v12051_v31 = vcombine.high %v12049_v60, %v12049_v60  ;;  %v12252_v5 = vmax.f32 %v12050_v39, %v12067_v22  ;;  %v12253_v52 = vmax.f32 %v12049_v60, %v12066_v7  ;;  %v18720_v26 = vld [vmem:[#allocation4 + $0x11] ss:$8 sps:$4 sm:$0xff]  }
 0x6b7   :  { %v15428_v8 = vrot.slane %v12251_v36, 9  ;;  %vm11847_vm8 = vcmp.ge.f32.partialorder %v22048_v54, 0.0  ;;  %v12086_v34 = vcombine.high %v11878_v40, %v11878_v40  ;;  %v12093_v14 = vrot.slane %v11878_v40, %v20549_v29  ;;  %17613 = vmatmul.mubr.msk.f32.vlgmr.msra.gmra.mrb[80].mxu1 %vm12697_vm2, %v18720_v26 }
 0x6b8   :  { %v12069_v3 = vcombine.high %v11877_v32, %v11877_v32  ;;  %v12076_v23 = vrot.slane %v11877_v32, %v20549_v29  ;;  %v12254_v19 = vmax.f32 %v12051_v31, %v12068_v15  ;;  %v15429_v33 = vrot.slane %v12252_v5, 9  ;;  %17885 = vmatpush3.bf16.msra.mxu1 %v21930_v4 }
 0x6b9   :  { %v15430_v58 = vrot.slane %v12253_v52, 9  ;;  %v12411_v25 = vmax.f32 %v12251_v36, %v15428_v8  ;;  %v12100_v13 = vrot.slane %v12086_v34, %v20549_v29  ;;  %v12101_v1 = vcombine.high %v12093_v14, %v12093_v14  ;;  %17887 = vmatprep.subr.bf16.mxu1 %v21953_v42 }
 0x6ba   :  { %v12083_v12 = vrot.slane %v12069_v3, %v20549_v29  ;;  %v12084_v24 = vcombine.high %v12076_v23, %v12076_v23  ;;  %v15431_v47 = vrot.slane %v12254_v19, 9  ;;  %v12412_v50 = vmax.f32 %v12252_v5, %v15429_v33 }
 0x6bb   :  { %v12413_v53 = vmax.f32 %v12253_v52, %v15430_v58  ;;  %v12550_v17 = vrot.slane %v12411_v25, %v20560_v43  ;;  %v12102_v49 = vcombine.high %v12100_v13, %v12100_v13  ;;  %v12255_v46 = vmax.f32 %v12076_v23, %v12093_v14 }
 0x6bc   :  { %v12085_v6 = vcombine.high %v12083_v12, %v12083_v12  ;;  %v12256_v0 = vmax.f32 %v12084_v24, %v12101_v1  ;;  %v12414_v48 = vmax.f32 %v12254_v19, %v15431_v47  ;;  %v12554_v41 = vrot.slane %v12412_v50, %v20560_v43  ;;  %17889 = vmatpush3.bf16.msra.mxu1 %v21953_v42  ;;  %v15461_v42 = vld [vmem:[%s22465_s5 + $0x88] sm:$0xff] }
 0x6bd   :  { %v12558_v45 = vrot.slane %v12413_v53, %v20560_v43  ;;  %v12257_v9 = vmax.f32 %v12083_v12, %v12100_v13  ;;  %v15432_v7 = vrot.slane %v12255_v46, 9  ;;  %v11880_v22 = vsel %vm11848_vm7, %v11832_v18, %v11864_v20  ;;  %17891 = vmatprep.subr.bf16.mxu1 %v21955_v59 }
 0x6be   :  { %v12258_v63 = vmax.f32 %v12085_v6, %v12102_v49  ;;  %v15433_v4 = vrot.slane %v12256_v0, 9  ;;  %v12562_v55 = vrot.slane %v12414_v48, %v20560_v43  ;;  %v12623_v51 = vsel %vm9623_vm10, %v12554_v41, %v12550_v17 }
 0x6bf   :  { %v15434_v44 = vrot.slane %v12257_v9, 9  ;;  %v12120_v56 = vcombine.high %v11880_v22, %v11880_v22  ;;  %v12624_v62 = vsel %vm9625_vm11, %v12558_v45, %v12623_v51  ;;  %v12415_v57 = vmax.f32 %v12255_v46, %v15432_v7 }
 0x6c0   :  { %v15435_v38 = vrot.slane %v12258_v63, 9  ;;  %v12416_v37 = vmax.f32 %v12256_v0, %v15433_v4  ;;  %v12625_v18 = vsel %vm9627_vm12, %v12562_v55, %v12624_v62  ;;  %v12127_v15 = vrot.slane %v11880_v22, %v20549_v29  ;;  %17893 = vmatpush3.bf16.msra.mxu1 %v21955_v59 }
 0x6c1   :  { %v12417_v2 = vmax.f32 %v12257_v9, %v15434_v44  ;;  %v12134_v30 = vrot.slane %v12120_v56, %v20549_v29  ;;  %12648 = vst.msk [vmem:[#allocation4 + $0x39] sm:$0xf] %vm12643_vm9, %v12625_v18  ;;  %v12566_v60 = vrot.slane %v12415_v57, %v20560_v43  ;;  %v11879_v36 = vsel %vm11847_vm8, %v22048_v54, %v11863_v27 }
 0x6c2   :  { %v12418_v21 = vmax.f32 %v12258_v63, %v15435_v38  ;;  %v12570_v39 = vrot.slane %v12416_v37, %v20560_v43  ;;  %v12135_v32 = vcombine.high %v12127_v15, %v12127_v15  ;;  %v12103_v20 = vcombine.high %v11879_v36, %v11879_v36  ;;  %17895 = vmatprep.subr.bf16.mxu1 %v22027_v10 }
 0x6c3   :  { %v12574_v40 = vrot.slane %v12417_v2, %v20560_v43  ;;  %v22090_v31 = vpack.c.bf16 %v15461_v42, %v15460_v35  ;;  %v12110_v8 = vrot.slane %v11879_v36, %v20549_v29  ;;  %v11834_v26 = vadd.f32 %v22002_v11, %v21936_v16 }
 0x6c4   :  { %v12578_v5 = vrot.slane %v12418_v21, %v20560_v43  ;;  %v12626_v52 = vsel %vm9623_vm10, %v12570_v39, %v12566_v60  ;;  %v12136_v59 = vcombine.high %v12134_v30, %v12134_v30  ;;  %v12117_v27 = vrot.slane %v12103_v20, %v20549_v29  ;;  %17897 = vmatpush3.bf16.msra.mxu1 %v22027_v10 }
 0x6c5   :  { %v12627_v54 = vsel %vm9625_vm11, %v12574_v40, %v12626_v52  ;;  %v11833_v34 = vadd.f32 %v21936_v16, %v22005_v28  ;;  %v12118_v3 = vcombine.high %v12110_v8, %v12110_v8  ;;  %v12259_v23 = vmax.f32 %v12110_v8, %v12127_v15  ;;  %17899 = vmatprep.subr.bf16.mxu1 %v22090_v31  ;;  %v15462_v8 = vld [vmem:[%s22465_s5 + $0x90] sm:$0xff] }
 0x6c6   :  { %v12628_v14 = vsel %vm9627_vm12, %v12578_v5, %v12627_v54  ;;  %vm11850_vm1 = vcmp.ge.f32.partialorder %v11834_v26, 0.0  ;;  %v12119_v19 = vcombine.high %v12117_v27, %v12117_v27  ;;  %v12261_v33 = vmax.f32 %v12117_v27, %v12134_v30  ;;  %v18723_v27 = vld [vmem:[#allocation4] ss:$8 sps:$4 sm:$0xff]  }
 0x6c7   :  { %12649 = vst.msk [vmem:[#allocation4 + $0x41] sm:$0xf] %vm12643_vm9, %v12628_v14  ;;  %v11866_v11 = vmul.f32 0.01, %v11834_v26  ;;  %v12260_v58 = vmax.f32 %v12118_v3, %v12135_v32  ;;  %v15436_v25 = vrot.slane %v12259_v23, 9  ;;  %vm11849_vm3 = vcmp.ge.f32.partialorder %v11833_v34, 0.0 }
 0x6c8   :  { %v11865_v13 = vmul.f32 0.01, %v11833_v34  ;;  %v12262_v1 = vmax.f32 %v12119_v19, %v12136_v59  ;;  %v15438_v16 = vrot.slane %v12261_v33, 9  ;;  %v18721_v12 = vld [vmem:[#allocation4 + $0x31] ss:$8 sps:$4 sm:$0xff]   ;;  %v15464_v19 = vld [vmem:[%s22465_s5 + $0xa0] sm:$0xff] }
 0x6c9   :  { %v11882_v28 = vsel %vm11850_vm1, %v11834_v26, %v11866_v11  ;;  %v15437_v24 = vrot.slane %v12260_v58, 9  ;;  %v12419_v47 = vmax.f32 %v12259_v23, %v15436_v25  ;;  %17615 = vmatprep.mubr.msk.f32.mxu1 %vm12697_vm2, %v18721_v12  ;;  %v18724_v14 = vld [vmem:[#allocation4 + $0x10] ss:$8 sps:$4 sm:$0xff]   ;;  %vm14444_vm14 = vcmask 130048  }
 0x6ca   :  { %v12154_v50 = vcombine.high %v11882_v28, %v11882_v28  ;;  %v12161_v10 = vrot.slane %v11882_v28, %v20549_v29  ;;  %v15439_v53 = vrot.slane %v12262_v1, 9  ;;  %v12421_v17 = vmax.f32 %v12261_v33, %v15438_v16  ;;  %v18725_v23 = vld [vmem:[#allocation4 + $0x30] ss:$8 sps:$4 sm:$0xff]   ;;  %v15465_v33 = vld [vmem:[%s22465_s5 + $0xa8] sm:$0xff]  ;;  %v15472_v16 = vld [vmem:[%s22465_s5 + $0xc0] sm:$0xff] }
 0x6cb   :  { %v11881_v49 = vsel %vm11849_vm3, %v11833_v34, %v11865_v13  ;;  %v12420_v6 = vmax.f32 %v12260_v58, %v15437_v24  ;;  %v12582_v63 = vrot.slane %v12419_v47, %v20560_v43  ;;  %v15463_v34 = vld [vmem:[%s22465_s5 + $0x98] sm:$0xff]  ;;  %v17906_v58 = vpack.c.bf16 %v15465_v33, %v15464_v19  ;;  %v15466_v25 = vld [vmem:[%s22465_s5 + $0xb0] sm:$0xff]  ;;  %v15473_v28 = vld [vmem:[%s22465_s5 + $0xc8] sm:$0xff] }
 0x6cc   :  { %v12168_v46 = vrot.slane %v12154_v50, %v20549_v29  ;;  %v12169_v0 = vcombine.high %v12161_v10, %v12161_v10  ;;  %v12422_v48 = vmax.f32 %v12262_v1, %v15439_v53  ;;  %v12590_v41 = vrot.slane %v12421_v17, %v20560_v43  ;;  %v15467_v13 = vld [vmem:[%s22465_s5 + $0xb8] sm:$0xff]  ;;  %v18727_v1 = vld [vmem:[#allocation4 + $0x2] ss:$8 sps:$4 sm:$0xff]   ;;  %v15474_v24 = vld [vmem:[%s22465_s5 + $0xd0] sm:$0xff] }
 0x6cd   :  { %v12137_v45 = vcombine.high %v11881_v49, %v11881_v49  ;;  %v12144_v9 = vrot.slane %v11881_v49, %v20549_v29  ;;  %v12586_v7 = vrot.slane %v12420_v6, %v20560_v43  ;;  %v17902_v3 = vpack.c.bf16 %v15463_v34, %v15462_v8  ;;  %v15475_v47 = vld [vmem:[%s22465_s5 + $0xd8] sm:$0xff]  ;;  %v15476_v17 = vld [vmem:[%s22465_s5 + $0xe0] sm:$0xff]  ;;  %v15477_v49 = vld [vmem:[%s22465_s5 + $0xe8] sm:$0xff] }
 0x6ce   :  { %v12170_v4 = vcombine.high %v12168_v46, %v12168_v46  ;;  %v12594_v22 = vrot.slane %v12422_v48, %v20560_v43  ;;  %v17914_v12 = vpack.c.bf16 %v15473_v28, %v15472_v16  ;;  %v18728_v50 = vld [vmem:[#allocation4 + $0x12] ss:$8 sps:$4 sm:$0xff]   ;;  %v15509_v34 = vld [vmem:[%s22465_s5 + $0x188] sm:$0xff]  ;;  %vm14446_vm15 = vcmask 162816  }
 0x6cf   :  { %v12151_v55 = vrot.slane %v12137_v45, %v20549_v29  ;;  %v12152_v51 = vcombine.high %v12144_v9, %v12144_v9  ;;  %v12263_v44 = vmax.f32 %v12144_v9, %v12161_v10  ;;  %v12629_v56 = vsel %vm9623_vm10, %v12586_v7, %v12582_v63  ;;  %v18729_v53 = vld [vmem:[#allocation4 + $0x32] ss:$8 sps:$4 sm:$0xff]   ;;  %v15484_v9 = vld [vmem:[%s22465_s5 + $0x100] sm:$0xff]  ;;  %v15485_v63 = vld [vmem:[%s22465_s5 + $0x108] sm:$0xff] }
 0x6d0   :  { %v12630_v62 = vsel %vm9625_vm11, %v12590_v41, %v12629_v56  ;;  %v17918_v10 = vpack.c.bf16 %v15475_v47, %v15474_v24  ;;  %v15478_v48 = vld [vmem:[%s22465_s5 + $0xf0] sm:$0xff]  ;;  %v15479_v41 = vld [vmem:[%s22465_s5 + $0xf8] sm:$0xff]  ;;  %v17930_v7 = vpack.c.bf16 %v15485_v63, %v15484_v9  ;;  %v15488_v56 = vld [vmem:[%s22465_s5 + $0x120] sm:$0xff]  ;;  %vm14448_vm0 = vcmask 195584  }
 0x6d1   :  { %v12153_v38 = vcombine.high %v12151_v55, %v12151_v55  ;;  %v12264_v57 = vmax.f32 %v12152_v51, %v12169_v0  ;;  %v12265_v37 = vmax.f32 %v12151_v55, %v12168_v46  ;;  %v12631_v35 = vsel %vm9627_vm12, %v12594_v22, %v12630_v62  ;;  %v18731_v0 = vld [vmem:[#allocation4 + $0x8] ss:$8 sps:$4 sm:$0xff]   ;;  %v15487_v22 = vld [vmem:[%s22465_s5 + $0x118] sm:$0xff]  ;;  %v15520_v24 = vld [vmem:[%s22465_s5 + $0x1c0] sm:$0xff] }
 0x6d2   :  { %v15440_v42 = vrot.slane %v12263_v44, 9  ;;  %12650 = vst.msk [vmem:[#allocation4 + $0x49] sm:$0xf] %vm12643_vm9, %v12631_v35  ;;  %v17922_v46 = vpack.c.bf16 %v15477_v49, %v15476_v17  ;;  %v17926_v45 = vpack.c.bf16 %v15479_v41, %v15478_v48  ;;  %v18732_v55 = vld [vmem:[#allocation4 + $0x18] ss:$8 sps:$4 sm:$0xff]   ;;  %v15489_v62 = vld [vmem:[%s22465_s5 + $0x128] sm:$0xff] }
 0x6d3   :  { %v12266_v18 = vmax.f32 %v12153_v38, %v12170_v4  ;;  %v15441_v2 = vrot.slane %v12264_v57, 9  ;;  %v15442_v15 = vrot.slane %v12265_v37, 9  ;;  %v15486_v4 = vld [vmem:[%s22465_s5 + $0x110] sm:$0xff]  ;;  %v18740_v19 = vld [vmem:[#allocation4 + $0x1a] ss:$8 sps:$4 sm:$0xff]   ;;  %v15521_v47 = vld [vmem:[%s22465_s5 + $0x1c8] sm:$0xff] }
 0x6d4   :  { %v12423_v30 = vmax.f32 %v12263_v44, %v15440_v42  ;;  %v17934_v51 = vpack.c.bf16 %v15487_v22, %v15486_v4  ;;  %v18733_v44 = vld [vmem:[#allocation4 + $0x38] ss:$8 sps:$4 sm:$0xff]   ;;  %v15490_v35 = vld [vmem:[%s22465_s5 + $0x130] sm:$0xff]  ;;  %v15533_v22 = vld [vmem:[%s22465_s5 + $0x208] sm:$0xff]  ;;  %vm14450_vm7 = vcmask 228352   ;;  %vm14453_vm8 = vcmask 293888  }
 0x6d5   :  { %v15443_v21 = vrot.slane %v12266_v18, 9  ;;  %v12424_v60 = vmax.f32 %v12264_v57, %v15441_v2  ;;  %v12425_v39 = vmax.f32 %v12265_v37, %v15442_v15  ;;  %v17938_v57 = vpack.c.bf16 %v15489_v62, %v15488_v56  ;;  %v18735_v37 = vld [vmem:[#allocation4 + $0x9] ss:$8 sps:$4 sm:$0xff]   ;;  %v15491_v42 = vld [vmem:[%s22465_s5 + $0x138] sm:$0xff]  ;;  %v15496_v2 = vld [vmem:[%s22465_s5 + $0x140] sm:$0xff] }
 0x6d6   :  { %v12598_v40 = vrot.slane %v12423_v30, %v20560_v43  ;;  %v15497_v15 = vld [vmem:[%s22465_s5 + $0x148] sm:$0xff]  ;;  %v15514_v16 = vld [vmem:[%s22465_s5 + $0x1b0] sm:$0xff]  ;;  %v15515_v28 = vld [vmem:[%s22465_s5 + $0x1b8] sm:$0xff]  ;;  %vm14455_vm1 = vcmask 326656   ;;  %vm14457_vm3 = vcmask 359424  }
 0x6d7   :  { %v12426_v36 = vmax.f32 %v12266_v18, %v15443_v21  ;;  %v12602_v32 = vrot.slane %v12424_v60, %v20560_v43  ;;  %v12606_v20 = vrot.slane %v12425_v39, %v20560_v43  ;;  %v17942_v18 = vpack.c.bf16 %v15491_v42, %v15490_v35  ;;  %v15498_v21 = vld [vmem:[%s22465_s5 + $0x150] sm:$0xff]  ;;  %v15499_v60 = vld [vmem:[%s22465_s5 + $0x158] sm:$0xff]  ;;  %v18744_v17 = vld [vmem:[#allocation4 + $0x20] ss:$8 sps:$4 sm:$0xff]  }
 0x6d8   :  { %v17946_v30 = vpack.c.bf16 %v15497_v15, %v15496_v2  ;;  %v18736_v39 = vld [vmem:[#allocation4 + $0x19] ss:$8 sps:$4 sm:$0xff]   ;;  %v18739_v8 = vld [vmem:[#allocation4 + $0xa] ss:$8 sps:$4 sm:$0xff]  }
 0x6d9   :  { %v12610_v5 = vrot.slane %v12426_v36, %v20560_v43  ;;  %v12632_v52 = vsel %vm9623_vm10, %v12602_v32, %v12598_v40  ;;  %v18722_v54 = vld [vmem:[#allocation4 + $0x41] ss:$8 sps:$4 sm:$0xff]   ;;  %v17950_v36 = vpack.c.bf16 %v15499_v60, %v15498_v21  ;;  %v15526_v9 = vld [vmem:[%s22465_s5 + $0x1f0] sm:$0xff]  ;;  %v15527_v63 = vld [vmem:[%s22465_s5 + $0x1f8] sm:$0xff] }
 0x6da   :  { %v12633_v26 = vsel %vm9625_vm11, %v12606_v20, %v12632_v52  ;;  %17616 = vmatmul.mubr.msk.f32.gmra.mrb[82].mxu1 %vm12697_vm2, %v18722_v54  ;;  %v18726_v11 = vld [vmem:[#allocation4 + $0x40] ss:$8 sps:$4 sm:$0xff]   ;;  %v15503_v54 = vld [vmem:[%s22465_s5 + $0x178] sm:$0xff]  ;;  %v15538_v2 = vld [vmem:[%s22465_s5 + $0x230] sm:$0xff] }
 0x6db   :  { %v12634_v59 = vsel %vm9627_vm12, %v12610_v5, %v12633_v26  ;;  %17634 = vmatprep.mubr.msk.f32.mxu1 %vm12697_vm2, %v18723_v27  ;;  %v18730_v6 = vld [vmem:[#allocation4 + $0x42] ss:$8 sps:$4 sm:$0xff]   ;;  %v15502_v26 = vld [vmem:[%s22465_s5 + $0x170] sm:$0xff]  ;;  %v15539_v15 = vld [vmem:[%s22465_s5 + $0x238] sm:$0xff] }
 0x6dc   :  { %12651 = vst.msk [vmem:[#allocation4 + $0x51] sm:$0xf] %vm12643_vm9, %v12634_v59  ;;  %v18737_v40 = vld [vmem:[#allocation4 + $0x39] ss:$8 sps:$4 sm:$0xff]   ;;  %v15501_v20 = vld [vmem:[%s22465_s5 + $0x168] sm:$0xff]  ;;  %v17958_v59 = vpack.c.bf16 %v15503_v54, %v15502_v26 }
 0x6dd   :  { %v15500_v32 = vld [vmem:[%s22465_s5 + $0x160] sm:$0xff] }
 0x6de   :  { %17635 = vmatmul.mubr.msk.f32.vlgmr.msra.gmra.mrb[80].mxu1 %vm12697_vm2, %v18724_v14  ;;  %v17954_v52 = vpack.c.bf16 %v15501_v20, %v15500_v32  ;;  %v15508_v27 = vld [vmem:[%s22465_s5 + $0x180] sm:$0xff] }
 0x6df   :  { %17901 = vmatpush3.bf16.msra.mxu1 %v22090_v31  ;;  %17637 = vmatprep.mubr.msk.f32.mxu1 %vm12697_vm2, %v18725_v23  ;;  %v17910_v31 = vpack.c.bf16 %v15467_v13, %v15466_v25  ;;  %v17962_v14 = vpack.c.bf16 %v15509_v34, %v15508_v27  ;;  %v15511_v23 = vld [vmem:[%s22465_s5 + $0x198] sm:$0xff]  ;;  %v15513_v25 = vld [vmem:[%s22465_s5 + $0x1a8] sm:$0xff]  ;;  %v15532_v4 = vld [vmem:[%s22465_s5 + $0x200] sm:$0xff] }
 0x6e0   :  { %17903 = vmatprep.subr.bf16.mxu1 %v17902_v3  ;;  %v18748_v56 = vld [vmem:[#allocation4 + $0x21] ss:$8 sps:$4 sm:$0xff]  }
 0x6e1   :  { %v18752_v21 = vld [vmem:[#allocation4 + $0x22] ss:$8 sps:$4 sm:$0xff]  }
 0x6e2   :  { %17638 = vmatmul.mubr.msk.f32.gmra.mrb[82].mxu1 %vm12697_vm2, %v18726_v11  ;;  %v18741_v11 = vld [vmem:[#allocation4 + $0x3a] ss:$8 sps:$4 sm:$0xff]  }
 0x6e3   :  { %17905 = vmatpush3.bf16.msra.mxu1 %v17902_v3  ;;  %17656 = vmatprep.mubr.msk.f32.mxu1 %vm12697_vm2, %v18727_v1  ;;  %v18734_v38 = vld [vmem:[#allocation4 + $0x48] ss:$8 sps:$4 sm:$0xff]  }
 0x6e4   :  { %17907 = vmatprep.subr.bf16.mxu1 %v17906_v58  ;;  %v18738_v5 = vld [vmem:[#allocation4 + $0x49] ss:$8 sps:$4 sm:$0xff]  }
 0x6e5   :  { %v15510_v3 = vld [vmem:[%s22465_s5 + $0x190] sm:$0xff]  ;;  %v18753_v60 = vld [vmem:[#allocation4 + $0x42] ss:$8 sps:$4 sm:$0xff]  }
 0x6e6   :  { %v17966_v33 = vpack.c.bf16 %v15511_v23, %v15510_v3  ;;  %v18742_v13 = vld [vmem:[#allocation4 + $0x4a] ss:$8 sps:$4 sm:$0xff]  }
 0x6e7   :  { %17909 = vmatpush3.bf16.msra.mxu1 %v17906_v58  ;;  %v15512_v58 = vld [vmem:[%s22465_s5 + $0x1a0] sm:$0xff]  ;;  %v18746_v48 = vld [vmem:[#allocation4 + $0x50] ss:$8 sps:$4 sm:$0xff]  }
 0x6e8   :  { %17911 = vmatprep.subr.bf16.mxu1 %v17910_v31  ;;  %v17970_v1 = vpack.c.bf16 %v15513_v25, %v15512_v58  ;;  %v18750_v35 = vld [vmem:[#allocation4 + $0x51] ss:$8 sps:$4 sm:$0xff]  }
 0x6eb   :  { %17913 = vmatpush3.bf16.msra.mxu1 %v17910_v31  ;;  %v18743_v31 = vld [vmem:[#allocation4 + $0x10] ss:$8 sps:$4 sm:$0xff]  }
 0x6ec   :  { %17915 = vmatprep.subr.bf16.mxu1 %v17914_v12 }
 0x6ee   :  { %17657 = vmatmul.mubr.msk.f32.vlgmr.msra.gmra.mrb[80].mxu1 %vm12697_vm2, %v18728_v50  ;;  %v17978_v50 = vpack.c.bf16 %v15521_v47, %v15520_v24 }
 0x6ef   :  { %17659 = vmatprep.mubr.msk.f32.mxu1 %vm12697_vm2, %v18729_v53  ;;  %17917 = vmatpush3.bf16.msra.mxu1 %v17914_v12  ;;  %v17974_v12 = vpack.c.bf16 %v15515_v28, %v15514_v16  ;;  %v15523_v53 = vld [vmem:[%s22465_s5 + $0x1d8] sm:$0xff] }
 0x6f0   :  { %17919 = vmatprep.subr.bf16.mxu1 %v17918_v10 }
 0x6f2   :  { %17660 = vmatmul.mubr.msk.f32.gmra.mrb[82].mxu1 %vm12697_vm2, %v18730_v6  ;;  %v18745_v6 = vld [vmem:[#allocation4 + $0x40] ss:$8 sps:$4 sm:$0xff]  }
 0x6f3   :  { %17921 = vmatpush3.bf16.msra.mxu1 %v17918_v10  ;;  %17678 = vmatprep.mubr.msk.f32.mxu1 %vm12697_vm2, %v18731_v0  ;;  %v15522_v10 = vld [vmem:[%s22465_s5 + $0x1d0] sm:$0xff]  ;;  %v15525_v0 = vld [vmem:[%s22465_s5 + $0x1e8] sm:$0xff] }
 0x6f4   :  { %17923 = vmatprep.subr.bf16.mxu1 %v17922_v46  ;;  %v17982_v49 = vpack.c.bf16 %v15523_v53, %v15522_v10 }
 0x6f7   :  { %17925 = vmatpush3.bf16.msra.mxu1 %v17922_v46  ;;  %v15524_v46 = vld [vmem:[%s22465_s5 + $0x1e0] sm:$0xff] }
 0x6f8   :  { %17927 = vmatprep.subr.bf16.mxu1 %v17926_v45  ;;  %v17986_v41 = vpack.c.bf16 %v15525_v0, %v15524_v46 }
 0x6fb   :  { %17929 = vmatpush3.bf16.msra.mxu1 %v17926_v45  ;;  %v18747_v45 = vld [vmem:[#allocation4 + $0x11] ss:$8 sps:$4 sm:$0xff]  }
 0x6fc   :  { %17931 = vmatprep.subr.bf16.mxu1 %v17930_v7 }
 0x6fe   :  { %17679 = vmatmul.mubr.msk.f32.vlgmr.msra.gmra.mrb[80].mxu1 %vm12697_vm2, %v18732_v55  ;;  %v17994_v55 = vpack.c.bf16 %v15533_v22, %v15532_v4 }
 0x6ff   :  { %17681 = vmatprep.mubr.msk.f32.mxu1 %vm12697_vm2, %v18733_v44  ;;  %17933 = vmatpush3.bf16.msra.mxu1 %v17930_v7  ;;  %v17990_v7 = vpack.c.bf16 %v15527_v63, %v15526_v9  ;;  %v15535_v44 = vld [vmem:[%s22465_s5 + $0x218] sm:$0xff] }
 0x700   :  { %17935 = vmatprep.subr.bf16.mxu1 %v17934_v51 }
 0x702   :  { %17682 = vmatmul.mubr.msk.f32.gmra.mrb[82].mxu1 %vm12697_vm2, %v18734_v38  ;;  %v18749_v38 = vld [vmem:[#allocation4 + $0x41] ss:$8 sps:$4 sm:$0xff]  }
 0x703   :  { %17937 = vmatpush3.bf16.msra.mxu1 %v17934_v51  ;;  %17700 = vmatprep.mubr.msk.f32.mxu1 %vm12697_vm2, %v18735_v37  ;;  %v15534_v51 = vld [vmem:[%s22465_s5 + $0x210] sm:$0xff]  ;;  %v15537_v37 = vld [vmem:[%s22465_s5 + $0x228] sm:$0xff] }
 0x704   :  { %17939 = vmatprep.subr.bf16.mxu1 %v17938_v57  ;;  %v17998_v62 = vpack.c.bf16 %v15535_v44, %v15534_v51 }
 0x707   :  { %17941 = vmatpush3.bf16.msra.mxu1 %v17938_v57  ;;  %v15536_v57 = vld [vmem:[%s22465_s5 + $0x220] sm:$0xff]  ;;  %s18823_s5 = smov 108  }
 0x708   :  { %17943 = vmatprep.subr.bf16.mxu1 %v17942_v18  ;;  %v18002_v42 = vpack.c.bf16 %v15537_v37, %v15536_v57 }
 0x70b   :  { %17945 = vmatpush3.bf16.msra.mxu1 %v17942_v18  ;;  %v18751_v18 = vld [vmem:[#allocation4 + $0x12] ss:$8 sps:$4 sm:$0xff]  }
 0x70c   :  { %17947 = vmatprep.subr.bf16.mxu1 %v17946_v30 }
 0x70e   :  { %17701 = vmatmul.mubr.msk.f32.vlgmr.msra.gmra.mrb[80].mxu1 %vm12697_vm2, %v18736_v39  ;;  %v18754_v39 = vld [vmem:[#allocation4 + $0x52] ss:$8 sps:$4 sm:$0xff]  }
 0x70f   :  { %17703 = vmatprep.mubr.msk.f32.mxu1 %vm12697_vm2, %v18737_v40  ;;  %17949 = vmatpush3.bf16.msra.mxu1 %v17946_v30  ;;  %v18006_v30 = vpack.c.bf16 %v15539_v15, %v15538_v2 }
 0x710   :  { %17951 = vmatprep.subr.bf16.mxu1 %v17950_v36 }
 0x712   :  { %17704 = vmatmul.mubr.msk.f32.gmra.mrb[82].mxu1 %vm12697_vm2, %v18738_v5 }
 0x713   :  { %17953 = vmatpush3.bf16.msra.mxu1 %v17950_v36  ;;  %17722 = vmatprep.mubr.msk.f32.mxu1 %vm12697_vm2, %v18739_v8  ;;  %v15544_v36 = vld [vmem:[%s22466_s6] ss:$0 sm:$0xff]  ;;  %s18795_s6 = smov 8  }
 0x714   :  { %17955 = vmatprep.subr.bf16.mxu1 %v17954_v52 }
 0x717   :  { %17957 = vmatpush3.bf16.msra.mxu1 %v17954_v52 }
 0x718   :  { %17959 = vmatprep.subr.bf16.mxu1 %v17958_v59 }
 0x71b   :  { %17961 = vmatpush3.bf16.msra.mxu1 %v17958_v59 }
 0x71c   :  { %17963 = vmatprep.subr.bf16.mxu1 %v17962_v14 }
 0x71e   :  { %17723 = vmatmul.mubr.msk.f32.vlgmr.msra.gmra.mrb[80].mxu1 %vm12697_vm2, %v18740_v19 }
 0x71f   :  { %17725 = vmatprep.mubr.msk.f32.mxu1 %vm12697_vm2, %v18741_v11  ;;  %17965 = vmatpush3.bf16.msra.mxu1 %v17962_v14 }
 0x720   :  { %17967 = vmatprep.subr.bf16.mxu1 %v17966_v33 }
 0x722   :  { %17726 = vmatmul.mubr.msk.f32.gmra.mrb[82].mxu1 %vm12697_vm2, %v18742_v13 }
 0x723   :  { %17969 = vmatpush3.bf16.msra.mxu1 %v17966_v33  ;;  %17744 = vmatprep.mubr.msk.f32.mxu1 %vm12697_vm2, %v18743_v31 }
 0x724   :  { %17971 = vmatprep.subr.bf16.mxu1 %v17970_v1 }
 0x727   :  { %17973 = vmatpush3.bf16.msra.mxu1 %v17970_v1 }
 0x728   :  { %17975 = vmatprep.subr.bf16.mxu1 %v17974_v12 }
 0x72b   :  { %17977 = vmatpush3.bf16.msra.mxu1 %v17974_v12 }
 0x72c   :  { %17979 = vmatprep.subr.bf16.mxu1 %v17978_v50 }
 0x72e   :  { %17745 = vmatmul.mubr.msk.f32.vlgmr.msra.gmra.mrb[80].mxu1 %vm12697_vm2, %v18744_v17 }
 0x72f   :  { %17747 = vmatprep.mubr.msk.f32.mxu1 %vm12697_vm2, %v18745_v6  ;;  %17981 = vmatpush3.bf16.msra.mxu1 %v17978_v50 }
 0x730   :  { %17983 = vmatprep.subr.bf16.mxu1 %v17982_v49 }
 0x732   :  { %17748 = vmatmul.mubr.msk.f32.gmra.mrb[82].mxu1 %vm12697_vm2, %v18746_v48 }
 0x733   :  { %17985 = vmatpush3.bf16.msra.mxu1 %v17982_v49  ;;  %17766 = vmatprep.mubr.msk.f32.mxu1 %vm12697_vm2, %v18747_v45 }
 0x734   :  { %17987 = vmatprep.subr.bf16.mxu1 %v17986_v41 }
 0x737   :  { %17989 = vmatpush3.bf16.msra.mxu1 %v17986_v41 }
 0x738   :  { %17991 = vmatprep.subr.bf16.mxu1 %v17990_v7 }
 0x73b   :  { %17993 = vmatpush3.bf16.msra.mxu1 %v17990_v7 }
 0x73c   :  { %17995 = vmatprep.subr.bf16.mxu1 %v17994_v55 }
 0x73e   :  { %17767 = vmatmul.mubr.msk.f32.vlgmr.msra.gmra.mrb[80].mxu1 %vm12697_vm2, %v18748_v56 }
 0x73f   :  { %17769 = vmatprep.mubr.msk.f32.mxu1 %vm12697_vm2, %v18749_v38  ;;  %17997 = vmatpush3.bf16.msra.mxu1 %v17994_v55 }
 0x740   :  { %17999 = vmatprep.subr.bf16.mxu1 %v17998_v62 }
 0x742   :  { %17770 = vmatmul.mubr.msk.f32.gmra.mrb[82].mxu1 %vm12697_vm2, %v18750_v35 }
 0x743   :  { %18001 = vmatpush3.bf16.msra.mxu1 %v17998_v62  ;;  %17788 = vmatprep.mubr.msk.f32.mxu1 %vm12697_vm2, %v18751_v18 }
 0x744   :  { %18003 = vmatprep.subr.bf16.mxu1 %v18002_v42 }
 0x747   :  { %18005 = vmatpush3.bf16.msra.mxu1 %v18002_v42 }
 0x748   :  { %18007 = vmatprep.subr.bf16.mxu1 %v18006_v30 }
 0x74b   :  { %18009 = vmatpush3.bf16.msra.mxu1 %v18006_v30 }
 0x74e   :  { %17789 = vmatmul.mubr.msk.f32.vlgmr.msra.gmra.mrb[80].mxu1 %vm12697_vm2, %v18752_v21 }
 0x74f   :  { %17791 = vmatprep.mubr.msk.f32.mxu1 %vm12697_vm2, %v18753_v60 }
 0x752   :  { %17792 = vmatmul.mubr.msk.f32.gmra.mrb[82].mxu1 %vm12697_vm2, %v18754_v39 }
 0x821   :  { %v17790_v40 = vpop.f32.mrb[80].mxu1 }
 0x822   :  { %v13787_v32 = vadd.f32 %v17790_v40, %v15544_v36  ;;  %v13756_v20 = vpop.f32.mrb[81].mxu1 }
 0x823   :  { %v13786_v5 = vadd.f32 %v15544_v36, %v13756_v20 }
 0x824   :  { %vm13791_vm9 = vcmp.ge.f32.partialorder %v13787_v32, 0.0  ;;  %v13795_v52 = vmul.f32 0.01, %v13787_v32 }
 0x825   :  { %vm13790_vm5 = vcmp.ge.f32.partialorder %v13786_v5, 0.0  ;;  %v13794_v8 = vmul.f32 0.01, %v13786_v5  ;;  %v17793_v26 = vpop.f32.mrb[82].mxu1 }
 0x826   :  { %v13799_v54 = vsel %vm13791_vm9, %v13787_v32, %v13795_v52  ;;  %v13789_v59 = vadd.f32 %v17793_v26, %v15544_v36  ;;  %v13766_v27 = vpop.f32.mrb[83].mxu1  ;;  %vm14459_vm9 = vcmask 392192  }
 0x827   :  { %v13823_v34 = vcombine.high %v13799_v54, %v13799_v54  ;;  %v13830_v14 = vrot.slane %v13799_v54, %v20549_v29  ;;  %v13798_v3 = vsel %vm13790_vm5, %v13786_v5, %v13794_v8  ;;  %v13788_v23 = vadd.f32 %v15544_v36, %v13766_v27 }
 0x828   :  { %v13806_v19 = vcombine.high %v13798_v3, %v13798_v3  ;;  %v13813_v33 = vrot.slane %v13798_v3, %v20549_v29  ;;  %vm13793_vm6 = vcmp.ge.f32.partialorder %v13789_v59, 0.0  ;;  %v13797_v11 = vmul.f32 0.01, %v13789_v59 }
 0x829   :  { %v13837_v58 = vrot.slane %v13823_v34, %v20549_v29  ;;  %vm13792_vm13 = vcmp.ge.f32.partialorder %v13788_v23, 0.0  ;;  %v13796_v25 = vmul.f32 0.01, %v13788_v23  ;;  %v13838_v13 = vcombine.high %v13830_v14, %v13830_v14 }
 0x82a   :  { %v13820_v1 = vrot.slane %v13806_v19, %v20549_v29  ;;  %v13801_v31 = vsel %vm13793_vm6, %v13789_v59, %v13797_v11  ;;  %v13821_v12 = vcombine.high %v13813_v33, %v13813_v33  ;;  %v18794_v11 = vmov 1934713408  }
 0x82b   :  { %v13839_v16 = vcombine.high %v13837_v58, %v13837_v58  ;;  %v13892_v28 = vmax.f32 %v13830_v14, %v13837_v58  ;;  %v13857_v24 = vcombine.high %v13801_v31, %v13801_v31  ;;  %v13864_v10 = vrot.slane %v13801_v31, %v20549_v29 }
 0x82c   :  { %v13822_v47 = vcombine.high %v13820_v1, %v13820_v1  ;;  %v13890_v50 = vmax.f32 %v13813_v33, %v13820_v1  ;;  %v13800_v53 = vsel %vm13792_vm13, %v13788_v23, %v13796_v25  ;;  %v14083_v58 = vunpack.c.l.s4 %v18794_v11 }
 0x82d   :  { %v15547_v17 = vrot.slane %v13892_v28, 9  ;;  %v13871_v49 = vrot.slane %v13857_v24, %v20549_v29  ;;  %v13840_v6 = vcombine.high %v13800_v53, %v13800_v53  ;;  %v13847_v48 = vrot.slane %v13800_v53, %v20549_v29 }
 0x82e   :  { %v13891_v46 = vmax.f32 %v13821_v12, %v13822_v47  ;;  %v15545_v0 = vrot.slane %v13890_v50, 9  ;;  %v13893_v41 = vmax.f32 %v13838_v13, %v13839_v16  ;;  %v13872_v22 = vcombine.high %v13864_v10, %v13864_v10  ;;  %v22586_v12 = vld [vmem:[#allocation42_spill] sm:$0xff] }
 0x82f   :  { %v13873_v45 = vcombine.high %v13871_v49, %v13871_v49  ;;  %v13896_v9 = vmax.f32 %v13864_v10, %v13871_v49  ;;  %v13854_v63 = vrot.slane %v13840_v6, %v20549_v29  ;;  %v13855_v51 = vcombine.high %v13847_v48, %v13847_v48 }
 0x830   :  { %v15546_v7 = vrot.slane %v13891_v46, 9  ;;  %v13930_v4 = vmax.f32 %v13890_v50, %v15545_v0  ;;  %v15548_v55 = vrot.slane %v13893_v41, 9  ;;  %v13932_v62 = vmax.f32 %v13892_v28, %v15547_v17 }
 0x831   :  { %v13856_v44 = vcombine.high %v13854_v63, %v13854_v63  ;;  %v13894_v56 = vmax.f32 %v13847_v48, %v13854_v63  ;;  %v15551_v38 = vrot.slane %v13896_v9, 9  ;;  %v13897_v35 = vmax.f32 %v13872_v22, %v13873_v45 }
 0x832   :  { %v13931_v57 = vmax.f32 %v13891_v46, %v15546_v7  ;;  %v13933_v37 = vmax.f32 %v13893_v41, %v15548_v55  ;;  %v13949_v2 = vrot.slane %v13930_v4, %v20560_v43  ;;  %v13957_v39 = vrot.slane %v13932_v62, %v20560_v43 }
 0x833   :  { %v13895_v42 = vmax.f32 %v13855_v51, %v13856_v44  ;;  %v15549_v18 = vrot.slane %v13894_v56, 9  ;;  %v15552_v30 = vrot.slane %v13897_v35, 9  ;;  %v13936_v32 = vmax.f32 %v13896_v9, %v15551_v38 }
 0x834   :  { %v13953_v15 = vrot.slane %v13931_v57, %v20560_v43  ;;  %v13961_v36 = vrot.slane %v13933_v37, %v20560_v43  ;;  %v14084_v13 = vunpack.c.0.s8 %v14083_v58  ;;  %vm14461_vm5 = vcmask 424960  }
 0x835   :  { %v15550_v21 = vrot.slane %v13895_v42, 9  ;;  %v13934_v60 = vmax.f32 %v13894_v56, %v15549_v18  ;;  %v13937_v52 = vmax.f32 %v13897_v35, %v15552_v30  ;;  %v13973_v59 = vrot.slane %v13936_v32, %v20560_v43 }
 0x836   :  { %v13978_v40 = vsel %vm9623_vm10, %v13953_v15, %v13949_v2  ;;  %v22356_v24 = vsub.s32 %v14084_v13, %v22586_v12  ;;  %vm14463_vm6 = vcmask 457728   ;;  %vm14465_vm13 = vcmask 490496  }
 0x837   :  { %v13979_v20 = vsel %vm9625_vm11, %v13957_v39, %v13978_v40  ;;  %v13935_v5 = vmax.f32 %v13895_v42, %v15550_v21  ;;  %v13965_v26 = vrot.slane %v13934_v60, %v20560_v43  ;;  %v13977_v27 = vrot.slane %v13937_v52, %v20560_v43 }
 0x838   :  { %v13980_v8 = vsel %vm9627_vm12, %v13961_v36, %v13979_v20 }
 0x839   :  { %13986 = vxpose.xlu0.b32.start.end [1/1] (short) (narrow) %v13980_v8, 32  ;;  %v13969_v54 = vrot.slane %v13935_v5, %v20560_v43 }
 0x83b   :  { %v13981_v34 = vsel %vm9623_vm10, %v13969_v54, %v13965_v26  ;;  %vm14438_vm10 = vcmask 31744  }
 0x83c   :  { %v13982_v14 = vsel %vm9625_vm11, %v13973_v59, %v13981_v34  ;;  %vm14440_vm11 = vcmask 64512  }
 0x83d   :  { %v13983_v3 = vsel %vm9627_vm12, %v13977_v27, %v13982_v14  ;;  %vm14442_vm12 = vcmask 97280  }
 0x846   :  { %14018 = vxpose.xlu0.b32.start.end [1/1] (short) (narrow) %v13983_v3, 32 }
 0x8b9   :  { %v14002_v23 = vpop.trf.xlu0 }
 0x8ba   :  { %v14050_v1 = vcombine.high %v14002_v23, %v22585_v61  ;;  %v14057_v43 = vrot.slane %v14002_v23, %v20549_v29 }
 0x8bc   :  { %v14064_v47 = vrot.slane %v14050_v1, %v20549_v29 }
 0x8bd   :  { %v22347_v19 = vpop.trf.xlu0 }
 0x8be   :  { %v14123_v39 = vrot.slane %v22347_v19, %v20549_v29  ;;  %v14116_v14 = vcombine.high %v22347_v19, %v22585_v61 }
 0x8c0   :  { %v14130_v11 = vrot.slane %v14116_v14, %v20549_v29 }
 0x8c1   :  { %v22349_v33 = vpop.trf.xlu0 }
 0x8c2   :  { %v14182_v0 = vcombine.high %v22349_v33, %v22585_v61 }
 0x8c4   :  { %v14196_v63 = vrot.slane %v14182_v0, %v20549_v29 }
 0x8c5   :  { %v14005_v25 = vpop.trf.xlu0 }
 0x8c6   :  { %v14255_v38 = vrot.slane %v14005_v25, %v20549_v29  ;;  %v14248_v18 = vcombine.high %v14005_v25, %v22585_v61 }
 0x8c8   :  { %v14262_v36 = vrot.slane %v14248_v18, %v20549_v29 }
 0x8c9   :  { %v14034_v31 = vpop.trf.xlu0 }
 0x8ca   :  { %v14065_v16 = vcombine.high %v14034_v31, %v22585_v61  ;;  %v14072_v28 = vrot.slane %v14034_v31, %v20549_v29 }
 0x8cc   :  { %v14079_v50 = vrot.slane %v14065_v16, %v20549_v29  ;;  %v14080_v10 = vcombine.low %v14057_v43, %v14072_v28  ;;  %v14081_v53 = vcombine.high %v14057_v43, %v14072_v28  ;;  %v14189_v16 = vrot.slane %v22349_v33, %v20549_v29 }
 0x8cd   :  { %v22360_v17 = vpop.trf.xlu0 }
 0x8ce   :  { %v14097_v49 = vcombine.high %v14064_v47, %v14079_v50  ;;  %v22363_v6 = vrot.slane %v14080_v10, %v22356_v24  ;;  %v14095_v46 = vrot.slane %v14081_v53, %v22356_v24  ;;  %v14096_v55 = vcombine.low %v14064_v47, %v14079_v50 }
 0x8cf   :  { %v14138_v2 = vrot.slane %v22360_v17, %v20549_v29  ;;  %v14131_v59 = vcombine.high %v22360_v17, %v22585_v61 }
 0x8d0   :  { %v14111_v48 = vrot.slane %v14097_v49, %v22356_v24  ;;  %14319 = vrot.lane.b32.xlu1 %v14095_v46, %s18795_s6  ;;  %v14112_v9 = vcombine.high %v22363_v6, %v22585_v61  ;;  %v14113_v51 = vcombine.high %v14095_v46, %v22585_v61  ;;  %v14104_v57 = vrot.slane %v14096_v55, %v22356_v24  ;;  %s18825_s6 = smov 124  }
 0x8d1   :  { %v22369_v41 = vpop.trf.xlu0  ;;  %v14146_v40 = vcombine.low %v14123_v39, %v14138_v2  ;;  %v14147_v52 = vcombine.high %v14123_v39, %v14138_v2  ;;  %v14145_v3 = vrot.slane %v14131_v59, %v20549_v29 }
 0x8d2   :  { %v14197_v45 = vcombine.high %v22369_v41, %v22585_v61  ;;  %14335 = vrot.lane.b32.xlu0 %v14111_v48, %s18796_s15  ;;  %v14114_v15 = vcombine.high %v14104_v57, %v22585_v61  ;;  %v14115_v32 = vcombine.high %v14111_v48, %v22585_v61  ;;  %v14204_v31 = vrot.slane %v22369_v41, %v20549_v29  ;;  %s18826_s15 = smov [#allocation5]  }
 0x8d3   :  { %v14154_v8 = vrot.slane %v14146_v40, %v22356_v24  ;;  %v14161_v27 = vrot.slane %v14147_v52, %v22356_v24  ;;  %v14162_v58 = vcombine.low %v14130_v11, %v14145_v3  ;;  %v14163_v13 = vcombine.high %v14130_v11, %v14145_v3 }
 0x8d4   :  { %v14211_v7 = vrot.slane %v14197_v45, %v20549_v29  ;;  %14315 = vrot.lane.b32.xlu1 %v14112_v9, %s18797_s16  ;;  %v14212_v28 = vcombine.low %v14189_v16, %v14204_v31  ;;  %v14213_v47 = vcombine.high %v14189_v16, %v14204_v31  ;;  %s14505_s16 = sshll.u32 %s18826_s15, 4  ;;  %s14506_s16 = int_to_ptr.vmem [resolvable:$true] %s14505_s16 }
 0x8d5   :  { %v14037_v4 = vpop.trf.xlu0  ;;  %v14178_v23 = vcombine.high %v14154_v8, %v22585_v61  ;;  %v14179_v25 = vcombine.high %v14161_v27, %v22585_v61  ;;  %v14170_v19 = vrot.slane %v14162_v58, %v22356_v24  ;;  %v14177_v1 = vrot.slane %v14163_v13, %v22356_v24  ;;  %p18773_p1 = scmp.lt.s32.totalorder %s14506_s16, %s14506_s16 }
 0x8d6   :  { %v14228_v22 = vcombine.low %v14196_v63, %v14211_v7  ;;  %v14229_v44 = vcombine.high %v14196_v63, %v14211_v7  ;;  %v14270_v56 = vrot.slane %v14037_v4, %v20549_v29  ;;  %v14263_v37 = vcombine.high %v14037_v4, %v22585_v61 }
 0x8d7   :  { %v14180_v43 = vcombine.high %v14170_v19, %v22585_v61  ;;  %v14181_v12 = vcombine.high %v14177_v1, %v22585_v61  ;;  %v14220_v50 = vrot.slane %v14212_v28, %v22356_v24  ;;  %v14227_v10 = vrot.slane %v14213_v47, %v22356_v24 }
 0x8d8   :  { %v22380_v62 = vrot.slane %v14228_v22, %v22356_v24  ;;  %14323 = vrot.lane.b32.xlu1 %v14113_v51, %s18798_s17  ;;  %v14278_v35 = vcombine.low %v14255_v38, %v14270_v56  ;;  %v22387_v42 = vrot.slane %v14229_v44, %v22356_v24  ;;  %v14277_v30 = vrot.slane %v14263_v37, %v20549_v29  ;;  %s18768_s17 = scalar_lea.vmem %s14506_s16, 32 }
 0x8d9   :  { %v14279_v21 = vcombine.high %v14255_v38, %v14270_v56  ;;  %v14244_v53 = vcombine.high %v14220_v50, %v22585_v61  ;;  %v14245_v29 = vcombine.high %v14227_v10, %v22585_v61  ;;  %p18769_p0 = scmp.ne.s32.totalorder %s14506_s16, %s18768_s17  ;;  %p18774_p2 = scmp.lt.s32.totalorder %s18768_s17, %s18768_s17 }
 0x8da   :  { %14391 = vrot.lane.b32.xlu0 %v22380_v62, %s18799_s18  ;;  %v22396_v60 = vrot.slane %v14278_v35, %v22356_v24  ;;  %v14294_v20 = vcombine.low %v14262_v36, %v14277_v30  ;;  %v14295_v26 = vcombine.high %v14262_v36, %v14277_v30  ;;  %v14246_v33 = vcombine.high %v22380_v62, %v22585_v61 }
 0x8db   :  { %v22404_v5 = vrot.slane %v14279_v21, %v22356_v24  ;;  %v14247_v17 = vcombine.high %v22387_v42, %v22585_v61  ;;  %p18775_p3 = por %p18774_p2, %p18773_p1 }
 0x8dc   :  { %14327 = vrot.lane.b32.xlu1 %v14104_v57, %s18800_s19  ;;  %v22409_v54 = vrot.slane %v14294_v20, %v22356_v24  ;;  %v14309_v34 = vrot.slane %v14295_v26, %v22356_v24  ;;  %v14310_v24 = vcombine.high %v22396_v60, %v22585_v61 }
 0x8dd   :  { %v14311_v49 = vcombine.high %v22404_v5, %v22585_v61  ;;  %p18776_p4 = pnand %p18775_p3, %p18769_p0 }
 0x8de   :  { %14399 = vrot.lane.b32.xlu0 %v22387_v42, %s18801_s20  ;;  %v14312_v46 = vcombine.high %v22409_v54, %v22585_v61  ;;  %v14313_v0 = vcombine.high %v14309_v34, %v22585_v61 }
 0x8e0   :  { %14331 = vrot.lane.b32.xlu1 %v14114_v15, %s18802_s21 }
 0x8e2   :  { %14407 = vrot.lane.b32.xlu0 %v22396_v60, %s18803_s0 }
 0x8e4   :  { %14339 = vrot.lane.b32.xlu1 %v14115_v32, %s18804_s2 }
 0x8e6   :  { %14415 = vrot.lane.b32.xlu0 %v22404_v5, %s18805_s22 }
 0x8e8   :  { %14343 = vrot.lane.b32.xlu1 %v14154_v8, %s18806_s23 }
 0x8ea   :  { %14423 = vrot.lane.b32.xlu0 %v22409_v54, %s18807_s24 }
 0x8ec   :  { %14351 = vrot.lane.b32.xlu1 %v14161_v27, %s18808_s25 }
 0x8ee   :  { %14431 = vrot.lane.b32.xlu0 %v14309_v34, %s18809_s26 }
 0x8f0   :  { %14347 = vrot.lane.b32.xlu1 %v14178_v23, %s18810_s27 }
 0x8f4   :  { %14355 = vrot.lane.b32.xlu1 %v14179_v25, %s18811_s28 }
 0x8f8   :  { %14359 = vrot.lane.b32.xlu1 %v14170_v19, %s18812_s29 }
 0x8fc   :  { %14367 = vrot.lane.b32.xlu1 %v14177_v1, %s18813_s30 }
 0x900   :  { %14363 = vrot.lane.b32.xlu1 %v14180_v43, %s18814_s8 }
 0x904   :  { %14371 = vrot.lane.b32.xlu1 %v14181_v12, %s18815_s9 }
 0x908   :  { %14375 = vrot.lane.b32.xlu1 %v14220_v50, %s18816_s3 }
 0x90c   :  { %14383 = vrot.lane.b32.xlu1 %v14227_v10, %s18817_s4 }
 0x910   :  { %14379 = vrot.lane.b32.xlu1 %v14244_v53, %s18818_s1 }
 0x914   :  { %14387 = vrot.lane.b32.xlu1 %v14245_v29, %s18819_s10 }
 0x918   :  { %14395 = vrot.lane.b32.xlu1 %v14246_v33, %s18820_s11 }
 0x91c   :  { %14403 = vrot.lane.b32.xlu1 %v14247_v17, %s18821_s12 }
 0x920   :  { %14411 = vrot.lane.b32.xlu1 %v14310_v24, %s18822_s13 }
 0x924   :  { %14419 = vrot.lane.b32.xlu1 %v14311_v49, %s18823_s5 }
 0x928   :  { %14427 = vrot.lane.b32.xlu1 %v14312_v46, %s18824_s14 }
 0x92c   :  { %14435 = vrot.lane.b32.xlu1 %v14313_v0, %s18825_s6 }
 0x942   :  { %v14320_v48 = vpop.permute.xlu1 %14319 }
 0x944   :  { %v14336_v42 = vpop.permute.xlu0 %14335 }
 0x946   :  { %v14316_v41 = vpop.permute.xlu1 %14315 }
 0x947   :  { %v14439_v56 = vsel %vm14438_vm10, %v22363_v6, %v14316_v41  ;;  %vm14468_vm10 = vcmask 556032  }
 0x948   :  { %v14441_v61 = vsel %vm14440_vm11, %v14439_v56, %v14320_v48  ;;  %vm14472_vm11 = vcmask 621568  }
 0x94a   :  { %v14324_v45 = vpop.permute.xlu1 %14323 }
 0x94b   :  { %v14443_v38 = vsel %vm14442_vm12, %v14441_v61, %v14324_v45  ;;  %vm14474_vm12 = vcmask 654336  }
 0x94c   :  { %v14392_v20 = vpop.permute.xlu0 %14391 }
 0x94e   :  { %v14328_v9 = vpop.permute.xlu1 %14327 }
 0x94f   :  { %v14445_v57 = vsel %vm14444_vm14, %v14443_v38, %v14328_v9  ;;  %vm14476_vm14 = vcmask 687104  }
 0x950   :  { %v14400_v59 = vpop.permute.xlu0 %14399 }
 0x952   :  { %v14332_v63 = vpop.permute.xlu1 %14331 }
 0x953   :  { %v14447_v37 = vsel %vm14446_vm15, %v14445_v57, %v14332_v63  ;;  %vm14478_vm15 = vcmask 719872  }
 0x954   :  { %v14449_v18 = vsel %vm14448_vm0, %v14447_v37, %v14336_v42  ;;  %v14408_v11 = vpop.permute.xlu0 %14407  ;;  %vm14480_vm0 = vcmask 752640  }
 0x956   :  { %v14340_v7 = vpop.permute.xlu1 %14339 }
 0x957   :  { %v14451_v2 = vsel %vm14450_vm7, %v14449_v18, %v14340_v7  ;;  %vm14484_vm7 = vcmask 818176  }
 0x958   :  { %v14416_v1 = vpop.permute.xlu0 %14415 }
 0x95a   :  { %v14344_v4 = vpop.permute.xlu1 %14343 }
 0x95b   :  { %v14452_v15 = vsel %vm8938_vm4, %v14451_v2, %v14344_v4  ;;  %vm14470_vm4 = vcmask 588800  }
 0x95c   :  { %v14424_v47 = vpop.permute.xlu0 %14423 }
 0x95e   :  { %v14352_v22 = vpop.permute.xlu1 %14351 }
 0x960   :  { %v14432_v33 = vpop.permute.xlu0 %14431 }
 0x962   :  { %v14348_v55 = vpop.permute.xlu1 %14347 }
 0x963   :  { %v14454_v6 = vsel %vm14453_vm8, %v14452_v15, %v14348_v55  ;;  %vm14486_vm8 = vcmask 850944  }
 0x964   :  { %v14456_v21 = vsel %vm14455_vm1, %v14454_v6, %v14352_v22  ;;  %vm14488_vm1 = vcmask 883712  }
 0x966   :  { %v14356_v51 = vpop.permute.xlu1 %14355 }
 0x967   :  { %v14458_v39 = vsel %vm14457_vm3, %v14456_v21, %v14356_v51  ;;  %vm14490_vm3 = vcmask 916480  }
 0x96a   :  { %v14360_v44 = vpop.permute.xlu1 %14359 }
 0x96b   :  { %v14460_v36 = vsel %vm14459_vm9, %v14458_v39, %v14360_v44  ;;  %vm14492_vm9 = vcmask 949248  }
 0x96e   :  { %v14368_v62 = vpop.permute.xlu1 %14367 }
 0x972   :  { %v14364_v35 = vpop.permute.xlu1 %14363 }
 0x973   :  { %v14462_v40 = vsel %vm14461_vm5, %v14460_v36, %v14364_v35  ;;  %vm14494_vm5 = vcmask 982016  }
 0x974   :  { %v14464_v5 = vsel %vm14463_vm6, %v14462_v40, %v14368_v62  ;;  %vm14496_vm6 = vcmask 1014784  }
 0x976   :  { %v14372_v30 = vpop.permute.xlu1 %14371 }
 0x977   :  { %v14466_v52 = vsel %vm14465_vm13, %v14464_v5, %v14372_v30 }
 0x97a   :  { %v14376_v60 = vpop.permute.xlu1 %14375 }
 0x97b   :  { %v14467_v8 = vsel %vm12697_vm2, %v14466_v52, %v14376_v60  ;;  %vm14482_vm2 = vcmask 785408  }
 0x97e   :  { %v14384_v32 = vpop.permute.xlu1 %14383 }
 0x982   :  { %v14380_v26 = vpop.permute.xlu1 %14379 }
 0x983   :  { %v14469_v54 = vsel %vm14468_vm10, %v14467_v8, %v14380_v26 }
 0x984   :  { %v14471_v34 = vsel %vm14470_vm4, %v14469_v54, %v14384_v32 }
 0x986   :  { %v14388_v27 = vpop.permute.xlu1 %14387 }
 0x987   :  { %v14473_v14 = vsel %vm14472_vm11, %v14471_v34, %v14388_v27 }
 0x988   :  { %v14475_v23 = vsel %vm14474_vm12, %v14473_v14, %v14392_v20 }
 0x98a   :  { %v14396_v3 = vpop.permute.xlu1 %14395 }
 0x98b   :  { %v14477_v58 = vsel %vm14476_vm14, %v14475_v23, %v14396_v3 }
 0x98c   :  { %v14479_v13 = vsel %vm14478_vm15, %v14477_v58, %v14400_v59 }
 0x98e   :  { %v14404_v25 = vpop.permute.xlu1 %14403 }
 0x98f   :  { %v14481_v19 = vsel %vm14480_vm0, %v14479_v13, %v14404_v25 }
 0x990   :  { %v14483_v43 = vsel %vm14482_vm2, %v14481_v19, %v14408_v11 }
 0x992   :  { %v14412_v31 = vpop.permute.xlu1 %14411 }
 0x993   :  { %v14485_v16 = vsel %vm14484_vm7, %v14483_v43, %v14412_v31 }
 0x994   :  { %v14487_v12 = vsel %vm14486_vm8, %v14485_v16, %v14416_v1 }
 0x996   :  { %v14420_v28 = vpop.permute.xlu1 %14419 }
 0x997   :  { %v14489_v50 = vsel %vm14488_vm1, %v14487_v12, %v14420_v28 }
 0x998   :  { %v14491_v53 = vsel %vm14490_vm3, %v14489_v50, %v14424_v47 }
 0x99a   :  { %v14428_v10 = vpop.permute.xlu1 %14427 }
 0x99b   :  { %v14493_v29 = vsel %vm14492_vm9, %v14491_v53, %v14428_v10 }
 0x99c   :  { %v14495_v24 = vsel %vm14494_vm5, %v14493_v29, %v14432_v33 }
 0x99e   :  { %v14436_v17 = vpop.permute.xlu1 %14435 }
 0x99f   :  { %v14497_v49 = vsel %vm14496_vm6, %v14495_v24, %v14436_v17 }
 0x9a0   :  { %14498 = vst [vmem:[#allocation5] sm:$0x3] %v14497_v49 }
 0x9a1   :  { %18779 = shalt.err (!%p18776_p4)
}
 0x9a2   :  { %s18780_s20 = scalar_lea.hbm %s22467_s7, 32 }
 0x9a3   :  { %p18781_p5 = scmp.ne.s32.totalorder %s22467_s7, %s18780_s20  ;;  %p18784_p6 = scmp.lt.u32.totalorder %s18780_s20, %s22467_s7 }
 0x9a5   :  { %p18786_p7 = pnand %p18784_p6, %p18781_p5 }
 0x9a7   :  { %18789 = shalt.err (!%p18786_p7)
}
 0x9a8   :  { %14508 = dma.vmem_to_hbm [thread:$0]  %s14506_s16, 32, %s22467_s7, [#allocation6]  }
 0x9a9   :  { %18790 = dma.done.wait [#allocation6], 32  }
 0x9aa   :  { %18791 = vsyncadd [#allocation6], 4294967264 }
 0x9ab   :  { %14512 = vsyncpa [#allocation6], 1 }

</bundles_post_ra>
